<compile_context>
chip_gen: v7x
topology: tpu7x:2x2x1
jax: 0.10.0
libtpu: 0.0.40
codegen_flags: <defaults>
</compile_context>

<pallas_src>
import math

import jax
import jax.numpy as jnp
from jax.experimental import pallas as pl
from jax.experimental.pallas import tpu as pltpu


def _round_up(x, m):
    return ((x + m - 1) // m) * m


# -----------------------------------------------------------------------------
# Pallas kernels
# -----------------------------------------------------------------------------
def _conv_bn_silu_kernel(a_ref, w_ref, shift_ref, o_ref):
    """Fused: (im2col patches, bf16) @ W_bnfolded (bf16) -> +shift -> SiLU -> bf16 store."""
    acc = jnp.dot(a_ref[...], w_ref[...], preferred_element_type=jnp.float32)
    y = acc + shift_ref[...]
    o_ref[...] = (y * jax.nn.sigmoid(y)).astype(o_ref.dtype)  # SiLU, f32 math, bf16 out


def conv_bn_silu_matmul(patches, w_mat, shift):
    """patches: (M, K) bf16, w_mat: (K, N) bf16 (BN scale pre-folded), shift: (1, N) f32.
    Returns (M, N) bf16."""
    M, K = patches.shape
    N = w_mat.shape[1]
    tm = min(4096, _round_up(M, 8))
    Mpad = _round_up(M, tm)
    if Mpad != M:
        patches = jnp.pad(patches, ((0, Mpad - M), (0, 0)))
    cost = pl.CostEstimate(
        flops=2 * Mpad * K * N,
        transcendentals=Mpad * N,
        bytes_accessed=Mpad * K * 2 + K * N * 2 + N * 4 + Mpad * N * 2,
    )
    out = pl.pallas_call(
        _conv_bn_silu_kernel,
        out_shape=jax.ShapeDtypeStruct((Mpad, N), jnp.bfloat16),
        grid=(Mpad // tm,),
        in_specs=[
            pl.BlockSpec((tm, K), lambda i: (i, 0)),
            pl.BlockSpec((K, N), lambda i: (0, 0)),
            pl.BlockSpec((1, N), lambda i: (0, 0)),
        ],
        out_specs=pl.BlockSpec((tm, N), lambda i: (i, 0)),
        compiler_params=pltpu.CompilerParams(
            dimension_semantics=("parallel",),
            vmem_limit_bytes=32 * 1024 * 1024,
        ),
        cost_estimate=cost,
    )(patches, w_mat, shift)
    return out[:M]


def _detect_kernel(lvl_ref, x_ref, w_ref, const_ref, gx_ref, gy_ref,
                   logit_ref, dec_ref):
    """Fused Detect for all 3 levels.  Per-tile level id (scalar prefetch) selects the
    level's weight slab and constant rows via the index_maps; this body only computes:
        logits = x @ W_level + bias_level
        sig    = sigmoid(logits)
        dec    = (a_lin + a_quad*sig)*sig + gx*is_x + gy*is_y     (YOLO xy/wh/conf decode)
    """
    del lvl_ref  # consumed by the index_maps only
    c = const_ref[...]                       # (8, Npad) f32 level-constant rows
    bias, alin, aquad = c[0:1, :], c[1:2, :], c[2:3, :]
    is_x, is_y = c[3:4, :], c[4:5, :]
    logits = jnp.dot(x_ref[...], w_ref[...],
                     preferred_element_type=jnp.float32) + bias
    logit_ref[...] = logits.astype(logit_ref.dtype)
    sig = jax.nn.sigmoid(logits)
    gadd = gx_ref[...] * is_x + gy_ref[...] * is_y
    dec_ref[...] = (alin + aquad * sig) * sig + gadd


def detect_fused(lvl_ids, x_cat, w_stack, const_tbl, gx, gy, tm):
    """lvl_ids: (n_tiles,) i32 scalar-prefetch; x_cat: (Mpad, Kd) bf16;
    w_stack: (3, Kd, Npad) bf16; const_tbl: (3, 8, Npad) f32; gx/gy: (Mpad, 1) f32."""
    n_tiles = lvl_ids.shape[0]
    Mpad, Kd = x_cat.shape
    Npad = w_stack.shape[2]
    cost = pl.CostEstimate(
        flops=2 * Mpad * Kd * Npad,
        transcendentals=Mpad * Npad,
        bytes_accessed=(Mpad * Kd * 2 + int(w_stack.size) * 2 + int(const_tbl.size) * 4
                        + 2 * Mpad * 4 + Mpad * Npad * (2 + 4)),
    )
    grid_spec = pltpu.PrefetchScalarGridSpec(
        num_scalar_prefetch=1,
        grid=(n_tiles,),
        in_specs=[
            pl.BlockSpec((tm, Kd), lambda i, lvl: (i, 0)),
            pl.BlockSpec((None, Kd, Npad), lambda i, lvl: (lvl[i], 0, 0)),
            pl.BlockSpec((None, 8, Npad), lambda i, lvl: (lvl[i], 0, 0)),
            pl.BlockSpec((tm, 1), lambda i, lvl: (i, 0)),
            pl.BlockSpec((tm, 1), lambda i, lvl: (i, 0)),
        ],
        out_specs=(
            pl.BlockSpec((tm, Npad), lambda i, lvl: (i, 0)),
            pl.BlockSpec((tm, Npad), lambda i, lvl: (i, 0)),
        ),
    )
    return pl.pallas_call(
        _detect_kernel,
        out_shape=(jax.ShapeDtypeStruct((Mpad, Npad), jnp.bfloat16),   # raw logits
                   jax.ShapeDtypeStruct((Mpad, Npad), jnp.float32)),   # decoded boxes
        grid_spec=grid_spec,
        compiler_params=pltpu.CompilerParams(
            dimension_semantics=("parallel",),
            vmem_limit_bytes=32 * 1024 * 1024,
        ),
        cost_estimate=cost,
    )(lvl_ids, x_cat, w_stack, const_tbl, gx, gy)


# -----------------------------------------------------------------------------
# Host-side glue
# -----------------------------------------------------------------------------
def im2col_k3_s2_p1(x_nhwc):
    """3x3 / stride 2 / pad 1 patch extraction (bf16 in, bf16 out).
    Returns (B*Ho*Wo, 9*C), Ho, Wo.  K ordering is (ky, kx, c)."""
    B, H, W, C = x_nhwc.shape
    Ho, Wo = H // 2, W // 2
    xp = jnp.pad(x_nhwc, ((0, 0), (1, 1), (1, 1), (0, 0)))
    cols = []
    for dy in range(3):
        for dx in range(3):
            cols.append(xp[:, dy::2, dx::2, :][:, :Ho, :Wo, :])
    patches = jnp.stack(cols, axis=3)                 # (B, Ho, Wo, 9, C)
    return patches.reshape(B * Ho * Wo, 9 * C), Ho, Wo


class DetectionModelPallas:
    """Reduced DetectionModel:
         backbone: 4 x Conv(k=3, s=2) (conv + BN + SiLU)  -> channels [8, 16, 32, 64]
         head    : Detect(nc, anchors, ch=[16, 32, 64]) taken from layers [1, 2, 3]
       Strides (as computed by DetectionModel.__init__ with a 256-input probe): [4, 8, 16].
    """

    def __init__(self, ch=3, nc=4, key=jax.random.PRNGKey(42)):
        self.nc = nc
        self.no = nc + 5
        self.na = 3
        self.nl = 3
        self.chs = [8, 16, 32, 64]
        self.strides = [4.0, 8.0, 16.0]
        self.n_det = self.na * self.no            # 27 real detect columns
        self.n_pad = 128                          # lane-dense detect output width
        # anchors in pixels (areas increase with stride -> check_anchor_order is a no-op)
        anchors_px = jnp.array(
            [[[10., 13.], [16., 30.], [33., 23.]],
             [[30., 61.], [62., 45.], [59., 119.]],
             [[116., 90.], [156., 198.], [373., 326.]]], dtype=jnp.float32)
        self.anchors_px = anchors_px   # m.anchors/stride * stride == anchors_px again

        # --- backbone params (deterministic); BN scale folded into the weight matrix ---
        keys = jax.random.split(key, 16)
        self.conv_w_mat, self.conv_shift = [], []
        c_prev = ch
        eps = 1e-3
        bn_scale = 1.0 / math.sqrt(1.0 + eps)     # gamma=1, var=1, eps=1e-3
        bn_shift = 0.0                            # beta=0, mean=0
        for l, c_out in enumerate(self.chs):
            w = jax.random.normal(keys[l], (c_out, c_prev, 3, 3), jnp.float32)
            w = w * (1.0 / math.sqrt(c_prev * 9))
            # weight laid out to match patch K-order (ky, kx, c_in); BN scale folded in
            w_mat = jnp.transpose(w, (2, 3, 1, 0)).reshape(9 * c_prev, c_out) * bn_scale
            self.conv_w_mat.append(w_mat.astype(jnp.bfloat16))
            self.conv_shift.append(jnp.full((1, c_out), bn_shift, jnp.float32))
            c_prev = c_out

        # --- Detect params: per-level weight stack + per-level constant table ---
        N, Npad = self.n_det, self.n_pad
        det_chs = [self.chs[1], self.chs[2], self.chs[3]]
        self.det_chs = det_chs
        self.det_kd = max(det_chs)                # 64: per-level K, no block-diag padding

        cols = jnp.arange(Npad)
        c_idx = cols % self.no
        a_idx = jnp.clip(cols // self.no, 0, self.na - 1)
        valid = (cols < N).astype(jnp.float32)
        is_x, is_y = (c_idx == 0), (c_idx == 1)
        is_w, is_h = (c_idx == 2), (c_idx == 3)
        is_conf = (c_idx >= 4)

        w_stack = jnp.zeros((self.nl, self.det_kd, Npad), jnp.float32)
        const_tbl = jnp.zeros((self.nl, 8, Npad), jnp.float32)
        for i, c_in in enumerate(det_chs):
            w = jax.random.normal(keys[8 + i], (c_in, N), jnp.float32) * 0.01
            w_stack = w_stack.at[i, :c_in, :N].set(w)
            s = self.strides[i]
            # _initialize_biases
            b = jnp.zeros((self.na, self.no), jnp.float32)
            b = b.at[:, 4].add(math.log(8.0 / (640.0 / s) ** 2))
            b = b.at[:, 5:5 + nc].add(math.log(0.6 / (nc - 0.99999)))
            bias_row = jnp.concatenate([b.reshape(N), jnp.zeros((Npad - N,), jnp.float32)])
            # decode coefficients: dec = (a_lin + a_quad*sig)*sig + gx*is_x + gy*is_y
            alin = jnp.where(is_x | is_y, 2.0 * s,
                             jnp.where(is_conf, 1.0, 0.0)) * valid
            aquad = (jnp.where(is_w, anchors_px[i, a_idx, 0], 0.0)
                     + jnp.where(is_h, anchors_px[i, a_idx, 1], 0.0)) * 4.0 * valid
            const_tbl = const_tbl.at[i, 0].set(bias_row)
            const_tbl = const_tbl.at[i, 1].set(alin)
            const_tbl = const_tbl.at[i, 2].set(aquad)
            const_tbl = const_tbl.at[i, 3].set(is_x.astype(jnp.float32) * valid)
            const_tbl = const_tbl.at[i, 4].set(is_y.astype(jnp.float32) * valid)
        self.det_w_stack = w_stack.astype(jnp.bfloat16)
        self.det_const_tbl = const_tbl

        self._jit_forward = jax.jit(self._forward_impl)

    # -------------------------------------------------------------------------
    def forward(self, x_nchw):
        """Inference-mode forward (BaseModel._forward_once, eval path).
        Returns (pred_all_outputs, pred_per_feature_map, feature_maps)."""
        return self._jit_forward(x_nchw)

    def _forward_impl(self, x_nchw):
        x = jnp.transpose(x_nchw, (0, 2, 3, 1)).astype(jnp.bfloat16)  # NHWC bf16
        B = x.shape[0]

        # ---- backbone: Conv(k3,s2) + folded BN + SiLU, one Pallas call per layer ----
        feats = []
        for l, c_out in enumerate(self.chs):
            patches, Ho, Wo = im2col_k3_s2_p1(x)
            out = conv_bn_silu_matmul(patches, self.conv_w_mat[l], self.conv_shift[l])
            x = out.reshape(B, Ho, Wo, c_out)
            feats.append(x)

        det_feats = [feats[1], feats[2], feats[3]]
        shapes = [(f.shape[1], f.shape[2]) for f in det_feats]
        Ms = [B * ny * nx for (ny, nx) in shapes]
        tm = 256
        Kd, Npad = self.det_kd, self.n_pad

        # Each level's rows are padded to a multiple of tm so no tile straddles levels
        # (required for the per-tile level-id constant selection); total tile count is
        # forced even so the v7x 2-TC parallel grid split is balanced.
        tiles = [max(1, -(-Mi // tm)) for Mi in Ms]
        if sum(tiles) % 2 == 1:
            tiles[-1] += 1
        n_tiles = sum(tiles)

        x_rows, gx_rows, gy_rows, lvl_list = [], [], [], []
        for i, f in enumerate(det_feats):
            ny, nx = shapes[i]
            Mi = Ms[i]
            Ci = f.shape[3]
            Mi_pad = tiles[i] * tm
            xf = f.reshape(Mi, Ci)                                    # bf16
            x_rows.append(jnp.pad(xf, ((0, Mi_pad - Mi), (0, Kd - Ci))))
            s = self.strides[i]
            yv, xv = jnp.meshgrid(jnp.arange(ny, dtype=jnp.float32),
                                  jnp.arange(nx, dtype=jnp.float32), indexing="ij")
            gx = jnp.broadcast_to(((xv - 0.5) * s)[None], (B, ny, nx)).reshape(Mi, 1)
            gy = jnp.broadcast_to(((yv - 0.5) * s)[None], (B, ny, nx)).reshape(Mi, 1)
            gx_rows.append(jnp.pad(gx, ((0, Mi_pad - Mi), (0, 0))))
            gy_rows.append(jnp.pad(gy, ((0, Mi_pad - Mi), (0, 0))))
            lvl_list += [i] * tiles[i]

        x_cat = jnp.concatenate(x_rows, axis=0)
        gx_cat = jnp.concatenate(gx_rows, axis=0)
        gy_cat = jnp.concatenate(gy_rows, axis=0)
        lvl_ids = jnp.asarray(lvl_list, dtype=jnp.int32)

        logits_full, dec_full = detect_fused(
            lvl_ids, x_cat, self.det_w_stack, self.det_const_tbl, gx_cat, gy_cat, tm)

        # ---- split back into per-level outputs ----
        z, per_map = [], []
        row = 0
        for i in range(self.nl):
            ny, nx = shapes[i]
            Mi = Ms[i]
            lg = logits_full[row:row + Mi, :self.n_det].astype(jnp.float32)
            dc = dec_full[row:row + Mi, :self.n_det]
            row += tiles[i] * tm
            # raw per-level output, matches torch x[i]: (bs, na, ny, nx, no)
            xi = jnp.transpose(lg.reshape(B, ny, nx, self.na, self.no), (0, 3, 1, 2, 4))
            per_map.append(xi)
            # decoded, flattened in (na, ny, nx) order, plus level-index column
            y = jnp.transpose(dc.reshape(B, ny, nx, self.na, self.no), (0, 3, 1, 2, 4))
            y = y.reshape(B, self.na * ny * nx, self.no)
            y = jnp.concatenate(
                [y, jnp.full((B, y.shape[1], 1), float(i), jnp.float32)], axis=2)
            z.append(y)

        pred_all = jnp.concatenate(z, axis=1)
        feature_maps = [jnp.transpose(f, (0, 3, 1, 2)).astype(jnp.float32)
                        for f in det_feats]                           # back to NCHW f32
        return pred_all, per_map, feature_maps


# -----------------------------------------------------------------------------
if __name__ == "__main__":
    key = jax.random.PRNGKey(0)
    x = jax.random.normal(key, (2, 3, 64, 64), jnp.float32)  # NCHW like PyTorch

    model = DetectionModelPallas(ch=3, nc=4)
    pred_all, per_map, feature_maps = model.forward(x)

    jax.block_until_ready(pred_all)
    for t in per_map:
        jax.block_until_ready(t)
    for t in feature_maps:
        jax.block_until_ready(t)

    # sanity: pred_all is (B, na*(16*16+8*8+4*4), no+1) = (2, 1008, 10)
    assert pred_all.shape == (2, 3 * (16 * 16 + 8 * 8 + 4 * 4), model.no + 1)
    assert per_map[0].shape == (2, 3, 16, 16, model.no)
    assert feature_maps[0].shape == (2, 16, 16, 16)
    assert bool(jnp.all(jnp.isfinite(pred_all)))

    print("KERNEL_OK")
</pallas_src>

<mosaic_0001>
module attributes {stable_mosaic.version = 11 : i64} {
  func.func @_conv_bn_silu_kernel(%arg0: i32, %arg1: memref<2048x27xbf16, #tpu.memory_space<vmem>>, %arg2: memref<27x8xbf16, #tpu.memory_space<vmem>>, %arg3: memref<1x8xf32, #tpu.memory_space<vmem>>, %arg4: memref<2048x8xbf16, #tpu.memory_space<vmem>>) attributes {dimension_semantics = [#tpu.dimension_semantics<parallel>], iteration_bounds = array<i64: 1>, scalar_prefetch = 0 : i64, scratch_operands = 0 : i64, tpu.core_type = #tpu.core_type<tc>, window_params = [{transform_indices = @transform_0, window_bounds = array<i64: 2048, 27>}, {pipeline_mode = #tpu.pipeline_mode<synchronous>, transform_indices = @transform_1, window_bounds = array<i64: 27, 8>}, {pipeline_mode = #tpu.pipeline_mode<synchronous>, transform_indices = @transform_2, window_bounds = array<i64: 1, 8>}, {transform_indices = @transform_3, window_bounds = array<i64: 2048, 8>}]} {
    %c0 = arith.constant 0 : index
    %c0_0 = arith.constant 0 : index
    %0 = vector.load %arg1[%c0, %c0_0] : memref<2048x27xbf16, #tpu.memory_space<vmem>>, vector<2048x27xbf16>
    %c0_1 = arith.constant 0 : index
    %c0_2 = arith.constant 0 : index
    %1 = vector.load %arg2[%c0_1, %c0_2] : memref<27x8xbf16, #tpu.memory_space<vmem>>, vector<27x8xbf16>
    %cst = arith.constant dense<0.000000e+00> : vector<2048x8xf32>
    %2 = tpu.matmul %0, %1, %cst {dimension_numbers = #tpu.dot_dimension_numbers<[1], [0], [0], [1], [0, 0, 1, 1], [], []>} : vector<2048x27xbf16>, vector<27x8xbf16>, vector<2048x8xf32> -> vector<2048x8xf32>
    %c0_3 = arith.constant 0 : index
    %c0_4 = arith.constant 0 : index
    %3 = vector.load %arg3[%c0_3, %c0_4] : memref<1x8xf32, #tpu.memory_space<vmem>>, vector<1x8xf32>
    %4 = vector.broadcast %3 : vector<1x8xf32> to vector<2048x8xf32>
    %5 = arith.addf %2, %4 : vector<2048x8xf32>
    %6 = arith.negf %5 : vector<2048x8xf32>
    %7 = math.exp %6 : vector<2048x8xf32>
    %cst_5 = arith.constant 1.000000e+00 : f32
    %8 = vector.broadcast %cst_5 : f32 to vector<2048x8xf32>
    %9 = arith.addf %8, %7 : vector<2048x8xf32>
    %10 = arith.divf %8, %9 : vector<2048x8xf32>
    %11 = arith.mulf %5, %10 : vector<2048x8xf32>
    %12 = arith.truncf %11 : vector<2048x8xf32> to vector<2048x8xbf16>
    %c0_6 = arith.constant 0 : index
    %c0_7 = arith.constant 0 : index
    %13 = vector.load %arg4[%c0_6, %c0_7] : memref<2048x8xbf16, #tpu.memory_space<vmem>>, vector<2048x8xbf16>
    tpu.vector_store %arg4[%c0_6, %c0_7], %12 {strides = array<i32>} : memref<2048x8xbf16, #tpu.memory_space<vmem>>, vector<2048x8xbf16>,
    return
  }
  func.func @transform_0(%arg0: i32) -> (i32, i32) {
    %c0_i32 = arith.constant 0 : i32
    %c0_i32_0 = arith.constant 0 : i32
    return %arg0, %c0_i32 : i32, i32
  }
  func.func @transform_1(%arg0: i32) -> (i32, i32) {
    %c0_i32 = arith.constant 0 : i32
    %c0_i32_0 = arith.constant 0 : i32
    %c0_i32_1 = arith.constant 0 : i32
    return %c0_i32, %c0_i32_0 : i32, i32
  }
  func.func @transform_2(%arg0: i32) -> (i32, i32) {
    %c0_i32 = arith.constant 0 : i32
    %c0_i32_0 = arith.constant 0 : i32
    %c0_i32_1 = arith.constant 0 : i32
    return %c0_i32, %c0_i32_0 : i32, i32
  }
  func.func @transform_3(%arg0: i32) -> (i32, i32) {
    %c0_i32 = arith.constant 0 : i32
    %c0_i32_0 = arith.constant 0 : i32
    return %arg0, %c0_i32 : i32, i32
  }
}

module attributes {stable_mosaic.version = 11 : i64} {
  func.func @_conv_bn_silu_kernel(%arg0: i32, %arg1: memref<512x72xbf16, #tpu.memory_space<vmem>>, %arg2: memref<72x16xbf16, #tpu.memory_space<vmem>>, %arg3: memref<1x16xf32, #tpu.memory_space<vmem>>, %arg4: memref<512x16xbf16, #tpu.memory_space<vmem>>) attributes {dimension_semantics = [#tpu.dimension_semantics<parallel>], iteration_bounds = array<i64: 1>, scalar_prefetch = 0 : i64, scratch_operands = 0 : i64, tpu.core_type = #tpu.core_type<tc>, window_params = [{transform_indices = @transform_0, window_bounds = array<i64: 512, 72>}, {pipeline_mode = #tpu.pipeline_mode<synchronous>, transform_indices = @transform_1, window_bounds = array<i64: 72, 16>}, {pipeline_mode = #tpu.pipeline_mode<synchronous>, transform_indices = @transform_2, window_bounds = array<i64: 1, 16>}, {transform_indices = @transform_3, window_bounds = array<i64: 512, 16>}]} {
    %c0 = arith.constant 0 : index
    %c0_0 = arith.constant 0 : index
    %0 = vector.load %arg1[%c0, %c0_0] : memref<512x72xbf16, #tpu.memory_space<vmem>>, vector<512x72xbf16>
    %c0_1 = arith.constant 0 : index
    %c0_2 = arith.constant 0 : index
    %1 = vector.load %arg2[%c0_1, %c0_2] : memref<72x16xbf16, #tpu.memory_space<vmem>>, vector<72x16xbf16>
    %cst = arith.constant dense<0.000000e+00> : vector<512x16xf32>
    %2 = tpu.matmul %0, %1, %cst {dimension_numbers = #tpu.dot_dimension_numbers<[1], [0], [0], [1], [0, 0, 1, 1], [], []>} : vector<512x72xbf16>, vector<72x16xbf16>, vector<512x16xf32> -> vector<512x16xf32>
    %c0_3 = arith.constant 0 : index
    %c0_4 = arith.constant 0 : index
    %3 = vector.load %arg3[%c0_3, %c0_4] : memref<1x16xf32, #tpu.memory_space<vmem>>, vector<1x16xf32>
    %4 = vector.broadcast %3 : vector<1x16xf32> to vector<512x16xf32>
    %5 = arith.addf %2, %4 : vector<512x16xf32>
    %6 = arith.negf %5 : vector<512x16xf32>
    %7 = math.exp %6 : vector<512x16xf32>
    %cst_5 = arith.constant 1.000000e+00 : f32
    %8 = vector.broadcast %cst_5 : f32 to vector<512x16xf32>
    %9 = arith.addf %8, %7 : vector<512x16xf32>
    %10 = arith.divf %8, %9 : vector<512x16xf32>
    %11 = arith.mulf %5, %10 : vector<512x16xf32>
    %12 = arith.truncf %11 : vector<512x16xf32> to vector<512x16xbf16>
    %c0_6 = arith.constant 0 : index
    %c0_7 = arith.constant 0 : index
    %13 = vector.load %arg4[%c0_6, %c0_7] : memref<512x16xbf16, #tpu.memory_space<vmem>>, vector<512x16xbf16>
    tpu.vector_store %arg4[%c0_6, %c0_7], %12 {strides = array<i32>} : memref<512x16xbf16, #tpu.memory_space<vmem>>, vector<512x16xbf16>,
    return
  }
  func.func @transform_0(%arg0: i32) -> (i32, i32) {
    %c0_i32 = arith.constant 0 : i32
    %c0_i32_0 = arith.constant 0 : i32
    return %arg0, %c0_i32 : i32, i32
  }
  func.func @transform_1(%arg0: i32) -> (i32, i32) {
    %c0_i32 = arith.constant 0 : i32
    %c0_i32_0 = arith.constant 0 : i32
    %c0_i32_1 = arith.constant 0 : i32
    return %c0_i32, %c0_i32_0 : i32, i32
  }
  func.func @transform_2(%arg0: i32) -> (i32, i32) {
    %c0_i32 = arith.constant 0 : i32
    %c0_i32_0 = arith.constant 0 : i32
    %c0_i32_1 = arith.constant 0 : i32
    return %c0_i32, %c0_i32_0 : i32, i32
  }
  func.func @transform_3(%arg0: i32) -> (i32, i32) {
    %c0_i32 = arith.constant 0 : i32
    %c0_i32_0 = arith.constant 0 : i32
    return %arg0, %c0_i32 : i32, i32
  }
}

module attributes {stable_mosaic.version = 11 : i64} {
  func.func @_conv_bn_silu_kernel(%arg0: i32, %arg1: memref<128x144xbf16, #tpu.memory_space<vmem>>, %arg2: memref<144x32xbf16, #tpu.memory_space<vmem>>, %arg3: memref<1x32xf32, #tpu.memory_space<vmem>>, %arg4: memref<128x32xbf16, #tpu.memory_space<vmem>>) attributes {dimension_semantics = [#tpu.dimension_semantics<parallel>], iteration_bounds = array<i64: 1>, scalar_prefetch = 0 : i64, scratch_operands = 0 : i64, tpu.core_type = #tpu.core_type<tc>, window_params = [{transform_indices = @transform_0, window_bounds = array<i64: 128, 144>}, {pipeline_mode = #tpu.pipeline_mode<synchronous>, transform_indices = @transform_1, window_bounds = array<i64: 144, 32>}, {pipeline_mode = #tpu.pipeline_mode<synchronous>, transform_indices = @transform_2, window_bounds = array<i64: 1, 32>}, {transform_indices = @transform_3, window_bounds = array<i64: 128, 32>}]} {
    %c0 = arith.constant 0 : index
    %c0_0 = arith.constant 0 : index
    %0 = vector.load %arg1[%c0, %c0_0] : memref<128x144xbf16, #tpu.memory_space<vmem>>, vector<128x144xbf16>
    %c0_1 = arith.constant 0 : index
    %c0_2 = arith.constant 0 : index
    %1 = vector.load %arg2[%c0_1, %c0_2] : memref<144x32xbf16, #tpu.memory_space<vmem>>, vector<144x32xbf16>
    %cst = arith.constant dense<0.000000e+00> : vector<128x32xf32>
    %2 = tpu.matmul %0, %1, %cst {dimension_numbers = #tpu.dot_dimension_numbers<[1], [0], [0], [1], [0, 0, 1, 1], [], []>} : vector<128x144xbf16>, vector<144x32xbf16>, vector<128x32xf32> -> vector<128x32xf32>
    %c0_3 = arith.constant 0 : index
    %c0_4 = arith.constant 0 : index
    %3 = vector.load %arg3[%c0_3, %c0_4] : memref<1x32xf32, #tpu.memory_space<vmem>>, vector<1x32xf32>
    %4 = vector.broadcast %3 : vector<1x32xf32> to vector<128x32xf32>
    %5 = arith.addf %2, %4 : vector<128x32xf32>
    %6 = arith.negf %5 : vector<128x32xf32>
    %7 = math.exp %6 : vector<128x32xf32>
    %cst_5 = arith.constant 1.000000e+00 : f32
    %8 = vector.broadcast %cst_5 : f32 to vector<128x32xf32>
    %9 = arith.addf %8, %7 : vector<128x32xf32>
    %10 = arith.divf %8, %9 : vector<128x32xf32>
    %11 = arith.mulf %5, %10 : vector<128x32xf32>
    %12 = arith.truncf %11 : vector<128x32xf32> to vector<128x32xbf16>
    %c0_6 = arith.constant 0 : index
    %c0_7 = arith.constant 0 : index
    %13 = vector.load %arg4[%c0_6, %c0_7] : memref<128x32xbf16, #tpu.memory_space<vmem>>, vector<128x32xbf16>
    tpu.vector_store %arg4[%c0_6, %c0_7], %12 {strides = array<i32>} : memref<128x32xbf16, #tpu.memory_space<vmem>>, vector<128x32xbf16>,
    return
  }
  func.func @transform_0(%arg0: i32) -> (i32, i32) {
    %c0_i32 = arith.constant 0 : i32
    %c0_i32_0 = arith.constant 0 : i32
    return %arg0, %c0_i32 : i32, i32
  }
  func.func @transform_1(%arg0: i32) -> (i32, i32) {
    %c0_i32 = arith.constant 0 : i32
    %c0_i32_0 = arith.constant 0 : i32
    %c0_i32_1 = arith.constant 0 : i32
    return %c0_i32, %c0_i32_0 : i32, i32
  }
  func.func @transform_2(%arg0: i32) -> (i32, i32) {
    %c0_i32 = arith.constant 0 : i32
    %c0_i32_0 = arith.constant 0 : i32
    %c0_i32_1 = arith.constant 0 : i32
    return %c0_i32, %c0_i32_0 : i32, i32
  }
  func.func @transform_3(%arg0: i32) -> (i32, i32) {
    %c0_i32 = arith.constant 0 : i32
    %c0_i32_0 = arith.constant 0 : i32
    return %arg0, %c0_i32 : i32, i32
  }
}

module attributes {stable_mosaic.version = 11 : i64} {
  func.func @_conv_bn_silu_kernel(%arg0: i32, %arg1: memref<32x288xbf16, #tpu.memory_space<vmem>>, %arg2: memref<288x64xbf16, #tpu.memory_space<vmem>>, %arg3: memref<1x64xf32, #tpu.memory_space<vmem>>, %arg4: memref<32x64xbf16, #tpu.memory_space<vmem>>) attributes {dimension_semantics = [#tpu.dimension_semantics<parallel>], iteration_bounds = array<i64: 1>, scalar_prefetch = 0 : i64, scratch_operands = 0 : i64, tpu.core_type = #tpu.core_type<tc>, window_params = [{transform_indices = @transform_0, window_bounds = array<i64: 32, 288>}, {pipeline_mode = #tpu.pipeline_mode<synchronous>, transform_indices = @transform_1, window_bounds = array<i64: 288, 64>}, {pipeline_mode = #tpu.pipeline_mode<synchronous>, transform_indices = @transform_2, window_bounds = array<i64: 1, 64>}, {transform_indices = @transform_3, window_bounds = array<i64: 32, 64>}]} {
    %c0 = arith.constant 0 : index
    %c0_0 = arith.constant 0 : index
    %0 = vector.load %arg1[%c0, %c0_0] : memref<32x288xbf16, #tpu.memory_space<vmem>>, vector<32x288xbf16>
    %c0_1 = arith.constant 0 : index
    %c0_2 = arith.constant 0 : index
    %1 = vector.load %arg2[%c0_1, %c0_2] : memref<288x64xbf16, #tpu.memory_space<vmem>>, vector<288x64xbf16>
    %cst = arith.constant dense<0.000000e+00> : vector<32x64xf32>
    %2 = tpu.matmul %0, %1, %cst {dimension_numbers = #tpu.dot_dimension_numbers<[1], [0], [0], [1], [0, 0, 1, 1], [], []>} : vector<32x288xbf16>, vector<288x64xbf16>, vector<32x64xf32> -> vector<32x64xf32>
    %c0_3 = arith.constant 0 : index
    %c0_4 = arith.constant 0 : index
    %3 = vector.load %arg3[%c0_3, %c0_4] : memref<1x64xf32, #tpu.memory_space<vmem>>, vector<1x64xf32>
    %4 = vector.broadcast %3 : vector<1x64xf32> to vector<32x64xf32>
    %5 = arith.addf %2, %4 : vector<32x64xf32>
    %6 = arith.negf %5 : vector<32x64xf32>
    %7 = math.exp %6 : vector<32x64xf32>
    %cst_5 = arith.constant 1.000000e+00 : f32
    %8 = vector.broadcast %cst_5 : f32 to vector<32x64xf32>
    %9 = arith.addf %8, %7 : vector<32x64xf32>
    %10 = arith.divf %8, %9 : vector<32x64xf32>
    %11 = arith.mulf %5, %10 : vector<32x64xf32>
    %12 = arith.truncf %11 : vector<32x64xf32> to vector<32x64xbf16>
    %c0_6 = arith.constant 0 : index
    %c0_7 = arith.constant 0 : index
    %13 = vector.load %arg4[%c0_6, %c0_7] : memref<32x64xbf16, #tpu.memory_space<vmem>>, vector<32x64xbf16>
    tpu.vector_store %arg4[%c0_6, %c0_7], %12 {strides = array<i32>} : memref<32x64xbf16, #tpu.memory_space<vmem>>, vector<32x64xbf16>,
    return
  }
  func.func @transform_0(%arg0: i32) -> (i32, i32) {
    %c0_i32 = arith.constant 0 : i32
    %c0_i32_0 = arith.constant 0 : i32
    return %arg0, %c0_i32 : i32, i32
  }
  func.func @transform_1(%arg0: i32) -> (i32, i32) {
    %c0_i32 = arith.constant 0 : i32
    %c0_i32_0 = arith.constant 0 : i32
    %c0_i32_1 = arith.constant 0 : i32
    return %c0_i32, %c0_i32_0 : i32, i32
  }
  func.func @transform_2(%arg0: i32) -> (i32, i32) {
    %c0_i32 = arith.constant 0 : i32
    %c0_i32_0 = arith.constant 0 : i32
    %c0_i32_1 = arith.constant 0 : i32
    return %c0_i32, %c0_i32_0 : i32, i32
  }
  func.func @transform_3(%arg0: i32) -> (i32, i32) {
    %c0_i32 = arith.constant 0 : i32
    %c0_i32_0 = arith.constant 0 : i32
    return %arg0, %c0_i32 : i32, i32
  }
}

module attributes {stable_mosaic.version = 11 : i64} {
  func.func @_detect_kernel(%arg0: i32, %arg1: memref<4xi32, #tpu.memory_space<smem>>, %arg2: memref<256x64xbf16, #tpu.memory_space<vmem>>, %arg3: memref<1x64x128xbf16, #tpu.memory_space<vmem>>, %arg4: memref<1x8x128xf32, #tpu.memory_space<vmem>>, %arg5: memref<256x1xf32, #tpu.memory_space<vmem>>, %arg6: memref<256x1xf32, #tpu.memory_space<vmem>>, %arg7: memref<256x128xbf16, #tpu.memory_space<vmem>>, %arg8: memref<256x128xf32, #tpu.memory_space<vmem>>) attributes {dimension_semantics = [#tpu.dimension_semantics<parallel>], iteration_bounds = array<i64: 4>, scalar_prefetch = 1 : i64, scratch_operands = 0 : i64, tpu.core_type = #tpu.core_type<tc>, window_params = [{transform_indices = @transform_0, window_bounds = array<i64: 256, 64>}, {transform_indices = @transform_1, window_bounds = array<i64: 1, 64, 128>}, {transform_indices = @transform_2, window_bounds = array<i64: 1, 8, 128>}, {transform_indices = @transform_3, window_bounds = array<i64: 256, 1>}, {transform_indices = @transform_4, window_bounds = array<i64: 256, 1>}, {transform_indices = @transform_5, window_bounds = array<i64: 256, 128>}, {transform_indices = @transform_6, window_bounds = array<i64: 256, 128>}]} {
    %c0 = arith.constant 0 : index
    %c0_0 = arith.constant 0 : index
    %c0_1 = arith.constant 0 : index
    %0 = vector.load %arg4[%c0, %c0_0, %c0_1] : memref<1x8x128xf32, #tpu.memory_space<vmem>>, vector<1x8x128xf32>
    %1 = vector.shape_cast %0 : vector<1x8x128xf32> to vector<8x128xf32>
    %2 = vector.extract_strided_slice %1 {offsets = [0, 0], sizes = [1, 128], strides = [1, 1]} : vector<8x128xf32> to vector<1x128xf32>
    %3 = vector.extract_strided_slice %1 {offsets = [1, 0], sizes = [1, 128], strides = [1, 1]} : vector<8x128xf32> to vector<1x128xf32>
    %4 = vector.extract_strided_slice %1 {offsets = [2, 0], sizes = [1, 128], strides = [1, 1]} : vector<8x128xf32> to vector<1x128xf32>
    %5 = vector.extract_strided_slice %1 {offsets = [3, 0], sizes = [1, 128], strides = [1, 1]} : vector<8x128xf32> to vector<1x128xf32>
    %6 = vector.extract_strided_slice %1 {offsets = [4, 0], sizes = [1, 128], strides = [1, 1]} : vector<8x128xf32> to vector<1x128xf32>
    %c0_2 = arith.constant 0 : index
    %c0_3 = arith.constant 0 : index
    %7 = vector.load %arg2[%c0_2, %c0_3] : memref<256x64xbf16, #tpu.memory_space<vmem>>, vector<256x64xbf16>
    %c0_4 = arith.constant 0 : index
    %c0_5 = arith.constant 0 : index
    %c0_6 = arith.constant 0 : index
    %8 = vector.load %arg3[%c0_4, %c0_5, %c0_6] : memref<1x64x128xbf16, #tpu.memory_space<vmem>>, vector<1x64x128xbf16>
    %9 = vector.shape_cast %8 : vector<1x64x128xbf16> to vector<64x128xbf16>
    %cst = arith.constant dense<0.000000e+00> : vector<256x128xf32>
    %10 = tpu.matmul %7, %9, %cst {dimension_numbers = #tpu.dot_dimension_numbers<[1], [0], [0], [1], [0, 0, 1, 1], [], []>} : vector<256x64xbf16>, vector<64x128xbf16>, vector<256x128xf32> -> vector<256x128xf32>
    %11 = vector.broadcast %2 : vector<1x128xf32> to vector<256x128xf32>
    %12 = arith.addf %10, %11 : vector<256x128xf32>
    %13 = arith.truncf %12 : vector<256x128xf32> to vector<256x128xbf16>
    %c0_7 = arith.constant 0 : index
    %c0_8 = arith.constant 0 : index
    %14 = vector.load %arg7[%c0_7, %c0_8] : memref<256x128xbf16, #tpu.memory_space<vmem>>, vector<256x128xbf16>
    tpu.vector_store %arg7[%c0_7, %c0_8], %13 {strides = array<i32>} : memref<256x128xbf16, #tpu.memory_space<vmem>>, vector<256x128xbf16>,
    %15 = arith.negf %12 : vector<256x128xf32>
    %16 = math.exp %15 : vector<256x128xf32>
    %cst_9 = arith.constant 1.000000e+00 : f32
    %17 = vector.broadcast %cst_9 : f32 to vector<256x128xf32>
    %18 = arith.addf %17, %16 : vector<256x128xf32>
    %19 = arith.divf %17, %18 : vector<256x128xf32>
    %c0_10 = arith.constant 0 : index
    %c0_11 = arith.constant 0 : index
    %20 = vector.load %arg5[%c0_10, %c0_11] : memref<256x1xf32, #tpu.memory_space<vmem>>, vector<256x1xf32>
    %21 = vector.broadcast %20 : vector<256x1xf32> to vector<256x128xf32>
    %22 = vector.broadcast %5 : vector<1x128xf32> to vector<256x128xf32>
    %23 = arith.mulf %21, %22 : vector<256x128xf32>
    %c0_12 = arith.constant 0 : index
    %c0_13 = arith.constant 0 : index
    %24 = vector.load %arg6[%c0_12, %c0_13] : memref<256x1xf32, #tpu.memory_space<vmem>>, vector<256x1xf32>
    %25 = vector.broadcast %24 : vector<256x1xf32> to vector<256x128xf32>
    %26 = vector.broadcast %6 : vector<1x128xf32> to vector<256x128xf32>
    %27 = arith.mulf %25, %26 : vector<256x128xf32>
    %28 = arith.addf %23, %27 : vector<256x128xf32>
    %29 = vector.broadcast %4 : vector<1x128xf32> to vector<256x128xf32>
    %30 = arith.mulf %29, %19 : vector<256x128xf32>
    %31 = vector.broadcast %3 : vector<1x128xf32> to vector<256x128xf32>
    %32 = arith.addf %31, %30 : vector<256x128xf32>
    %33 = arith.mulf %32, %19 : vector<256x128xf32>
    %34 = arith.addf %33, %28 : vector<256x128xf32>
    %c0_14 = arith.constant 0 : index
    %c0_15 = arith.constant 0 : index
    %35 = vector.load %arg8[%c0_14, %c0_15] : memref<256x128xf32, #tpu.memory_space<vmem>>, vector<256x128xf32>
    tpu.vector_store %arg8[%c0_14, %c0_15], %34 {strides = array<i32>} : memref<256x128xf32, #tpu.memory_space<vmem>>, vector<256x128xf32>,
    return
  }
  func.func @transform_0(%arg0: i32, %arg1: memref<4xi32, #tpu.memory_space<smem>>) -> (i32, i32) {
    %c0_i32 = arith.constant 0 : i32
    %c0_i32_0 = arith.constant 0 : i32
    return %arg0, %c0_i32 : i32, i32
  }
  func.func @transform_1(%arg0: i32, %arg1: memref<4xi32, #tpu.memory_space<smem>>) -> (i32, i32, i32) {
    %0 = arith.index_cast %arg0 : i32 to index
    %1 = memref.load %arg1[%0] : memref<4xi32, #tpu.memory_space<smem>>
    %c0_i32 = arith.constant 0 : i32
    %c0_i32_0 = arith.constant 0 : i32
    %c0_i32_1 = arith.constant 0 : i32
    return %1, %c0_i32, %c0_i32_0 : i32, i32, i32
  }
  func.func @transform_2(%arg0: i32, %arg1: memref<4xi32, #tpu.memory_space<smem>>) -> (i32, i32, i32) {
    %0 = arith.index_cast %arg0 : i32 to index
    %1 = memref.load %arg1[%0] : memref<4xi32, #tpu.memory_space<smem>>
    %c0_i32 = arith.constant 0 : i32
    %c0_i32_0 = arith.constant 0 : i32
    %c0_i32_1 = arith.constant 0 : i32
    return %1, %c0_i32, %c0_i32_0 : i32, i32, i32
  }
  func.func @transform_3(%arg0: i32, %arg1: memref<4xi32, #tpu.memory_space<smem>>) -> (i32, i32) {
    %c0_i32 = arith.constant 0 : i32
    %c0_i32_0 = arith.constant 0 : i32
    return %arg0, %c0_i32 : i32, i32
  }
  func.func @transform_4(%arg0: i32, %arg1: memref<4xi32, #tpu.memory_space<smem>>) -> (i32, i32) {
    %c0_i32 = arith.constant 0 : i32
    %c0_i32_0 = arith.constant 0 : i32
    return %arg0, %c0_i32 : i32, i32
  }
  func.func @transform_5(%arg0: i32, %arg1: memref<4xi32, #tpu.memory_space<smem>>) -> (i32, i32) {
    %c0_i32 = arith.constant 0 : i32
    %c0_i32_0 = arith.constant 0 : i32
    return %arg0, %c0_i32 : i32, i32
  }
  func.func @transform_6(%arg0: i32, %arg1: memref<4xi32, #tpu.memory_space<smem>>) -> (i32, i32) {
    %c0_i32 = arith.constant 0 : i32
    %c0_i32_0 = arith.constant 0 : i32
    return %arg0, %c0_i32 : i32, i32
  }
}

</mosaic_0001>

<bundles_post_ra>
// kernel: _forward_impl.5
= control target key start
LH: loop header
LB: loop body
LE: loop exit
PB: predicated region body
PF: predicated region fallthrough
CT: control target
= control target key end

     0   :  { %vm1318_vm0 = vcmask 1044480   ;;  %vm1319_vm1 = vcmask 1045504   ;;  %vm933_vm2 = vcmask 220160   ;;  %v8040_v1 = vmov 65535   ;;  %s11610_s1 = inlined_call_operand.vmem [shape: bf16[27,8], index: 1, kind: input, shape index: {}]   ;;  %s11611_s0 = inlined_call_operand.vmem [shape: bf16[2048,27], index: 0, kind: input, shape index: {}]   ;;  %s11612_s2 = inlined_call_operand.vmem [shape: f32[1,8], index: 2, kind: input, shape index: {}]   ;;  %s11613_s3 = inlined_call_operand.vmem [shape: bf16[2048,8], index: 3, kind: output, shape index: {}]  }
   0x1   :  { %v6881_v0 = vld [vmem:[%s11610_s1] sm:$0xff]   ;;  %v1320_v2 = vsel %vm1318_vm0, 4294967295, %v8040_v1  ;;  %v6882_v3 = vld [vmem:[%s11610_s1 + $0x8] sm:$0x3f]   ;;  %v6887_v10 = vld [vmem:[%s11611_s0 + $0x10] sm:$0xff]   ;;  %vm5198_vm3 = vcmask 60416  }
   0x2   :  { %6616 = vmatprep.subr.bf16.mxu0 %v6881_v0  ;;  %6876 = vmatprep.subr.bf16.mxu1 %v6881_v0  ;;  %v1321_v4 = vsel %vm1319_vm1, %v1320_v2, 0  ;;  %v6883_v5 = vld [vmem:[%s11611_s0] sm:$0xff]   ;;  %v6885_v8 = vld [vmem:[%s11611_s0 + $0x8] sm:$0xff]   ;;  %v6888_v11 = vld [vmem:[%s11611_s0 + $0x210] sm:$0xff]  }
   0x3   :  { %6617 = vmatpush3.bf16.msra.mxu0 %v6881_v0  ;;  %6878 = vmatpush3.bf16.msra.mxu1 %v6881_v0  ;;  %v1323_v6 = vand.u32 %v6882_v3, %v1321_v4  ;;  %v6884_v7 = vld [vmem:[%s11611_s0 + $0x200] sm:$0xff]   ;;  %v6886_v9 = vld [vmem:[%s11611_s0 + $0x208] sm:$0xff]   ;;  %v6889_v12 = vld [vmem:[%s11611_s0 + $0x18] sm:$0xff]  }
   0x4   :  { %6620 = vmatprep.mubr.msk.bf16.mxu0 %vm933_vm2, %v6883_v5  ;;  %6748 = vmatprep.mubr.msk.bf16.mxu1 %vm933_vm2, %v6884_v7  ;;  %v6890_v13 = vld [vmem:[%s11611_s0 + $0x218] sm:$0xff]   ;;  %v6891_v14 = vld [vmem:[%s11611_s0 + $0x20] sm:$0xff]   ;;  %v6893_v16 = vld [vmem:[%s11611_s0 + $0x28] sm:$0xff]  }
   0x5   :  { %6618 = vmatprep.subr.bf16.mxu0 %v1323_v6  ;;  %6877 = vmatprep.subr.bf16.mxu1 %v1323_v6  ;;  %v6892_v15 = vld [vmem:[%s11611_s0 + $0x220] sm:$0xff]   ;;  %v6894_v17 = vld [vmem:[%s11611_s0 + $0x228] sm:$0xff]   ;;  %v6895_v18 = vld [vmem:[%s11611_s0 + $0x30] sm:$0xff]  }
   0x6   :  { %v6896_v19 = vld [vmem:[%s11611_s0 + $0x230] sm:$0xff]   ;;  %v6897_v20 = vld [vmem:[%s11611_s0 + $0x38] sm:$0xff]   ;;  %v6899_v22 = vld [vmem:[%s11611_s0 + $0x40] sm:$0xff]  }
   0x7   :  { %6619 = vmatpush3.bf16.msra.mxu0 %v1323_v6  ;;  %6879 = vmatpush3.bf16.msra.mxu1 %v1323_v6  ;;  %v6898_v21 = vld [vmem:[%s11611_s0 + $0x238] sm:$0xff]   ;;  %v6900_v23 = vld [vmem:[%s11611_s0 + $0x240] sm:$0xff]   ;;  %v6901_v24 = vld [vmem:[%s11611_s0 + $0x48] sm:$0xff]  }
   0x8   :  { %v6902_v25 = vld [vmem:[%s11611_s0 + $0x248] sm:$0xff]   ;;  %v6903_v26 = vld [vmem:[%s11611_s0 + $0x50] sm:$0xff]   ;;  %v6905_v28 = vld [vmem:[%s11611_s0 + $0x58] sm:$0xff]  }
   0x9   :  { %v6904_v27 = vld [vmem:[%s11611_s0 + $0x250] sm:$0xff]   ;;  %v6906_v29 = vld [vmem:[%s11611_s0 + $0x258] sm:$0xff]   ;;  %v6907_v30 = vld [vmem:[%s11611_s0 + $0x60] sm:$0xff]  }
   0xa   :  { %6621 = vmatmul.mubr.msk.bf16.vlgmr.msra.gmra.mrb[0].mxu0 %vm933_vm2, %v6885_v8  ;;  %6749 = vmatmul.mubr.msk.bf16.vlgmr.msra.gmra.mrb[0].mxu1 %vm933_vm2, %v6886_v9  ;;  %v6908_v31 = vld [vmem:[%s11611_s0 + $0x260] sm:$0xff]   ;;  %v6909_v32 = vld [vmem:[%s11611_s0 + $0x68] sm:$0xff]   ;;  %v6911_v34 = vld [vmem:[%s11611_s0 + $0x70] sm:$0xff]  }
   0xb   :  { %6624 = vmatprep.mubr.msk.bf16.mxu0 %vm933_vm2, %v6887_v10  ;;  %6752 = vmatprep.mubr.msk.bf16.mxu1 %vm933_vm2, %v6888_v11  ;;  %v6910_v33 = vld [vmem:[%s11611_s0 + $0x268] sm:$0xff]   ;;  %v6912_v35 = vld [vmem:[%s11611_s0 + $0x270] sm:$0xff]   ;;  %v6913_v36 = vld [vmem:[%s11611_s0 + $0x78] sm:$0xff]  }
   0xc   :  { %v6914_v37 = vld [vmem:[%s11611_s0 + $0x278] sm:$0xff]   ;;  %v6915_v38 = vld [vmem:[%s11611_s0 + $0x80] sm:$0xff]   ;;  %v6917_v40 = vld [vmem:[%s11611_s0 + $0x88] sm:$0xff]  }
   0xd   :  { %v6916_v39 = vld [vmem:[%s11611_s0 + $0x280] sm:$0xff]   ;;  %v6918_v41 = vld [vmem:[%s11611_s0 + $0x288] sm:$0xff]   ;;  %v6919_v42 = vld [vmem:[%s11611_s0 + $0x90] sm:$0xff]  }
   0xe   :  { %v6920_v43 = vld [vmem:[%s11611_s0 + $0x290] sm:$0xff]   ;;  %v6921_v44 = vld [vmem:[%s11611_s0 + $0x98] sm:$0xff]   ;;  %v6923_v46 = vld [vmem:[%s11611_s0 + $0xa0] sm:$0xff]  }
   0xf   :  { %v6922_v45 = vld [vmem:[%s11611_s0 + $0x298] sm:$0xff]   ;;  %v6924_v47 = vld [vmem:[%s11611_s0 + $0x2a0] sm:$0xff]   ;;  %v6925_v48 = vld [vmem:[%s11611_s0 + $0xa8] sm:$0xff]  }
  0x10   :  { %v6926_v49 = vld [vmem:[%s11611_s0 + $0x2a8] sm:$0xff]   ;;  %v6927_v50 = vld [vmem:[%s11611_s0 + $0xb0] sm:$0xff]   ;;  %v6929_v52 = vld [vmem:[%s11611_s0 + $0xb8] sm:$0xff]  }
  0x11   :  { %v6928_v51 = vld [vmem:[%s11611_s0 + $0x2b0] sm:$0xff]   ;;  %v6930_v53 = vld [vmem:[%s11611_s0 + $0x2b8] sm:$0xff]   ;;  %v6931_v54 = vld [vmem:[%s11611_s0 + $0xc0] sm:$0xff]  }
  0x12   :  { %6625 = vmatmul.mubr.msk.bf16.gmra.mrb[4].mxu0 %vm933_vm2, %v6889_v12  ;;  %6753 = vmatmul.mubr.msk.bf16.gmra.mrb[4].mxu1 %vm933_vm2, %v6890_v13  ;;  %v6932_v55 = vld [vmem:[%s11611_s0 + $0x2c0] sm:$0xff]   ;;  %v6933_v56 = vld [vmem:[%s11611_s0 + $0xc8] sm:$0xff]   ;;  %v6935_v58 = vld [vmem:[%s11611_s0 + $0xd0] sm:$0xff]  }
  0x13   :  { %6628 = vmatprep.mubr.msk.bf16.mxu0 %vm933_vm2, %v6891_v14  ;;  %6756 = vmatprep.mubr.msk.bf16.mxu1 %vm933_vm2, %v6892_v15  ;;  %v6934_v57 = vld [vmem:[%s11611_s0 + $0x2c8] sm:$0xff]   ;;  %v6936_v59 = vld [vmem:[%s11611_s0 + $0x2d0] sm:$0xff]   ;;  %v6937_v60 = vld [vmem:[%s11611_s0 + $0xd8] sm:$0xff]  }
  0x14   :  { %v6938_v61 = vld [vmem:[%s11611_s0 + $0x2d8] sm:$0xff]   ;;  %v6939_v62 = vld [vmem:[%s11611_s0 + $0xe0] sm:$0xff]   ;;  %v6941_v0 = vld [vmem:[%s11611_s0 + $0xe8] sm:$0xff]  }
  0x15   :  { %v6940_v63 = vld [vmem:[%s11611_s0 + $0x2e0] sm:$0xff]   ;;  %v6942_v1 = vld [vmem:[%s11611_s0 + $0x2e8] sm:$0xff]   ;;  %v6943_v2 = vld [vmem:[%s11611_s0 + $0xf0] sm:$0xff]  }
  0x16   :  { %v6944_v3 = vld [vmem:[%s11611_s0 + $0x2f0] sm:$0xff]   ;;  %v6945_v4 = vld [vmem:[%s11611_s0 + $0xf8] sm:$0xff]   ;;  %v6947_v6 = vld [vmem:[%s11611_s0 + $0x100] sm:$0xff]  }
  0x17   :  { %v6946_v5 = vld [vmem:[%s11611_s0 + $0x2f8] sm:$0xff]   ;;  %v6948_v7 = vld [vmem:[%s11611_s0 + $0x300] sm:$0xff]   ;;  %v6949_v8 = vld [vmem:[%s11611_s0 + $0x108] sm:$0xff]  }
  0x18   :  { %v6950_v9 = vld [vmem:[%s11611_s0 + $0x308] sm:$0xff]   ;;  %v6951_v10 = vld [vmem:[%s11611_s0 + $0x110] sm:$0xff]   ;;  %v6953_v12 = vld [vmem:[%s11611_s0 + $0x118] sm:$0xff]  }
  0x19   :  { %v6952_v11 = vld [vmem:[%s11611_s0 + $0x310] sm:$0xff]   ;;  %v6954_v13 = vld [vmem:[%s11611_s0 + $0x318] sm:$0xff]   ;;  %v6955_v14 = vld [vmem:[%s11611_s0 + $0x120] sm:$0xff]  }
  0x1a   :  { %6629 = vmatmul.mubr.msk.bf16.gmra.mrb[8].mxu0 %vm933_vm2, %v6893_v16  ;;  %6757 = vmatmul.mubr.msk.bf16.gmra.mrb[8].mxu1 %vm933_vm2, %v6894_v17  ;;  %v6956_v15 = vld [vmem:[%s11611_s0 + $0x320] sm:$0xff]   ;;  %v6957_v16 = vld [vmem:[%s11611_s0 + $0x128] sm:$0xff]  }
  0x1b   :  { %6632 = vmatprep.mubr.msk.bf16.mxu0 %vm933_vm2, %v6895_v18  ;;  %6760 = vmatprep.mubr.msk.bf16.mxu1 %vm933_vm2, %v6896_v19  ;;  %v6958_v17 = vld [vmem:[%s11611_s0 + $0x328] sm:$0xff]   ;;  %v6959_v18 = vld [vmem:[%s11611_s0 + $0x130] sm:$0xff]  }
  0x1c   :  { %v6960_v19 = vld [vmem:[%s11611_s0 + $0x330] sm:$0xff]  }
  0x22   :  { %6633 = vmatmul.mubr.msk.bf16.gmra.mrb[12].mxu0 %vm933_vm2, %v6897_v20  ;;  %6761 = vmatmul.mubr.msk.bf16.gmra.mrb[12].mxu1 %vm933_vm2, %v6898_v21  ;;  %v6961_v20 = vld [vmem:[%s11611_s0 + $0x138] sm:$0xff]  }
  0x23   :  { %6636 = vmatprep.mubr.msk.bf16.mxu0 %vm933_vm2, %v6899_v22  ;;  %6764 = vmatprep.mubr.msk.bf16.mxu1 %vm933_vm2, %v6900_v23  ;;  %v6962_v21 = vld [vmem:[%s11611_s0 + $0x338] sm:$0xff]   ;;  %v6963_v22 = vld [vmem:[%s11611_s0 + $0x140] sm:$0xff]  }
  0x24   :  { %v6964_v23 = vld [vmem:[%s11611_s0 + $0x340] sm:$0xff]  }
  0x2a   :  { %6637 = vmatmul.mubr.msk.bf16.gmra.mrb[16].mxu0 %vm933_vm2, %v6901_v24  ;;  %6765 = vmatmul.mubr.msk.bf16.gmra.mrb[16].mxu1 %vm933_vm2, %v6902_v25  ;;  %v6965_v24 = vld [vmem:[%s11611_s0 + $0x148] sm:$0xff]  }
  0x2b   :  { %6640 = vmatprep.mubr.msk.bf16.mxu0 %vm933_vm2, %v6903_v26  ;;  %6768 = vmatprep.mubr.msk.bf16.mxu1 %vm933_vm2, %v6904_v27  ;;  %v6966_v25 = vld [vmem:[%s11611_s0 + $0x348] sm:$0xff]   ;;  %v6967_v26 = vld [vmem:[%s11611_s0 + $0x150] sm:$0xff]  }
  0x2c   :  { %v6968_v27 = vld [vmem:[%s11611_s0 + $0x350] sm:$0xff]  }
  0x32   :  { %6641 = vmatmul.mubr.msk.bf16.gmra.mrb[20].mxu0 %vm933_vm2, %v6905_v28  ;;  %6769 = vmatmul.mubr.msk.bf16.gmra.mrb[20].mxu1 %vm933_vm2, %v6906_v29  ;;  %v6969_v28 = vld [vmem:[%s11611_s0 + $0x158] sm:$0xff]  }
  0x33   :  { %6644 = vmatprep.mubr.msk.bf16.mxu0 %vm933_vm2, %v6907_v30  ;;  %6772 = vmatprep.mubr.msk.bf16.mxu1 %vm933_vm2, %v6908_v31  ;;  %v6970_v29 = vld [vmem:[%s11611_s0 + $0x358] sm:$0xff]   ;;  %v6971_v30 = vld [vmem:[%s11611_s0 + $0x160] sm:$0xff]  }
  0x34   :  { %v6972_v31 = vld [vmem:[%s11611_s0 + $0x360] sm:$0xff]  }
  0x3a   :  { %6645 = vmatmul.mubr.msk.bf16.gmra.mrb[24].mxu0 %vm933_vm2, %v6909_v32  ;;  %6773 = vmatmul.mubr.msk.bf16.gmra.mrb[24].mxu1 %vm933_vm2, %v6910_v33  ;;  %v6973_v32 = vld [vmem:[%s11611_s0 + $0x168] sm:$0xff]  }
  0x3b   :  { %6648 = vmatprep.mubr.msk.bf16.mxu0 %vm933_vm2, %v6911_v34  ;;  %6776 = vmatprep.mubr.msk.bf16.mxu1 %vm933_vm2, %v6912_v35  ;;  %v6974_v33 = vld [vmem:[%s11611_s0 + $0x368] sm:$0xff]   ;;  %v6975_v34 = vld [vmem:[%s11611_s0 + $0x170] sm:$0xff]  }
  0x3c   :  { %v6976_v35 = vld [vmem:[%s11611_s0 + $0x370] sm:$0xff]  }
  0x42   :  { %6649 = vmatmul.mubr.msk.bf16.gmra.mrb[28].mxu0 %vm933_vm2, %v6913_v36  ;;  %6777 = vmatmul.mubr.msk.bf16.gmra.mrb[28].mxu1 %vm933_vm2, %v6914_v37  ;;  %v6977_v36 = vld [vmem:[%s11611_s0 + $0x178] sm:$0xff]  }
  0x43   :  { %6652 = vmatprep.mubr.msk.bf16.mxu0 %vm933_vm2, %v6915_v38  ;;  %6780 = vmatprep.mubr.msk.bf16.mxu1 %vm933_vm2, %v6916_v39  ;;  %v6978_v37 = vld [vmem:[%s11611_s0 + $0x378] sm:$0xff]   ;;  %v6979_v38 = vld [vmem:[%s11611_s0 + $0x180] sm:$0xff]  }
  0x44   :  { %v6980_v39 = vld [vmem:[%s11611_s0 + $0x380] sm:$0xff]  }
  0x4a   :  { %6653 = vmatmul.mubr.msk.bf16.gmra.mrb[32].mxu0 %vm933_vm2, %v6917_v40  ;;  %6781 = vmatmul.mubr.msk.bf16.gmra.mrb[32].mxu1 %vm933_vm2, %v6918_v41  ;;  %v6981_v40 = vld [vmem:[%s11611_s0 + $0x188] sm:$0xff]  }
  0x4b   :  { %6656 = vmatprep.mubr.msk.bf16.mxu0 %vm933_vm2, %v6919_v42  ;;  %6784 = vmatprep.mubr.msk.bf16.mxu1 %vm933_vm2, %v6920_v43  ;;  %v6982_v41 = vld [vmem:[%s11611_s0 + $0x388] sm:$0xff]   ;;  %v6983_v42 = vld [vmem:[%s11611_s0 + $0x190] sm:$0xff]  }
  0x4c   :  { %v6984_v43 = vld [vmem:[%s11611_s0 + $0x390] sm:$0xff]  }
  0x52   :  { %6657 = vmatmul.mubr.msk.bf16.gmra.mrb[36].mxu0 %vm933_vm2, %v6921_v44  ;;  %6785 = vmatmul.mubr.msk.bf16.gmra.mrb[36].mxu1 %vm933_vm2, %v6922_v45  ;;  %v6985_v44 = vld [vmem:[%s11611_s0 + $0x198] sm:$0xff]  }
  0x53   :  { %6660 = vmatprep.mubr.msk.bf16.mxu0 %vm933_vm2, %v6923_v46  ;;  %6788 = vmatprep.mubr.msk.bf16.mxu1 %vm933_vm2, %v6924_v47  ;;  %v6986_v45 = vld [vmem:[%s11611_s0 + $0x398] sm:$0xff]   ;;  %v6987_v46 = vld [vmem:[%s11611_s0 + $0x1a0] sm:$0xff]  }
  0x54   :  { %v6988_v47 = vld [vmem:[%s11611_s0 + $0x3a0] sm:$0xff]  }
  0x5a   :  { %6661 = vmatmul.mubr.msk.bf16.gmra.mrb[40].mxu0 %vm933_vm2, %v6925_v48  ;;  %6789 = vmatmul.mubr.msk.bf16.gmra.mrb[40].mxu1 %vm933_vm2, %v6926_v49  ;;  %v6989_v48 = vld [vmem:[%s11611_s0 + $0x1a8] sm:$0xff]  }
  0x5b   :  { %6664 = vmatprep.mubr.msk.bf16.mxu0 %vm933_vm2, %v6927_v50  ;;  %6792 = vmatprep.mubr.msk.bf16.mxu1 %vm933_vm2, %v6928_v51  ;;  %v6990_v49 = vld [vmem:[%s11611_s0 + $0x3a8] sm:$0xff]   ;;  %v6991_v50 = vld [vmem:[%s11611_s0 + $0x1b0] sm:$0xff]  }
  0x5c   :  { %v6992_v51 = vld [vmem:[%s11611_s0 + $0x3b0] sm:$0xff]  }
  0x62   :  { %6665 = vmatmul.mubr.msk.bf16.gmra.mrb[44].mxu0 %vm933_vm2, %v6929_v52  ;;  %6793 = vmatmul.mubr.msk.bf16.gmra.mrb[44].mxu1 %vm933_vm2, %v6930_v53  ;;  %v8508_v52 = vld [vmem:[%s11612_s2] ss:$0 sm:$0xff] }
  0x63   :  { %6668 = vmatprep.mubr.msk.bf16.mxu0 %vm933_vm2, %v6931_v54  ;;  %6796 = vmatprep.mubr.msk.bf16.mxu1 %vm933_vm2, %v6932_v55 }
  0x6a   :  { %6669 = vmatmul.mubr.msk.bf16.gmra.mrb[48].mxu0 %vm933_vm2, %v6933_v56  ;;  %6797 = vmatmul.mubr.msk.bf16.gmra.mrb[48].mxu1 %vm933_vm2, %v6934_v57 }
  0x6b   :  { %6672 = vmatprep.mubr.msk.bf16.mxu0 %vm933_vm2, %v6935_v58  ;;  %6800 = vmatprep.mubr.msk.bf16.mxu1 %vm933_vm2, %v6936_v59  ;;  %v6993_v59 = vld [vmem:[%s11611_s0 + $0x1b8] sm:$0xff]  }
  0x72   :  { %6673 = vmatmul.mubr.msk.bf16.gmra.mrb[52].mxu0 %vm933_vm2, %v6937_v60  ;;  %6801 = vmatmul.mubr.msk.bf16.gmra.mrb[52].mxu1 %vm933_vm2, %v6938_v61  ;;  %v6994_v60 = vld [vmem:[%s11611_s0 + $0x3b8] sm:$0xff]  }
  0x73   :  { %6676 = vmatprep.mubr.msk.bf16.mxu0 %vm933_vm2, %v6939_v62  ;;  %6804 = vmatprep.mubr.msk.bf16.mxu1 %vm933_vm2, %v6940_v63 }
  0x7a   :  { %6677 = vmatmul.mubr.msk.bf16.gmra.mrb[56].mxu0 %vm933_vm2, %v6941_v0  ;;  %6805 = vmatmul.mubr.msk.bf16.gmra.mrb[56].mxu1 %vm933_vm2, %v6942_v1  ;;  %v6995_v1 = vld [vmem:[%s11611_s0 + $0x1c0] sm:$0xff]  }
  0x7b   :  { %6680 = vmatprep.mubr.msk.bf16.mxu0 %vm933_vm2, %v6943_v2  ;;  %6808 = vmatprep.mubr.msk.bf16.mxu1 %vm933_vm2, %v6944_v3  ;;  %v6996_v2 = vld [vmem:[%s11611_s0 + $0x3c0] sm:$0xff]  }
  0x82   :  { %6681 = vmatmul.mubr.msk.bf16.gmra.mrb[60].mxu0 %vm933_vm2, %v6945_v4  ;;  %6809 = vmatmul.mubr.msk.bf16.gmra.mrb[60].mxu1 %vm933_vm2, %v6946_v5 }
  0x83   :  { %6684 = vmatprep.mubr.msk.bf16.mxu0 %vm933_vm2, %v6947_v6  ;;  %6812 = vmatprep.mubr.msk.bf16.mxu1 %vm933_vm2, %v6948_v7 }
  0x8a   :  { %6685 = vmatmul.mubr.msk.bf16.gmra.mrb[64].mxu0 %vm933_vm2, %v6949_v8  ;;  %6813 = vmatmul.mubr.msk.bf16.gmra.mrb[64].mxu1 %vm933_vm2, %v6950_v9 }
  0x8b   :  { %6688 = vmatprep.mubr.msk.bf16.mxu0 %vm933_vm2, %v6951_v10  ;;  %6816 = vmatprep.mubr.msk.bf16.mxu1 %vm933_vm2, %v6952_v11 }
  0x92   :  { %6689 = vmatmul.mubr.msk.bf16.gmra.mrb[68].mxu0 %vm933_vm2, %v6953_v12  ;;  %6817 = vmatmul.mubr.msk.bf16.gmra.mrb[68].mxu1 %vm933_vm2, %v6954_v13 }
  0x93   :  { %6692 = vmatprep.mubr.msk.bf16.mxu0 %vm933_vm2, %v6955_v14  ;;  %6820 = vmatprep.mubr.msk.bf16.mxu1 %vm933_vm2, %v6956_v15 }
  0x9a   :  { %6693 = vmatmul.mubr.msk.bf16.gmra.mrb[72].mxu0 %vm933_vm2, %v6957_v16  ;;  %6821 = vmatmul.mubr.msk.bf16.gmra.mrb[72].mxu1 %vm933_vm2, %v6958_v17 }
  0x9b   :  { %6696 = vmatprep.mubr.msk.bf16.mxu0 %vm933_vm2, %v6959_v18  ;;  %6824 = vmatprep.mubr.msk.bf16.mxu1 %vm933_vm2, %v6960_v19 }
  0xa2   :  { %6697 = vmatmul.mubr.msk.bf16.gmra.mrb[76].mxu0 %vm933_vm2, %v6961_v20  ;;  %6825 = vmatmul.mubr.msk.bf16.gmra.mrb[76].mxu1 %vm933_vm2, %v6962_v21 }
  0xa3   :  { %6700 = vmatprep.mubr.msk.bf16.mxu0 %vm933_vm2, %v6963_v22  ;;  %6828 = vmatprep.mubr.msk.bf16.mxu1 %vm933_vm2, %v6964_v23  ;;  %v6997_v23 = vld [vmem:[%s11611_s0 + $0x1c8] sm:$0xff]  }
  0xaa   :  { %6701 = vmatmul.mubr.msk.bf16.gmra.mrb[80].mxu0 %vm933_vm2, %v6965_v24  ;;  %6829 = vmatmul.mubr.msk.bf16.gmra.mrb[80].mxu1 %vm933_vm2, %v6966_v25  ;;  %v6998_v24 = vld [vmem:[%s11611_s0 + $0x3c8] sm:$0xff]  }
  0xab   :  { %6704 = vmatprep.mubr.msk.bf16.mxu0 %vm933_vm2, %v6967_v26  ;;  %6832 = vmatprep.mubr.msk.bf16.mxu1 %vm933_vm2, %v6968_v27 }
  0xb2   :  { %6705 = vmatmul.mubr.msk.bf16.gmra.mrb[84].mxu0 %vm933_vm2, %v6969_v28  ;;  %6833 = vmatmul.mubr.msk.bf16.gmra.mrb[84].mxu1 %vm933_vm2, %v6970_v29  ;;  %v6999_v29 = vld [vmem:[%s11611_s0 + $0x1d0] sm:$0xff]  }
  0xb3   :  { %6708 = vmatprep.mubr.msk.bf16.mxu0 %vm933_vm2, %v6971_v30  ;;  %6836 = vmatprep.mubr.msk.bf16.mxu1 %vm933_vm2, %v6972_v31  ;;  %v7000_v30 = vld [vmem:[%s11611_s0 + $0x3d0] sm:$0xff]  }
  0xba   :  { %6709 = vmatmul.mubr.msk.bf16.gmra.mrb[88].mxu0 %vm933_vm2, %v6973_v32  ;;  %6837 = vmatmul.mubr.msk.bf16.gmra.mrb[88].mxu1 %vm933_vm2, %v6974_v33 }
  0xbb   :  { %6712 = vmatprep.mubr.msk.bf16.mxu0 %vm933_vm2, %v6975_v34  ;;  %6840 = vmatprep.mubr.msk.bf16.mxu1 %vm933_vm2, %v6976_v35 }
  0xc2   :  { %6713 = vmatmul.mubr.msk.bf16.gmra.mrb[92].mxu0 %vm933_vm2, %v6977_v36  ;;  %6841 = vmatmul.mubr.msk.bf16.gmra.mrb[92].mxu1 %vm933_vm2, %v6978_v37 }
  0xc3   :  { %6716 = vmatprep.mubr.msk.bf16.mxu0 %vm933_vm2, %v6979_v38  ;;  %6844 = vmatprep.mubr.msk.bf16.mxu1 %vm933_vm2, %v6980_v39 }
  0xca   :  { %6717 = vmatmul.mubr.msk.bf16.gmra.mrb[96].mxu0 %vm933_vm2, %v6981_v40  ;;  %6845 = vmatmul.mubr.msk.bf16.gmra.mrb[96].mxu1 %vm933_vm2, %v6982_v41 }
  0xcb   :  { %6720 = vmatprep.mubr.msk.bf16.mxu0 %vm933_vm2, %v6983_v42  ;;  %6848 = vmatprep.mubr.msk.bf16.mxu1 %vm933_vm2, %v6984_v43 }
  0xd2   :  { %6721 = vmatmul.mubr.msk.bf16.gmra.mrb[100].mxu0 %vm933_vm2, %v6985_v44  ;;  %6849 = vmatmul.mubr.msk.bf16.gmra.mrb[100].mxu1 %vm933_vm2, %v6986_v45 }
  0xd3   :  { %6724 = vmatprep.mubr.msk.bf16.mxu0 %vm933_vm2, %v6987_v46  ;;  %6852 = vmatprep.mubr.msk.bf16.mxu1 %vm933_vm2, %v6988_v47 }
  0xda   :  { %6725 = vmatmul.mubr.msk.bf16.gmra.mrb[104].mxu0 %vm933_vm2, %v6989_v48  ;;  %6853 = vmatmul.mubr.msk.bf16.gmra.mrb[104].mxu1 %vm933_vm2, %v6990_v49  ;;  %v7001_v48 = vld [vmem:[%s11611_s0 + $0x1d8] sm:$0xff]  }
  0xdb   :  { %6728 = vmatprep.mubr.msk.bf16.mxu0 %vm933_vm2, %v6991_v50  ;;  %6856 = vmatprep.mubr.msk.bf16.mxu1 %vm933_vm2, %v6992_v51  ;;  %v7002_v49 = vld [vmem:[%s11611_s0 + $0x3d8] sm:$0xff]  }
  0xdd   :  { %v6622_v53 = vpop.f32.mrb[0].mxu0  ;;  %v6750_v54 = vpop.f32.mrb[0].mxu1 }
  0xde   :  { %v8513_v55 = vadd.f32 %v6622_v53, %v8508_v52  ;;  %v8516_v56 = vadd.f32 %v6750_v54, %v8508_v52  ;;  %v1359_v57 = vpop.f32.mrb[1].mxu0  ;;  %v1871_v58 = vpop.f32.mrb[1].mxu1 }
  0xdf   :  { %v8525_v61 = vadd.f32 %v8508_v52, %v1359_v57  ;;  %v8528_v62 = vadd.f32 %v8508_v52, %v1871_v58  ;;  %v6623_v63 = vpop.f32.mrb[2].mxu0  ;;  %v6751_v0 = vpop.f32.mrb[2].mxu1  ;;  %v7003_v57 = vld [vmem:[%s11611_s0 + $0x1e0] sm:$0xff]  }
  0xe0   :  { %v5720_v3 = vmul.f32 -1.442695, %v8513_v55  ;;  %v5848_v4 = vmul.f32 -1.442695, %v8516_v56  ;;  %v8539_v5 = vadd.f32 %v6623_v63, %v8508_v52  ;;  %v8542_v6 = vadd.f32 %v6751_v0, %v8508_v52  ;;  %v1362_v7 = vpop.f32.mrb[3].mxu0  ;;  %v1874_v8 = vpop.f32.mrb[3].mxu1 }
  0xe1   :  { %v5718_v9 = vmul.f32 -1.442695, %v8525_v61  ;;  %v5846_v10 = vmul.f32 -1.442695, %v8528_v62  ;;  %v8547_v11 = vadd.f32 %v8508_v52, %v1362_v7  ;;  %v8550_v12 = vadd.f32 %v8508_v52, %v1874_v8  ;;  %v7004_v58 = vld [vmem:[%s11611_s0 + $0x3e0] sm:$0xff]  }
  0xe2   :  { %7011 = vpow2.f32 %v5720_v3  ;;  %v5721_v13 = vmul.f32 -1.442695, %v8539_v5  ;;  %6729 = vmatmul.mubr.msk.bf16.gmra.mrb[108].mxu0 %vm933_vm2, %v6993_v59  ;;  %6857 = vmatmul.mubr.msk.bf16.gmra.mrb[108].mxu1 %vm933_vm2, %v6994_v60  ;;  %v5849_v14 = vmul.f32 -1.442695, %v8542_v6 }
  0xe3   :  { %7013 = vpow2.f32 %v5848_v4  ;;  %6732 = vmatprep.mubr.msk.bf16.mxu0 %vm933_vm2, %v6995_v1  ;;  %6860 = vmatprep.mubr.msk.bf16.mxu1 %vm933_vm2, %v6996_v2  ;;  %v5719_v15 = vmul.f32 -1.442695, %v8547_v11  ;;  %v5847_v16 = vmul.f32 -1.442695, %v8550_v12 }
  0xe4   :  { %7015 = vpow2.f32 %v5718_v9 }
  0xe5   :  { %7017 = vpow2.f32 %v5846_v10  ;;  %v6626_v17 = vpop.f32.mrb[4].mxu0  ;;  %v6754_v18 = vpop.f32.mrb[4].mxu1 }
  0xe6   :  { %7019 = vpow2.f32 %v5721_v13  ;;  %v8561_v19 = vadd.f32 %v6626_v17, %v8508_v52  ;;  %v8564_v20 = vadd.f32 %v6754_v18, %v8508_v52  ;;  %v1375_v21 = vpop.f32.mrb[5].mxu0  ;;  %v1887_v22 = vpop.f32.mrb[5].mxu1 }
  0xe7   :  { %7021 = vpow2.f32 %v5849_v14  ;;  %v8573_v25 = vadd.f32 %v8508_v52, %v1375_v21  ;;  %v8576_v26 = vadd.f32 %v8508_v52, %v1887_v22  ;;  %v6627_v27 = vpop.f32.mrb[6].mxu0  ;;  %v6755_v28 = vpop.f32.mrb[6].mxu1 }
  0xe8   :  { %7023 = vpow2.f32 %v5719_v15  ;;  %v5724_v31 = vmul.f32 -1.442695, %v8561_v19  ;;  %v5852_v32 = vmul.f32 -1.442695, %v8564_v20  ;;  %v8587_v33 = vadd.f32 %v6627_v27, %v8508_v52  ;;  %v1378_v34 = vpop.f32.mrb[7].mxu0  ;;  %v1890_v35 = vpop.f32.mrb[7].mxu1 }
  0xe9   :  { %7025 = vpow2.f32 %v5847_v16  ;;  %v5722_v36 = vmul.f32 -1.442695, %v8573_v25  ;;  %v5850_v37 = vmul.f32 -1.442695, %v8576_v26  ;;  %v8615_v2 = vadd.f32 %v6755_v28, %v8508_v52  ;;  %v7006_v27 = vld [vmem:[%s11611_s0 + $0x3e8] sm:$0xff]  }
  0xea   :  { %7027 = vpow2.f32 %v5724_v31  ;;  %v5725_v38 = vmul.f32 -1.442695, %v8587_v33  ;;  %6733 = vmatmul.mubr.msk.bf16.gmra.mrb[112].mxu0 %vm933_vm2, %v6997_v23  ;;  %6861 = vmatmul.mubr.msk.bf16.gmra.mrb[112].mxu1 %vm933_vm2, %v6998_v24  ;;  %v8620_v8 = vadd.f32 %v8508_v52, %v1378_v34  ;;  %v8625_v13 = vadd.f32 %v8508_v52, %v1890_v35  ;;  %v7005_v24 = vld [vmem:[%s11611_s0 + $0x1e8] sm:$0xff]   ;;  %v7007_v35 = vld [vmem:[%s11611_s0 + $0x1f0] sm:$0xff]  }
  0xeb   :  { %7029 = vpow2.f32 %v5852_v32  ;;  %6736 = vmatprep.mubr.msk.bf16.mxu0 %vm933_vm2, %v6999_v29  ;;  %6864 = vmatprep.mubr.msk.bf16.mxu1 %vm933_vm2, %v7000_v30  ;;  %v5853_v21 = vmul.f32 -1.442695, %v8615_v2 }
  0xec   :  { %v7012_v39 = vpop.eup %7011  ;;  %7031 = vpow2.f32 %v5722_v36  ;;  %v5723_v30 = vmul.f32 -1.442695, %v8620_v8 }
  0xed   :  { %v7014_v40 = vpop.eup %7013  ;;  %v3152_v41 = vadd.f32 1.0, %v7012_v39  ;;  %7033 = vpow2.f32 %v5850_v37  ;;  %v6630_v42 = vpop.f32.mrb[8].mxu0 }
  0xee   :  { %v6758_v43 = vpop.f32.mrb[8].mxu1  ;;  %v7016_v44 = vpop.eup %7015  ;;  %v3280_v45 = vadd.f32 1.0, %v7014_v40  ;;  %7035 = vpow2.f32 %v5725_v38  ;;  %v8630_v16 = vadd.f32 %v6630_v42, %v8508_v52  ;;  %v5851_v38 = vmul.f32 -1.442695, %v8625_v13  ;;  %v7008_v42 = vld [vmem:[%s11611_s0 + $0x3f0] sm:$0xff]  }
  0xef   :  { %v1391_v46 = vpop.f32.mrb[9].mxu0  ;;  %v1903_v47 = vpop.f32.mrb[9].mxu1  ;;  %7037 = vrcp.f32 %v3152_v41  ;;  %v3150_v51 = vadd.f32 1.0, %v7016_v44  ;;  %v8634_v22 = vadd.f32 %v6758_v43, %v8508_v52 }
  0xf0   :  { %v7018_v50 = vpop.eup %7017  ;;  %v8602_v53 = vpop.f32.mrb[10].mxu0  ;;  %7039 = vrcp.f32 %v3280_v45  ;;  %v8646_v31 = vadd.f32 %v8508_v52, %v1391_v46  ;;  %v8657_v39 = vadd.f32 %v8508_v52, %v1903_v47  ;;  %v5728_v45 = vmul.f32 -1.442695, %v8630_v16 }
  0xf1   :  { %v8604_v54 = vpop.f32.mrb[10].mxu1  ;;  %v7020_v59 = vpop.eup %7019  ;;  %v3278_v60 = vadd.f32 1.0, %v7018_v50  ;;  %7041 = vrcp.f32 %v3150_v51  ;;  %v5856_v50 = vmul.f32 -1.442695, %v8634_v22  ;;  %v8674_v51 = vadd.f32 %v8602_v53, %v8508_v52 }
  0xf2   :  { %v8612_v63 = vpop.f32.mrb[11].mxu0  ;;  %v7022_v0 = vpop.eup %7021  ;;  %v3153_v1 = vadd.f32 1.0, %v7020_v59  ;;  %6737 = vmatmul.mubr.msk.bf16.gmra.mrb[116].mxu0 %vm933_vm2, %v7001_v48  ;;  %6865 = vmatmul.mubr.msk.bf16.gmra.mrb[116].mxu1 %vm933_vm2, %v7002_v49 }
  0xf3   :  { %v8617_v3 = vpop.f32.mrb[11].mxu1  ;;  %v7024_v4 = vpop.eup %7023  ;;  %7043 = vrcp.f32 %v3278_v60  ;;  %v3281_v7 = vadd.f32 1.0, %v7022_v0  ;;  %6740 = vmatprep.mubr.msk.bf16.mxu0 %vm933_vm2, %v7003_v57  ;;  %6868 = vmatprep.mubr.msk.bf16.mxu1 %vm933_vm2, %v7004_v58  ;;  %v5726_v60 = vmul.f32 -1.442695, %v8646_v31  ;;  %v8682_v0 = vadd.f32 %v8604_v54, %v8508_v52 }
  0xf4   :  { %v7026_v9 = vpop.eup %7025  ;;  %7045 = vrcp.f32 %v3153_v1  ;;  %v3151_v10 = vadd.f32 1.0, %v7024_v4  ;;  %v5854_v4 = vmul.f32 -1.442695, %v8657_v39 }
  0xf5   :  { %v7028_v14 = vpop.eup %7027  ;;  %7047 = vrcp.f32 %v3281_v7  ;;  %v3279_v15 = vadd.f32 1.0, %v7026_v9  ;;  %v8636_v23 = vpop.f32.mrb[12].mxu0 }
  0xf6   :  { %v7030_v17 = vpop.eup %7029  ;;  %7049 = vrcp.f32 %v3151_v10  ;;  %v3156_v18 = vadd.f32 1.0, %v7028_v14  ;;  %v8648_v32 = vpop.f32.mrb[12].mxu1  ;;  %v8697_v10 = vadd.f32 %v8508_v52, %v8617_v3 }
  0xf7   :  { %v7032_v28 = vpop.eup %7031  ;;  %7051 = vrcp.f32 %v3279_v15  ;;  %v3284_v29 = vadd.f32 1.0, %v7030_v17  ;;  %v8650_v34 = vpop.f32.mrb[13].mxu0 }
  0xf8   :  { %v7034_v36 = vpop.eup %7033  ;;  %7053 = vrcp.f32 %v3156_v18  ;;  %v3154_v37 = vadd.f32 1.0, %v7032_v28  ;;  %v8659_v40 = vpop.f32.mrb[13].mxu1  ;;  %v7009_v28 = vld [vmem:[%s11611_s0 + $0x1f8] sm:$0xff]  }
  0xf9   :  { %v8661_v41 = vpop.f32.mrb[14].mxu0  ;;  %v7036_v43 = vpop.eup %7035  ;;  %7055 = vrcp.f32 %v3284_v29  ;;  %v3282_v44 = vadd.f32 1.0, %v7034_v36  ;;  %v7010_v29 = vld [vmem:[%s11611_s0 + $0x3f8] sm:$0xff]   ;;  %v8728_v36 = vadd.f32 %v8636_v23, %v8508_v52 }
  0xfa   :  { %v8667_v46 = vpop.f32.mrb[14].mxu1  ;;  %v8669_v48 = vpop.f32.mrb[15].mxu0  ;;  %7057 = vrcp.f32 %v3154_v37  ;;  %v3157_v49 = vadd.f32 1.0, %v7036_v43  ;;  %6741 = vmatmul.mubr.msk.bf16.gmra.mrb[120].mxu0 %vm933_vm2, %v7005_v24  ;;  %6869 = vmatmul.mubr.msk.bf16.gmra.mrb[120].mxu1 %vm933_vm2, %v7006_v27 }
  0xfb   :  { %v7038_v47 = vpop.eup %7037  ;;  %v8676_v57 = vpop.f32.mrb[15].mxu1  ;;  %7059 = vrcp.f32 %v3282_v44  ;;  %6744 = vmatprep.mubr.msk.bf16.mxu0 %vm933_vm2, %v7007_v35  ;;  %6872 = vmatprep.mubr.msk.bf16.mxu1 %vm933_vm2, %v7008_v42 }
  0xfc   :  { %v7040_v58 = vpop.eup %7039  ;;  %v3920_v59 = vmul.f32 %v7038_v47, %v8513_v55  ;;  %7061 = vrcp.f32 %v3157_v49  ;;  %v8690_v55 = vadd.f32 %v8508_v52, %v8612_v63  ;;  %v5729_v63 = vmul.f32 -1.442695, %v8674_v51 }
  0xfd   :  { %v7042_v1 = vpop.eup %7041  ;;  %v4048_v53 = vmul.f32 %v7040_v58, %v8516_v56  ;;  %7063 = vpow2.f32 %v5853_v21  ;;  %v8701_v17 = vpop.f32.mrb[16].mxu0  ;;  %v5857_v21 = vmul.f32 -1.442695, %v8682_v0 }
  0xfe   :  { %v7044_v54 = vpop.eup %7043  ;;  %v6232_v7 = vpack.c.bf16 %v3920_v59, %v3920_v59  ;;  %v3918_v9 = vmul.f32 %v7042_v1, %v8525_v61  ;;  %7065 = vpow2.f32 %v5723_v30  ;;  %v8703_v18 = vpop.f32.mrb[16].mxu1  ;;  %v5855_v1 = vmul.f32 -1.442695, %v8697_v10 }
  0xff   :  { %v7046_v56 = vpop.eup %7045  ;;  %v6360_v14 = vpack.c.bf16 %v4048_v53, %v4048_v53  ;;  %v4046_v15 = vmul.f32 %v7044_v54, %v8528_v62  ;;  %7067 = vpow2.f32 %v5851_v38  ;;  %v8711_v62 = vpop.f32.mrb[17].mxu0  ;;  %v5732_v54 = vmul.f32 -1.442695, %v8728_v36 }
 0x100   :  { %v7048_v24 = vpop.eup %7047  ;;  %5201 = vst.msk [vmem:[%s11613_s3 + $0x8] sm:$0xf] %vm5198_vm3, %v6232_v7  ;;  %v6230_v61 = vpack.c.bf16 %v3918_v9, %v3918_v9  ;;  %v3921_v3 = vmul.f32 %v7046_v56, %v8539_v5  ;;  %v8713_v27 = vpop.f32.mrb[17].mxu1  ;;  %7069 = vpow2.f32 %v5728_v45 }
 0x101   :  { %v7050_v30 = vpop.eup %7049  ;;  %5329 = vst.msk [vmem:[%s11613_s3 + $0x208] sm:$0xf] %vm5198_vm3, %v6360_v14  ;;  %v6358_v5 = vpack.c.bf16 %v4046_v15, %v4046_v15  ;;  %v4049_v35 = vmul.f32 %v7048_v24, %v8542_v6  ;;  %v8730_v37 = vpop.f32.mrb[18].mxu0  ;;  %7071 = vpow2.f32 %v5856_v50  ;;  %v8741_v6 = vadd.f32 %v8648_v32, %v8508_v52 }
 0x102   :  { %v8732_v38 = vpop.f32.mrb[18].mxu1  ;;  %v7052_v42 = vpop.eup %7051  ;;  %5199 = vst.msk [vmem:[%s11613_s3] sm:$0xf] %vm5198_vm3, %v6230_v61  ;;  %v6233_v43 = vpack.c.bf16 %v3921_v3, %v3921_v3  ;;  %v3919_v44 = vmul.f32 %v7050_v30, %v8547_v11  ;;  %7073 = vpow2.f32 %v5726_v60  ;;  %v5727_v11 = vmul.f32 -1.442695, %v8690_v55  ;;  %6745 = vmatmul.mubr.msk.bf16.gmra.mrb[124].mxu0 %vm933_vm2, %v7009_v28  ;;  %6873 = vmatmul.mubr.msk.bf16.gmra.mrb[124].mxu1 %vm933_vm2, %v7010_v29 }
 0x103   :  { %v8743_v23 = vpop.f32.mrb[19].mxu0  ;;  %v8745_v45 = vpop.f32.mrb[19].mxu1  ;;  %5327 = vst.msk [vmem:[%s11613_s3 + $0x200] sm:$0xf] %vm5198_vm3, %v6358_v5  ;;  %v6361_v49 = vpack.c.bf16 %v4049_v35, %v4049_v35  ;;  %v4047_v58 = vmul.f32 %v7052_v42, %v8550_v12  ;;  %7075 = vpow2.f32 %v5854_v4  ;;  %v5860_v9 = vmul.f32 -1.442695, %v8741_v6 }
 0x104   :  { %v7054_v47 = vpop.eup %7053  ;;  %5202 = vst.msk [vmem:[%s11613_s3 + $0xc] sm:$0xf] %vm5198_vm3, %v6233_v43  ;;  %v6231_v32 = vpack.c.bf16 %v3919_v44, %v3919_v44  ;;  %7077 = vpow2.f32 %v5729_v63 }
 0x105   :  { %v7056_v50 = vpop.eup %7055  ;;  %v3924_v59 = vmul.f32 %v7054_v47, %v8561_v19  ;;  %5330 = vst.msk [vmem:[%s11613_s3 + $0x20c] sm:$0xf] %vm5198_vm3, %v6361_v49  ;;  %v6359_v60 = vpack.c.bf16 %v4047_v58, %v4047_v58  ;;  %7079 = vpow2.f32 %v5857_v21  ;;  %v8778_v15 = vpop.f32.mrb[20].mxu0 }
 0x106   :  { %v7058_v12 = vpop.eup %7057  ;;  %v4052_v53 = vmul.f32 %v7056_v50, %v8564_v20  ;;  %5200 = vst.msk [vmem:[%s11613_s3 + $0x4] sm:$0xf] %vm5198_vm3, %v6231_v32  ;;  %7081 = vpow2.f32 %v5727_v11  ;;  %v8780_v63 = vpop.f32.mrb[20].mxu1  ;;  %v8817_v50 = vadd.f32 %v8508_v52, %v8650_v34  ;;  %v8826_v34 = vadd.f32 %v8508_v52, %v8659_v40 }
 0x107   :  { %v7060_v19 = vpop.eup %7059  ;;  %v6236_v4 = vpack.c.bf16 %v3924_v59, %v3924_v59  ;;  %v3922_v7 = vmul.f32 %v7058_v12, %v8573_v25  ;;  %5328 = vst.msk [vmem:[%s11613_s3 + $0x204] sm:$0xf] %vm5198_vm3, %v6359_v60  ;;  %7083 = vpow2.f32 %v5855_v1  ;;  %v8787_v3 = vpop.f32.mrb[21].mxu0 }
 0x108   :  { %v7062_v56 = vpop.eup %7061  ;;  %v6364_v20 = vpack.c.bf16 %v4052_v53, %v4052_v53  ;;  %v4050_v14 = vmul.f32 %v7060_v19, %v8576_v26  ;;  %v8789_v21 = vpop.f32.mrb[21].mxu1  ;;  %7085 = vpow2.f32 %v5732_v54 }
 0x109   :  { %v7064_v24 = vpop.eup %7063  ;;  %5205 = vst.msk [vmem:[%s11613_s3 + $0x18] sm:$0xf] %vm5198_vm3, %v6236_v4  ;;  %v6234_v25 = vpack.c.bf16 %v3922_v7, %v3922_v7  ;;  %v3925_v61 = vmul.f32 %v7062_v56, %v8587_v33  ;;  %v8795_v30 = vpop.f32.mrb[22].mxu0  ;;  %7087 = vpow2.f32 %v5860_v9  ;;  %v5730_v9 = vmul.f32 -1.442695, %v8817_v50 }
 0x10a   :  { %v7066_v26 = vpop.eup %7065  ;;  %5333 = vst.msk [vmem:[%s11613_s3 + $0x218] sm:$0xf] %vm5198_vm3, %v6364_v20  ;;  %v6362_v28 = vpack.c.bf16 %v4050_v14, %v4050_v14  ;;  %v3285_v29 = vadd.f32 1.0, %v7064_v24  ;;  %v8797_v5 = vpop.f32.mrb[22].mxu1 }
 0x10b   :  { %v7068_v35 = vpop.eup %7067  ;;  %5203 = vst.msk [vmem:[%s11613_s3 + $0x10] sm:$0xf] %vm5198_vm3, %v6234_v25  ;;  %v6237_v33 = vpack.c.bf16 %v3925_v61, %v3925_v61  ;;  %v3155_v42 = vadd.f32 1.0, %v7066_v26  ;;  %v8803_v43 = vpop.f32.mrb[23].mxu0  ;;  %v8834_v25 = vadd.f32 %v8661_v41, %v8508_v52  ;;  %v8838_v61 = vadd.f32 %v8667_v46, %v8508_v52 }
 0x10c   :  { %v8805_v44 = vpop.f32.mrb[23].mxu1  ;;  %v7070_v47 = vpop.eup %7069  ;;  %5331 = vst.msk [vmem:[%s11613_s3 + $0x210] sm:$0xf] %vm5198_vm3, %v6362_v28  ;;  %7089 = vrcp.f32 %v3285_v29  ;;  %v3283_v49 = vadd.f32 1.0, %v7068_v35  ;;  %v8846_v35 = vadd.f32 %v8508_v52, %v8669_v48 }
 0x10d   :  { %v7072_v58 = vpop.eup %7071  ;;  %5206 = vst.msk [vmem:[%s11613_s3 + $0x1c] sm:$0xf] %vm5198_vm3, %v6237_v33  ;;  %7091 = vrcp.f32 %v3155_v42  ;;  %v3160_v11 = vadd.f32 1.0, %v7070_v47  ;;  %v8819_v54 = vpop.f32.mrb[24].mxu0  ;;  %v8850_v33 = vadd.f32 %v8508_v52, %v8676_v57  ;;  %v5858_v57 = vmul.f32 -1.442695, %v8826_v34 }
 0x10e   :  { %v7074_v32 = vpop.eup %7073  ;;  %7093 = vrcp.f32 %v3283_v49  ;;  %v3288_v59 = vadd.f32 1.0, %v7072_v58  ;;  %v8821_v19 = vpop.f32.mrb[24].mxu1  ;;  %v8858_v49 = vadd.f32 %v8701_v17, %v8508_v52  ;;  %v8862_v58 = vadd.f32 %v8703_v18, %v8508_v52 }
 0x10f   :  { %v7076_v1 = vpop.eup %7075  ;;  %7095 = vrcp.f32 %v3160_v11  ;;  %v3158_v12 = vadd.f32 1.0, %v7074_v32  ;;  %v8828_v56 = vpop.f32.mrb[25].mxu0  ;;  %v8867_v32 = vadd.f32 %v8508_v52, %v8711_v62  ;;  %v5861_v17 = vmul.f32 -1.442695, %v8838_v61 }
 0x110   :  { %v7078_v60 = vpop.eup %7077  ;;  %7097 = vrcp.f32 %v3288_v59  ;;  %v3286_v53 = vadd.f32 1.0, %v7076_v1  ;;  %v8830_v20 = vpop.f32.mrb[25].mxu1  ;;  %v5736_v62 = vmul.f32 -1.442695, %v8858_v49 }
 0x111   :  { %v7080_v4 = vpop.eup %7079  ;;  %7099 = vrcp.f32 %v3158_v12  ;;  %v3161_v7 = vadd.f32 1.0, %v7078_v60  ;;  %v8840_v26 = vpop.f32.mrb[26].mxu0  ;;  %v5733_v12 = vmul.f32 -1.442695, %v8834_v25 }
 0x112   :  { %v7082_v14 = vpop.eup %7081  ;;  %7101 = vrcp.f32 %v3286_v53  ;;  %v3289_v24 = vadd.f32 1.0, %v7080_v4  ;;  %v8842_v28 = vpop.f32.mrb[26].mxu1  ;;  %v5731_v53 = vmul.f32 -1.442695, %v8846_v35  ;;  %v5859_v4 = vmul.f32 -1.442695, %v8850_v33 }
 0x113   :  { %v7084_v40 = vpop.eup %7083  ;;  %7103 = vrcp.f32 %v3161_v7  ;;  %v3159_v29 = vadd.f32 1.0, %v7082_v14  ;;  %v8852_v41 = vpop.f32.mrb[27].mxu0 }
 0x114   :  { %v8854_v42 = vpop.f32.mrb[27].mxu1  ;;  %v7086_v46 = vpop.eup %7085  ;;  %7105 = vrcp.f32 %v3289_v24  ;;  %v3287_v47 = vadd.f32 1.0, %v7084_v40  ;;  %v5864_v24 = vmul.f32 -1.442695, %v8862_v58 }
 0x115   :  { %v7088_v48 = vpop.eup %7087  ;;  %7107 = vrcp.f32 %v3159_v29  ;;  %v3164_v11 = vadd.f32 1.0, %v7086_v46  ;;  %v8877_v40 = vpop.f32.mrb[28].mxu0 }
 0x116   :  { %v7090_v59 = vpop.eup %7089  ;;  %7109 = vrcp.f32 %v3287_v47  ;;  %v3292_v1 = vadd.f32 1.0, %v7088_v48  ;;  %11614 = vst [vmem:[#allocation2_spill] sm:$0xff] %v8877_v40  ;;  %v8879_v29 = vpop.f32.mrb[28].mxu1  ;;  %v5734_v48 = vmul.f32 -1.442695, %v8867_v32  ;;  %v8890_v40 = vadd.f32 %v8508_v52, %v8713_v27 }
 0x117   :  { %v7092_v60 = vpop.eup %7091  ;;  %v4053_v18 = vmul.f32 %v7090_v59, %v8615_v2  ;;  %7111 = vrcp.f32 %v3164_v11  ;;  %11615 = vst [vmem:[#allocation3_spill] sm:$0xff] %v8879_v29  ;;  %v8883_v11 = vpop.f32.mrb[29].mxu0 }
 0x118   :  { %v7094_v7 = vpop.eup %7093  ;;  %v3923_v14 = vmul.f32 %v7092_v60, %v8620_v8  ;;  %7113 = vrcp.f32 %v3292_v1  ;;  %v8885_v59 = vpop.f32.mrb[29].mxu1 }
 0x119   :  { %v7096_v46 = vpop.eup %7095  ;;  %v6365_v47 = vpack.c.bf16 %v4053_v18, %v4053_v18  ;;  %v4051_v2 = vmul.f32 %v7094_v7, %v8625_v13  ;;  %7115 = vpow2.f32 %v5730_v9  ;;  %v8892_v29 = vpop.f32.mrb[30].mxu0 }
 0x11a   :  { %v7098_v8 = vpop.eup %7097  ;;  %v6235_v1 = vpack.c.bf16 %v3923_v14, %v3923_v14  ;;  %v3928_v60 = vmul.f32 %v7096_v46, %v8630_v16  ;;  %7117 = vpow2.f32 %v5858_v57  ;;  %v8894_v18 = vpop.f32.mrb[30].mxu1  ;;  %v8903_v16 = vadd.f32 %v8730_v37, %v8508_v52 }
 0x11b   :  { %v7100_v13 = vpop.eup %7099  ;;  %5334 = vst.msk [vmem:[%s11613_s3 + $0x21c] sm:$0xf] %vm5198_vm3, %v6365_v47  ;;  %v6363_v9 = vpack.c.bf16 %v4051_v2, %v4051_v2  ;;  %v4056_v7 = vmul.f32 %v7098_v8, %v8634_v22  ;;  %7119 = vpow2.f32 %v5733_v12  ;;  %v8905_v27 = vpop.f32.mrb[31].mxu0  ;;  %v8916_v22 = vadd.f32 %v8732_v38, %v8508_v52 }
 0x11c   :  { %v8907_v57 = vpop.f32.mrb[31].mxu1  ;;  %v7102_v14 = vpop.eup %7101  ;;  %5204 = vst.msk [vmem:[%s11613_s3 + $0x14] sm:$0xf] %vm5198_vm3, %v6235_v1  ;;  %v6240_v46 = vpack.c.bf16 %v3928_v60, %v3928_v60  ;;  %v3926_v47 = vmul.f32 %v7100_v13, %v8646_v31  ;;  %7121 = vpow2.f32 %v5861_v17  ;;  %v8925_v8 = vadd.f32 %v8508_v52, %v8743_v23 }
 0x11d   :  { %v7104_v37 = vpop.eup %7103  ;;  %5332 = vst.msk [vmem:[%s11613_s3 + $0x214] sm:$0xf] %vm5198_vm3, %v6363_v9  ;;  %v6368_v12 = vpack.c.bf16 %v4056_v7, %v4056_v7  ;;  %v4054_v2 = vmul.f32 %v7102_v14, %v8657_v39  ;;  %7123 = vpow2.f32 %v5731_v53  ;;  %v5862_v1 = vmul.f32 -1.442695, %v8890_v40  ;;  %v8945_v7 = vpop.f32.mrb[32].mxu0 }
 0x11e   :  { %v7106_v31 = vpop.eup %7105  ;;  %5209 = vst.msk [vmem:[%s11613_s3 + $0x28] sm:$0xf] %vm5198_vm3, %v6240_v46  ;;  %v6238_v38 = vpack.c.bf16 %v3926_v47, %v3926_v47  ;;  %v3929_v17 = vmul.f32 %v7104_v37, %v8674_v51  ;;  %7125 = vpow2.f32 %v5859_v4  ;;  %v5737_v53 = vmul.f32 -1.442695, %v8903_v16  ;;  %v8947_v14 = vpop.f32.mrb[32].mxu1 }
 0x11f   :  { %v7108_v60 = vpop.eup %7107  ;;  %5337 = vst.msk [vmem:[%s11613_s3 + $0x228] sm:$0xf] %vm5198_vm3, %v6368_v12  ;;  %v6366_v39 = vpack.c.bf16 %v4054_v2, %v4054_v2  ;;  %v4057_v23 = vmul.f32 %v7106_v31, %v8682_v0  ;;  %7127 = vpow2.f32 %v5736_v62  ;;  %v5865_v9 = vmul.f32 -1.442695, %v8916_v22 }
 0x120   :  { %v7110_v13 = vpop.eup %7109  ;;  %5207 = vst.msk [vmem:[%s11613_s3 + $0x20] sm:$0xf] %vm5198_vm3, %v6238_v38  ;;  %v6241_v51 = vpack.c.bf16 %v3929_v17, %v3929_v17  ;;  %v3927_v4 = vmul.f32 %v7108_v60, %v8690_v55  ;;  %7129 = vpow2.f32 %v5864_v24  ;;  %v5735_v47 = vmul.f32 -1.442695, %v8925_v8  ;;  %v8955_v55 = vpop.f32.mrb[33].mxu0 }
 0x121   :  { %v7112_v0 = vpop.eup %7111  ;;  %5335 = vst.msk [vmem:[%s11613_s3 + $0x220] sm:$0xf] %vm5198_vm3, %v6366_v39  ;;  %v6369_v62 = vpack.c.bf16 %v4057_v23, %v4057_v23  ;;  %v4055_v46 = vmul.f32 %v7110_v13, %v8697_v10  ;;  %7131 = vpow2.f32 %v5734_v48  ;;  %v8957_v24 = vpop.f32.mrb[33].mxu1 }
 0x122   :  { %v7114_v37 = vpop.eup %7113  ;;  %5210 = vst.msk [vmem:[%s11613_s3 + $0x2c] sm:$0xf] %vm5198_vm3, %v6241_v51  ;;  %v6239_v12 = vpack.c.bf16 %v3927_v4, %v3927_v4  ;;  %v3932_v2 = vmul.f32 %v7112_v0, %v8728_v36  ;;  %7133 = vpow2.f32 %v5862_v1  ;;  %v8964_v31 = vpop.f32.mrb[34].mxu0 }
 0x123   :  { %v8966_v10 = vpop.f32.mrb[34].mxu1  ;;  %v7116_v48 = vpop.eup %7115  ;;  %5338 = vst.msk [vmem:[%s11613_s3 + $0x22c] sm:$0xf] %vm5198_vm3, %v6369_v62  ;;  %v6367_v38 = vpack.c.bf16 %v4055_v46, %v4055_v46  ;;  %v4060_v17 = vmul.f32 %v7114_v37, %v8741_v6  ;;  %7135 = vpow2.f32 %v5737_v53 }
 0x124   :  { %v8973_v60 = vpop.f32.mrb[35].mxu0  ;;  %v8975_v39 = vpop.f32.mrb[35].mxu1  ;;  %5208 = vst.msk [vmem:[%s11613_s3 + $0x24] sm:$0xf] %vm5198_vm3, %v6239_v12  ;;  %v6244_v1 = vpack.c.bf16 %v3932_v2, %v3932_v2  ;;  %v3162_v23 = vadd.f32 1.0, %v7116_v48  ;;  %7137 = vpow2.f32 %v5865_v9 }
 0x125   :  { %11616 = vst [vmem:[#allocation4_spill] sm:$0xff] %v8975_v39  ;;  %v7118_v36 = vpop.eup %7117  ;;  %5336 = vst.msk [vmem:[%s11613_s3 + $0x224] sm:$0xf] %vm5198_vm3, %v6367_v38  ;;  %v6372_v6 = vpack.c.bf16 %v4060_v17, %v4060_v17  ;;  %7139 = vpow2.f32 %v5735_v47  ;;  %v8995_v47 = vadd.f32 %v8508_v52, %v8745_v45  ;;  %v8997_v37 = vpop.f32.mrb[36].mxu0 }
 0x126   :  { %v7120_v13 = vpop.eup %7119  ;;  %v3290_v53 = vadd.f32 1.0, %v7118_v36  ;;  %5213 = vst.msk [vmem:[%s11613_s3 + $0x38] sm:$0xf] %vm5198_vm3, %v6244_v1  ;;  %7141 = vrcp.f32 %v3162_v23  ;;  %11617 = vst [vmem:[#allocation5_spill] sm:$0xff] %v8997_v37  ;;  %v8999_v12 = vpop.f32.mrb[36].mxu1 }
 0x127   :  { %v7122_v51 = vpop.eup %7121  ;;  %v3165_v4 = vadd.f32 1.0, %v7120_v13  ;;  %5341 = vst.msk [vmem:[%s11613_s3 + $0x238] sm:$0xf] %vm5198_vm3, %v6372_v6  ;;  %11618 = vst [vmem:[#allocation6_spill] sm:$0xff] %v8999_v12  ;;  %v9001_v38 = vpop.f32.mrb[37].mxu0  ;;  %v9009_v6 = vadd.f32 %v8778_v15, %v8508_v52 }
 0x128   :  { %v7124_v0 = vpop.eup %7123  ;;  %7143 = vrcp.f32 %v3290_v53  ;;  %v3293_v9 = vadd.f32 1.0, %v7122_v51  ;;  %11619 = vst [vmem:[#allocation7_spill] sm:$0xff] %v9001_v38  ;;  %v9003_v1 = vpop.f32.mrb[37].mxu1  ;;  %v9013_v53 = vadd.f32 %v8780_v63, %v8508_v52  ;;  %v9028_v63 = vadd.f32 %v8508_v52, %v8789_v21 }
 0x129   :  { %v7126_v62 = vpop.eup %7125  ;;  %7145 = vrcp.f32 %v3165_v4  ;;  %v3163_v46 = vadd.f32 1.0, %v7124_v0  ;;  %11620 = vst [vmem:[#allocation8_spill] sm:$0xff] %v9003_v1  ;;  %v9005_v23 = vpop.f32.mrb[38].mxu0  ;;  %v5740_v21 = vmul.f32 -1.442695, %v9009_v6 }
 0x12a   :  { %v7128_v2 = vpop.eup %7127  ;;  %7147 = vrcp.f32 %v3293_v9  ;;  %v3291_v48 = vadd.f32 1.0, %v7126_v62  ;;  %11621 = vst [vmem:[#allocation9_spill] sm:$0xff] %v9005_v23  ;;  %v9015_v51 = vpop.f32.mrb[38].mxu1  ;;  %v5863_v62 = vmul.f32 -1.442695, %v8995_v47 }
 0x12b   :  { %v7130_v17 = vpop.eup %7129  ;;  %7149 = vrcp.f32 %v3163_v46  ;;  %v3168_v36 = vadd.f32 1.0, %v7128_v2  ;;  %11622 = vst [vmem:[#allocation10_spill] sm:$0xff] %v9015_v51  ;;  %v9017_v4 = vpop.f32.mrb[39].mxu0  ;;  %v9022_v46 = vadd.f32 %v8508_v52, %v8787_v3  ;;  %v9036_v3 = vadd.f32 %v8797_v5, %v8508_v52 }
 0x12c   :  { %v7132_v13 = vpop.eup %7131  ;;  %7151 = vrcp.f32 %v3291_v48  ;;  %v3296_v45 = vadd.f32 1.0, %v7130_v17  ;;  %11623 = vst [vmem:[#allocation11_spill] sm:$0xff] %v9017_v4  ;;  %v9024_v2 = vpop.f32.mrb[39].mxu1  ;;  %v9032_v17 = vadd.f32 %v8795_v30, %v8508_v52  ;;  %v5868_v4 = vmul.f32 -1.442695, %v9013_v53 }
 0x12d   :  { %v7134_v0 = vpop.eup %7133  ;;  %7153 = vrcp.f32 %v3168_v36  ;;  %v3166_v9 = vadd.f32 1.0, %v7132_v13  ;;  %11624 = vst [vmem:[#allocation12_spill] sm:$0xff] %v9024_v2  ;;  %v9040_v2 = vadd.f32 %v8508_v52, %v8803_v43  ;;  %v9047_v5 = vadd.f32 %v8508_v52, %v8805_v44  ;;  %v9051_v43 = vpop.f32.mrb[40].mxu1 }
 0x12e   :  { %v7136_v15 = vpop.eup %7135  ;;  %7155 = vrcp.f32 %v3296_v45  ;;  %v3294_v48 = vadd.f32 1.0, %v7134_v0  ;;  %11626 = vst [vmem:[#allocation14_spill] sm:$0xff] %v9051_v43  ;;  %v5741_v1 = vmul.f32 -1.442695, %v9032_v17 }
 0x12f   :  { %v7138_v36 = vpop.eup %7137  ;;  %7157 = vrcp.f32 %v3166_v9  ;;  %v3169_v13 = vadd.f32 1.0, %v7136_v15  ;;  %v5738_v9 = vmul.f32 -1.442695, %v9022_v46  ;;  %v9049_v15 = vpop.f32.mrb[40].mxu0  ;;  %v5739_v43 = vmul.f32 -1.442695, %v9040_v2 }
 0x130   :  { %v7140_v45 = vpop.eup %7139  ;;  %7159 = vrcp.f32 %v3294_v48  ;;  %v3297_v0 = vadd.f32 1.0, %v7138_v36  ;;  %11625 = vst [vmem:[#allocation13_spill] sm:$0xff] %v9049_v15  ;;  %v5866_v36 = vmul.f32 -1.442695, %v9028_v63  ;;  %v5869_v15 = vmul.f32 -1.442695, %v9036_v3 }
 0x131   :  { %v7142_v30 = vpop.eup %7141  ;;  %7161 = vrcp.f32 %v3169_v13  ;;  %v3167_v51 = vadd.f32 1.0, %v7140_v45  ;;  %v9056_v13 = vpop.f32.mrb[41].mxu0 }
 0x132   :  { %v7144_v23 = vpop.eup %7143  ;;  %v3930_v48 = vmul.f32 %v7142_v30, %v8817_v50  ;;  %7163 = vrcp.f32 %v3297_v0  ;;  %11627 = vst [vmem:[#allocation15_spill] sm:$0xff] %v9056_v13  ;;  %v9058_v45 = vpop.f32.mrb[41].mxu1 }
 0x133   :  { %11628 = vst [vmem:[#allocation16_spill] sm:$0xff] %v9058_v45  ;;  %v7146_v38 = vpop.eup %7145  ;;  %v4058_v44 = vmul.f32 %v7144_v23, %v8826_v34  ;;  %7165 = vrcp.f32 %v3167_v51  ;;  %v9063_v12 = vpop.f32.mrb[42].mxu0  ;;  %v9070_v45 = vadd.f32 %v8819_v54, %v8508_v52 }
 0x134   :  { %11629 = vst [vmem:[#allocation17_spill] sm:$0xff] %v9063_v12  ;;  %v9065_v50 = vpop.f32.mrb[42].mxu1  ;;  %v7148_v0 = vpop.eup %7147  ;;  %v6242_v30 = vpack.c.bf16 %v3930_v48, %v3930_v48  ;;  %v3933_v37 = vmul.f32 %v7146_v38, %v8834_v25  ;;  %7167 = vpow2.f32 %v5863_v62  ;;  %v9085_v38 = vadd.f32 %v8821_v19, %v8508_v52 }
 0x135   :  { %11630 = vst [vmem:[#allocation18_spill] sm:$0xff] %v9065_v50  ;;  %v9072_v13 = vpop.f32.mrb[43].mxu0  ;;  %v9074_v34 = vpop.f32.mrb[43].mxu1  ;;  %v6370_v51 = vpack.c.bf16 %v4058_v44, %v4058_v44  ;;  %v4061_v39 = vmul.f32 %v7148_v0, %v8838_v61  ;;  %7169 = vpow2.f32 %v5740_v21  ;;  %v5867_v50 = vmul.f32 -1.442695, %v9047_v5 }
 0x136   :  { %v7150_v23 = vpop.eup %7149  ;;  %5211 = vst.msk [vmem:[%s11613_s3 + $0x30] sm:$0xf] %vm5198_vm3, %v6242_v30  ;;  %v6245_v25 = vpack.c.bf16 %v3933_v37, %v3933_v37  ;;  %7171 = vpow2.f32 %v5868_v4  ;;  %v9094_v37 = vadd.f32 %v8508_v52, %v8828_v56  ;;  %v9118_v48 = vpop.f32.mrb[44].mxu1  ;;  %v5872_v0 = vmul.f32 -1.442695, %v9085_v38 }
 0x137   :  { %v7152_v12 = vpop.eup %7151  ;;  %v3931_v54 = vmul.f32 %v7150_v23, %v8846_v35  ;;  %5339 = vst.msk [vmem:[%s11613_s3 + $0x230] sm:$0xf] %vm5198_vm3, %v6370_v51  ;;  %v6373_v61 = vpack.c.bf16 %v4061_v39, %v4061_v39  ;;  %7173 = vpow2.f32 %v5738_v9  ;;  %v9104_v39 = vld [vmem:[%s11612_s2] ss:$0 sm:$0xff]  ;;  %v9116_v9 = vpop.f32.mrb[44].mxu0 }
 0x138   :  { %v7154_v62 = vpop.eup %7153  ;;  %v4059_v21 = vmul.f32 %v7152_v12, %v8850_v33  ;;  %5214 = vst.msk [vmem:[%s11613_s3 + $0x3c] sm:$0xf] %vm5198_vm3, %v6245_v25  ;;  %7175 = vpow2.f32 %v5866_v36  ;;  %v9108_v33 = vadd.f32 %v9104_v39, %v8830_v20  ;;  %v5742_v25 = vmul.f32 -1.442695, %v9094_v37 }
 0x139   :  { %v7156_v35 = vpop.eup %7155  ;;  %v6243_v19 = vpack.c.bf16 %v3931_v54, %v3931_v54  ;;  %v3936_v4 = vmul.f32 %v7154_v62, %v8858_v49  ;;  %5342 = vst.msk [vmem:[%s11613_s3 + $0x23c] sm:$0xf] %vm5198_vm3, %v6373_v61  ;;  %7177 = vpow2.f32 %v5741_v1  ;;  %v5744_v49 = vmul.f32 -1.442695, %v9070_v45  ;;  %v9128_v1 = vpop.f32.mrb[45].mxu1 }
 0x13a   :  { %v7158_v52 = vpop.eup %7157  ;;  %v6371_v56 = vpack.c.bf16 %v4059_v21, %v4059_v21  ;;  %v4064_v12 = vmul.f32 %v7156_v35, %v8862_v58  ;;  %7179 = vpow2.f32 %v5869_v15  ;;  %v9126_v58 = vpop.f32.mrb[45].mxu0  ;;  %v5870_v21 = vmul.f32 -1.442695, %v9108_v33 }
 0x13b   :  { %v7160_v36 = vpop.eup %7159  ;;  %5212 = vst.msk [vmem:[%s11613_s3 + $0x34] sm:$0xf] %vm5198_vm3, %v6243_v19  ;;  %v6248_v20 = vpack.c.bf16 %v3936_v4, %v3936_v4  ;;  %v3934_v44 = vmul.f32 %v7158_v52, %v8867_v32  ;;  %7181 = vpow2.f32 %v5739_v43  ;;  %v9136_v32 = vpop.f32.mrb[46].mxu0 }
 0x13c   :  { %v7162_v30 = vpop.eup %7161  ;;  %5340 = vst.msk [vmem:[%s11613_s3 + $0x234] sm:$0xf] %vm5198_vm3, %v6371_v56  ;;  %v6376_v23 = vpack.c.bf16 %v4064_v12, %v4064_v12  ;;  %v4062_v51 = vmul.f32 %v7160_v36, %v8890_v40  ;;  %v9138_v15 = vpop.f32.mrb[46].mxu1  ;;  %7183 = vpow2.f32 %v5867_v50 }
 0x13d   :  { %v7164_v54 = vpop.eup %7163  ;;  %5217 = vst.msk [vmem:[%s11613_s3 + $0x48] sm:$0xf] %vm5198_vm3, %v6248_v20  ;;  %v6246_v62 = vpack.c.bf16 %v3934_v44, %v3934_v44  ;;  %v3937_v61 = vmul.f32 %v7162_v30, %v8903_v16  ;;  %v9146_v40 = vpop.f32.mrb[47].mxu0  ;;  %7185 = vpow2.f32 %v5744_v49 }
 0x13e   :  { %v9148_v43 = vpop.f32.mrb[47].mxu1  ;;  %v7166_v35 = vpop.eup %7165  ;;  %5345 = vst.msk [vmem:[%s11613_s3 + $0x248] sm:$0xf] %vm5198_vm3, %v6376_v23  ;;  %v6374_v19 = vpack.c.bf16 %v4062_v51, %v4062_v51  ;;  %v4065_v4 = vmul.f32 %v7164_v54, %v8916_v22  ;;  %7187 = vpow2.f32 %v5872_v0 }
 0x13f   :  { %v7168_v52 = vpop.eup %7167  ;;  %5215 = vst.msk [vmem:[%s11613_s3 + $0x40] sm:$0xf] %vm5198_vm3, %v6246_v62  ;;  %v6249_v16 = vpack.c.bf16 %v3937_v61, %v3937_v61  ;;  %v3935_v50 = vmul.f32 %v7166_v35, %v8925_v8  ;;  %7189 = vpow2.f32 %v5742_v25  ;;  %v9172_v0 = vpop.f32.mrb[48].mxu0  ;;  %v9182_v25 = vadd.f32 %v9104_v39, %v8840_v26 }
 0x140   :  { %v7170_v56 = vpop.eup %7169  ;;  %5343 = vst.msk [vmem:[%s11613_s3 + $0x240] sm:$0xf] %vm5198_vm3, %v6374_v19  ;;  %v6377_v12 = vpack.c.bf16 %v4065_v4, %v4065_v4  ;;  %v3295_v36 = vadd.f32 1.0, %v7168_v52  ;;  %7191 = vpow2.f32 %v5870_v21  ;;  %v9174_v30 = vpop.f32.mrb[48].mxu1  ;;  %v9190_v35 = vadd.f32 %v9104_v39, %v8842_v28 }
 0x141   :  { %v7172_v22 = vpop.eup %7171  ;;  %5218 = vst.msk [vmem:[%s11613_s3 + $0x4c] sm:$0xf] %vm5198_vm3, %v6249_v16  ;;  %v6247_v49 = vpack.c.bf16 %v3935_v50, %v3935_v50  ;;  %v3172_v20 = vadd.f32 1.0, %v7170_v56  ;;  %v9184_v54 = vpop.f32.mrb[49].mxu0  ;;  %v9198_v26 = vadd.f32 %v9104_v39, %v8852_v41 }
 0x142   :  { %v7174_v8 = vpop.eup %7173  ;;  %5346 = vst.msk [vmem:[%s11613_s3 + $0x24c] sm:$0xf] %vm5198_vm3, %v6377_v12  ;;  %7193 = vrcp.f32 %v3295_v36  ;;  %v3300_v44 = vadd.f32 1.0, %v7172_v22  ;;  %11631 = vst [vmem:[#allocation19_spill] sm:$0xff] %v9184_v54  ;;  %v9186_v62 = vpop.f32.mrb[49].mxu1 }
 0x143   :  { %v7176_v23 = vpop.eup %7175  ;;  %5216 = vst.msk [vmem:[%s11613_s3 + $0x44] sm:$0xf] %vm5198_vm3, %v6247_v49  ;;  %7195 = vrcp.f32 %v3172_v20  ;;  %v3170_v51 = vadd.f32 1.0, %v7174_v8  ;;  %11632 = vst [vmem:[#allocation20_spill] sm:$0xff] %v9186_v62  ;;  %v9192_v19 = vpop.f32.mrb[50].mxu0  ;;  %v9207_v20 = vadd.f32 %v9104_v39, %v8854_v42 }
 0x144   :  { %v7178_v61 = vpop.eup %7177  ;;  %7197 = vrcp.f32 %v3300_v44  ;;  %v3298_v21 = vadd.f32 1.0, %v7176_v23  ;;  %11633 = vst [vmem:[#allocation21_spill] sm:$0xff] %v9192_v19  ;;  %v9194_v4 = vpop.f32.mrb[50].mxu1  ;;  %v5745_v49 = vmul.f32 -1.442695, %v9182_v25  ;;  %v11637_v23 = vld [vmem:[#allocation2_spill] sm:$0xff] }
 0x145   :  { %11634 = vst [vmem:[#allocation22_spill] sm:$0xff] %v9194_v4  ;;  %v7180_v52 = vpop.eup %7179  ;;  %7199 = vrcp.f32 %v3170_v51  ;;  %v3173_v16 = vadd.f32 1.0, %v7178_v61  ;;  %v9200_v50 = vpop.f32.mrb[51].mxu0  ;;  %v5873_v44 = vmul.f32 -1.442695, %v9190_v35  ;;  %v9212_v51 = vadd.f32 %v9104_v39, %v11637_v23 }
 0x146   :  { %11635 = vst [vmem:[#allocation23_spill] sm:$0xff] %v9200_v50  ;;  %v9202_v56 = vpop.f32.mrb[51].mxu1  ;;  %v7182_v12 = vpop.eup %7181  ;;  %7201 = vrcp.f32 %v3298_v21  ;;  %v3301_v36 = vadd.f32 1.0, %v7180_v52  ;;  %v5743_v52 = vmul.f32 -1.442695, %v9198_v26 }
 0x147   :  { %11636 = vst [vmem:[#allocation24_spill] sm:$0xff] %v9202_v56  ;;  %v7184_v28 = vpop.eup %7183  ;;  %7203 = vrcp.f32 %v3173_v16  ;;  %v3171_v22 = vadd.f32 1.0, %v7182_v12  ;;  %v11638_v16 = vld [vmem:[#allocation3_spill] sm:$0xff]  ;;  %v9227_v23 = vpop.f32.mrb[52].mxu0  ;;  %v5748_v19 = vmul.f32 -1.442695, %v9212_v51 }
 0x148   :  { %v7186_v8 = vpop.eup %7185  ;;  %7205 = vrcp.f32 %v3301_v36  ;;  %v3299_v41 = vadd.f32 1.0, %v7184_v28  ;;  %v9217_v12 = vadd.f32 %v9104_v39, %v11638_v16  ;;  %v9221_v36 = vadd.f32 %v9104_v39, %v8883_v11  ;;  %11639 = vst [vmem:[#allocation2_spill] sm:$0xff] %v9227_v23  ;;  %v9232_v4 = vpop.f32.mrb[53].mxu0 }
 0x149   :  { %v7188_v61 = vpop.eup %7187  ;;  %7207 = vrcp.f32 %v3171_v22  ;;  %v3176_v21 = vadd.f32 1.0, %v7186_v8  ;;  %v9225_v28 = vadd.f32 %v9104_v39, %v8885_v59  ;;  %v9229_v22 = vpop.f32.mrb[52].mxu1  ;;  %v5871_v16 = vmul.f32 -1.442695, %v9207_v20  ;;  %11641 = vst [vmem:[#allocation25_spill] sm:$0xff] %v9232_v4 }
 0x14a   :  { %v7190_v42 = vpop.eup %7189  ;;  %7209 = vrcp.f32 %v3299_v41  ;;  %v3304_v56 = vadd.f32 1.0, %v7188_v61  ;;  %11640 = vst [vmem:[#allocation3_spill] sm:$0xff] %v9229_v22  ;;  %v9234_v41 = vpop.f32.mrb[53].mxu1 }
 0x14b   :  { %v7192_v8 = vpop.eup %7191  ;;  %7211 = vrcp.f32 %v3176_v21  ;;  %v3174_v50 = vadd.f32 1.0, %v7190_v42  ;;  %11642 = vst [vmem:[#allocation26_spill] sm:$0xff] %v9234_v41  ;;  %v9237_v59 = vpop.f32.mrb[54].mxu0  ;;  %v5876_v21 = vmul.f32 -1.442695, %v9217_v12  ;;  %v9245_v42 = vadd.f32 %v9104_v39, %v8892_v29 }
 0x14c   :  { %v7194_v61 = vpop.eup %7193  ;;  %7213 = vrcp.f32 %v3304_v56  ;;  %v3302_v11 = vadd.f32 1.0, %v7192_v8  ;;  %11643 = vst [vmem:[#allocation27_spill] sm:$0xff] %v9237_v59  ;;  %v9239_v62 = vpop.f32.mrb[54].mxu1  ;;  %v5874_v59 = vmul.f32 -1.442695, %v9225_v28  ;;  %v9257_v29 = vadd.f32 %v9104_v39, %v8894_v18 }
 0x14d   :  { %11644 = vst [vmem:[#allocation28_spill] sm:$0xff] %v9239_v62  ;;  %v7196_v23 = vpop.eup %7195  ;;  %v4063_v22 = vmul.f32 %v7194_v61, %v8995_v47  ;;  %7215 = vrcp.f32 %v3174_v50  ;;  %v9247_v41 = vpop.f32.mrb[55].mxu0  ;;  %v5746_v62 = vmul.f32 -1.442695, %v9221_v36  ;;  %v5749_v18 = vmul.f32 -1.442695, %v9245_v42 }
 0x14e   :  { %11645 = vst [vmem:[#allocation29_spill] sm:$0xff] %v9247_v41  ;;  %v9249_v56 = vpop.f32.mrb[55].mxu1  ;;  %v7198_v8 = vpop.eup %7197  ;;  %v3940_v4 = vmul.f32 %v7196_v23, %v9009_v6  ;;  %7217 = vrcp.f32 %v3302_v11  ;;  %v9262_v6 = vadd.f32 %v9104_v39, %v8905_v27 }
 0x14f   :  { %11646 = vst [vmem:[#allocation30_spill] sm:$0xff] %v9249_v56  ;;  %v7200_v47 = vpop.eup %7199  ;;  %v6375_v50 = vpack.c.bf16 %v4063_v22, %v4063_v22  ;;  %v4068_v61 = vmul.f32 %v7198_v8, %v9013_v53  ;;  %7219 = vpow2.f32 %v5745_v49  ;;  %v9279_v22 = vpop.f32.mrb[56].mxu0 }
 0x150   :  { %v7202_v41 = vpop.eup %7201  ;;  %v6252_v54 = vpack.c.bf16 %v3940_v4, %v3940_v4  ;;  %v3938_v56 = vmul.f32 %v7200_v47, %v9022_v46  ;;  %7221 = vpow2.f32 %v5873_v44  ;;  %v9277_v44 = vadd.f32 %v9104_v39, %v8907_v57  ;;  %v9292_v57 = vpop.f32.mrb[57].mxu0 }
 0x151   :  { %v7204_v23 = vpop.eup %7203  ;;  %5344 = vst.msk [vmem:[%s11613_s3 + $0x244] sm:$0xf] %vm5198_vm3, %v6375_v50  ;;  %v6380_v53 = vpack.c.bf16 %v4068_v61, %v4068_v61  ;;  %v4066_v49 = vmul.f32 %v7202_v41, %v9028_v63  ;;  %7223 = vpow2.f32 %v5743_v52  ;;  %v9281_v63 = vpop.f32.mrb[56].mxu1 }
 0x152   :  { %v7206_v4 = vpop.eup %7205  ;;  %5221 = vst.msk [vmem:[%s11613_s3 + $0x58] sm:$0xf] %vm5198_vm3, %v6252_v54  ;;  %v6250_v27 = vpack.c.bf16 %v3938_v56, %v3938_v56  ;;  %v3941_v46 = vmul.f32 %v7204_v23, %v9032_v17  ;;  %7225 = vpow2.f32 %v5871_v16  ;;  %v9290_v17 = vadd.f32 %v9104_v39, %v8945_v7  ;;  %v9294_v16 = vpop.f32.mrb[57].mxu1 }
 0x153   :  { %v7208_v52 = vpop.eup %7207  ;;  %5349 = vst.msk [vmem:[%s11613_s3 + $0x258] sm:$0xf] %vm5198_vm3, %v6380_v53  ;;  %v6378_v41 = vpack.c.bf16 %v4066_v49, %v4066_v49  ;;  %v4069_v54 = vmul.f32 %v7206_v4, %v9036_v3  ;;  %7227 = vpow2.f32 %v5748_v19  ;;  %v5877_v3 = vmul.f32 -1.442695, %v9257_v29  ;;  %v9302_v19 = vpop.f32.mrb[58].mxu0 }
 0x154   :  { %v7210_v11 = vpop.eup %7209  ;;  %5219 = vst.msk [vmem:[%s11613_s3 + $0x50] sm:$0xf] %vm5198_vm3, %v6250_v27  ;;  %v6253_v56 = vpack.c.bf16 %v3941_v46, %v3941_v46  ;;  %v3939_v8 = vmul.f32 %v7208_v52, %v9040_v2  ;;  %7229 = vpow2.f32 %v5876_v21  ;;  %v9304_v7 = vpop.f32.mrb[58].mxu1  ;;  %v5747_v23 = vmul.f32 -1.442695, %v9262_v6 }
 0x155   :  { %v7212_v47 = vpop.eup %7211  ;;  %5347 = vst.msk [vmem:[%s11613_s3 + $0x250] sm:$0xf] %vm5198_vm3, %v6378_v41  ;;  %v6381_v50 = vpack.c.bf16 %v4069_v54, %v4069_v54  ;;  %v4067_v61 = vmul.f32 %v7210_v11, %v9047_v5  ;;  %7231 = vpow2.f32 %v5746_v62  ;;  %v9312_v2 = vpop.f32.mrb[59].mxu0  ;;  %v5875_v27 = vmul.f32 -1.442695, %v9277_v44 }
 0x156   :  { %v9314_v21 = vpop.f32.mrb[59].mxu1  ;;  %v7214_v53 = vpop.eup %7213  ;;  %5222 = vst.msk [vmem:[%s11613_s3 + $0x5c] sm:$0xf] %vm5198_vm3, %v6253_v56  ;;  %v6251_v49 = vpack.c.bf16 %v3939_v8, %v3939_v8  ;;  %v3944_v4 = vmul.f32 %v7212_v47, %v9070_v45  ;;  %7233 = vpow2.f32 %v5874_v59  ;;  %v5752_v52 = vmul.f32 -1.442695, %v9290_v17 }
 0x157   :  { %v7216_v5 = vpop.eup %7215  ;;  %5350 = vst.msk [vmem:[%s11613_s3 + $0x25c] sm:$0xf] %vm5198_vm3, %v6381_v50  ;;  %v6379_v62 = vpack.c.bf16 %v4067_v61, %v4067_v61  ;;  %v4072_v46 = vmul.f32 %v7214_v53, %v9085_v38  ;;  %7235 = vpow2.f32 %v5749_v18 }
 0x158   :  { %v7218_v41 = vpop.eup %7217  ;;  %5220 = vst.msk [vmem:[%s11613_s3 + $0x54] sm:$0xf] %vm5198_vm3, %v6251_v49  ;;  %v6256_v45 = vpack.c.bf16 %v3944_v4, %v3944_v4  ;;  %v3942_v59 = vmul.f32 %v7216_v5, %v9094_v37  ;;  %7237 = vpow2.f32 %v5877_v3  ;;  %v9342_v37 = vpop.f32.mrb[60].mxu0 }
 0x159   :  { %v7220_v54 = vpop.eup %7219  ;;  %5348 = vst.msk [vmem:[%s11613_s3 + $0x254] sm:$0xf] %vm5198_vm3, %v6379_v62  ;;  %v6384_v38 = vpack.c.bf16 %v4072_v46, %v4072_v46  ;;  %v4070_v18 = vmul.f32 %v7218_v41, %v9108_v33  ;;  %7239 = vpow2.f32 %v5747_v23  ;;  %11647 = vst [vmem:[#allocation31_spill] sm:$0xff] %v9342_v37  ;;  %v9344_v3 = vpop.f32.mrb[60].mxu1 }
 0x15a   :  { %v7222_v11 = vpop.eup %7221  ;;  %5225 = vst.msk [vmem:[%s11613_s3 + $0x68] sm:$0xf] %vm5198_vm3, %v6256_v45  ;;  %v6254_v56 = vpack.c.bf16 %v3942_v59, %v3942_v59  ;;  %v3177_v8 = vadd.f32 1.0, %v7220_v54  ;;  %7241 = vpow2.f32 %v5875_v27  ;;  %11648 = vst [vmem:[#allocation32_spill] sm:$0xff] %v9344_v3  ;;  %v9350_v61 = vpop.f32.mrb[61].mxu0  ;;  %v9372_v59 = vadd.f32 %v9104_v39, %v8947_v14 }
 0x15b   :  { %v7224_v47 = vpop.eup %7223  ;;  %5353 = vst.msk [vmem:[%s11613_s3 + $0x268] sm:$0xf] %vm5198_vm3, %v6384_v38  ;;  %v6382_v33 = vpack.c.bf16 %v4070_v18, %v4070_v18  ;;  %v3305_v50 = vadd.f32 1.0, %v7222_v11  ;;  %7243 = vpow2.f32 %v5752_v52  ;;  %11649 = vst [vmem:[#allocation33_spill] sm:$0xff] %v9350_v61  ;;  %v9352_v23 = vpop.f32.mrb[61].mxu1 }
 0x15c   :  { %11650 = vst [vmem:[#allocation34_spill] sm:$0xff] %v9352_v23  ;;  %v7226_v53 = vpop.eup %7225  ;;  %5223 = vst.msk [vmem:[%s11613_s3 + $0x60] sm:$0xf] %vm5198_vm3, %v6254_v56  ;;  %7245 = vrcp.f32 %v3177_v8  ;;  %v3175_v49 = vadd.f32 1.0, %v7224_v47  ;;  %v9358_v4 = vpop.f32.mrb[62].mxu0  ;;  %v9376_v47 = vadd.f32 %v9104_v39, %v8955_v55 }
 0x15d   :  { %11651 = vst [vmem:[#allocation35_spill] sm:$0xff] %v9358_v4  ;;  %v9360_v27 = vpop.f32.mrb[62].mxu1  ;;  %v7228_v5 = vpop.eup %7227  ;;  %5351 = vst.msk [vmem:[%s11613_s3 + $0x260] sm:$0xf] %vm5198_vm3, %v6382_v33  ;;  %7247 = vrcp.f32 %v3305_v50  ;;  %v3303_v62 = vadd.f32 1.0, %v7226_v53  ;;  %v9380_v33 = vadd.f32 %v9104_v39, %v8957_v24  ;;  %v9393_v24 = vadd.f32 %v9104_v39, %v8966_v10 }
 0x15e   :  { %11652 = vst [vmem:[#allocation36_spill] sm:$0xff] %v9360_v27  ;;  %v9366_v46 = vpop.f32.mrb[63].mxu0  ;;  %v9368_v52 = vpop.f32.mrb[63].mxu1  ;;  %7249 = vrcp.f32 %v3175_v49  ;;  %v3180_v45 = vadd.f32 1.0, %v7228_v5  ;;  %v5880_v53 = vmul.f32 -1.442695, %v9372_v59  ;;  %v9385_v49 = vadd.f32 %v9104_v39, %v8964_v31 }
 0x15f   :  { %11653 = vst [vmem:[#allocation37_spill] sm:$0xff] %v9366_v46  ;;  %11654 = vst [vmem:[#allocation38_spill] sm:$0xff] %v9368_v52  ;;  %v7230_v41 = vpop.eup %7229  ;;  %7251 = vrcp.f32 %v3303_v62  ;;  %v9387_v5 = vpop.f32.mrb[64].mxu0 }
 0x160   :  { %v7232_v54 = vpop.eup %7231  ;;  %v3308_v38 = vadd.f32 1.0, %v7230_v41  ;;  %7253 = vrcp.f32 %v3180_v45  ;;  %11655 = vst [vmem:[#allocation39_spill] sm:$0xff] %v9387_v5  ;;  %v9389_v62 = vpop.f32.mrb[64].mxu1  ;;  %v9397_v45 = vadd.f32 %v9104_v39, %v8973_v60  ;;  %v11660_v60 = vld [vmem:[#allocation6_spill] sm:$0xff] }
 0x161   :  { %v7234_v18 = vpop.eup %7233  ;;  %v3178_v11 = vadd.f32 1.0, %v7232_v54  ;;  %11656 = vst [vmem:[#allocation40_spill] sm:$0xff] %v9389_v62  ;;  %v9399_v54 = vpop.f32.mrb[65].mxu0  ;;  %v5750_v62 = vmul.f32 -1.442695, %v9376_v47  ;;  %v9412_v5 = vadd.f32 %v9104_v39, %v11660_v60 }
 0x162   :  { %v7236_v56 = vpop.eup %7235  ;;  %7255 = vrcp.f32 %v3308_v38  ;;  %v3306_v8 = vadd.f32 1.0, %v7234_v18  ;;  %11657 = vst [vmem:[#allocation41_spill] sm:$0xff] %v9399_v54  ;;  %v11658_v18 = vld [vmem:[#allocation4_spill] sm:$0xff]  ;;  %v9416_v52 = vpop.f32.mrb[65].mxu1 }
 0x163   :  { %v7238_v50 = vpop.eup %7237  ;;  %7257 = vrcp.f32 %v3178_v11  ;;  %v3181_v14 = vadd.f32 1.0, %v7236_v56  ;;  %v9403_v11 = vadd.f32 %v9104_v39, %v11658_v18  ;;  %v11659_v56 = vld [vmem:[#allocation5_spill] sm:$0xff]  ;;  %v5753_v18 = vmul.f32 -1.442695, %v9385_v49  ;;  %11661 = vst [vmem:[#allocation4_spill] sm:$0xff] %v9416_v52  ;;  %v9424_v4 = vpop.f32.mrb[66].mxu0 }
 0x164   :  { %v7240_v41 = vpop.eup %7239  ;;  %7259 = vrcp.f32 %v3306_v8  ;;  %v3309_v55 = vadd.f32 1.0, %v7238_v50  ;;  %v9407_v8 = vadd.f32 %v9104_v39, %v11659_v56  ;;  %11662 = vst [vmem:[#allocation5_spill] sm:$0xff] %v9424_v4  ;;  %v9426_v23 = vpop.f32.mrb[66].mxu1 }
 0x165   :  { %v7242_v38 = vpop.eup %7241  ;;  %7261 = vrcp.f32 %v3181_v14  ;;  %v3179_v31 = vadd.f32 1.0, %v7240_v41  ;;  %v5878_v41 = vmul.f32 -1.442695, %v9380_v33  ;;  %11663 = vst [vmem:[#allocation6_spill] sm:$0xff] %v9426_v23  ;;  %v9435_v37 = vpop.f32.mrb[67].mxu0 }
 0x166   :  { %v7244_v50 = vpop.eup %7243  ;;  %7263 = vrcp.f32 %v3309_v55  ;;  %v3307_v10 = vadd.f32 1.0, %v7242_v38  ;;  %v5881_v55 = vmul.f32 -1.442695, %v9393_v24  ;;  %v5751_v38 = vmul.f32 -1.442695, %v9397_v45  ;;  %v9437_v4 = vpop.f32.mrb[67].mxu1 }
 0x167   :  { %v7246_v54 = vpop.eup %7245  ;;  %7265 = vrcp.f32 %v3179_v31  ;;  %v3184_v14 = vadd.f32 1.0, %v7244_v50  ;;  %v5879_v31 = vmul.f32 -1.442695, %v9403_v11  ;;  %v5756_v50 = vmul.f32 -1.442695, %v9407_v8 }
 0x168   :  { %v7248_v56 = vpop.eup %7247  ;;  %v3945_v46 = vmul.f32 %v7246_v54, %v9182_v25  ;;  %7267 = vrcp.f32 %v3307_v10  ;;  %v5884_v54 = vmul.f32 -1.442695, %v9412_v5 }
 0x169   :  { %v7250_v27 = vpop.eup %7249  ;;  %v4073_v60 = vmul.f32 %v7248_v56, %v9190_v35  ;;  %7269 = vrcp.f32 %v3184_v14  ;;  %v11664_v14 = vld [vmem:[#allocation7_spill] sm:$0xff] }
 0x16a   :  { %v7252_v52 = vpop.eup %7251  ;;  %v6257_v61 = vpack.c.bf16 %v3945_v46, %v3945_v46  ;;  %v3943_v25 = vmul.f32 %v7250_v27, %v9198_v26  ;;  %7271 = vpow2.f32 %v5880_v53  ;;  %v9433_v56 = vadd.f32 %v9104_v39, %v11664_v14 }
 0x16b   :  { %v7254_v10 = vpop.eup %7253  ;;  %v6385_v3 = vpack.c.bf16 %v4073_v60, %v4073_v60  ;;  %v4071_v35 = vmul.f32 %v7252_v52, %v9207_v20  ;;  %7273 = vpow2.f32 %v5750_v62  ;;  %v11665_v20 = vld [vmem:[#allocation8_spill] sm:$0xff]  ;;  %v11666_v60 = vld [vmem:[#allocation9_spill] sm:$0xff] }
 0x16c   :  { %v7256_v23 = vpop.eup %7255  ;;  %5226 = vst.msk [vmem:[%s11613_s3 + $0x6c] sm:$0xf] %vm5198_vm3, %v6257_v61  ;;  %v6255_v26 = vpack.c.bf16 %v3943_v25, %v3943_v25  ;;  %v3948_v27 = vmul.f32 %v7254_v10, %v9212_v51  ;;  %7275 = vpow2.f32 %v5878_v41  ;;  %v9446_v46 = vadd.f32 %v9104_v39, %v11665_v20  ;;  %v11667_v10 = vld [vmem:[#allocation10_spill] sm:$0xff] }
 0x16d   :  { %v7258_v52 = vpop.eup %7257  ;;  %5354 = vst.msk [vmem:[%s11613_s3 + $0x26c] sm:$0xf] %vm5198_vm3, %v6385_v3  ;;  %v6383_v53 = vpack.c.bf16 %v4071_v35, %v4071_v35  ;;  %v4076_v62 = vmul.f32 %v7256_v23, %v9217_v12  ;;  %7277 = vpow2.f32 %v5753_v18  ;;  %v9455_v61 = vadd.f32 %v9104_v39, %v11666_v60 }
 0x16e   :  { %v7260_v51 = vpop.eup %7259  ;;  %5224 = vst.msk [vmem:[%s11613_s3 + $0x64] sm:$0xf] %vm5198_vm3, %v6255_v26  ;;  %v6260_v41 = vpack.c.bf16 %v3948_v27, %v3948_v27  ;;  %v3946_v25 = vmul.f32 %v7258_v52, %v9221_v36  ;;  %7279 = vpow2.f32 %v5881_v55  ;;  %v9464_v3 = vadd.f32 %v9104_v39, %v11667_v10  ;;  %v9484_v52 = vpop.f32.mrb[68].mxu0 }
 0x16f   :  { %v7262_v12 = vpop.eup %7261  ;;  %5352 = vst.msk [vmem:[%s11613_s3 + $0x264] sm:$0xf] %vm5198_vm3, %v6383_v53  ;;  %v6388_v23 = vpack.c.bf16 %v4076_v62, %v4076_v62  ;;  %v4074_v18 = vmul.f32 %v7260_v51, %v9225_v28  ;;  %7281 = vpow2.f32 %v5751_v38  ;;  %v5754_v35 = vmul.f32 -1.442695, %v9433_v56  ;;  %v9486_v53 = vpop.f32.mrb[68].mxu1 }
 0x170   :  { %v7264_v14 = vpop.eup %7263  ;;  %5229 = vst.msk [vmem:[%s11613_s3 + $0x78] sm:$0xf] %vm5198_vm3, %v6260_v41  ;;  %v6258_v36 = vpack.c.bf16 %v3946_v25, %v3946_v25  ;;  %v3949_v55 = vmul.f32 %v7262_v12, %v9245_v42  ;;  %7283 = vpow2.f32 %v5879_v31  ;;  %v5882_v26 = vmul.f32 -1.442695, %v9446_v46  ;;  %11668 = vst [vmem:[#allocation7_spill] sm:$0xff] %v9486_v53 }
 0x171   :  { %v7266_v27 = vpop.eup %7265  ;;  %5357 = vst.msk [vmem:[%s11613_s3 + $0x278] sm:$0xf] %vm5198_vm3, %v6388_v23  ;;  %v6386_v28 = vpack.c.bf16 %v4074_v18, %v4074_v18  ;;  %v4077_v38 = vmul.f32 %v7264_v14, %v9257_v29  ;;  %7285 = vpow2.f32 %v5756_v50  ;;  %v5757_v20 = vmul.f32 -1.442695, %v9455_v61  ;;  %v9494_v29 = vpop.f32.mrb[69].mxu0 }
 0x172   :  { %v7268_v42 = vpop.eup %7267  ;;  %5227 = vst.msk [vmem:[%s11613_s3 + $0x70] sm:$0xf] %vm5198_vm3, %v6258_v36  ;;  %v6261_v31 = vpack.c.bf16 %v3949_v55, %v3949_v55  ;;  %v3947_v62 = vmul.f32 %v7266_v27, %v9262_v6  ;;  %7287 = vpow2.f32 %v5884_v54  ;;  %v5885_v60 = vmul.f32 -1.442695, %v9464_v3  ;;  %11669 = vst [vmem:[#allocation8_spill] sm:$0xff] %v9494_v29  ;;  %v9496_v50 = vpop.f32.mrb[69].mxu1 }
 0x173   :  { %11670 = vst [vmem:[#allocation9_spill] sm:$0xff] %v9496_v50  ;;  %v7270_v51 = vpop.eup %7269  ;;  %5355 = vst.msk [vmem:[%s11613_s3 + $0x270] sm:$0xf] %vm5198_vm3, %v6386_v28  ;;  %v6389_v41 = vpack.c.bf16 %v4077_v38, %v4077_v38  ;;  %v4075_v25 = vmul.f32 %v7268_v42, %v9277_v44  ;;  %7289 = vpow2.f32 %v5754_v35  ;;  %v9503_v10 = vpop.f32.mrb[70].mxu0 }
 0x174   :  { %11671 = vst [vmem:[#allocation10_spill] sm:$0xff] %v9503_v10  ;;  %v9505_v6 = vpop.f32.mrb[70].mxu1  ;;  %v7272_v54 = vpop.eup %7271  ;;  %5230 = vst.msk [vmem:[%s11613_s3 + $0x7c] sm:$0xf] %vm5198_vm3, %v6261_v31  ;;  %v6259_v12 = vpack.c.bf16 %v3947_v62, %v3947_v62  ;;  %v3952_v23 = vmul.f32 %v7270_v51, %v9290_v17  ;;  %7291 = vpow2.f32 %v5882_v26  ;;  %v11675_v62 = vld [vmem:[#allocation11_spill] sm:$0xff] }
 0x175   :  { %11672 = vst [vmem:[#allocation42_spill] sm:$0xff] %v9505_v6  ;;  %v9512_v18 = vpop.f32.mrb[71].mxu0  ;;  %v9514_v14 = vpop.f32.mrb[71].mxu1  ;;  %5358 = vst.msk [vmem:[%s11613_s3 + $0x27c] sm:$0xf] %vm5198_vm3, %v6389_v41  ;;  %v6387_v35 = vpack.c.bf16 %v4075_v25, %v4075_v25  ;;  %v3312_v36 = vadd.f32 1.0, %v7272_v54  ;;  %7293 = vpow2.f32 %v5757_v20 }
 0x176   :  { %11673 = vst [vmem:[#allocation43_spill] sm:$0xff] %v9512_v18  ;;  %11674 = vst [vmem:[#allocation44_spill] sm:$0xff] %v9514_v14  ;;  %v7274_v44 = vpop.eup %7273  ;;  %v6264_v17 = vpack.c.bf16 %v3952_v23, %v3952_v23  ;;  %7295 = vpow2.f32 %v5885_v60  ;;  %v9534_v60 = vadd.f32 %v9104_v39, %v11675_v62 }
 0x177   :  { %v7276_v55 = vpop.eup %7275  ;;  %5228 = vst.msk [vmem:[%s11613_s3 + $0x74] sm:$0xf] %vm5198_vm3, %v6259_v12  ;;  %v3182_v26 = vadd.f32 1.0, %v7274_v44  ;;  %5356 = vst.msk [vmem:[%s11613_s3 + $0x274] sm:$0xf] %vm5198_vm3, %v6387_v35  ;;  %7297 = vrcp.f32 %v3312_v36  ;;  %v11676_v44 = vld [vmem:[#allocation12_spill] sm:$0xff] }
 0x178   :  { %v7278_v27 = vpop.eup %7277  ;;  %v3310_v28 = vadd.f32 1.0, %v7276_v55  ;;  %5233 = vst.msk [vmem:[%s11613_s3 + $0x88] sm:$0xf] %vm5198_vm3, %v6264_v17  ;;  %v9538_v35 = vadd.f32 %v9104_v39, %v11676_v44  ;;  %v11677_v36 = vld [vmem:[#allocation13_spill] sm:$0xff] }
 0x179   :  { %v7280_v38 = vpop.eup %7279  ;;  %7299 = vrcp.f32 %v3182_v26  ;;  %v3185_v20 = vadd.f32 1.0, %v7278_v27  ;;  %v9542_v55 = vadd.f32 %v9104_v39, %v11677_v36  ;;  %v5755_v27 = vmul.f32 -1.442695, %v9534_v60  ;;  %v11682_v36 = vld [vmem:[#allocation18_spill] sm:$0xff] }
 0x17a   :  { %v7282_v42 = vpop.eup %7281  ;;  %7301 = vrcp.f32 %v3310_v28  ;;  %v3313_v31 = vadd.f32 1.0, %v7280_v38  ;;  %v11678_v28 = vld [vmem:[#allocation14_spill] sm:$0xff] }
 0x17b   :  { %v7284_v51 = vpop.eup %7283  ;;  %7303 = vrcp.f32 %v3185_v20  ;;  %v3183_v41 = vadd.f32 1.0, %v7282_v42  ;;  %v9547_v38 = vadd.f32 %v9104_v39, %v11678_v28  ;;  %v9563_v28 = vadd.f32 %v9104_v39, %v11682_v36 }
 0x17c   :  { %v7286_v25 = vpop.eup %7285  ;;  %7305 = vrcp.f32 %v3313_v31  ;;  %v3311_v54 = vadd.f32 1.0, %v7284_v51  ;;  %v11679_v31 = vld [vmem:[#allocation15_spill] sm:$0xff]  ;;  %v11680_v51 = vld [vmem:[#allocation16_spill] sm:$0xff]  ;;  %v5760_v14 = vmul.f32 -1.442695, %v9542_v55 }
 0x17d   :  { %v7288_v12 = vpop.eup %7287  ;;  %7307 = vrcp.f32 %v3183_v41  ;;  %v3188_v23 = vadd.f32 1.0, %v7286_v25  ;;  %v9551_v62 = vadd.f32 %v9104_v39, %v11679_v31  ;;  %v9555_v41 = vadd.f32 %v9104_v39, %v11680_v51 }
 0x17e   :  { %v7290_v17 = vpop.eup %7289  ;;  %7309 = vrcp.f32 %v3311_v54  ;;  %v3316_v26 = vadd.f32 1.0, %v7288_v12  ;;  %v11681_v12 = vld [vmem:[#allocation17_spill] sm:$0xff]  ;;  %v5883_v31 = vmul.f32 -1.442695, %v9538_v35 }
 0x17f   :  { %v7292_v20 = vpop.eup %7291  ;;  %7311 = vrcp.f32 %v3188_v23  ;;  %v3186_v42 = vadd.f32 1.0, %v7290_v17  ;;  %v9559_v44 = vadd.f32 %v9104_v39, %v11681_v12 }
 0x180   :  { %v7294_v25 = vpop.eup %7293  ;;  %7313 = vrcp.f32 %v3316_v26  ;;  %v3314_v54 = vadd.f32 1.0, %v7292_v20  ;;  %v5888_v26 = vmul.f32 -1.442695, %v9547_v38  ;;  %v9570_v20 = vadd.f32 %v9104_v39, %v9072_v13 }
 0x181   :  { %v7296_v23 = vpop.eup %7295  ;;  %7315 = vrcp.f32 %v3186_v42  ;;  %v3189_v17 = vadd.f32 1.0, %v7294_v25  ;;  %v5758_v42 = vmul.f32 -1.442695, %v9551_v62  ;;  %v5886_v25 = vmul.f32 -1.442695, %v9555_v41 }
 0x182   :  { %v7298_v51 = vpop.eup %7297  ;;  %7317 = vrcp.f32 %v3314_v54  ;;  %v3317_v18 = vadd.f32 1.0, %v7296_v23  ;;  %v5761_v54 = vmul.f32 -1.442695, %v9559_v44  ;;  %v5889_v23 = vmul.f32 -1.442695, %v9563_v28 }
 0x183   :  { %v7300_v12 = vpop.eup %7299  ;;  %v4080_v36 = vmul.f32 %v7298_v51, %v9372_v59  ;;  %7319 = vrcp.f32 %v3189_v17  ;;  %v9581_v59 = vadd.f32 %v9104_v39, %v9074_v34  ;;  %v9592_v34 = vadd.f32 %v9104_v39, %v9116_v9 }
 0x184   :  { %v7302_v6 = vpop.eup %7301  ;;  %v3950_v10 = vmul.f32 %v7300_v12, %v9376_v47  ;;  %7321 = vrcp.f32 %v3317_v18  ;;  %v5759_v47 = vmul.f32 -1.442695, %v9570_v20 }
 0x185   :  { %v7304_v50 = vpop.eup %7303  ;;  %v6392_v29 = vpack.c.bf16 %v4080_v36, %v4080_v36  ;;  %v4078_v13 = vmul.f32 %v7302_v6, %v9380_v33  ;;  %7323 = vpow2.f32 %v5755_v27 }
 0x186   :  { %v7306_v17 = vpop.eup %7305  ;;  %v6262_v51 = vpack.c.bf16 %v3950_v10, %v3950_v10  ;;  %v3953_v53 = vmul.f32 %v7304_v50, %v9385_v49  ;;  %7325 = vpow2.f32 %v5883_v31  ;;  %v9594_v10 = vpop.f32.mrb[72].mxu0 }
 0x187   :  { %v7308_v18 = vpop.eup %7307  ;;  %5361 = vst.msk [vmem:[%s11613_s3 + $0x288] sm:$0xf] %vm5198_vm3, %v6392_v29  ;;  %v6390_v12 = vpack.c.bf16 %v4078_v13, %v4078_v13  ;;  %v4081_v33 = vmul.f32 %v7306_v17, %v9393_v24  ;;  %7327 = vpow2.f32 %v5760_v14  ;;  %v9596_v49 = vpop.f32.mrb[72].mxu1  ;;  %v9605_v24 = vadd.f32 %v9104_v39, %v9118_v48 }
 0x188   :  { %v7310_v50 = vpop.eup %7309  ;;  %5231 = vst.msk [vmem:[%s11613_s3 + $0x80] sm:$0xf] %vm5198_vm3, %v6262_v51  ;;  %v6265_v6 = vpack.c.bf16 %v3953_v53, %v3953_v53  ;;  %v3951_v29 = vmul.f32 %v7308_v18, %v9397_v45  ;;  %7329 = vpow2.f32 %v5888_v26  ;;  %v9607_v9 = vpop.f32.mrb[73].mxu0  ;;  %v9618_v45 = vadd.f32 %v9104_v39, %v9126_v58 }
 0x189   :  { %v9609_v14 = vpop.f32.mrb[73].mxu1  ;;  %v7312_v27 = vpop.eup %7311  ;;  %5359 = vst.msk [vmem:[%s11613_s3 + $0x280] sm:$0xf] %vm5198_vm3, %v6390_v12  ;;  %v6393_v31 = vpack.c.bf16 %v4081_v33, %v4081_v33  ;;  %v4079_v53 = vmul.f32 %v7310_v50, %v9403_v11  ;;  %7331 = vpow2.f32 %v5758_v42  ;;  %v5887_v11 = vmul.f32 -1.442695, %v9581_v59 }
 0x18a   :  { %v9620_v48 = vpop.f32.mrb[74].mxu0  ;;  %v9622_v26 = vpop.f32.mrb[74].mxu1  ;;  %5234 = vst.msk [vmem:[%s11613_s3 + $0x8c] sm:$0xf] %vm5198_vm3, %v6265_v6  ;;  %v6263_v13 = vpack.c.bf16 %v3951_v29, %v3951_v29  ;;  %v3956_v17 = vmul.f32 %v7312_v27, %v9407_v8  ;;  %7333 = vpow2.f32 %v5886_v25  ;;  %v5764_v12 = vmul.f32 -1.442695, %v9592_v34 }
 0x18b   :  { %v7314_v36 = vpop.eup %7313  ;;  %v9630_v42 = vpop.f32.mrb[75].mxu0  ;;  %5362 = vst.msk [vmem:[%s11613_s3 + $0x28c] sm:$0xf] %vm5198_vm3, %v6393_v31  ;;  %v6391_v51 = vpack.c.bf16 %v4079_v53, %v4079_v53  ;;  %7335 = vpow2.f32 %v5761_v54  ;;  %v5892_v50 = vmul.f32 -1.442695, %v9605_v24 }
 0x18c   :  { %v9632_v39 = vpop.f32.mrb[75].mxu1  ;;  %v7316_v58 = vpop.eup %7315  ;;  %v4084_v18 = vmul.f32 %v7314_v36, %v9412_v5  ;;  %5232 = vst.msk [vmem:[%s11613_s3 + $0x84] sm:$0xf] %vm5198_vm3, %v6263_v13  ;;  %v6268_v25 = vpack.c.bf16 %v3956_v17, %v3956_v17  ;;  %7337 = vpow2.f32 %v5889_v23  ;;  %v5762_v29 = vmul.f32 -1.442695, %v9618_v45 }
 0x18d   :  { %v7318_v8 = vpop.eup %7317  ;;  %v3954_v33 = vmul.f32 %v7316_v58, %v9433_v56  ;;  %5360 = vst.msk [vmem:[%s11613_s3 + $0x284] sm:$0xf] %vm5198_vm3, %v6391_v51  ;;  %7339 = vpow2.f32 %v5759_v47  ;;  %v9662_v53 = vpop.f32.mrb[76].mxu0 }
 0x18e   :  { %v7320_v6 = vpop.eup %7319  ;;  %v6396_v5 = vpack.c.bf16 %v4084_v18, %v4084_v18  ;;  %v4082_v54 = vmul.f32 %v7318_v8, %v9446_v46  ;;  %5237 = vst.msk [vmem:[%s11613_s3 + $0x98] sm:$0xf] %vm5198_vm3, %v6268_v25  ;;  %7341 = vpow2.f32 %v5887_v11  ;;  %v9664_v36 = vpop.f32.mrb[76].mxu1 }
 0x18f   :  { %v7322_v27 = vpop.eup %7321  ;;  %v6266_v56 = vpack.c.bf16 %v3954_v33, %v3954_v33  ;;  %v3957_v23 = vmul.f32 %v7320_v6, %v9455_v61  ;;  %7343 = vpow2.f32 %v5764_v12  ;;  %11683 = vst [vmem:[#allocation11_spill] sm:$0xff] %v9664_v36  ;;  %v9670_v11 = vpop.f32.mrb[77].mxu0 }
 0x190   :  { %v7324_v31 = vpop.eup %7323  ;;  %5365 = vst.msk [vmem:[%s11613_s3 + $0x298] sm:$0xf] %vm5198_vm3, %v6396_v5  ;;  %v6394_v46 = vpack.c.bf16 %v4082_v54, %v4082_v54  ;;  %v4085_v47 = vmul.f32 %v7322_v27, %v9464_v3  ;;  %7345 = vpow2.f32 %v5892_v50  ;;  %11684 = vst [vmem:[#allocation12_spill] sm:$0xff] %v9670_v11  ;;  %v9672_v58 = vpop.f32.mrb[77].mxu1  ;;  %v9691_v27 = vld [vmem:[%s11612_s2] ss:$0 sm:$0xff] }
 0x191   :  { %v7326_v13 = vpop.eup %7325  ;;  %5235 = vst.msk [vmem:[%s11613_s3 + $0x90] sm:$0xf] %vm5198_vm3, %v6266_v56  ;;  %v6269_v61 = vpack.c.bf16 %v3957_v23, %v3957_v23  ;;  %v3187_v17 = vadd.f32 1.0, %v7324_v31  ;;  %11685 = vst [vmem:[#allocation13_spill] sm:$0xff] %v9672_v58  ;;  %7347 = vpow2.f32 %v5762_v29  ;;  %v9678_v12 = vpop.f32.mrb[78].mxu0  ;;  %v9695_v56 = vadd.f32 %v9691_v27, %v9128_v1  ;;  %v11691_v58 = vld [vmem:[#allocation21_spill] sm:$0xff] }
 0x192   :  { %v7328_v51 = vpop.eup %7327  ;;  %5363 = vst.msk [vmem:[%s11613_s3 + $0x290] sm:$0xf] %vm5198_vm3, %v6394_v46  ;;  %v6397_v3 = vpack.c.bf16 %v4085_v47, %v4085_v47  ;;  %v3315_v18 = vadd.f32 1.0, %v7326_v13  ;;  %11686 = vst [vmem:[#allocation14_spill] sm:$0xff] %v9678_v12  ;;  %v9699_v13 = vadd.f32 %v9691_v27, %v9136_v32  ;;  %v9707_v1 = vadd.f32 %v9691_v27, %v9146_v40  ;;  %v9741_v12 = vpop.f32.mrb[79].mxu0 }
 0x193   :  { %v7330_v8 = vpop.eup %7329  ;;  %5238 = vst.msk [vmem:[%s11613_s3 + $0x9c] sm:$0xf] %vm5198_vm3, %v6269_v61  ;;  %7349 = vrcp.f32 %v3187_v17  ;;  %v3192_v25 = vadd.f32 1.0, %v7328_v51  ;;  %v9703_v61 = vadd.f32 %v9691_v27, %v9138_v15  ;;  %v5890_v32 = vmul.f32 -1.442695, %v9695_v56  ;;  %11690 = vst [vmem:[#allocation16_spill] sm:$0xff] %v9741_v12 }
 0x194   :  { %v7332_v33 = vpop.eup %7331  ;;  %5366 = vst.msk [vmem:[%s11613_s3 + $0x29c] sm:$0xf] %vm5198_vm3, %v6397_v3  ;;  %7351 = vrcp.f32 %v3315_v18  ;;  %v3320_v50 = vadd.f32 1.0, %v7330_v8  ;;  %v9711_v3 = vadd.f32 %v9691_v27, %v9148_v43  ;;  %v9716_v15 = vadd.f32 %v9691_v27, %v9172_v0 }
 0x195   :  { %v7334_v6 = vpop.eup %7333  ;;  %7353 = vrcp.f32 %v3192_v25  ;;  %v3190_v5 = vadd.f32 1.0, %v7332_v33  ;;  %v9720_v40 = vadd.f32 %v9691_v27, %v9174_v30  ;;  %v9730_v30 = vpop.f32.mrb[78].mxu1 }
 0x196   :  { %v7336_v54 = vpop.eup %7335  ;;  %7355 = vrcp.f32 %v3320_v50  ;;  %v3318_v29 = vadd.f32 1.0, %v7334_v6  ;;  %v11687_v50 = vld [vmem:[#allocation19_spill] sm:$0xff]  ;;  %11688 = vst [vmem:[#allocation15_spill] sm:$0xff] %v9730_v30  ;;  %v9743_v30 = vpop.f32.mrb[79].mxu1 }
 0x197   :  { %v7338_v23 = vpop.eup %7337  ;;  %7357 = vrcp.f32 %v3190_v5  ;;  %v3193_v31 = vadd.f32 1.0, %v7336_v54  ;;  %v9724_v43 = vadd.f32 %v9691_v27, %v11687_v50  ;;  %v5765_v54 = vmul.f32 -1.442695, %v9699_v13 }
 0x198   :  { %v7340_v46 = vpop.eup %7339  ;;  %7359 = vrcp.f32 %v3318_v29  ;;  %v3321_v47 = vadd.f32 1.0, %v7338_v23  ;;  %v5893_v29 = vmul.f32 -1.442695, %v9703_v61  ;;  %v5896_v50 = vmul.f32 -1.442695, %v9720_v40 }
 0x199   :  { %v7342_v17 = vpop.eup %7341  ;;  %7361 = vrcp.f32 %v3193_v31  ;;  %v3191_v51 = vadd.f32 1.0, %v7340_v46  ;;  %v5763_v31 = vmul.f32 -1.442695, %v9707_v1  ;;  %v5891_v46 = vmul.f32 -1.442695, %v9711_v3 }
 0x19a   :  { %v7344_v18 = vpop.eup %7343  ;;  %7363 = vrcp.f32 %v3321_v47  ;;  %v3319_v8 = vadd.f32 1.0, %v7342_v17 }
 0x19b   :  { %v7346_v25 = vpop.eup %7345  ;;  %7365 = vrcp.f32 %v3191_v51  ;;  %v3196_v33 = vadd.f32 1.0, %v7344_v18  ;;  %v5768_v51 = vmul.f32 -1.442695, %v9716_v15  ;;  %v11689_v18 = vld [vmem:[#allocation20_spill] sm:$0xff] }
 0x19c   :  { %v7348_v6 = vpop.eup %7347  ;;  %7367 = vrcp.f32 %v3319_v8  ;;  %v3324_v5 = vadd.f32 1.0, %v7346_v25  ;;  %v9736_v8 = vadd.f32 %v9691_v27, %v11689_v18  ;;  %v9748_v18 = vadd.f32 %v9691_v27, %v11691_v58 }
 0x19d   :  { %v7350_v0 = vpop.eup %7349  ;;  %7369 = vrcp.f32 %v3196_v33  ;;  %v3194_v23 = vadd.f32 1.0, %v7348_v6  ;;  %v5766_v6 = vmul.f32 -1.442695, %v9724_v43 }
 0x19e   :  { %v7352_v47 = vpop.eup %7351  ;;  %v3955_v17 = vmul.f32 %v7350_v0, %v9534_v60  ;;  %7371 = vrcp.f32 %v3324_v5  ;;  %v5894_v58 = vmul.f32 -1.442695, %v9736_v8 }
 0x19f   :  { %v7354_v25 = vpop.eup %7353  ;;  %v4083_v33 = vmul.f32 %v7352_v47, %v9538_v35  ;;  %7373 = vrcp.f32 %v3194_v23  ;;  %v11692_v47 = vld [vmem:[#allocation22_spill] sm:$0xff] }
 0x1a0   :  { %v7356_v60 = vpop.eup %7355  ;;  %v6267_v5 = vpack.c.bf16 %v3955_v17, %v3955_v17  ;;  %v3960_v0 = vmul.f32 %v7354_v25, %v9542_v55  ;;  %7375 = vpow2.f32 %v5890_v32  ;;  %v9753_v36 = vadd.f32 %v9691_v27, %v11692_v47  ;;  %v11693_v25 = vld [vmem:[#allocation23_spill] sm:$0xff] }
 0x1a1   :  { %v7358_v11 = vpop.eup %7357  ;;  %v6395_v35 = vpack.c.bf16 %v4083_v33, %v4083_v33  ;;  %v4088_v23 = vmul.f32 %v7356_v60, %v9547_v38  ;;  %7377 = vpow2.f32 %v5765_v54  ;;  %v9768_v33 = vadd.f32 %v9691_v27, %v11693_v25 }
 0x1a2   :  { %v7360_v12 = vpop.eup %7359  ;;  %5236 = vst.msk [vmem:[%s11613_s3 + $0x94] sm:$0xf] %vm5198_vm3, %v6267_v5  ;;  %v6272_v55 = vpack.c.bf16 %v3960_v0, %v3960_v0  ;;  %v3958_v32 = vmul.f32 %v7358_v11, %v9551_v62  ;;  %7379 = vpow2.f32 %v5893_v29  ;;  %v11694_v29 = vld [vmem:[#allocation24_spill] sm:$0xff]  ;;  %v5769_v0 = vmul.f32 -1.442695, %v9748_v18 }
 0x1a3   :  { %v7362_v17 = vpop.eup %7361  ;;  %5364 = vst.msk [vmem:[%s11613_s3 + $0x294] sm:$0xf] %vm5198_vm3, %v6395_v35  ;;  %v6400_v38 = vpack.c.bf16 %v4088_v23, %v4088_v23  ;;  %v4086_v54 = vmul.f32 %v7360_v12, %v9555_v41  ;;  %7381 = vpow2.f32 %v5763_v31  ;;  %v9777_v5 = vadd.f32 %v9691_v27, %v11694_v29  ;;  %v9785_v35 = vpop.f32.mrb[80].mxu0 }
 0x1a4   :  { %v7364_v60 = vpop.eup %7363  ;;  %5241 = vst.msk [vmem:[%s11613_s3 + $0xa8] sm:$0xf] %vm5198_vm3, %v6272_v55  ;;  %v6270_v62 = vpack.c.bf16 %v3958_v32, %v3958_v32  ;;  %v3961_v11 = vmul.f32 %v7362_v17, %v9559_v44  ;;  %7383 = vpow2.f32 %v5891_v46  ;;  %v9787_v44 = vpop.f32.mrb[80].mxu1  ;;  %v5897_v55 = vmul.f32 -1.442695, %v9753_v36 }
 0x1a5   :  { %v7366_v41 = vpop.eup %7365  ;;  %5369 = vst.msk [vmem:[%s11613_s3 + $0x2a8] sm:$0xf] %vm5198_vm3, %v6400_v38  ;;  %v6398_v12 = vpack.c.bf16 %v4086_v54, %v4086_v54  ;;  %v4089_v31 = vmul.f32 %v7364_v60, %v9563_v28  ;;  %7385 = vpow2.f32 %v5768_v51  ;;  %11695 = vst [vmem:[#allocation17_spill] sm:$0xff] %v9787_v44  ;;  %v9795_v28 = vpop.f32.mrb[81].mxu0  ;;  %v5767_v54 = vmul.f32 -1.442695, %v9768_v33 }
 0x1a6   :  { %v7368_v46 = vpop.eup %7367  ;;  %5239 = vst.msk [vmem:[%s11613_s3 + $0xa0] sm:$0xf] %vm5198_vm3, %v6270_v62  ;;  %v6273_v23 = vpack.c.bf16 %v3961_v11, %v3961_v11  ;;  %v3959_v47 = vmul.f32 %v7366_v41, %v9570_v20  ;;  %7387 = vpow2.f32 %v5896_v50  ;;  %11696 = vst [vmem:[#allocation18_spill] sm:$0xff] %v9795_v28  ;;  %v9797_v51 = vpop.f32.mrb[81].mxu1  ;;  %v5895_v11 = vmul.f32 -1.442695, %v9777_v5 }
 0x1a7   :  { %11697 = vst [vmem:[#allocation19_spill] sm:$0xff] %v9797_v51  ;;  %v7370_v32 = vpop.eup %7369  ;;  %5367 = vst.msk [vmem:[%s11613_s3 + $0x2a0] sm:$0xf] %vm5198_vm3, %v6398_v12  ;;  %v6401_v17 = vpack.c.bf16 %v4089_v31, %v4089_v31  ;;  %v4087_v38 = vmul.f32 %v7368_v46, %v9581_v59  ;;  %7389 = vpow2.f32 %v5766_v6  ;;  %v9805_v20 = vpop.f32.mrb[82].mxu0 }
 0x1a8   :  { %11698 = vst [vmem:[#allocation20_spill] sm:$0xff] %v9805_v20  ;;  %v9807_v50 = vpop.f32.mrb[82].mxu1  ;;  %v7372_v25 = vpop.eup %7371  ;;  %5242 = vst.msk [vmem:[%s11613_s3 + $0xac] sm:$0xf] %vm5198_vm3, %v6273_v23  ;;  %v6271_v60 = vpack.c.bf16 %v3959_v47, %v3959_v47  ;;  %v3964_v62 = vmul.f32 %v7370_v32, %v9592_v34  ;;  %7391 = vpow2.f32 %v5894_v58 }
 0x1a9   :  { %11699 = vst [vmem:[#allocation21_spill] sm:$0xff] %v9807_v50  ;;  %v9815_v59 = vpop.f32.mrb[83].mxu0  ;;  %v9817_v6 = vpop.f32.mrb[83].mxu1  ;;  %5370 = vst.msk [vmem:[%s11613_s3 + $0x2ac] sm:$0xf] %vm5198_vm3, %v6401_v17  ;;  %v6399_v41 = vpack.c.bf16 %v4087_v38, %v4087_v38  ;;  %v4092_v12 = vmul.f32 %v7372_v25, %v9605_v24  ;;  %7393 = vpow2.f32 %v5769_v0 }
 0x1aa   :  { %11700 = vst [vmem:[#allocation22_spill] sm:$0xff] %v9815_v59  ;;  %11701 = vst [vmem:[#allocation23_spill] sm:$0xff] %v9817_v6  ;;  %v7374_v29 = vpop.eup %7373  ;;  %v6276_v34 = vpack.c.bf16 %v3964_v62, %v3964_v62  ;;  %7395 = vpow2.f32 %v5897_v55  ;;  %v9841_v17 = vpop.f32.mrb[84].mxu0 }
 0x1ab   :  { %v7376_v31 = vpop.eup %7375  ;;  %5240 = vst.msk [vmem:[%s11613_s3 + $0xa4] sm:$0xf] %vm5198_vm3, %v6271_v60  ;;  %v3962_v58 = vmul.f32 %v7374_v29, %v9618_v45  ;;  %5368 = vst.msk [vmem:[%s11613_s3 + $0x2a4] sm:$0xf] %vm5198_vm3, %v6399_v41  ;;  %v6404_v23 = vpack.c.bf16 %v4092_v12, %v4092_v12  ;;  %7397 = vpow2.f32 %v5767_v54  ;;  %v9843_v38 = vpop.f32.mrb[84].mxu1 }
 0x1ac   :  { %v7378_v46 = vpop.eup %7377  ;;  %v3322_v47 = vadd.f32 1.0, %v7376_v31  ;;  %5245 = vst.msk [vmem:[%s11613_s3 + $0xb8] sm:$0xf] %vm5198_vm3, %v6276_v34  ;;  %7399 = vpow2.f32 %v5895_v11  ;;  %11702 = vst [vmem:[#allocation24_spill] sm:$0xff] %v9841_v17  ;;  %v11704_v11 = vld [vmem:[#allocation2_spill] sm:$0xff]  ;;  %v9892_v59 = vpop.f32.mrb[85].mxu0 }
 0x1ad   :  { %v7380_v24 = vpop.eup %7379  ;;  %v6274_v0 = vpack.c.bf16 %v3962_v58, %v3962_v58  ;;  %v3197_v32 = vadd.f32 1.0, %v7378_v46  ;;  %5373 = vst.msk [vmem:[%s11613_s3 + $0x2b8] sm:$0xf] %vm5198_vm3, %v6404_v23  ;;  %11703 = vst [vmem:[#allocation45_spill] sm:$0xff] %v9843_v38  ;;  %v9851_v29 = vadd.f32 %v9691_v27, %v11704_v11  ;;  %v11705_v23 = vld [vmem:[#allocation3_spill] sm:$0xff]  ;;  %v9894_v50 = vpop.f32.mrb[85].mxu1 }
 0x1ae   :  { %v7382_v45 = vpop.eup %7381  ;;  %7401 = vrcp.f32 %v3322_v47  ;;  %v3325_v55 = vadd.f32 1.0, %v7380_v24  ;;  %v9855_v47 = vadd.f32 %v9691_v27, %v11705_v23  ;;  %v11706_v24 = vld [vmem:[#allocation25_spill] sm:$0xff]  ;;  %v11708_v11 = vld [vmem:[#allocation27_spill] sm:$0xff]  ;;  %11712 = vst [vmem:[#allocation2_spill] sm:$0xff] %v9892_v59  ;;  %11713 = vst [vmem:[#allocation3_spill] sm:$0xff] %v9894_v50  ;;  %v9903_v59 = vpop.f32.mrb[86].mxu1 }
 0x1af   :  { %v7384_v54 = vpop.eup %7383  ;;  %5243 = vst.msk [vmem:[%s11613_s3 + $0xb0] sm:$0xf] %vm5198_vm3, %v6274_v0  ;;  %7403 = vrcp.f32 %v3197_v32  ;;  %v3195_v25 = vadd.f32 1.0, %v7382_v45  ;;  %v9859_v0 = vadd.f32 %v9691_v27, %v11706_v24 }
 0x1b0   :  { %v7386_v60 = vpop.eup %7385  ;;  %7405 = vrcp.f32 %v3325_v55  ;;  %v3323_v62 = vadd.f32 1.0, %v7384_v54  ;;  %v5772_v55 = vmul.f32 -1.442695, %v9851_v29  ;;  %v11707_v54 = vld [vmem:[#allocation26_spill] sm:$0xff] }
 0x1b1   :  { %v7388_v41 = vpop.eup %7387  ;;  %7407 = vrcp.f32 %v3195_v25  ;;  %v3200_v12 = vadd.f32 1.0, %v7386_v60  ;;  %v9864_v25 = vadd.f32 %v9691_v27, %v11707_v54  ;;  %v11711_v54 = vld [vmem:[#allocation30_spill] sm:$0xff] }
 0x1b2   :  { %v7390_v31 = vpop.eup %7389  ;;  %7409 = vrcp.f32 %v3323_v62  ;;  %v3328_v34 = vadd.f32 1.0, %v7388_v41  ;;  %v9868_v41 = vadd.f32 %v9691_v27, %v11708_v11  ;;  %v9880_v38 = vadd.f32 %v9691_v27, %v11711_v54 }
 0x1b3   :  { %v7392_v58 = vpop.eup %7391  ;;  %7411 = vrcp.f32 %v3200_v12  ;;  %v3198_v46 = vadd.f32 1.0, %v7390_v31  ;;  %v11709_v12 = vld [vmem:[#allocation28_spill] sm:$0xff]  ;;  %v5900_v11 = vmul.f32 -1.442695, %v9855_v47 }
 0x1b4   :  { %v7394_v32 = vpop.eup %7393  ;;  %7413 = vrcp.f32 %v3328_v34  ;;  %v3326_v45 = vadd.f32 1.0, %v7392_v58  ;;  %v9872_v31 = vadd.f32 %v9691_v27, %v11709_v12  ;;  %v11710_v58 = vld [vmem:[#allocation29_spill] sm:$0xff]  ;;  %v9885_v12 = vadd.f32 %v9691_v27, %v9279_v22 }
 0x1b5   :  { %v7396_v60 = vpop.eup %7395  ;;  %7415 = vrcp.f32 %v3198_v46  ;;  %v3201_v62 = vadd.f32 1.0, %v7394_v32  ;;  %v9876_v24 = vadd.f32 %v9691_v27, %v11710_v58  ;;  %v5898_v58 = vmul.f32 -1.442695, %v9864_v25 }
 0x1b6   :  { %v7398_v23 = vpop.eup %7397  ;;  %7417 = vrcp.f32 %v3326_v45  ;;  %v3329_v34 = vadd.f32 1.0, %v7396_v60  ;;  %v5770_v60 = vmul.f32 -1.442695, %v9859_v0  ;;  %v5899_v20 = vmul.f32 -1.442695, %v9880_v38 }
 0x1b7   :  { %v7400_v46 = vpop.eup %7399  ;;  %7419 = vrcp.f32 %v3201_v62  ;;  %v3199_v32 = vadd.f32 1.0, %v7398_v23  ;;  %v5773_v62 = vmul.f32 -1.442695, %v9868_v41  ;;  %v5901_v23 = vmul.f32 -1.442695, %v9872_v31 }
 0x1b8   :  { %v7402_v17 = vpop.eup %7401  ;;  %7421 = vrcp.f32 %v3329_v34  ;;  %v3327_v45 = vadd.f32 1.0, %v7400_v46  ;;  %v5771_v46 = vmul.f32 -1.442695, %v9876_v24 }
 0x1b9   :  { %v7404_v6 = vpop.eup %7403  ;;  %v4090_v54 = vmul.f32 %v7402_v17, %v9695_v56  ;;  %7423 = vrcp.f32 %v3199_v32  ;;  %v5776_v17 = vmul.f32 -1.442695, %v9885_v12  ;;  %v9901_v32 = vpop.f32.mrb[86].mxu0 }
 0x1ba   :  { %v7406_v22 = vpop.eup %7405  ;;  %v3965_v34 = vmul.f32 %v7404_v6, %v9699_v13  ;;  %7425 = vrcp.f32 %v3327_v45  ;;  %v9908_v6 = vadd.f32 %v9691_v27, %v9281_v63 }
 0x1bb   :  { %v7408_v51 = vpop.eup %7407  ;;  %v6402_v28 = vpack.c.bf16 %v4090_v54, %v4090_v54  ;;  %v4093_v56 = vmul.f32 %v7406_v22, %v9703_v61  ;;  %7427 = vpow2.f32 %v5772_v55  ;;  %v9917_v54 = vadd.f32 %v9691_v27, %v9292_v57 }
 0x1bc   :  { %v7410_v50 = vpop.eup %7409  ;;  %v6277_v44 = vpack.c.bf16 %v3965_v34, %v3965_v34  ;;  %v3963_v13 = vmul.f32 %v7408_v51, %v9707_v1  ;;  %7429 = vpow2.f32 %v5900_v11  ;;  %v9919_v1 = vpop.f32.mrb[87].mxu0  ;;  %v5904_v22 = vmul.f32 -1.442695, %v9908_v6 }
 0x1bd   :  { %v7412_v45 = vpop.eup %7411  ;;  %5371 = vst.msk [vmem:[%s11613_s3 + $0x2b0] sm:$0xf] %vm5198_vm3, %v6402_v28  ;;  %v6405_v61 = vpack.c.bf16 %v4093_v56, %v4093_v56  ;;  %v4091_v55 = vmul.f32 %v7410_v50, %v9711_v3  ;;  %7431 = vpow2.f32 %v5770_v60  ;;  %v9921_v51 = vpop.f32.mrb[87].mxu1  ;;  %v9930_v3 = vadd.f32 %v9691_v27, %v9294_v16 }
 0x1be   :  { %v7414_v63 = vpop.eup %7413  ;;  %5246 = vst.msk [vmem:[%s11613_s3 + $0xbc] sm:$0xf] %vm5198_vm3, %v6277_v44  ;;  %v6275_v11 = vpack.c.bf16 %v3963_v13, %v3963_v13  ;;  %v3968_v28 = vmul.f32 %v7412_v45, %v9716_v15  ;;  %7433 = vpow2.f32 %v5898_v58  ;;  %v9939_v44 = vadd.f32 %v9691_v27, %v9302_v19 }
 0x1bf   :  { %v7416_v57 = vpop.eup %7415  ;;  %5374 = vst.msk [vmem:[%s11613_s3 + $0x2bc] sm:$0xf] %vm5198_vm3, %v6405_v61  ;;  %v6403_v50 = vpack.c.bf16 %v4091_v55, %v4091_v55  ;;  %v4096_v60 = vmul.f32 %v7414_v63, %v9720_v40  ;;  %7435 = vpow2.f32 %v5773_v62  ;;  %v5774_v62 = vmul.f32 -1.442695, %v9917_v54  ;;  %v9965_v55 = vpop.f32.mrb[88].mxu0 }
 0x1c0   :  { %v7418_v15 = vpop.eup %7417  ;;  %5244 = vst.msk [vmem:[%s11613_s3 + $0xb4] sm:$0xf] %vm5198_vm3, %v6275_v11  ;;  %v6280_v16 = vpack.c.bf16 %v3968_v28, %v3968_v28  ;;  %v3966_v58 = vmul.f32 %v7416_v57, %v9724_v43  ;;  %7437 = vpow2.f32 %v5901_v23  ;;  %v5902_v13 = vmul.f32 -1.442695, %v9930_v3  ;;  %v9967_v63 = vpop.f32.mrb[88].mxu1 }
 0x1c1   :  { %v7420_v34 = vpop.eup %7419  ;;  %5372 = vst.msk [vmem:[%s11613_s3 + $0x2b4] sm:$0xf] %vm5198_vm3, %v6403_v50  ;;  %v6408_v19 = vpack.c.bf16 %v4096_v60, %v4096_v60  ;;  %v4094_v40 = vmul.f32 %v7418_v15, %v9736_v8  ;;  %7439 = vpow2.f32 %v5771_v46  ;;  %v5777_v61 = vmul.f32 -1.442695, %v9939_v44  ;;  %v9974_v28 = vpop.f32.mrb[89].mxu0 }
 0x1c2   :  { %v7422_v56 = vpop.eup %7421  ;;  %5249 = vst.msk [vmem:[%s11613_s3 + $0xc8] sm:$0xf] %vm5198_vm3, %v6280_v16  ;;  %v6278_v43 = vpack.c.bf16 %v3966_v58, %v3966_v58  ;;  %v3969_v23 = vmul.f32 %v7420_v34, %v9748_v18  ;;  %7441 = vpow2.f32 %v5899_v20  ;;  %v9983_v60 = vpop.f32.mrb[90].mxu0 }
 0x1c3   :  { %v7424_v45 = vpop.eup %7423  ;;  %5377 = vst.msk [vmem:[%s11613_s3 + $0x2c8] sm:$0xf] %vm5198_vm3, %v6408_v19  ;;  %v6406_v8 = vpack.c.bf16 %v4094_v40, %v4094_v40  ;;  %v4097_v46 = vmul.f32 %v7422_v56, %v9753_v36  ;;  %7443 = vpow2.f32 %v5776_v17  ;;  %v9976_v36 = vpop.f32.mrb[89].mxu1  ;;  %11715 = vst [vmem:[#allocation26_spill] sm:$0xff] %v9983_v60  ;;  %v11725_v60 = vld [vmem:[#allocation37_spill] sm:$0xff] }
 0x1c4   :  { %v7426_v18 = vpop.eup %7425  ;;  %5247 = vst.msk [vmem:[%s11613_s3 + $0xc0] sm:$0xf] %vm5198_vm3, %v6278_v43  ;;  %v6281_v20 = vpack.c.bf16 %v3969_v23, %v3969_v23  ;;  %v3967_v11 = vmul.f32 %v7424_v45, %v9768_v33  ;;  %7445 = vpow2.f32 %v5904_v22  ;;  %11714 = vst [vmem:[#allocation25_spill] sm:$0xff] %v9976_v36  ;;  %v9985_v15 = vpop.f32.mrb[90].mxu1  ;;  %v10007_v45 = vadd.f32 %v9691_v27, %v9304_v7 }
 0x1c5   :  { %v7428_v17 = vpop.eup %7427  ;;  %5375 = vst.msk [vmem:[%s11613_s3 + $0x2c0] sm:$0xf] %vm5198_vm3, %v6406_v8  ;;  %v6409_v57 = vpack.c.bf16 %v4097_v46, %v4097_v46  ;;  %v4095_v50 = vmul.f32 %v7426_v18, %v9777_v5  ;;  %7447 = vpow2.f32 %v5774_v62  ;;  %11716 = vst [vmem:[#allocation27_spill] sm:$0xff] %v9985_v15  ;;  %v9991_v22 = vpop.f32.mrb[91].mxu0 }
 0x1c6   :  { %v7430_v33 = vpop.eup %7429  ;;  %5250 = vst.msk [vmem:[%s11613_s3 + $0xcc] sm:$0xf] %vm5198_vm3, %v6281_v20  ;;  %v6279_v16 = vpack.c.bf16 %v3967_v11, %v3967_v11  ;;  %v3204_v58 = vadd.f32 1.0, %v7428_v17  ;;  %7449 = vpow2.f32 %v5902_v13  ;;  %11717 = vst [vmem:[#allocation28_spill] sm:$0xff] %v9991_v22  ;;  %v10011_v17 = vadd.f32 %v9691_v27, %v9312_v2 }
 0x1c7   :  { %v7432_v34 = vpop.eup %7431  ;;  %5378 = vst.msk [vmem:[%s11613_s3 + $0x2cc] sm:$0xf] %vm5198_vm3, %v6409_v57  ;;  %v6407_v5 = vpack.c.bf16 %v4095_v50, %v4095_v50  ;;  %v3332_v19 = vadd.f32 1.0, %v7430_v33  ;;  %7451 = vpow2.f32 %v5777_v61  ;;  %v10015_v57 = vadd.f32 %v9691_v27, %v9314_v21 }
 0x1c8   :  { %v7434_v40 = vpop.eup %7433  ;;  %5248 = vst.msk [vmem:[%s11613_s3 + $0xc4] sm:$0xf] %vm5198_vm3, %v6279_v16  ;;  %7453 = vrcp.f32 %v3204_v58  ;;  %v3202_v62 = vadd.f32 1.0, %v7432_v34  ;;  %v5905_v33 = vmul.f32 -1.442695, %v10007_v45  ;;  %v11718_v16 = vld [vmem:[#allocation31_spill] sm:$0xff] }
 0x1c9   :  { %v7436_v56 = vpop.eup %7435  ;;  %5376 = vst.msk [vmem:[%s11613_s3 + $0x2c4] sm:$0xf] %vm5198_vm3, %v6407_v5  ;;  %7455 = vrcp.f32 %v3332_v19  ;;  %v3330_v43 = vadd.f32 1.0, %v7434_v40  ;;  %v10020_v58 = vadd.f32 %v9691_v27, %v11718_v16  ;;  %v11719_v19 = vld [vmem:[#allocation32_spill] sm:$0xff]  ;;  %v11720_v40 = vld [vmem:[#allocation33_spill] sm:$0xff] }
 0x1ca   :  { %v7438_v23 = vpop.eup %7437  ;;  %7457 = vrcp.f32 %v3202_v62  ;;  %v3205_v13 = vadd.f32 1.0, %v7436_v56  ;;  %v10024_v2 = vadd.f32 %v9691_v27, %v11719_v19  ;;  %v10028_v21 = vadd.f32 %v9691_v27, %v11720_v40  ;;  %v11723_v16 = vld [vmem:[#allocation36_spill] sm:$0xff]  ;;  %v10045_v19 = vpop.f32.mrb[91].mxu1 }
 0x1cb   :  { %v7440_v8 = vpop.eup %7439  ;;  %7459 = vrcp.f32 %v3330_v43  ;;  %v3333_v46 = vadd.f32 1.0, %v7438_v23  ;;  %v11721_v43 = vld [vmem:[#allocation34_spill] sm:$0xff]  ;;  %11724 = vst [vmem:[#allocation29_spill] sm:$0xff] %v10045_v19 }
 0x1cc   :  { %v7442_v61 = vpop.eup %7441  ;;  %7461 = vrcp.f32 %v3205_v13  ;;  %v3203_v18 = vadd.f32 1.0, %v7440_v8  ;;  %v10032_v23 = vadd.f32 %v9691_v27, %v11721_v43  ;;  %v11722_v13 = vld [vmem:[#allocation35_spill] sm:$0xff] }
 0x1cd   :  { %v7444_v20 = vpop.eup %7443  ;;  %7463 = vrcp.f32 %v3333_v46  ;;  %v3331_v11 = vadd.f32 1.0, %v7442_v61  ;;  %v10036_v8 = vadd.f32 %v9691_v27, %v11722_v13 }
 0x1ce   :  { %v7446_v50 = vpop.eup %7445  ;;  %7465 = vrcp.f32 %v3203_v18  ;;  %v3208_v7 = vadd.f32 1.0, %v7444_v20  ;;  %v5775_v18 = vmul.f32 -1.442695, %v10011_v17  ;;  %v5903_v20 = vmul.f32 -1.442695, %v10015_v57 }
 0x1cf   :  { %v7448_v34 = vpop.eup %7447  ;;  %7467 = vrcp.f32 %v3331_v11  ;;  %v3336_v5 = vadd.f32 1.0, %v7446_v50  ;;  %v5781_v22 = vmul.f32 -1.442695, %v10036_v8 }
 0x1d0   :  { %v7450_v62 = vpop.eup %7449  ;;  %7469 = vrcp.f32 %v3208_v7  ;;  %v3206_v56 = vadd.f32 1.0, %v7448_v34  ;;  %v5780_v7 = vmul.f32 -1.442695, %v10020_v58  ;;  %v10043_v34 = vadd.f32 %v9691_v27, %v11723_v16 }
 0x1d1   :  { %v7452_v46 = vpop.eup %7451  ;;  %7471 = vrcp.f32 %v3336_v5  ;;  %v3334_v61 = vadd.f32 1.0, %v7450_v62  ;;  %v5908_v5 = vmul.f32 -1.442695, %v10024_v2  ;;  %v5778_v62 = vmul.f32 -1.442695, %v10028_v21 }
 0x1d2   :  { %v7454_v11 = vpop.eup %7453  ;;  %7473 = vrcp.f32 %v3206_v56  ;;  %v3209_v50 = vadd.f32 1.0, %v7452_v46  ;;  %v5906_v46 = vmul.f32 -1.442695, %v10032_v23 }
 0x1d3   :  { %v7456_v40 = vpop.eup %7455  ;;  %v3972_v43 = vmul.f32 %v7454_v11, %v9851_v29  ;;  %7475 = vrcp.f32 %v3334_v61  ;;  %v10056_v29 = vadd.f32 %v9691_v27, %v11725_v60 }
 0x1d4   :  { %v7458_v13 = vpop.eup %7457  ;;  %v4100_v56 = vmul.f32 %v7456_v40, %v9855_v47  ;;  %7477 = vrcp.f32 %v3209_v50  ;;  %v5909_v47 = vmul.f32 -1.442695, %v10043_v34 }
 0x1d5   :  { %v7460_v16 = vpop.eup %7459  ;;  %v6284_v15 = vpack.c.bf16 %v3972_v43, %v3972_v43  ;;  %v3970_v19 = vmul.f32 %v7458_v13, %v9859_v0  ;;  %7479 = vpow2.f32 %v5905_v33  ;;  %v11726_v33 = vld [vmem:[#allocation38_spill] sm:$0xff]  ;;  %v11727_v13 = vld [vmem:[#allocation39_spill] sm:$0xff] }
 0x1d6   :  { %v7462_v61 = vpop.eup %7461  ;;  %v6412_v11 = vpack.c.bf16 %v4100_v56, %v4100_v56  ;;  %v4098_v36 = vmul.f32 %v7460_v16, %v9864_v25  ;;  %7481 = vpow2.f32 %v5775_v18  ;;  %v10067_v60 = vadd.f32 %v9691_v27, %v11726_v33 }
 0x1d7   :  { %v7464_v50 = vpop.eup %7463  ;;  %5253 = vst.msk [vmem:[%s11613_s3 + $0xd8] sm:$0xf] %vm5198_vm3, %v6284_v15  ;;  %v6282_v40 = vpack.c.bf16 %v3970_v19, %v3970_v19  ;;  %v3973_v0 = vmul.f32 %v7462_v61, %v9868_v41  ;;  %7483 = vpow2.f32 %v5903_v20  ;;  %v10076_v15 = vadd.f32 %v9691_v27, %v11727_v13  ;;  %v10078_v41 = vpop.f32.mrb[92].mxu0 }
 0x1d8   :  { %v7466_v43 = vpop.eup %7465  ;;  %5381 = vst.msk [vmem:[%s11613_s3 + $0x2d8] sm:$0xf] %vm5198_vm3, %v6412_v11  ;;  %v6410_v25 = vpack.c.bf16 %v4098_v36, %v4098_v36  ;;  %v4101_v18 = vmul.f32 %v7464_v50, %v9872_v31  ;;  %7485 = vpow2.f32 %v5780_v7  ;;  %v10080_v20 = vpop.f32.mrb[92].mxu1  ;;  %v11728_v31 = vld [vmem:[#allocation40_spill] sm:$0xff] }
 0x1d9   :  { %v7468_v19 = vpop.eup %7467  ;;  %5251 = vst.msk [vmem:[%s11613_s3 + $0xd0] sm:$0xf] %vm5198_vm3, %v6282_v40  ;;  %v6285_v56 = vpack.c.bf16 %v3973_v0, %v3973_v0  ;;  %v3971_v36 = vmul.f32 %v7466_v43, %v9876_v24  ;;  %7487 = vpow2.f32 %v5908_v5  ;;  %v10089_v7 = vadd.f32 %v9691_v27, %v11728_v31  ;;  %v10091_v16 = vpop.f32.mrb[93].mxu0 }
 0x1da   :  { %11729 = vst [vmem:[#allocation30_spill] sm:$0xff] %v10091_v16  ;;  %v10093_v61 = vpop.f32.mrb[93].mxu1  ;;  %v7470_v11 = vpop.eup %7469  ;;  %5379 = vst.msk [vmem:[%s11613_s3 + $0x2d0] sm:$0xf] %vm5198_vm3, %v6410_v25  ;;  %v6413_v50 = vpack.c.bf16 %v4101_v18, %v4101_v18  ;;  %v4099_v40 = vmul.f32 %v7468_v19, %v9880_v38  ;;  %7489 = vpow2.f32 %v5778_v62  ;;  %v5779_v24 = vmul.f32 -1.442695, %v10056_v29 }
 0x1db   :  { %11730 = vst [vmem:[#allocation31_spill] sm:$0xff] %v10093_v61  ;;  %v10101_v5 = vpop.f32.mrb[94].mxu0  ;;  %v10103_v0 = vpop.f32.mrb[94].mxu1  ;;  %5254 = vst.msk [vmem:[%s11613_s3 + $0xdc] sm:$0xf] %vm5198_vm3, %v6285_v56  ;;  %v6283_v43 = vpack.c.bf16 %v3971_v36, %v3971_v36  ;;  %v3976_v13 = vmul.f32 %v7470_v11, %v9885_v12  ;;  %7491 = vpow2.f32 %v5906_v46 }
 0x1dc   :  { %11731 = vst [vmem:[#allocation32_spill] sm:$0xff] %v10101_v5  ;;  %11732 = vst [vmem:[#allocation33_spill] sm:$0xff] %v10103_v0  ;;  %v7472_v33 = vpop.eup %7471  ;;  %v5907_v25 = vmul.f32 -1.442695, %v10067_v60  ;;  %v10111_v38 = vpop.f32.mrb[95].mxu0  ;;  %v6411_v19 = vpack.c.bf16 %v4099_v40, %v4099_v40  ;;  %7493 = vpow2.f32 %v5781_v22  ;;  %v11747_v5 = vld [vmem:[#allocation9_spill] sm:$0xff] }
 0x1dd   :  { %11733 = vst [vmem:[#allocation34_spill] sm:$0xff] %v10111_v38  ;;  %v10113_v62 = vpop.f32.mrb[95].mxu1  ;;  %v7474_v18 = vpop.eup %7473  ;;  %5382 = vst.msk [vmem:[%s11613_s3 + $0x2dc] sm:$0xf] %vm5198_vm3, %v6413_v50  ;;  %v4104_v31 = vmul.f32 %v7472_v33, %v9908_v6  ;;  %v5784_v56 = vmul.f32 -1.442695, %v10076_v15  ;;  %v6288_v46 = vpack.c.bf16 %v3976_v13, %v3976_v13  ;;  %7495 = vpow2.f32 %v5909_v47 }
 0x1de   :  { %11734 = vst [vmem:[#allocation35_spill] sm:$0xff] %v10113_v62  ;;  %v7476_v12 = vpop.eup %7475  ;;  %5252 = vst.msk [vmem:[%s11613_s3 + $0xd4] sm:$0xf] %vm5198_vm3, %v6283_v43  ;;  %v3974_v36 = vmul.f32 %v7474_v18, %v9917_v54  ;;  %v5912_v11 = vmul.f32 -1.442695, %v10089_v7  ;;  %7497 = vpow2.f32 %v5779_v24  ;;  %v10143_v24 = vpop.f32.mrb[96].mxu1 }
 0x1df   :  { %v7478_v62 = vpop.eup %7477  ;;  %5380 = vst.msk [vmem:[%s11613_s3 + $0x2d4] sm:$0xf] %vm5198_vm3, %v6411_v19  ;;  %v6416_v6 = vpack.c.bf16 %v4104_v31, %v4104_v31  ;;  %v4102_v22 = vmul.f32 %v7476_v12, %v9930_v3  ;;  %5257 = vst.msk [vmem:[%s11613_s3 + $0xe8] sm:$0xf] %vm5198_vm3, %v6288_v46  ;;  %7499 = vpow2.f32 %v5907_v25  ;;  %v10141_v3 = vpop.f32.mrb[96].mxu0 }
 0x1e0   :  { %v7480_v50 = vpop.eup %7479  ;;  %v6286_v54 = vpack.c.bf16 %v3974_v36, %v3974_v36  ;;  %v3977_v47 = vmul.f32 %v7478_v62, %v9939_v44  ;;  %7501 = vpow2.f32 %v5784_v56  ;;  %11735 = vst [vmem:[#allocation36_spill] sm:$0xff] %v10141_v3  ;;  %11736 = vst [vmem:[#allocation37_spill] sm:$0xff] %v10143_v24  ;;  %v10149_v62 = vpop.f32.mrb[97].mxu0  ;;  %v11744_v24 = vld [vmem:[#allocation8_spill] sm:$0xff] }
 0x1e1   :  { %v7482_v40 = vpop.eup %7481  ;;  %5385 = vst.msk [vmem:[%s11613_s3 + $0x2e8] sm:$0xf] %vm5198_vm3, %v6416_v6  ;;  %v6414_v33 = vpack.c.bf16 %v4102_v22, %v4102_v22  ;;  %v3337_v43 = vadd.f32 1.0, %v7480_v50  ;;  %7503 = vpow2.f32 %v5912_v11  ;;  %11737 = vst [vmem:[#allocation38_spill] sm:$0xff] %v10149_v62  ;;  %v10151_v18 = vpop.f32.mrb[97].mxu1  ;;  %v11739_v22 = vld [vmem:[#allocation41_spill] sm:$0xff] }
 0x1e2   :  { %v7484_v13 = vpop.eup %7483  ;;  %5255 = vst.msk [vmem:[%s11613_s3 + $0xe0] sm:$0xf] %vm5198_vm3, %v6286_v54  ;;  %v6289_v44 = vpack.c.bf16 %v3977_v47, %v3977_v47  ;;  %v3207_v25 = vadd.f32 1.0, %v7482_v40  ;;  %11738 = vst [vmem:[#allocation39_spill] sm:$0xff] %v10151_v18  ;;  %v10163_v50 = vadd.f32 %v9691_v27, %v11739_v22  ;;  %v10184_v22 = vadd.f32 %v9691_v27, %v9437_v4  ;;  %v10206_v3 = vpop.f32.mrb[98].mxu1 }
 0x1e3   :  { %v7486_v19 = vpop.eup %7485  ;;  %5383 = vst.msk [vmem:[%s11613_s3 + $0x2e0] sm:$0xf] %vm5198_vm3, %v6414_v33  ;;  %7505 = vrcp.f32 %v3337_v43  ;;  %v3335_v31 = vadd.f32 1.0, %v7484_v13  ;;  %v11740_v43 = vld [vmem:[#allocation4_spill] sm:$0xff]  ;;  %11746 = vst [vmem:[#allocation41_spill] sm:$0xff] %v10206_v3  ;;  %v10218_v3 = vpop.f32.mrb[99].mxu1 }
 0x1e4   :  { %v7488_v56 = vpop.eup %7487  ;;  %5258 = vst.msk [vmem:[%s11613_s3 + $0xec] sm:$0xf] %vm5198_vm3, %v6289_v44  ;;  %7507 = vrcp.f32 %v3207_v25  ;;  %v3212_v12 = vadd.f32 1.0, %v7486_v19  ;;  %v10167_v13 = vadd.f32 %v9691_v27, %v11740_v43  ;;  %v11741_v44 = vld [vmem:[#allocation5_spill] sm:$0xff]  ;;  %v11743_v43 = vld [vmem:[#allocation7_spill] sm:$0xff] }
 0x1e5   :  { %v7490_v46 = vpop.eup %7489  ;;  %7509 = vrcp.f32 %v3335_v31  ;;  %v3340_v36 = vadd.f32 1.0, %v7488_v56  ;;  %v10171_v25 = vadd.f32 %v9691_v27, %v11741_v44  ;;  %v11742_v56 = vld [vmem:[#allocation6_spill] sm:$0xff] }
 0x1e6   :  { %v7492_v11 = vpop.eup %7491  ;;  %7511 = vrcp.f32 %v3212_v12  ;;  %v3210_v6 = vadd.f32 1.0, %v7490_v46  ;;  %v10175_v12 = vadd.f32 %v9691_v27, %v11742_v56  ;;  %v10179_v46 = vadd.f32 %v9691_v27, %v9435_v37 }
 0x1e7   :  { %v7494_v54 = vpop.eup %7493  ;;  %7513 = vrcp.f32 %v3340_v36  ;;  %v3338_v47 = vadd.f32 1.0, %v7492_v11  ;;  %v10192_v37 = vadd.f32 %v9691_v27, %v11743_v43  ;;  %v5785_v56 = vmul.f32 -1.442695, %v10171_v25 }
 0x1e8   :  { %v7496_v40 = vpop.eup %7495  ;;  %7515 = vrcp.f32 %v3210_v6  ;;  %v3213_v33 = vadd.f32 1.0, %v7494_v54  ;;  %v5782_v6 = vmul.f32 -1.442695, %v10163_v50  ;;  %v5911_v43 = vmul.f32 -1.442695, %v10184_v22 }
 0x1e9   :  { %v7498_v19 = vpop.eup %7497  ;;  %7517 = vrcp.f32 %v3338_v47  ;;  %v3341_v31 = vadd.f32 1.0, %v7496_v40  ;;  %v10188_v40 = vadd.f32 %v9691_v27, %v9484_v52  ;;  %v5916_v0 = vmul.f32 -1.442695, %v10192_v37 }
 0x1ea   :  { %v7500_v36 = vpop.eup %7499  ;;  %7519 = vrcp.f32 %v3213_v33  ;;  %v3211_v11 = vadd.f32 1.0, %v7498_v19  ;;  %v5910_v19 = vmul.f32 -1.442695, %v10167_v13 }
 0x1eb   :  { %v7502_v54 = vpop.eup %7501  ;;  %7521 = vrcp.f32 %v3341_v31  ;;  %v3339_v47 = vadd.f32 1.0, %v7500_v36  ;;  %v5913_v31 = vmul.f32 -1.442695, %v10175_v12  ;;  %v5783_v36 = vmul.f32 -1.442695, %v10179_v46 }
 0x1ec   :  { %v7504_v44 = vpop.eup %7503  ;;  %7523 = vrcp.f32 %v3211_v11  ;;  %v3216_v33 = vadd.f32 1.0, %v7502_v54  ;;  %v10202_v11 = vadd.f32 %v9691_v27, %v11744_v24  ;;  %v10204_v54 = vpop.f32.mrb[98].mxu0  ;;  %v5788_v38 = vmul.f32 -1.442695, %v10188_v40 }
 0x1ed   :  { %v7506_v4 = vpop.eup %7505  ;;  %7525 = vrcp.f32 %v3339_v47  ;;  %v3344_v18 = vadd.f32 1.0, %v7504_v44  ;;  %11745 = vst [vmem:[#allocation40_spill] sm:$0xff] %v10204_v54  ;;  %v10214_v24 = vadd.f32 %v9691_v27, %v11747_v5  ;;  %v10216_v54 = vpop.f32.mrb[99].mxu0 }
 0x1ee   :  { %v7508_v52 = vpop.eup %7507  ;;  %v4105_v62 = vmul.f32 %v7506_v4, %v10007_v45  ;;  %7527 = vrcp.f32 %v3216_v33 }
 0x1ef   :  { %v7510_v47 = vpop.eup %7509  ;;  %v3975_v44 = vmul.f32 %v7508_v52, %v10011_v17  ;;  %7529 = vrcp.f32 %v3344_v18  ;;  %v11748_v52 = vld [vmem:[#allocation10_spill] sm:$0xff] }
 0x1f0   :  { %v7512_v45 = vpop.eup %7511  ;;  %v6417_v33 = vpack.c.bf16 %v4105_v62, %v4105_v62  ;;  %v4103_v4 = vmul.f32 %v7510_v47, %v10015_v57  ;;  %7531 = vpow2.f32 %v5782_v6  ;;  %v10223_v16 = vadd.f32 %v9691_v27, %v11748_v52 }
 0x1f1   :  { %v7514_v61 = vpop.eup %7513  ;;  %v6287_v17 = vpack.c.bf16 %v3975_v44, %v3975_v44  ;;  %v3980_v18 = vmul.f32 %v7512_v45, %v10020_v58  ;;  %7533 = vpow2.f32 %v5910_v19  ;;  %v5786_v6 = vmul.f32 -1.442695, %v10202_v11  ;;  %v11749_v44 = vld [vmem:[#allocation42_spill] sm:$0xff] }
 0x1f2   :  { %v7516_v62 = vpop.eup %7515  ;;  %5386 = vst.msk [vmem:[%s11613_s3 + $0x2ec] sm:$0xf] %vm5198_vm3, %v6417_v33  ;;  %v6415_v57 = vpack.c.bf16 %v4103_v4, %v4103_v4  ;;  %v4108_v5 = vmul.f32 %v7514_v61, %v10024_v2  ;;  %7535 = vpow2.f32 %v5785_v56  ;;  %v10238_v45 = vadd.f32 %v9691_v27, %v11749_v44  ;;  %v11750_v56 = vld [vmem:[#allocation43_spill] sm:$0xff] }
 0x1f3   :  { %v7518_v47 = vpop.eup %7517  ;;  %5256 = vst.msk [vmem:[%s11613_s3 + $0xe4] sm:$0xf] %vm5198_vm3, %v6287_v17  ;;  %v6292_v58 = vpack.c.bf16 %v3980_v18, %v3980_v18  ;;  %v3978_v19 = vmul.f32 %v7516_v62, %v10028_v21  ;;  %7537 = vpow2.f32 %v5913_v31  ;;  %v10247_v4 = vadd.f32 %v9691_v27, %v11750_v56  ;;  %v10261_v62 = vpop.f32.mrb[100].mxu0 }
 0x1f4   :  { %v7520_v33 = vpop.eup %7519  ;;  %5384 = vst.msk [vmem:[%s11613_s3 + $0x2e4] sm:$0xf] %vm5198_vm3, %v6415_v57  ;;  %v6420_v2 = vpack.c.bf16 %v4108_v5, %v4108_v5  ;;  %v4106_v61 = vmul.f32 %v7518_v47, %v10032_v23  ;;  %7539 = vpow2.f32 %v5783_v36  ;;  %v5914_v18 = vmul.f32 -1.442695, %v10214_v24  ;;  %v10263_v57 = vpop.f32.mrb[100].mxu1 }
 0x1f5   :  { %v7522_v21 = vpop.eup %7521  ;;  %5261 = vst.msk [vmem:[%s11613_s3 + $0xf8] sm:$0xf] %vm5198_vm3, %v6292_v58  ;;  %v6290_v31 = vpack.c.bf16 %v3978_v19, %v3978_v19  ;;  %v3981_v17 = vmul.f32 %v7520_v33, %v10036_v8  ;;  %7541 = vpow2.f32 %v5911_v43  ;;  %v5789_v36 = vmul.f32 -1.442695, %v10223_v16 }
 0x1f6   :  { %v7524_v52 = vpop.eup %7523  ;;  %5389 = vst.msk [vmem:[%s11613_s3 + $0x2f8] sm:$0xf] %vm5198_vm3, %v6420_v2  ;;  %v6418_v27 = vpack.c.bf16 %v4106_v61, %v4106_v61  ;;  %v4109_v23 = vmul.f32 %v7522_v21, %v10043_v34  ;;  %7543 = vpow2.f32 %v5788_v38  ;;  %v5917_v47 = vmul.f32 -1.442695, %v10238_v45  ;;  %v10271_v34 = vpop.f32.mrb[101].mxu0 }
 0x1f7   :  { %v7526_v8 = vpop.eup %7525  ;;  %5259 = vst.msk [vmem:[%s11613_s3 + $0xf0] sm:$0xf] %vm5198_vm3, %v6290_v31  ;;  %v6293_v43 = vpack.c.bf16 %v3981_v17, %v3981_v17  ;;  %v3979_v5 = vmul.f32 %v7524_v52, %v10056_v29  ;;  %7545 = vpow2.f32 %v5916_v0  ;;  %v10273_v38 = vpop.f32.mrb[101].mxu1  ;;  %v5787_v33 = vmul.f32 -1.442695, %v10247_v4 }
 0x1f8   :  { %v7528_v58 = vpop.eup %7527  ;;  %5387 = vst.msk [vmem:[%s11613_s3 + $0x2f0] sm:$0xf] %vm5198_vm3, %v6418_v27  ;;  %v6421_v19 = vpack.c.bf16 %v4109_v23, %v4109_v23  ;;  %v4107_v44 = vmul.f32 %v7526_v8, %v10067_v60  ;;  %7547 = vpow2.f32 %v5786_v6  ;;  %v10281_v29 = vpop.f32.mrb[102].mxu0 }
 0x1f9   :  { %v10283_v0 = vpop.f32.mrb[102].mxu1  ;;  %v7530_v2 = vpop.eup %7529  ;;  %5262 = vst.msk [vmem:[%s11613_s3 + $0xfc] sm:$0xf] %vm5198_vm3, %v6293_v43  ;;  %v6291_v61 = vpack.c.bf16 %v3979_v5, %v3979_v5  ;;  %v3984_v56 = vmul.f32 %v7528_v58, %v10076_v15  ;;  %7549 = vpow2.f32 %v5914_v18 }
 0x1fa   :  { %v10290_v21 = vpop.f32.mrb[103].mxu0  ;;  %v10292_v60 = vpop.f32.mrb[103].mxu1  ;;  %5390 = vst.msk [vmem:[%s11613_s3 + $0x2fc] sm:$0xf] %vm5198_vm3, %v6421_v19  ;;  %v6419_v31 = vpack.c.bf16 %v4107_v44, %v4107_v44  ;;  %v4112_v17 = vmul.f32 %v7530_v2, %v10089_v7  ;;  %7551 = vpow2.f32 %v5789_v36  ;;  %v10320_v44 = vld [vmem:[%s11612_s2] ss:$0 sm:$0xff] }
 0x1fb   :  { %11751 = vst [vmem:[#allocation4_spill] sm:$0xff] %v10292_v60  ;;  %v7532_v6 = vpop.eup %7531  ;;  %5260 = vst.msk [vmem:[%s11613_s3 + $0xf4] sm:$0xf] %vm5198_vm3, %v6291_v61  ;;  %v6296_v15 = vpack.c.bf16 %v3984_v56, %v3984_v56  ;;  %7553 = vpow2.f32 %v5917_v47  ;;  %v10315_v47 = vpop.f32.mrb[104].mxu0 }
 0x1fc   :  { %v7534_v52 = vpop.eup %7533  ;;  %v3214_v18 = vadd.f32 1.0, %v7532_v6  ;;  %5388 = vst.msk [vmem:[%s11613_s3 + $0x2f4] sm:$0xf] %vm5198_vm3, %v6419_v31  ;;  %v6424_v23 = vpack.c.bf16 %v4112_v17, %v4112_v17  ;;  %7555 = vpow2.f32 %v5787_v33  ;;  %11752 = vst [vmem:[#allocation5_spill] sm:$0xff] %v10315_v47  ;;  %v11753_v33 = vld [vmem:[#allocation44_spill] sm:$0xff] }
 0x1fd   :  { %v7536_v27 = vpop.eup %7535  ;;  %v3342_v8 = vadd.f32 1.0, %v7534_v52  ;;  %5265 = vst.msk [vmem:[%s11613_s3 + $0x108] sm:$0xf] %vm5198_vm3, %v6296_v15  ;;  %v10324_v2 = vadd.f32 %v10320_v44, %v11753_v33  ;;  %v10328_v15 = vadd.f32 %v10320_v44, %v9594_v10  ;;  %v10341_v10 = vadd.f32 %v10320_v44, %v9609_v14 }
 0x1fe   :  { %v7538_v7 = vpop.eup %7537  ;;  %7557 = vrcp.f32 %v3214_v18  ;;  %v3217_v36 = vadd.f32 1.0, %v7536_v27  ;;  %5393 = vst.msk [vmem:[%s11613_s3 + $0x308] sm:$0xf] %vm5198_vm3, %v6424_v23  ;;  %v10332_v18 = vadd.f32 %v10320_v44, %v9596_v49  ;;  %v10345_v49 = vadd.f32 %v10320_v44, %v9620_v48 }
 0x1ff   :  { %v7540_v43 = vpop.eup %7539  ;;  %7559 = vrcp.f32 %v3342_v8  ;;  %v3345_v5 = vadd.f32 1.0, %v7538_v7  ;;  %v5915_v8 = vmul.f32 -1.442695, %v10324_v2  ;;  %v10337_v7 = vadd.f32 %v10320_v44, %v9607_v9 }
 0x200   :  { %v7542_v58 = vpop.eup %7541  ;;  %7561 = vrcp.f32 %v3217_v36  ;;  %v3215_v19 = vadd.f32 1.0, %v7540_v43  ;;  %v10353_v9 = vadd.f32 %v10320_v44, %v9630_v42  ;;  %v5792_v14 = vmul.f32 -1.442695, %v10328_v15 }
 0x201   :  { %v7544_v61 = vpop.eup %7543  ;;  %7563 = vrcp.f32 %v3345_v5  ;;  %v3343_v56 = vadd.f32 1.0, %v7542_v58  ;;  %v10358_v48 = vadd.f32 %v10320_v44, %v9632_v39 }
 0x202   :  { %v7546_v6 = vpop.eup %7545  ;;  %7565 = vrcp.f32 %v3215_v19  ;;  %v3220_v31 = vadd.f32 1.0, %v7544_v61  ;;  %v10349_v19 = vadd.f32 %v10320_v44, %v9622_v26  ;;  %v5790_v26 = vmul.f32 -1.442695, %v10337_v7 }
 0x203   :  { %v7548_v17 = vpop.eup %7547  ;;  %7567 = vrcp.f32 %v3343_v56  ;;  %v3348_v52 = vadd.f32 1.0, %v7546_v6 }
 0x204   :  { %v7550_v27 = vpop.eup %7549  ;;  %7569 = vrcp.f32 %v3220_v31  ;;  %v3218_v23 = vadd.f32 1.0, %v7548_v17  ;;  %v5920_v31 = vmul.f32 -1.442695, %v10332_v18  ;;  %v10362_v17 = vpop.f32.mrb[104].mxu1 }
 0x205   :  { %v7552_v36 = vpop.eup %7551  ;;  %7571 = vrcp.f32 %v3348_v52  ;;  %v3346_v43 = vadd.f32 1.0, %v7550_v27  ;;  %11754 = vst [vmem:[#allocation6_spill] sm:$0xff] %v10362_v17  ;;  %v5918_v27 = vmul.f32 -1.442695, %v10341_v10 }
 0x206   :  { %v7554_v5 = vpop.eup %7553  ;;  %7573 = vrcp.f32 %v3218_v23  ;;  %v3221_v58 = vadd.f32 1.0, %v7552_v36  ;;  %v5793_v23 = vmul.f32 -1.442695, %v10345_v49 }
 0x207   :  { %v7556_v33 = vpop.eup %7555  ;;  %7575 = vrcp.f32 %v3346_v43  ;;  %v3349_v61 = vadd.f32 1.0, %v7554_v5  ;;  %v5921_v43 = vmul.f32 -1.442695, %v10349_v19  ;;  %v5791_v5 = vmul.f32 -1.442695, %v10353_v9 }
 0x208   :  { %v7558_v56 = vpop.eup %7557  ;;  %7577 = vrcp.f32 %v3221_v58  ;;  %v3219_v6 = vadd.f32 1.0, %v7556_v33  ;;  %v10370_v58 = vpop.f32.mrb[105].mxu0 }
 0x209   :  { %v7560_v42 = vpop.eup %7559  ;;  %v3982_v52 = vmul.f32 %v7558_v56, %v10163_v50  ;;  %7579 = vrcp.f32 %v3349_v61  ;;  %11755 = vst [vmem:[#allocation7_spill] sm:$0xff] %v10370_v58  ;;  %v10372_v33 = vpop.f32.mrb[105].mxu1  ;;  %v5919_v61 = vmul.f32 -1.442695, %v10358_v48 }
 0x20a   :  { %v7562_v36 = vpop.eup %7561  ;;  %v4110_v39 = vmul.f32 %v7560_v42, %v10167_v13  ;;  %7581 = vrcp.f32 %v3219_v6  ;;  %11756 = vst [vmem:[#allocation8_spill] sm:$0xff] %v10372_v33  ;;  %v10379_v6 = vadd.f32 %v10320_v44, %v9662_v53  ;;  %v10381_v42 = vpop.f32.mrb[106].mxu0 }
 0x20b   :  { %v7564_v17 = vpop.eup %7563  ;;  %v6294_v47 = vpack.c.bf16 %v3982_v52, %v3982_v52  ;;  %v3985_v50 = vmul.f32 %v7562_v36, %v10171_v25  ;;  %7583 = vpow2.f32 %v5915_v8  ;;  %v10383_v58 = vpop.f32.mrb[106].mxu1  ;;  %v11758_v36 = vld [vmem:[#allocation12_spill] sm:$0xff] }
 0x20c   :  { %v7566_v56 = vpop.eup %7565  ;;  %v6422_v60 = vpack.c.bf16 %v4110_v39, %v4110_v39  ;;  %v4113_v13 = vmul.f32 %v7564_v17, %v10175_v12  ;;  %7585 = vpow2.f32 %v5792_v14  ;;  %v11757_v12 = vld [vmem:[#allocation11_spill] sm:$0xff] }
 0x20d   :  { %v7568_v33 = vpop.eup %7567  ;;  %5263 = vst.msk [vmem:[%s11613_s3 + $0x100] sm:$0xf] %vm5198_vm3, %v6294_v47  ;;  %v6297_v25 = vpack.c.bf16 %v3985_v50, %v3985_v50  ;;  %v3983_v8 = vmul.f32 %v7566_v56, %v10179_v46  ;;  %7587 = vpow2.f32 %v5920_v31  ;;  %v10392_v14 = vadd.f32 %v10320_v44, %v11757_v12  ;;  %v10403_v46 = vpop.f32.mrb[107].mxu0 }
 0x20e   :  { %v7570_v53 = vpop.eup %7569  ;;  %5391 = vst.msk [vmem:[%s11613_s3 + $0x300] sm:$0xf] %vm5198_vm3, %v6422_v60  ;;  %v6425_v17 = vpack.c.bf16 %v4113_v13, %v4113_v13  ;;  %v4111_v52 = vmul.f32 %v7568_v33, %v10184_v22  ;;  %7589 = vpow2.f32 %v5790_v26  ;;  %v10401_v47 = vadd.f32 %v10320_v44, %v11758_v36  ;;  %v10405_v31 = vpop.f32.mrb[107].mxu1  ;;  %v11760_v22 = vld [vmem:[#allocation13_spill] sm:$0xff] }
 0x20f   :  { %11759 = vst [vmem:[#allocation9_spill] sm:$0xff] %v10405_v31  ;;  %v7572_v39 = vpop.eup %7571  ;;  %5266 = vst.msk [vmem:[%s11613_s3 + $0x10c] sm:$0xf] %vm5198_vm3, %v6297_v25  ;;  %v6295_v50 = vpack.c.bf16 %v3983_v8, %v3983_v8  ;;  %v3988_v60 = vmul.f32 %v7570_v53, %v10188_v40  ;;  %7591 = vpow2.f32 %v5918_v27  ;;  %v10414_v26 = vadd.f32 %v10320_v44, %v11760_v22 }
 0x210   :  { %v7574_v33 = vpop.eup %7573  ;;  %5394 = vst.msk [vmem:[%s11613_s3 + $0x30c] sm:$0xf] %vm5198_vm3, %v6425_v17  ;;  %v6423_v56 = vpack.c.bf16 %v4111_v52, %v4111_v52  ;;  %v4116_v13 = vmul.f32 %v7572_v39, %v10192_v37  ;;  %7593 = vpow2.f32 %v5793_v23  ;;  %v5796_v25 = vmul.f32 -1.442695, %v10379_v6 }
 0x211   :  { %v7576_v8 = vpop.eup %7575  ;;  %5264 = vst.msk [vmem:[%s11613_s3 + $0x104] sm:$0xf] %vm5198_vm3, %v6295_v50  ;;  %v6300_v40 = vpack.c.bf16 %v3988_v60, %v3988_v60  ;;  %v3986_v27 = vmul.f32 %v7574_v33, %v10202_v11  ;;  %7595 = vpow2.f32 %v5921_v43  ;;  %v5924_v12 = vmul.f32 -1.442695, %v10392_v14  ;;  %v10445_v50 = vpop.f32.mrb[108].mxu0 }
 0x212   :  { %v7578_v53 = vpop.eup %7577  ;;  %5392 = vst.msk [vmem:[%s11613_s3 + $0x304] sm:$0xf] %vm5198_vm3, %v6423_v56  ;;  %v6428_v37 = vpack.c.bf16 %v4116_v13, %v4116_v13  ;;  %v4114_v23 = vmul.f32 %v7576_v8, %v10214_v24  ;;  %7597 = vpow2.f32 %v5791_v5  ;;  %v5794_v17 = vmul.f32 -1.442695, %v10401_v47  ;;  %11761 = vst [vmem:[#allocation10_spill] sm:$0xff] %v10445_v50  ;;  %v10447_v60 = vpop.f32.mrb[108].mxu1 }
 0x213   :  { %v7580_v52 = vpop.eup %7579  ;;  %5269 = vst.msk [vmem:[%s11613_s3 + $0x118] sm:$0xf] %vm5198_vm3, %v6300_v40  ;;  %v6298_v11 = vpack.c.bf16 %v3986_v27, %v3986_v27  ;;  %v3989_v43 = vmul.f32 %v7578_v53, %v10223_v16  ;;  %7599 = vpow2.f32 %v5919_v61  ;;  %v5922_v36 = vmul.f32 -1.442695, %v10414_v26  ;;  %11762 = vst [vmem:[#allocation42_spill] sm:$0xff] %v10447_v60  ;;  %v10454_v33 = vpop.f32.mrb[109].mxu0 }
 0x214   :  { %v7582_v39 = vpop.eup %7581  ;;  %5397 = vst.msk [vmem:[%s11613_s3 + $0x318] sm:$0xf] %vm5198_vm3, %v6428_v37  ;;  %v6426_v24 = vpack.c.bf16 %v4114_v23, %v4114_v23  ;;  %v4117_v5 = vmul.f32 %v7580_v52, %v10238_v45  ;;  %7601 = vpow2.f32 %v5796_v25  ;;  %11763 = vst [vmem:[#allocation43_spill] sm:$0xff] %v10454_v33  ;;  %v10456_v56 = vpop.f32.mrb[109].mxu1 }
 0x215   :  { %v7584_v22 = vpop.eup %7583  ;;  %5267 = vst.msk [vmem:[%s11613_s3 + $0x110] sm:$0xf] %vm5198_vm3, %v6298_v11  ;;  %v6301_v16 = vpack.c.bf16 %v3989_v43, %v3989_v43  ;;  %v3987_v61 = vmul.f32 %v7582_v39, %v10247_v4  ;;  %7603 = vpow2.f32 %v5924_v12  ;;  %11764 = vst [vmem:[#allocation44_spill] sm:$0xff] %v10456_v56  ;;  %v10462_v8 = vpop.f32.mrb[110].mxu0  ;;  %v11767_v43 = vld [vmem:[#allocation14_spill] sm:$0xff] }
 0x216   :  { %v7586_v45 = vpop.eup %7585  ;;  %5395 = vst.msk [vmem:[%s11613_s3 + $0x310] sm:$0xf] %vm5198_vm3, %v6426_v24  ;;  %v6429_v13 = vpack.c.bf16 %v4117_v5, %v4117_v5  ;;  %v3347_v25 = vadd.f32 1.0, %v7584_v22  ;;  %7605 = vpow2.f32 %v5794_v17  ;;  %11765 = vst [vmem:[#allocation11_spill] sm:$0xff] %v10462_v8  ;;  %v10464_v40 = vpop.f32.mrb[110].mxu1 }
 0x217   :  { %11766 = vst [vmem:[#allocation12_spill] sm:$0xff] %v10464_v40  ;;  %v7588_v27 = vpop.eup %7587  ;;  %5270 = vst.msk [vmem:[%s11613_s3 + $0x11c] sm:$0xf] %vm5198_vm3, %v6301_v16  ;;  %v6299_v4 = vpack.c.bf16 %v3987_v61, %v3987_v61  ;;  %v3224_v12 = vadd.f32 1.0, %v7586_v45  ;;  %7607 = vpow2.f32 %v5922_v36  ;;  %v10480_v36 = vadd.f32 %v10320_v44, %v11767_v43  ;;  %v11768_v45 = vld [vmem:[#allocation15_spill] sm:$0xff]  ;;  %v10521_v8 = vpop.f32.mrb[111].mxu0 }
 0x218   :  { %v7590_v53 = vpop.eup %7589  ;;  %5398 = vst.msk [vmem:[%s11613_s3 + $0x31c] sm:$0xf] %vm5198_vm3, %v6429_v13  ;;  %7609 = vrcp.f32 %v3347_v25  ;;  %v3352_v37 = vadd.f32 1.0, %v7588_v27  ;;  %v10484_v13 = vadd.f32 %v10320_v44, %v11768_v45  ;;  %v11769_v25 = vld [vmem:[#allocation16_spill] sm:$0xff]  ;;  %11774 = vst [vmem:[#allocation13_spill] sm:$0xff] %v10521_v8  ;;  %v10523_v56 = vpop.f32.mrb[111].mxu1 }
 0x219   :  { %v7592_v23 = vpop.eup %7591  ;;  %5268 = vst.msk [vmem:[%s11613_s3 + $0x114] sm:$0xf] %vm5198_vm3, %v6299_v4  ;;  %7611 = vrcp.f32 %v3224_v12  ;;  %v3222_v17 = vadd.f32 1.0, %v7590_v53  ;;  %v10488_v27 = vadd.f32 %v10320_v44, %v11769_v25  ;;  %v5797_v53 = vmul.f32 -1.442695, %v10480_v36  ;;  %11775 = vst [vmem:[#allocation14_spill] sm:$0xff] %v10523_v56 }
 0x21a   :  { %v7594_v52 = vpop.eup %7593  ;;  %7613 = vrcp.f32 %v3352_v37  ;;  %v3350_v11 = vadd.f32 1.0, %v7592_v23  ;;  %v10493_v37 = vadd.f32 %v10320_v44, %v9743_v30  ;;  %v11772_v30 = vld [vmem:[#allocation19_spill] sm:$0xff] }
 0x21b   :  { %v7596_v39 = vpop.eup %7595  ;;  %7615 = vrcp.f32 %v3222_v17  ;;  %v3225_v24 = vadd.f32 1.0, %v7594_v52  ;;  %v10497_v52 = vadd.f32 %v10320_v44, %v9785_v35  ;;  %v5925_v35 = vmul.f32 -1.442695, %v10484_v13 }
 0x21c   :  { %v7598_v5 = vpop.eup %7597  ;;  %7617 = vrcp.f32 %v3350_v11  ;;  %v3353_v22 = vadd.f32 1.0, %v7596_v39  ;;  %v11770_v11 = vld [vmem:[#allocation17_spill] sm:$0xff]  ;;  %v5795_v25 = vmul.f32 -1.442695, %v10488_v27 }
 0x21d   :  { %v7600_v16 = vpop.eup %7599  ;;  %7619 = vrcp.f32 %v3225_v24  ;;  %v3223_v61 = vadd.f32 1.0, %v7598_v5  ;;  %v10501_v43 = vadd.f32 %v10320_v44, %v11770_v11  ;;  %v11771_v5 = vld [vmem:[#allocation18_spill] sm:$0xff] }
 0x21e   :  { %v7602_v4 = vpop.eup %7601  ;;  %7621 = vrcp.f32 %v3353_v22  ;;  %v3351_v12 = vadd.f32 1.0, %v7600_v16  ;;  %v10505_v22 = vadd.f32 %v10320_v44, %v11771_v5  ;;  %v10509_v16 = vadd.f32 %v10320_v44, %v11772_v30 }
 0x21f   :  { %v7604_v23 = vpop.eup %7603  ;;  %7623 = vrcp.f32 %v3223_v61  ;;  %v3228_v17 = vadd.f32 1.0, %v7602_v4 }
 0x220   :  { %v7606_v39 = vpop.eup %7605  ;;  %7625 = vrcp.f32 %v3351_v12  ;;  %v3356_v24 = vadd.f32 1.0, %v7604_v23  ;;  %v5923_v12 = vmul.f32 -1.442695, %v10493_v37  ;;  %v11773_v23 = vld [vmem:[#allocation20_spill] sm:$0xff]  ;;  %v5798_v33 = vmul.f32 -1.442695, %v10505_v22 }
 0x221   :  { %v7608_v61 = vpop.eup %7607  ;;  %7627 = vrcp.f32 %v3228_v17  ;;  %v3226_v45 = vadd.f32 1.0, %v7606_v39  ;;  %v10516_v5 = vadd.f32 %v10320_v44, %v11773_v23  ;;  %v5800_v17 = vmul.f32 -1.442695, %v10497_v52 }
 0x222   :  { %v7610_v4 = vpop.eup %7609  ;;  %7629 = vrcp.f32 %v3356_v24  ;;  %v3354_v11 = vadd.f32 1.0, %v7608_v61  ;;  %v5928_v39 = vmul.f32 -1.442695, %v10501_v43  ;;  %v5926_v23 = vmul.f32 -1.442695, %v10509_v16 }
 0x223   :  { %v7612_v40 = vpop.eup %7611  ;;  %v4115_v30 = vmul.f32 %v7610_v4, %v10324_v2  ;;  %7631 = vrcp.f32 %v3226_v45  ;;  %v11776_v45 = vld [vmem:[#allocation21_spill] sm:$0xff] }
 0x224   :  { %v7614_v24 = vpop.eup %7613  ;;  %v3992_v61 = vmul.f32 %v7612_v40, %v10328_v15  ;;  %7633 = vrcp.f32 %v3354_v11  ;;  %v10531_v4 = vadd.f32 %v10320_v44, %v11776_v45  ;;  %v5801_v15 = vmul.f32 -1.442695, %v10516_v5 }
 0x225   :  { %v7616_v60 = vpop.eup %7615  ;;  %v6427_v50 = vpack.c.bf16 %v4115_v30, %v4115_v30  ;;  %v4120_v2 = vmul.f32 %v7614_v24, %v10332_v18  ;;  %7635 = vpow2.f32 %v5797_v53  ;;  %v11777_v53 = vld [vmem:[#allocation22_spill] sm:$0xff] }
 0x226   :  { %v7618_v8 = vpop.eup %7617  ;;  %v6304_v31 = vpack.c.bf16 %v3992_v61, %v3992_v61  ;;  %v3990_v56 = vmul.f32 %v7616_v60, %v10337_v7  ;;  %7637 = vpow2.f32 %v5925_v35  ;;  %v10542_v30 = vadd.f32 %v10320_v44, %v11777_v53  ;;  %v11778_v35 = vld [vmem:[#allocation23_spill] sm:$0xff]  ;;  %v11779_v61 = vld [vmem:[#allocation24_spill] sm:$0xff] }
 0x227   :  { %v7620_v40 = vpop.eup %7619  ;;  %5396 = vst.msk [vmem:[%s11613_s3 + $0x314] sm:$0xf] %vm5198_vm3, %v6427_v50  ;;  %v6432_v11 = vpack.c.bf16 %v4120_v2, %v4120_v2  ;;  %v4118_v18 = vmul.f32 %v7618_v8, %v10341_v10  ;;  %7639 = vpow2.f32 %v5795_v25  ;;  %v10551_v50 = vadd.f32 %v10320_v44, %v11778_v35 }
 0x228   :  { %v7622_v24 = vpop.eup %7621  ;;  %5273 = vst.msk [vmem:[%s11613_s3 + $0x128] sm:$0xf] %vm5198_vm3, %v6304_v31  ;;  %v6302_v7 = vpack.c.bf16 %v3990_v56, %v3990_v56  ;;  %v3993_v60 = vmul.f32 %v7620_v40, %v10345_v49  ;;  %7641 = vpow2.f32 %v5923_v12  ;;  %v10560_v31 = vadd.f32 %v10320_v44, %v11779_v61  ;;  %v10562_v49 = vpop.f32.mrb[112].mxu0 }
 0x229   :  { %v7624_v10 = vpop.eup %7623  ;;  %5401 = vst.msk [vmem:[%s11613_s3 + $0x328] sm:$0xf] %vm5198_vm3, %v6432_v11  ;;  %v6430_v8 = vpack.c.bf16 %v4118_v18, %v4118_v18  ;;  %v4121_v25 = vmul.f32 %v7622_v24, %v10349_v19  ;;  %7643 = vpow2.f32 %v5800_v17  ;;  %v10564_v56 = vpop.f32.mrb[112].mxu1  ;;  %v5929_v19 = vmul.f32 -1.442695, %v10531_v4 }
 0x22a   :  { %v7626_v12 = vpop.eup %7625  ;;  %5271 = vst.msk [vmem:[%s11613_s3 + $0x120] sm:$0xf] %vm5198_vm3, %v6302_v7  ;;  %v6305_v2 = vpack.c.bf16 %v3993_v60, %v3993_v60  ;;  %v3991_v45 = vmul.f32 %v7624_v10, %v10353_v9  ;;  %7645 = vpow2.f32 %v5928_v39  ;;  %v10572_v17 = vpop.f32.mrb[113].mxu0  ;;  %v5799_v24 = vmul.f32 -1.442695, %v10542_v30 }
 0x22b   :  { %v10574_v40 = vpop.f32.mrb[113].mxu1  ;;  %v7628_v11 = vpop.eup %7627  ;;  %5399 = vst.msk [vmem:[%s11613_s3 + $0x320] sm:$0xf] %vm5198_vm3, %v6430_v8  ;;  %v6433_v18 = vpack.c.bf16 %v4121_v25, %v4121_v25  ;;  %v4119_v53 = vmul.f32 %v7626_v12, %v10358_v48  ;;  %7647 = vpow2.f32 %v5798_v33  ;;  %v5927_v10 = vmul.f32 -1.442695, %v10551_v50 }
 0x22c   :  { %v10582_v9 = vpop.f32.mrb[114].mxu0  ;;  %v10584_v39 = vpop.f32.mrb[114].mxu1  ;;  %5274 = vst.msk [vmem:[%s11613_s3 + $0x12c] sm:$0xf] %vm5198_vm3, %v6305_v2  ;;  %v6303_v60 = vpack.c.bf16 %v3991_v45, %v3991_v45  ;;  %v3996_v35 = vmul.f32 %v7628_v11, %v10379_v6  ;;  %7649 = vpow2.f32 %v5926_v23  ;;  %v5804_v12 = vmul.f32 -1.442695, %v10560_v31 }
 0x22d   :  { %v7630_v7 = vpop.eup %7629  ;;  %v10592_v48 = vpop.f32.mrb[115].mxu0  ;;  %5402 = vst.msk [vmem:[%s11613_s3 + $0x32c] sm:$0xf] %vm5198_vm3, %v6433_v18  ;;  %v6431_v25 = vpack.c.bf16 %v4119_v53, %v4119_v53  ;;  %7651 = vpow2.f32 %v5801_v15 }
 0x22e   :  { %11780 = vst [vmem:[#allocation15_spill] sm:$0xff] %v10592_v48  ;;  %v10594_v33 = vpop.f32.mrb[115].mxu1  ;;  %v7632_v8 = vpop.eup %7631  ;;  %v4124_v61 = vmul.f32 %v7630_v7, %v10392_v14  ;;  %5272 = vst.msk [vmem:[%s11613_s3 + $0x124] sm:$0xf] %vm5198_vm3, %v6303_v60  ;;  %v6308_v23 = vpack.c.bf16 %v3996_v35, %v3996_v35  ;;  %7653 = vpow2.f32 %v5929_v19 }
 0x22f   :  { %11781 = vst [vmem:[#allocation16_spill] sm:$0xff] %v10594_v33  ;;  %v7634_v6 = vpop.eup %7633  ;;  %v3994_v2 = vmul.f32 %v7632_v8, %v10401_v47  ;;  %5400 = vst.msk [vmem:[%s11613_s3 + $0x324] sm:$0xf] %vm5198_vm3, %v6431_v25  ;;  %7655 = vpow2.f32 %v5799_v24  ;;  %v10622_v24 = vpop.f32.mrb[116].mxu1 }
 0x230   :  { %v7636_v45 = vpop.eup %7635  ;;  %v6436_v14 = vpack.c.bf16 %v4124_v61, %v4124_v61  ;;  %v4122_v15 = vmul.f32 %v7634_v6, %v10414_v26  ;;  %5277 = vst.msk [vmem:[%s11613_s3 + $0x138] sm:$0xf] %vm5198_vm3, %v6308_v23  ;;  %7657 = vpow2.f32 %v5927_v10  ;;  %v10620_v26 = vpop.f32.mrb[116].mxu0  ;;  %11783 = vst [vmem:[#allocation18_spill] sm:$0xff] %v10622_v24 }
 0x231   :  { %v7638_v11 = vpop.eup %7637  ;;  %v6306_v18 = vpack.c.bf16 %v3994_v2, %v3994_v2  ;;  %v3229_v53 = vadd.f32 1.0, %v7636_v45  ;;  %7659 = vpow2.f32 %v5804_v12  ;;  %11782 = vst [vmem:[#allocation17_spill] sm:$0xff] %v10620_v26  ;;  %v10628_v10 = vpop.f32.mrb[117].mxu0  ;;  %v11785_v2 = vld [vmem:[#allocation45_spill] sm:$0xff] }
 0x232   :  { %v7640_v47 = vpop.eup %7639  ;;  %5405 = vst.msk [vmem:[%s11613_s3 + $0x338] sm:$0xf] %vm5198_vm3, %v6436_v14  ;;  %v6434_v19 = vpack.c.bf16 %v4122_v15, %v4122_v15  ;;  %v3357_v7 = vadd.f32 1.0, %v7638_v11  ;;  %11784 = vst [vmem:[#allocation19_spill] sm:$0xff] %v10628_v10  ;;  %v10636_v45 = vadd.f32 %v10320_v44, %v11785_v2  ;;  %v10682_v26 = vpop.f32.mrb[118].mxu0 }
 0x233   :  { %v7642_v60 = vpop.eup %7641  ;;  %5275 = vst.msk [vmem:[%s11613_s3 + $0x130] sm:$0xf] %vm5198_vm3, %v6306_v18  ;;  %7661 = vrcp.f32 %v3229_v53  ;;  %v3227_v35 = vadd.f32 1.0, %v7640_v47  ;;  %v11786_v53 = vld [vmem:[#allocation2_spill] sm:$0xff]  ;;  %11789 = vst [vmem:[#allocation21_spill] sm:$0xff] %v10682_v26  ;;  %v10696_v26 = vpop.f32.mrb[119].mxu0 }
 0x234   :  { %v7644_v8 = vpop.eup %7643  ;;  %5403 = vst.msk [vmem:[%s11613_s3 + $0x330] sm:$0xf] %vm5198_vm3, %v6434_v19  ;;  %7663 = vrcp.f32 %v3357_v7  ;;  %v3355_v25 = vadd.f32 1.0, %v7642_v60  ;;  %v10640_v47 = vadd.f32 %v10320_v44, %v11786_v53  ;;  %v11787_v19 = vld [vmem:[#allocation3_spill] sm:$0xff] }
 0x235   :  { %v7646_v61 = vpop.eup %7645  ;;  %7665 = vrcp.f32 %v3227_v35  ;;  %v3232_v12 = vadd.f32 1.0, %v7644_v8  ;;  %v10644_v7 = vadd.f32 %v10320_v44, %v11787_v19  ;;  %v10648_v8 = vadd.f32 %v10320_v44, %v9901_v32 }
 0x236   :  { %v7648_v6 = vpop.eup %7647  ;;  %7667 = vrcp.f32 %v3355_v25  ;;  %v3360_v23 = vadd.f32 1.0, %v7646_v61  ;;  %v10652_v25 = vadd.f32 %v10320_v44, %v9903_v59  ;;  %v10661_v32 = vadd.f32 %v10320_v44, %v9921_v51  ;;  %v10671_v51 = vpop.f32.mrb[117].mxu1 }
 0x237   :  { %v7650_v14 = vpop.eup %7649  ;;  %7669 = vrcp.f32 %v3232_v12  ;;  %v3230_v15 = vadd.f32 1.0, %v7648_v6  ;;  %v5932_v6 = vmul.f32 -1.442695, %v10636_v45  ;;  %v10665_v59 = vadd.f32 %v10320_v44, %v9965_v55  ;;  %11788 = vst [vmem:[#allocation20_spill] sm:$0xff] %v10671_v51  ;;  %v10684_v51 = vpop.f32.mrb[118].mxu1 }
 0x238   :  { %v7652_v11 = vpop.eup %7651  ;;  %7671 = vrcp.f32 %v3360_v23  ;;  %v3358_v18 = vadd.f32 1.0, %v7650_v14  ;;  %v10657_v23 = vadd.f32 %v10320_v44, %v9919_v1  ;;  %v5930_v53 = vmul.f32 -1.442695, %v10644_v7  ;;  %11790 = vst [vmem:[#allocation22_spill] sm:$0xff] %v10684_v51  ;;  %v10698_v51 = vpop.f32.mrb[119].mxu1 }
 0x239   :  { %v7654_v60 = vpop.eup %7653  ;;  %7673 = vrcp.f32 %v3230_v15  ;;  %v3233_v35 = vadd.f32 1.0, %v7652_v11  ;;  %v5808_v24 = vmul.f32 -1.442695, %v10665_v59 }
 0x23a   :  { %v7656_v61 = vpop.eup %7655  ;;  %7675 = vrcp.f32 %v3358_v18  ;;  %v3361_v12 = vadd.f32 1.0, %v7654_v60  ;;  %v5802_v18 = vmul.f32 -1.442695, %v10640_v47  ;;  %v5805_v60 = vmul.f32 -1.442695, %v10648_v8 }
 0x23b   :  { %v7658_v2 = vpop.eup %7657  ;;  %7677 = vrcp.f32 %v3233_v35  ;;  %v3231_v14 = vadd.f32 1.0, %v7656_v61  ;;  %v5933_v35 = vmul.f32 -1.442695, %v10652_v25 }
 0x23c   :  { %v7660_v15 = vpop.eup %7659  ;;  %7679 = vrcp.f32 %v3361_v12  ;;  %v3359_v11 = vadd.f32 1.0, %v7658_v2  ;;  %v5803_v12 = vmul.f32 -1.442695, %v10657_v23  ;;  %v10677_v2 = vadd.f32 %v10320_v44, %v9967_v63 }
 0x23d   :  { %v7662_v1 = vpop.eup %7661  ;;  %7681 = vrcp.f32 %v3231_v14  ;;  %v3236_v19 = vadd.f32 1.0, %v7660_v15  ;;  %v5931_v15 = vmul.f32 -1.442695, %v10661_v32  ;;  %v10689_v63 = vadd.f32 %v10320_v44, %v9974_v28 }
 0x23e   :  { %v7664_v61 = vpop.eup %7663  ;;  %v3997_v55 = vmul.f32 %v7662_v1, %v10480_v36  ;;  %7683 = vrcp.f32 %v3359_v11 }
 0x23f   :  { %v7666_v10 = vpop.eup %7665  ;;  %v4125_v14 = vmul.f32 %v7664_v61, %v10484_v13  ;;  %7685 = vrcp.f32 %v3236_v19  ;;  %v11791_v61 = vld [vmem:[#allocation25_spill] sm:$0xff] }
 0x240   :  { %v7668_v36 = vpop.eup %7667  ;;  %v6309_v11 = vpack.c.bf16 %v3997_v55, %v3997_v55  ;;  %v3995_v1 = vmul.f32 %v7666_v10, %v10488_v27  ;;  %7687 = vpow2.f32 %v5932_v6  ;;  %v10694_v48 = vadd.f32 %v10320_v44, %v11791_v61 }
 0x241   :  { %v7670_v33 = vpop.eup %7669  ;;  %v6437_v13 = vpack.c.bf16 %v4125_v14, %v4125_v14  ;;  %v4123_v19 = vmul.f32 %v7668_v36, %v10493_v37  ;;  %7689 = vpow2.f32 %v5802_v18  ;;  %v5936_v37 = vmul.f32 -1.442695, %v10677_v2  ;;  %v11792_v14 = vld [vmem:[#allocation26_spill] sm:$0xff] }
 0x242   :  { %v7672_v55 = vpop.eup %7671  ;;  %5278 = vst.msk [vmem:[%s11613_s3 + $0x13c] sm:$0xf] %vm5198_vm3, %v6309_v11  ;;  %v6307_v28 = vpack.c.bf16 %v3995_v1, %v3995_v1  ;;  %v4000_v27 = vmul.f32 %v7670_v33, %v10497_v52  ;;  %7691 = vpow2.f32 %v5930_v53  ;;  %v10713_v36 = vadd.f32 %v10320_v44, %v11792_v14  ;;  %v11793_v53 = vld [vmem:[#allocation27_spill] sm:$0xff] }
 0x243   :  { %v7674_v10 = vpop.eup %7673  ;;  %5406 = vst.msk [vmem:[%s11613_s3 + $0x33c] sm:$0xf] %vm5198_vm3, %v6437_v13  ;;  %v6435_v6 = vpack.c.bf16 %v4123_v19, %v4123_v19  ;;  %v4128_v18 = vmul.f32 %v7672_v55, %v10501_v43  ;;  %7693 = vpow2.f32 %v5805_v60  ;;  %v10722_v1 = vadd.f32 %v10320_v44, %v11793_v53 }
 0x244   :  { %v7676_v11 = vpop.eup %7675  ;;  %5276 = vst.msk [vmem:[%s11613_s3 + $0x134] sm:$0xf] %vm5198_vm3, %v6307_v28  ;;  %v6312_v52 = vpack.c.bf16 %v4000_v27, %v4000_v27  ;;  %v3998_v33 = vmul.f32 %v7674_v10, %v10505_v22  ;;  %7695 = vpow2.f32 %v5933_v35  ;;  %v5806_v19 = vmul.f32 -1.442695, %v10689_v63  ;;  %v10742_v10 = vpop.f32.mrb[120].mxu0 }
 0x245   :  { %v7678_v43 = vpop.eup %7677  ;;  %5404 = vst.msk [vmem:[%s11613_s3 + $0x334] sm:$0xf] %vm5198_vm3, %v6435_v6  ;;  %v6440_v60 = vpack.c.bf16 %v4128_v18, %v4128_v18  ;;  %v4126_v13 = vmul.f32 %v7676_v11, %v10509_v16  ;;  %7697 = vpow2.f32 %v5803_v12  ;;  %v5934_v55 = vmul.f32 -1.442695, %v10694_v48  ;;  %v10744_v6 = vpop.f32.mrb[120].mxu1 }
 0x246   :  { %v7680_v61 = vpop.eup %7679  ;;  %5281 = vst.msk [vmem:[%s11613_s3 + $0x148] sm:$0xf] %vm5198_vm3, %v6312_v52  ;;  %v6310_v22 = vpack.c.bf16 %v3998_v33, %v3998_v33  ;;  %v4001_v35 = vmul.f32 %v7678_v43, %v10516_v5  ;;  %7699 = vpow2.f32 %v5931_v15  ;;  %v5809_v27 = vmul.f32 -1.442695, %v10713_v36  ;;  %11794 = vst [vmem:[#allocation23_spill] sm:$0xff] %v10744_v6 }
 0x247   :  { %v7682_v28 = vpop.eup %7681  ;;  %5409 = vst.msk [vmem:[%s11613_s3 + $0x348] sm:$0xf] %vm5198_vm3, %v6440_v60  ;;  %v6438_v16 = vpack.c.bf16 %v4126_v13, %v4126_v13  ;;  %v4129_v12 = vmul.f32 %v7680_v61, %v10531_v4  ;;  %7701 = vpow2.f32 %v5808_v24  ;;  %v5937_v14 = vmul.f32 -1.442695, %v10722_v1  ;;  %v10752_v4 = vpop.f32.mrb[121].mxu0 }
 0x248   :  { %v7684_v5 = vpop.eup %7683  ;;  %5279 = vst.msk [vmem:[%s11613_s3 + $0x140] sm:$0xf] %vm5198_vm3, %v6310_v22  ;;  %v6313_v15 = vpack.c.bf16 %v4001_v35, %v4001_v35  ;;  %v3999_v18 = vmul.f32 %v7682_v28, %v10542_v30  ;;  %7703 = vpow2.f32 %v5936_v37  ;;  %11795 = vst [vmem:[#allocation24_spill] sm:$0xff] %v10752_v4  ;;  %v10754_v24 = vpop.f32.mrb[121].mxu1 }
 0x249   :  { %11796 = vst [vmem:[#allocation45_spill] sm:$0xff] %v10754_v24  ;;  %v7686_v11 = vpop.eup %7685  ;;  %5407 = vst.msk [vmem:[%s11613_s3 + $0x340] sm:$0xf] %vm5198_vm3, %v6438_v16  ;;  %v6441_v52 = vpack.c.bf16 %v4129_v12, %v4129_v12  ;;  %v4127_v33 = vmul.f32 %v7684_v5, %v10551_v50  ;;  %7705 = vpow2.f32 %v5806_v19  ;;  %v10761_v53 = vpop.f32.mrb[122].mxu0 }
 0x24a   :  { %11797 = vst [vmem:[#allocation2_spill] sm:$0xff] %v10761_v53  ;;  %v10763_v30 = vpop.f32.mrb[122].mxu1  ;;  %v7688_v37 = vpop.eup %7687  ;;  %5282 = vst.msk [vmem:[%s11613_s3 + $0x14c] sm:$0xf] %vm5198_vm3, %v6313_v15  ;;  %v6311_v43 = vpack.c.bf16 %v3999_v18, %v3999_v18  ;;  %v4004_v60 = vmul.f32 %v7686_v11, %v10560_v31  ;;  %7707 = vpow2.f32 %v5934_v55  ;;  %v11801_v18 = vld [vmem:[#allocation28_spill] sm:$0xff] }
 0x24b   :  { %11798 = vst [vmem:[#allocation3_spill] sm:$0xff] %v10763_v30  ;;  %v10770_v13 = vpop.f32.mrb[123].mxu0  ;;  %v10772_v61 = vpop.f32.mrb[123].mxu1  ;;  %5410 = vst.msk [vmem:[%s11613_s3 + $0x34c] sm:$0xf] %vm5198_vm3, %v6441_v52  ;;  %v6439_v19 = vpack.c.bf16 %v4127_v33, %v4127_v33  ;;  %v3364_v22 = vadd.f32 1.0, %v7688_v37  ;;  %7709 = vpow2.f32 %v5809_v27 }
 0x24c   :  { %11799 = vst [vmem:[#allocation25_spill] sm:$0xff] %v10770_v13  ;;  %11800 = vst [vmem:[#allocation26_spill] sm:$0xff] %v10772_v61  ;;  %v7690_v50 = vpop.eup %7689  ;;  %v6316_v31 = vpack.c.bf16 %v4004_v60, %v4004_v60  ;;  %7711 = vpow2.f32 %v5937_v14  ;;  %v10792_v14 = vadd.f32 %v10320_v44, %v11801_v18 }
 0x24d   :  { %v7692_v35 = vpop.eup %7691  ;;  %5280 = vst.msk [vmem:[%s11613_s3 + $0x144] sm:$0xf] %vm5198_vm3, %v6311_v43  ;;  %v3234_v55 = vadd.f32 1.0, %v7690_v50  ;;  %5408 = vst.msk [vmem:[%s11613_s3 + $0x344] sm:$0xf] %vm5198_vm3, %v6439_v19  ;;  %7713 = vrcp.f32 %v3364_v22  ;;  %v11802_v43 = vld [vmem:[#allocation29_spill] sm:$0xff]  ;;  %v10800_v22 = vadd.f32 %v10320_v44, %v10078_v41 }
 0x24e   :  { %v7694_v28 = vpop.eup %7693  ;;  %v3362_v16 = vadd.f32 1.0, %v7692_v35  ;;  %5285 = vst.msk [vmem:[%s11613_s3 + $0x158] sm:$0xf] %vm5198_vm3, %v6316_v31  ;;  %v10796_v60 = vadd.f32 %v10320_v44, %v11802_v43 }
 0x24f   :  { %v7696_v12 = vpop.eup %7695  ;;  %7715 = vrcp.f32 %v3234_v55  ;;  %v3237_v27 = vadd.f32 1.0, %v7694_v28  ;;  %v5807_v55 = vmul.f32 -1.442695, %v10792_v14  ;;  %v10805_v28 = vadd.f32 %v10320_v44, %v10080_v20 }
 0x250   :  { %v7698_v5 = vpop.eup %7697  ;;  %7717 = vrcp.f32 %v3362_v16  ;;  %v3365_v15 = vadd.f32 1.0, %v7696_v12 }
 0x251   :  { %v7700_v11 = vpop.eup %7699  ;;  %7719 = vrcp.f32 %v3237_v27  ;;  %v3235_v52 = vadd.f32 1.0, %v7698_v5  ;;  %v11803_v27 = vld [vmem:[#allocation30_spill] sm:$0xff] }
 0x252   :  { %v7702_v33 = vpop.eup %7701  ;;  %7721 = vrcp.f32 %v3365_v15  ;;  %v3363_v37 = vadd.f32 1.0, %v7700_v11  ;;  %v10809_v5 = vadd.f32 %v10320_v44, %v11803_v27  ;;  %v11804_v15 = vld [vmem:[#allocation31_spill] sm:$0xff] }
 0x253   :  { %v7704_v50 = vpop.eup %7703  ;;  %7723 = vrcp.f32 %v3235_v52  ;;  %v3240_v19 = vadd.f32 1.0, %v7702_v33  ;;  %v10813_v41 = vadd.f32 %v10320_v44, %v11804_v15  ;;  %v5935_v52 = vmul.f32 -1.442695, %v10796_v60  ;;  %v11805_v33 = vld [vmem:[#allocation32_spill] sm:$0xff] }
 0x254   :  { %v7706_v35 = vpop.eup %7705  ;;  %7725 = vrcp.f32 %v3363_v37  ;;  %v3368_v31 = vadd.f32 1.0, %v7704_v50  ;;  %v10818_v20 = vadd.f32 %v10320_v44, %v11805_v33  ;;  %v5812_v50 = vmul.f32 -1.442695, %v10800_v22 }
 0x255   :  { %v7708_v16 = vpop.eup %7707  ;;  %7727 = vrcp.f32 %v3240_v19  ;;  %v3238_v12 = vadd.f32 1.0, %v7706_v35  ;;  %v11806_v19 = vld [vmem:[#allocation33_spill] sm:$0xff] }
 0x256   :  { %v7710_v18 = vpop.eup %7709  ;;  %7729 = vrcp.f32 %v3368_v31  ;;  %v3366_v11 = vadd.f32 1.0, %v7708_v16  ;;  %v10823_v35 = vadd.f32 %v10320_v44, %v11806_v19  ;;  %v5940_v31 = vmul.f32 -1.442695, %v10805_v28  ;;  %v11807_v16 = vld [vmem:[#allocation34_spill] sm:$0xff] }
 0x257   :  { %v7712_v37 = vpop.eup %7711  ;;  %7731 = vrcp.f32 %v3238_v12  ;;  %v3241_v43 = vadd.f32 1.0, %v7710_v18  ;;  %v10828_v61 = vadd.f32 %v10320_v44, %v11807_v16  ;;  %v5810_v12 = vmul.f32 -1.442695, %v10809_v5 }
 0x258   :  { %v7714_v27 = vpop.eup %7713  ;;  %7733 = vrcp.f32 %v3366_v11  ;;  %v3369_v15 = vadd.f32 1.0, %v7712_v37  ;;  %v5938_v18 = vmul.f32 -1.442695, %v10813_v41  ;;  %v5813_v11 = vmul.f32 -1.442695, %v10818_v20  ;;  %v11808_v37 = vld [vmem:[#allocation35_spill] sm:$0xff] }
 0x259   :  { %v7716_v33 = vpop.eup %7715  ;;  %v4132_v13 = vmul.f32 %v7714_v27, %v10636_v45  ;;  %7735 = vrcp.f32 %v3241_v43  ;;  %v10837_v53 = vadd.f32 %v10320_v44, %v11808_v37  ;;  %v5941_v45 = vmul.f32 -1.442695, %v10823_v35 }
 0x25a   :  { %v7718_v30 = vpop.eup %7717  ;;  %v4002_v19 = vmul.f32 %v7716_v33, %v10640_v47  ;;  %7737 = vrcp.f32 %v3369_v15  ;;  %v5811_v47 = vmul.f32 -1.442695, %v10828_v61 }
 0x25b   :  { %v7720_v16 = vpop.eup %7719  ;;  %v6444_v24 = vpack.c.bf16 %v4132_v13, %v4132_v13  ;;  %v4130_v4 = vmul.f32 %v7718_v30, %v10644_v7  ;;  %7739 = vpow2.f32 %v5807_v55  ;;  %v11809_v7 = vld [vmem:[#allocation36_spill] sm:$0xff]  ;;  %v10852_v55 = vpop.f32.mrb[124].mxu0 }
 0x25c   :  { %v7722_v43 = vpop.eup %7721  ;;  %v6314_v27 = vpack.c.bf16 %v4002_v19, %v4002_v19  ;;  %v4005_v6 = vmul.f32 %v7720_v16, %v10648_v8  ;;  %7741 = vpow2.f32 %v5935_v52  ;;  %v10850_v30 = vadd.f32 %v10320_v44, %v11809_v7  ;;  %v10854_v8 = vpop.f32.mrb[124].mxu1 }
 0x25d   :  { %v7724_v15 = vpop.eup %7723  ;;  %5413 = vst.msk [vmem:[%s11613_s3 + $0x358] sm:$0xf] %vm5198_vm3, %v6444_v24  ;;  %v6442_v33 = vpack.c.bf16 %v4130_v4, %v4130_v4  ;;  %v4133_v13 = vmul.f32 %v7722_v43, %v10652_v25  ;;  %7743 = vpow2.f32 %v5812_v50  ;;  %v11810_v25 = vld [vmem:[#allocation37_spill] sm:$0xff]  ;;  %v10865_v50 = vpop.f32.mrb[125].mxu0 }
 0x25e   :  { %v7726_v52 = vpop.eup %7725  ;;  %5283 = vst.msk [vmem:[%s11613_s3 + $0x150] sm:$0xf] %vm5198_vm3, %v6314_v27  ;;  %v6317_v19 = vpack.c.bf16 %v4005_v6, %v4005_v6  ;;  %v4003_v4 = vmul.f32 %v7724_v15, %v10657_v23  ;;  %7745 = vpow2.f32 %v5940_v31  ;;  %v10863_v24 = vadd.f32 %v10320_v44, %v11810_v25  ;;  %v10867_v37 = vpop.f32.mrb[125].mxu1  ;;  %v11811_v23 = vld [vmem:[#allocation38_spill] sm:$0xff] }
 0x25f   :  { %v7728_v16 = vpop.eup %7727  ;;  %5411 = vst.msk [vmem:[%s11613_s3 + $0x350] sm:$0xf] %vm5198_vm3, %v6442_v33  ;;  %v6445_v43 = vpack.c.bf16 %v4133_v13, %v4133_v13  ;;  %v4131_v6 = vmul.f32 %v7726_v52, %v10661_v32  ;;  %7747 = vpow2.f32 %v5810_v12  ;;  %v10876_v31 = vadd.f32 %v10320_v44, %v11811_v23  ;;  %v10878_v27 = vpop.f32.mrb[126].mxu0 }
 0x260   :  { %v10880_v15 = vpop.f32.mrb[126].mxu1  ;;  %v7730_v7 = vpop.eup %7729  ;;  %5286 = vst.msk [vmem:[%s11613_s3 + $0x15c] sm:$0xf] %vm5198_vm3, %v6317_v19  ;;  %v6315_v25 = vpack.c.bf16 %v4003_v4, %v4003_v4  ;;  %v4008_v33 = vmul.f32 %v7728_v16, %v10665_v59  ;;  %7749 = vpow2.f32 %v5938_v18  ;;  %v5939_v32 = vmul.f32 -1.442695, %v10837_v53 }
 0x261   :  { %v10888_v12 = vpop.f32.mrb[127].mxu0  ;;  %v10890_v44 = vpop.f32.mrb[127].mxu1  ;;  %5414 = vst.msk [vmem:[%s11613_s3 + $0x35c] sm:$0xf] %vm5198_vm3, %v6445_v43  ;;  %v6443_v52 = vpack.c.bf16 %v4131_v6, %v4131_v6  ;;  %v4136_v23 = vmul.f32 %v7730_v7, %v10677_v2  ;;  %7751 = vpow2.f32 %v5813_v11  ;;  %v5816_v19 = vmul.f32 -1.442695, %v10850_v30 }
 0x262   :  { %11812 = vst [vmem:[#allocation27_spill] sm:$0xff] %v10890_v44  ;;  %v7732_v13 = vpop.eup %7731  ;;  %5284 = vst.msk [vmem:[%s11613_s3 + $0x154] sm:$0xf] %vm5198_vm3, %v6315_v25  ;;  %v6320_v18 = vpack.c.bf16 %v4008_v33, %v4008_v33  ;;  %7753 = vpow2.f32 %v5941_v45  ;;  %v5944_v16 = vmul.f32 -1.442695, %v10863_v24 }
 0x263   :  { %v7734_v59 = vpop.eup %7733  ;;  %v4006_v4 = vmul.f32 %v7732_v13, %v10689_v63  ;;  %5412 = vst.msk [vmem:[%s11613_s3 + $0x354] sm:$0xf] %vm5198_vm3, %v6443_v52  ;;  %v6448_v2 = vpack.c.bf16 %v4136_v23, %v4136_v23  ;;  %7755 = vpow2.f32 %v5811_v47  ;;  %v5814_v43 = vmul.f32 -1.442695, %v10876_v31 }
 0x264   :  { %v7736_v44 = vpop.eup %7735  ;;  %v4134_v11 = vmul.f32 %v7734_v59, %v10694_v48  ;;  %5289 = vst.msk [vmem:[%s11613_s3 + $0x168] sm:$0xf] %vm5198_vm3, %v6320_v18  ;;  %7757 = vpow2.f32 %v5939_v32 }
 0x265   :  { %v7738_v6 = vpop.eup %7737  ;;  %v6318_v63 = vpack.c.bf16 %v4006_v4, %v4006_v4  ;;  %v4009_v45 = vmul.f32 %v7736_v44, %v10713_v36  ;;  %5417 = vst.msk [vmem:[%s11613_s3 + $0x368] sm:$0xf] %vm5198_vm3, %v6448_v2  ;;  %7759 = vpow2.f32 %v5816_v19  ;;  %v10939_v4 = vld [vmem:[%s11612_s2] ss:$0 sm:$0xff] }
 0x266   :  { %v7740_v7 = vpop.eup %7739  ;;  %v6446_v48 = vpack.c.bf16 %v4134_v11, %v4134_v11  ;;  %v4137_v47 = vmul.f32 %v7738_v6, %v10722_v1  ;;  %7761 = vpow2.f32 %v5944_v16  ;;  %v11813_v16 = vld [vmem:[#allocation39_spill] sm:$0xff] }
 0x267   :  { %v7742_v25 = vpop.eup %7741  ;;  %5287 = vst.msk [vmem:[%s11613_s3 + $0x160] sm:$0xf] %vm5198_vm3, %v6318_v63  ;;  %v6321_v33 = vpack.c.bf16 %v4009_v45, %v4009_v45  ;;  %v3239_v13 = vadd.f32 1.0, %v7740_v7  ;;  %7763 = vpow2.f32 %v5814_v43  ;;  %v10943_v2 = vadd.f32 %v10939_v4, %v11813_v16 }
 0x268   :  { %v7744_v36 = vpop.eup %7743  ;;  %5415 = vst.msk [vmem:[%s11613_s3 + $0x360] sm:$0xf] %vm5198_vm3, %v6446_v48  ;;  %v6449_v32 = vpack.c.bf16 %v4137_v47, %v4137_v47  ;;  %v3367_v44 = vadd.f32 1.0, %v7742_v25  ;;  %v11814_v48 = vld [vmem:[#allocation40_spill] sm:$0xff]  ;;  %v11815_v25 = vld [vmem:[#allocation41_spill] sm:$0xff]  ;;  %v10968_v16 = vadd.f32 %v10939_v4, %v10263_v57  ;;  %v10979_v57 = vadd.f32 %v10939_v4, %v10273_v38 }
 0x269   :  { %v7746_v1 = vpop.eup %7745  ;;  %5290 = vst.msk [vmem:[%s11613_s3 + $0x16c] sm:$0xf] %vm5198_vm3, %v6321_v33  ;;  %7765 = vrcp.f32 %v3239_v13  ;;  %v3244_v52 = vadd.f32 1.0, %v7744_v36  ;;  %v10947_v47 = vadd.f32 %v10939_v4, %v11814_v48  ;;  %v10951_v33 = vadd.f32 %v10939_v4, %v11815_v25 }
 0x26a   :  { %v7748_v23 = vpop.eup %7747  ;;  %5418 = vst.msk [vmem:[%s11613_s3 + $0x36c] sm:$0xf] %vm5198_vm3, %v6449_v32  ;;  %7767 = vrcp.f32 %v3367_v44  ;;  %v3372_v19 = vadd.f32 1.0, %v7746_v1  ;;  %v5942_v32 = vmul.f32 -1.442695, %v10943_v2  ;;  %v10956_v44 = vadd.f32 %v10939_v4, %v10216_v54 }
 0x26b   :  { %v7750_v59 = vpop.eup %7749  ;;  %7769 = vrcp.f32 %v3244_v52  ;;  %v3242_v18 = vadd.f32 1.0, %v7748_v23  ;;  %v10960_v23 = vadd.f32 %v10939_v4, %v10218_v3  ;;  %v10972_v54 = vadd.f32 %v10939_v4, %v10271_v34 }
 0x26c   :  { %v7752_v11 = vpop.eup %7751  ;;  %7771 = vrcp.f32 %v3372_v19  ;;  %v3370_v43 = vadd.f32 1.0, %v7750_v59  ;;  %v10964_v19 = vadd.f32 %v10939_v4, %v10261_v62  ;;  %v5817_v3 = vmul.f32 -1.442695, %v10947_v47 }
 0x26d   :  { %v7754_v6 = vpop.eup %7753  ;;  %7773 = vrcp.f32 %v3242_v18  ;;  %v3245_v63 = vadd.f32 1.0, %v7752_v11  ;;  %v5943_v48 = vmul.f32 -1.442695, %v10960_v23 }
 0x26e   :  { %v7756_v45 = vpop.eup %7755  ;;  %7775 = vrcp.f32 %v3370_v43  ;;  %v3373_v7 = vadd.f32 1.0, %v7754_v6  ;;  %v5945_v6 = vmul.f32 -1.442695, %v10951_v33  ;;  %v5820_v25 = vmul.f32 -1.442695, %v10964_v19 }
 0x26f   :  { %v7758_v13 = vpop.eup %7757  ;;  %7777 = vrcp.f32 %v3245_v63  ;;  %v3243_v36 = vadd.f32 1.0, %v7756_v45  ;;  %v5815_v45 = vmul.f32 -1.442695, %v10956_v44 }
 0x270   :  { %v7760_v1 = vpop.eup %7759  ;;  %7779 = vrcp.f32 %v3373_v7  ;;  %v3371_v52 = vadd.f32 1.0, %v7758_v13 }
 0x271   :  { %v7762_v59 = vpop.eup %7761  ;;  %7781 = vrcp.f32 %v3243_v36  ;;  %v3248_v18 = vadd.f32 1.0, %v7760_v1  ;;  %v5948_v1 = vmul.f32 -1.442695, %v10968_v16 }
 0x272   :  { %v7764_v11 = vpop.eup %7763  ;;  %7783 = vrcp.f32 %v3371_v52  ;;  %v3376_v43 = vadd.f32 1.0, %v7762_v59  ;;  %v5818_v52 = vmul.f32 -1.442695, %v10972_v54 }
 0x273   :  { %v7766_v62 = vpop.eup %7765  ;;  %7785 = vrcp.f32 %v3248_v18  ;;  %v3246_v63 = vadd.f32 1.0, %v7764_v11 }
 0x274   :  { %v7768_v7 = vpop.eup %7767  ;;  %v4007_v34 = vmul.f32 %v7766_v62, %v10792_v14  ;;  %7787 = vrcp.f32 %v3376_v43  ;;  %v10990_v14 = vadd.f32 %v10939_v4, %v10281_v29  ;;  %v11001_v29 = vadd.f32 %v10939_v4, %v10283_v0 }
 0x275   :  { %v7770_v13 = vpop.eup %7769  ;;  %v4135_v36 = vmul.f32 %v7768_v7, %v10796_v60  ;;  %7789 = vrcp.f32 %v3246_v63  ;;  %v5946_v60 = vmul.f32 -1.442695, %v10979_v57 }
 0x276   :  { %v7772_v59 = vpop.eup %7771  ;;  %v6319_v18 = vpack.c.bf16 %v4007_v34, %v4007_v34  ;;  %v4012_v38 = vmul.f32 %v7770_v13, %v10800_v22  ;;  %7791 = vpow2.f32 %v5942_v32  ;;  %v11010_v34 = vadd.f32 %v10939_v4, %v10290_v21  ;;  %v11816_v13 = vld [vmem:[#allocation4_spill] sm:$0xff] }
 0x277   :  { %v7774_v11 = vpop.eup %7773  ;;  %v6447_v43 = vpack.c.bf16 %v4135_v36, %v4135_v36  ;;  %v4140_v62 = vmul.f32 %v7772_v59, %v10805_v28  ;;  %7793 = vpow2.f32 %v5817_v3  ;;  %v11019_v36 = vadd.f32 %v10939_v4, %v11816_v13 }
 0x278   :  { %v7776_v63 = vpop.eup %7775  ;;  %5288 = vst.msk [vmem:[%s11613_s3 + $0x164] sm:$0xf] %vm5198_vm3, %v6319_v18  ;;  %v6324_v7 = vpack.c.bf16 %v4012_v38, %v4012_v38  ;;  %v4010_v22 = vmul.f32 %v7774_v11, %v10809_v5  ;;  %7795 = vpow2.f32 %v5945_v6  ;;  %v5821_v59 = vmul.f32 -1.442695, %v10990_v14 }
 0x279   :  { %v7778_v32 = vpop.eup %7777  ;;  %5416 = vst.msk [vmem:[%s11613_s3 + $0x364] sm:$0xf] %vm5198_vm3, %v6447_v43  ;;  %v6452_v28 = vpack.c.bf16 %v4140_v62, %v4140_v62  ;;  %v4138_v3 = vmul.f32 %v7776_v63, %v10813_v41  ;;  %7797 = vpow2.f32 %v5815_v45  ;;  %v5949_v38 = vmul.f32 -1.442695, %v11001_v29 }
 0x27a   :  { %v7780_v5 = vpop.eup %7779  ;;  %5293 = vst.msk [vmem:[%s11613_s3 + $0x178] sm:$0xf] %vm5198_vm3, %v6324_v7  ;;  %v6322_v0 = vpack.c.bf16 %v4010_v22, %v4010_v22  ;;  %v4013_v6 = vmul.f32 %v7778_v32, %v10818_v20  ;;  %7799 = vpow2.f32 %v5943_v48  ;;  %v5819_v43 = vmul.f32 -1.442695, %v11010_v34 }
 0x27b   :  { %v7782_v41 = vpop.eup %7781  ;;  %5421 = vst.msk [vmem:[%s11613_s3 + $0x378] sm:$0xf] %vm5198_vm3, %v6452_v28  ;;  %v6450_v21 = vpack.c.bf16 %v4138_v3, %v4138_v3  ;;  %v4141_v45 = vmul.f32 %v7780_v5, %v10823_v35  ;;  %7801 = vpow2.f32 %v5820_v25  ;;  %v5947_v63 = vmul.f32 -1.442695, %v11019_v36 }
 0x27c   :  { %v7784_v18 = vpop.eup %7783  ;;  %5291 = vst.msk [vmem:[%s11613_s3 + $0x170] sm:$0xf] %vm5198_vm3, %v6322_v0  ;;  %v6325_v20 = vpack.c.bf16 %v4013_v6, %v4013_v6  ;;  %v4011_v48 = vmul.f32 %v7782_v41, %v10828_v61  ;;  %7803 = vpow2.f32 %v5948_v1 }
 0x27d   :  { %v7786_v11 = vpop.eup %7785  ;;  %5419 = vst.msk [vmem:[%s11613_s3 + $0x370] sm:$0xf] %vm5198_vm3, %v6450_v21  ;;  %v6453_v35 = vpack.c.bf16 %v4141_v45, %v4141_v45  ;;  %v4139_v25 = vmul.f32 %v7784_v18, %v10837_v53  ;;  %7805 = vpow2.f32 %v5818_v52 }
 0x27e   :  { %v7788_v62 = vpop.eup %7787  ;;  %5294 = vst.msk [vmem:[%s11613_s3 + $0x17c] sm:$0xf] %vm5198_vm3, %v6325_v20  ;;  %v6323_v61 = vpack.c.bf16 %v4011_v48, %v4011_v48  ;;  %v4016_v1 = vmul.f32 %v7786_v11, %v10850_v30  ;;  %7807 = vpow2.f32 %v5946_v60 }
 0x27f   :  { %v7790_v7 = vpop.eup %7789  ;;  %5422 = vst.msk [vmem:[%s11613_s3 + $0x37c] sm:$0xf] %vm5198_vm3, %v6453_v35  ;;  %v6451_v53 = vpack.c.bf16 %v4139_v25, %v4139_v25  ;;  %v4144_v52 = vmul.f32 %v7788_v62, %v10863_v24  ;;  %7809 = vpow2.f32 %v5821_v59 }
 0x280   :  { %v7792_v22 = vpop.eup %7791  ;;  %5292 = vst.msk [vmem:[%s11613_s3 + $0x174] sm:$0xf] %vm5198_vm3, %v6323_v61  ;;  %v6328_v30 = vpack.c.bf16 %v4016_v1, %v4016_v1  ;;  %v4014_v60 = vmul.f32 %v7790_v7, %v10876_v31  ;;  %7811 = vpow2.f32 %v5949_v38  ;;  %v11817_v38 = vld [vmem:[#allocation5_spill] sm:$0xff]  ;;  %v11819_v61 = vld [vmem:[#allocation7_spill] sm:$0xff] }
 0x281   :  { %v7794_v32 = vpop.eup %7793  ;;  %5420 = vst.msk [vmem:[%s11613_s3 + $0x374] sm:$0xf] %vm5198_vm3, %v6451_v53  ;;  %v6456_v28 = vpack.c.bf16 %v4144_v52, %v4144_v52  ;;  %v3374_v3 = vadd.f32 1.0, %v7792_v22  ;;  %7813 = vpow2.f32 %v5819_v43  ;;  %v11073_v11 = vadd.f32 %v10939_v4, %v11817_v38  ;;  %v11818_v43 = vld [vmem:[#allocation6_spill] sm:$0xff]  ;;  %v11820_v53 = vld [vmem:[#allocation8_spill] sm:$0xff] }
 0x282   :  { %v7796_v24 = vpop.eup %7795  ;;  %5297 = vst.msk [vmem:[%s11613_s3 + $0x188] sm:$0xf] %vm5198_vm3, %v6328_v30  ;;  %v6326_v5 = vpack.c.bf16 %v4014_v60, %v4014_v60  ;;  %v3249_v0 = vadd.f32 1.0, %v7794_v32  ;;  %7815 = vpow2.f32 %v5947_v63  ;;  %v11077_v62 = vadd.f32 %v10939_v4, %v11818_v43  ;;  %v11822_v43 = vld [vmem:[#allocation10_spill] sm:$0xff] }
 0x283   :  { %v7798_v31 = vpop.eup %7797  ;;  %5425 = vst.msk [vmem:[%s11613_s3 + $0x388] sm:$0xf] %vm5198_vm3, %v6456_v28  ;;  %7817 = vrcp.f32 %v3374_v3  ;;  %v3377_v6 = vadd.f32 1.0, %v7796_v24  ;;  %v11081_v1 = vadd.f32 %v10939_v4, %v11819_v61  ;;  %v11085_v52 = vadd.f32 %v10939_v4, %v11820_v53 }
 0x284   :  { %v7800_v13 = vpop.eup %7799  ;;  %5295 = vst.msk [vmem:[%s11613_s3 + $0x180] sm:$0xf] %vm5198_vm3, %v6326_v5  ;;  %7819 = vrcp.f32 %v3249_v0  ;;  %v3247_v41 = vadd.f32 1.0, %v7798_v31  ;;  %v11089_v22 = vadd.f32 %v10939_v4, %v10381_v42  ;;  %v11093_v32 = vadd.f32 %v10939_v4, %v10383_v58  ;;  %v11821_v0 = vld [vmem:[#allocation9_spill] sm:$0xff] }
 0x285   :  { %v7802_v21 = vpop.eup %7801  ;;  %7821 = vrcp.f32 %v3377_v6  ;;  %v3375_v45 = vadd.f32 1.0, %v7800_v13  ;;  %v11097_v28 = vadd.f32 %v10939_v4, %v10403_v46  ;;  %v5824_v5 = vmul.f32 -1.442695, %v11073_v11 }
 0x286   :  { %v7804_v59 = vpop.eup %7803  ;;  %7823 = vrcp.f32 %v3247_v41  ;;  %v3252_v18 = vadd.f32 1.0, %v7802_v21  ;;  %v11102_v42 = vadd.f32 %v10939_v4, %v11821_v0  ;;  %v5952_v13 = vmul.f32 -1.442695, %v11077_v62 }
 0x287   :  { %v7806_v20 = vpop.eup %7805  ;;  %7825 = vrcp.f32 %v3375_v45  ;;  %v3380_v48 = vadd.f32 1.0, %v7804_v59  ;;  %v5822_v58 = vmul.f32 -1.442695, %v11081_v1  ;;  %v5950_v21 = vmul.f32 -1.442695, %v11085_v52 }
 0x288   :  { %v7808_v35 = vpop.eup %7807  ;;  %7827 = vrcp.f32 %v3252_v18  ;;  %v3250_v25 = vadd.f32 1.0, %v7806_v20  ;;  %v5825_v45 = vmul.f32 -1.442695, %v11089_v22  ;;  %v5953_v20 = vmul.f32 -1.442695, %v11093_v32 }
 0x289   :  { %v7810_v63 = vpop.eup %7809  ;;  %7829 = vrcp.f32 %v3380_v48  ;;  %v3378_v7 = vadd.f32 1.0, %v7808_v35  ;;  %v5823_v48 = vmul.f32 -1.442695, %v11097_v28  ;;  %v11115_v61 = vadd.f32 %v10939_v4, %v11822_v43 }
 0x28a   :  { %v7812_v30 = vpop.eup %7811  ;;  %7831 = vrcp.f32 %v3250_v25  ;;  %v3253_v60 = vadd.f32 1.0, %v7810_v63  ;;  %v5951_v25 = vmul.f32 -1.442695, %v11102_v42 }
 0x28b   :  { %v7814_v3 = vpop.eup %7813  ;;  %7833 = vrcp.f32 %v3378_v7  ;;  %v3381_v24 = vadd.f32 1.0, %v7812_v30 }
 0x28c   :  { %v7816_v31 = vpop.eup %7815  ;;  %7835 = vrcp.f32 %v3253_v60  ;;  %v3251_v6 = vadd.f32 1.0, %v7814_v3 }
 0x28d   :  { %v7818_v41 = vpop.eup %7817  ;;  %7837 = vrcp.f32 %v3381_v24  ;;  %v3379_v46 = vadd.f32 1.0, %v7816_v31  ;;  %v11824_v24 = vld [vmem:[#allocation43_spill] sm:$0xff] }
 0x28e   :  { %v7820_v59 = vpop.eup %7819  ;;  %v4142_v18 = vmul.f32 %v7818_v41, %v10943_v2  ;;  %7839 = vrcp.f32 %v3251_v6  ;;  %v11823_v2 = vld [vmem:[#allocation42_spill] sm:$0xff]  ;;  %v11125_v0 = vadd.f32 %v10939_v4, %v11824_v24  ;;  %v11825_v6 = vld [vmem:[#allocation44_spill] sm:$0xff] }
 0x28f   :  { %v7822_v38 = vpop.eup %7821  ;;  %v4017_v35 = vmul.f32 %v7820_v59, %v10947_v47  ;;  %7841 = vrcp.f32 %v3379_v46  ;;  %v11120_v30 = vadd.f32 %v10939_v4, %v11823_v2  ;;  %v11134_v41 = vadd.f32 %v10939_v4, %v11825_v6 }
 0x290   :  { %v7824_v63 = vpop.eup %7823  ;;  %v6454_v7 = vpack.c.bf16 %v4142_v18, %v4142_v18  ;;  %v4145_v53 = vmul.f32 %v7822_v38, %v10951_v33  ;;  %7843 = vpow2.f32 %v5824_v5  ;;  %v5828_v59 = vmul.f32 -1.442695, %v11115_v61  ;;  %v11826_v38 = vld [vmem:[#allocation11_spill] sm:$0xff] }
 0x291   :  { %v7826_v60 = vpop.eup %7825  ;;  %v6329_v3 = vpack.c.bf16 %v4017_v35, %v4017_v35  ;;  %v4015_v47 = vmul.f32 %v7824_v63, %v10956_v44  ;;  %7845 = vpow2.f32 %v5952_v13  ;;  %v11149_v35 = vadd.f32 %v10939_v4, %v11826_v38 }
 0x292   :  { %v7828_v31 = vpop.eup %7827  ;;  %5423 = vst.msk [vmem:[%s11613_s3 + $0x380] sm:$0xf] %vm5198_vm3, %v6454_v7  ;;  %v6457_v33 = vpack.c.bf16 %v4145_v53, %v4145_v53  ;;  %v4143_v5 = vmul.f32 %v7826_v60, %v10960_v23  ;;  %7847 = vpow2.f32 %v5822_v58  ;;  %v5956_v63 = vmul.f32 -1.442695, %v11120_v30 }
 0x293   :  { %v7830_v44 = vpop.eup %7829  ;;  %5298 = vst.msk [vmem:[%s11613_s3 + $0x18c] sm:$0xf] %vm5198_vm3, %v6329_v3  ;;  %v6327_v13 = vpack.c.bf16 %v4015_v47, %v4015_v47  ;;  %v4020_v46 = vmul.f32 %v7828_v31, %v10964_v19  ;;  %7849 = vpow2.f32 %v5950_v21  ;;  %v5826_v53 = vmul.f32 -1.442695, %v11125_v0 }
 0x294   :  { %v7832_v18 = vpop.eup %7831  ;;  %5426 = vst.msk [vmem:[%s11613_s3 + $0x38c] sm:$0xf] %vm5198_vm3, %v6457_v33  ;;  %v6455_v23 = vpack.c.bf16 %v4143_v5, %v4143_v5  ;;  %v4148_v58 = vmul.f32 %v7830_v44, %v10968_v16  ;;  %7851 = vpow2.f32 %v5825_v45  ;;  %v5954_v60 = vmul.f32 -1.442695, %v11134_v41 }
 0x295   :  { %v7834_v43 = vpop.eup %7833  ;;  %5296 = vst.msk [vmem:[%s11613_s3 + $0x184] sm:$0xf] %vm5198_vm3, %v6327_v13  ;;  %v6332_v19 = vpack.c.bf16 %v4020_v46, %v4020_v46  ;;  %v4018_v21 = vmul.f32 %v7832_v18, %v10972_v54  ;;  %7853 = vpow2.f32 %v5953_v20  ;;  %v5829_v47 = vmul.f32 -1.442695, %v11149_v35 }
 0x296   :  { %v7836_v7 = vpop.eup %7835  ;;  %5424 = vst.msk [vmem:[%s11613_s3 + $0x384] sm:$0xf] %vm5198_vm3, %v6455_v23  ;;  %v6460_v16 = vpack.c.bf16 %v4148_v58, %v4148_v58  ;;  %v4146_v45 = vmul.f32 %v7834_v43, %v10979_v57  ;;  %7855 = vpow2.f32 %v5823_v48 }
 0x297   :  { %v7838_v2 = vpop.eup %7837  ;;  %5301 = vst.msk [vmem:[%s11613_s3 + $0x198] sm:$0xf] %vm5198_vm3, %v6332_v19  ;;  %v6330_v54 = vpack.c.bf16 %v4018_v21, %v4018_v21  ;;  %v4021_v20 = vmul.f32 %v7836_v7, %v10990_v14  ;;  %7857 = vpow2.f32 %v5951_v25  ;;  %v11827_v21 = vld [vmem:[#allocation12_spill] sm:$0xff] }
 0x298   :  { %v7840_v3 = vpop.eup %7839  ;;  %5429 = vst.msk [vmem:[%s11613_s3 + $0x398] sm:$0xf] %vm5198_vm3, %v6460_v16  ;;  %v6458_v57 = vpack.c.bf16 %v4146_v45, %v4146_v45  ;;  %v4149_v48 = vmul.f32 %v7838_v2, %v11001_v29  ;;  %7859 = vpow2.f32 %v5828_v59  ;;  %v11828_v45 = vld [vmem:[#allocation13_spill] sm:$0xff] }
 0x299   :  { %v7842_v24 = vpop.eup %7841  ;;  %5299 = vst.msk [vmem:[%s11613_s3 + $0x190] sm:$0xf] %vm5198_vm3, %v6330_v54  ;;  %v6333_v14 = vpack.c.bf16 %v4021_v20, %v4021_v20  ;;  %v4019_v25 = vmul.f32 %v7840_v3, %v11010_v34  ;;  %7861 = vpow2.f32 %v5956_v63  ;;  %v11203_v63 = vadd.f32 %v10939_v4, %v11827_v21  ;;  %v11829_v20 = vld [vmem:[#allocation14_spill] sm:$0xff] }
 0x29a   :  { %v7844_v31 = vpop.eup %7843  ;;  %5427 = vst.msk [vmem:[%s11613_s3 + $0x390] sm:$0xf] %vm5198_vm3, %v6458_v57  ;;  %v6461_v29 = vpack.c.bf16 %v4149_v48, %v4149_v48  ;;  %v4147_v33 = vmul.f32 %v7842_v24, %v11019_v36  ;;  %7863 = vpow2.f32 %v5826_v53  ;;  %v11207_v53 = vadd.f32 %v10939_v4, %v11828_v45 }
 0x29b   :  { %v7846_v5 = vpop.eup %7845  ;;  %5302 = vst.msk [vmem:[%s11613_s3 + $0x19c] sm:$0xf] %vm5198_vm3, %v6333_v14  ;;  %v6331_v6 = vpack.c.bf16 %v4019_v25, %v4019_v25  ;;  %v3256_v44 = vadd.f32 1.0, %v7844_v31  ;;  %7865 = vpow2.f32 %v5954_v60  ;;  %v11211_v60 = vadd.f32 %v10939_v4, %v11829_v20 }
 0x29c   :  { %v7848_v34 = vpop.eup %7847  ;;  %5430 = vst.msk [vmem:[%s11613_s3 + $0x39c] sm:$0xf] %vm5198_vm3, %v6461_v29  ;;  %v6459_v13 = vpack.c.bf16 %v4147_v33, %v4147_v33  ;;  %v3384_v46 = vadd.f32 1.0, %v7846_v5  ;;  %7867 = vpow2.f32 %v5829_v47  ;;  %v11215_v3 = vadd.f32 %v10939_v4, %v10562_v49 }
 0x29d   :  { %v7850_v36 = vpop.eup %7849  ;;  %5300 = vst.msk [vmem:[%s11613_s3 + $0x194] sm:$0xf] %vm5198_vm3, %v6331_v6  ;;  %7869 = vrcp.f32 %v3256_v44  ;;  %v3254_v59 = vadd.f32 1.0, %v7848_v34  ;;  %v11219_v47 = vadd.f32 %v10939_v4, %v10564_v56  ;;  %v5957_v25 = vmul.f32 -1.442695, %v11203_v63 }
 0x29e   :  { %v7852_v18 = vpop.eup %7851  ;;  %5428 = vst.msk [vmem:[%s11613_s3 + $0x394] sm:$0xf] %vm5198_vm3, %v6459_v13  ;;  %7871 = vrcp.f32 %v3384_v46  ;;  %v3382_v23 = vadd.f32 1.0, %v7850_v36  ;;  %v11224_v31 = vadd.f32 %v10939_v4, %v10572_v17  ;;  %v5827_v33 = vmul.f32 -1.442695, %v11207_v53 }
 0x29f   :  { %v7854_v58 = vpop.eup %7853  ;;  %7873 = vrcp.f32 %v3254_v59  ;;  %v3257_v38 = vadd.f32 1.0, %v7852_v18  ;;  %v11229_v5 = vadd.f32 %v10939_v4, %v10574_v40  ;;  %v5955_v44 = vmul.f32 -1.442695, %v11211_v60 }
 0x2a0   :  { %v7856_v43 = vpop.eup %7855  ;;  %7875 = vrcp.f32 %v3382_v23  ;;  %v3385_v19 = vadd.f32 1.0, %v7854_v58  ;;  %v5832_v34 = vmul.f32 -1.442695, %v11215_v3  ;;  %v5960_v46 = vmul.f32 -1.442695, %v11219_v47 }
 0x2a1   :  { %v7858_v7 = vpop.eup %7857  ;;  %7877 = vrcp.f32 %v3257_v38  ;;  %v3255_v16 = vadd.f32 1.0, %v7856_v43  ;;  %v11236_v36 = vadd.f32 %v10939_v4, %v10582_v9  ;;  %v5830_v18 = vmul.f32 -1.442695, %v11224_v31 }
 0x2a2   :  { %v7860_v2 = vpop.eup %7859  ;;  %7879 = vrcp.f32 %v3385_v19  ;;  %v3383_v54 = vadd.f32 1.0, %v7858_v7  ;;  %v11242_v23 = vadd.f32 %v10939_v4, %v10584_v39  ;;  %v5958_v43 = vmul.f32 -1.442695, %v11229_v5  ;;  %v11830_v19 = vld [vmem:[#allocation15_spill] sm:$0xff] }
 0x2a3   :  { %v7862_v57 = vpop.eup %7861  ;;  %7881 = vrcp.f32 %v3255_v16  ;;  %v3260_v48 = vadd.f32 1.0, %v7860_v2  ;;  %v11248_v9 = vadd.f32 %v10939_v4, %v11830_v19  ;;  %v11831_v16 = vld [vmem:[#allocation16_spill] sm:$0xff] }
 0x2a4   :  { %v7864_v24 = vpop.eup %7863  ;;  %7883 = vrcp.f32 %v3383_v54  ;;  %v3388_v14 = vadd.f32 1.0, %v7862_v57  ;;  %v11253_v45 = vadd.f32 %v10939_v4, %v11831_v16  ;;  %v5833_v54 = vmul.f32 -1.442695, %v11236_v36 }
 0x2a5   :  { %v7866_v29 = vpop.eup %7865  ;;  %7885 = vrcp.f32 %v3260_v48  ;;  %v3258_v49 = vadd.f32 1.0, %v7864_v24  ;;  %v5961_v48 = vmul.f32 -1.442695, %v11242_v23 }
 0x2a6   :  { %v7868_v56 = vpop.eup %7867  ;;  %7887 = vrcp.f32 %v3388_v14  ;;  %v3386_v6 = vadd.f32 1.0, %v7866_v29 }
 0x2a7   :  { %v7870_v13 = vpop.eup %7869  ;;  %7889 = vrcp.f32 %v3258_v49  ;;  %v3261_v17 = vadd.f32 1.0, %v7868_v56  ;;  %v11833_v56 = vld [vmem:[#allocation18_spill] sm:$0xff] }
 0x2a8   :  { %v7872_v59 = vpop.eup %7871  ;;  %v4024_v40 = vmul.f32 %v7870_v13, %v11073_v11  ;;  %7891 = vrcp.f32 %v3386_v6  ;;  %v11279_v6 = vadd.f32 %v10939_v4, %v11833_v56  ;;  %v5831_v13 = vmul.f32 -1.442695, %v11248_v9 }
 0x2a9   :  { %v7874_v58 = vpop.eup %7873  ;;  %v4152_v38 = vmul.f32 %v7872_v59, %v11077_v62  ;;  %7893 = vrcp.f32 %v3261_v17  ;;  %v5959_v59 = vmul.f32 -1.442695, %v11253_v45 }
 0x2aa   :  { %v7876_v21 = vpop.eup %7875  ;;  %v6336_v7 = vpack.c.bf16 %v4024_v40, %v4024_v40  ;;  %v4022_v11 = vmul.f32 %v7874_v58, %v11081_v1  ;;  %7895 = vpow2.f32 %v5957_v25  ;;  %v11832_v25 = vld [vmem:[#allocation17_spill] sm:$0xff]  ;;  %v5964_v19 = vmul.f32 -1.442695, %v11279_v6 }
 0x2ab   :  { %v7878_v39 = vpop.eup %7877  ;;  %v6464_v2 = vpack.c.bf16 %v4152_v38, %v4152_v38  ;;  %v4150_v62 = vmul.f32 %v7876_v21, %v11085_v52  ;;  %7897 = vpow2.f32 %v5827_v33  ;;  %v11270_v29 = vadd.f32 %v10939_v4, %v11832_v25 }
 0x2ac   :  { %v7880_v20 = vpop.eup %7879  ;;  %5305 = vst.msk [vmem:[%s11613_s3 + $0x1a8] sm:$0xf] %vm5198_vm3, %v6336_v7  ;;  %v6334_v57 = vpack.c.bf16 %v4022_v11, %v4022_v11  ;;  %v4025_v1 = vmul.f32 %v7878_v39, %v11089_v22  ;;  %7899 = vpow2.f32 %v5955_v44 }
 0x2ad   :  { %v7882_v24 = vpop.eup %7881  ;;  %5433 = vst.msk [vmem:[%s11613_s3 + $0x3a8] sm:$0xf] %vm5198_vm3, %v6464_v2  ;;  %v6462_v52 = vpack.c.bf16 %v4150_v62, %v4150_v62  ;;  %v4153_v14 = vmul.f32 %v7880_v20, %v11093_v32  ;;  %7901 = vpow2.f32 %v5832_v34  ;;  %v5836_v58 = vmul.f32 -1.442695, %v11270_v29 }
 0x2ae   :  { %v7884_v49 = vpop.eup %7883  ;;  %5303 = vst.msk [vmem:[%s11613_s3 + $0x1a0] sm:$0xf] %vm5198_vm3, %v6334_v57  ;;  %v6337_v22 = vpack.c.bf16 %v4025_v1, %v4025_v1  ;;  %v4023_v33 = vmul.f32 %v7882_v24, %v11097_v28  ;;  %7903 = vpow2.f32 %v5960_v46 }
 0x2af   :  { %v7886_v32 = vpop.eup %7885  ;;  %5431 = vst.msk [vmem:[%s11613_s3 + $0x3a0] sm:$0xf] %vm5198_vm3, %v6462_v52  ;;  %v6465_v44 = vpack.c.bf16 %v4153_v14, %v4153_v14  ;;  %v4151_v34 = vmul.f32 %v7884_v49, %v11102_v42  ;;  %7905 = vpow2.f32 %v5830_v18 }
 0x2b0   :  { %v7888_v17 = vpop.eup %7887  ;;  %5306 = vst.msk [vmem:[%s11613_s3 + $0x1ac] sm:$0xf] %vm5198_vm3, %v6337_v22  ;;  %v6335_v28 = vpack.c.bf16 %v4023_v33, %v4023_v33  ;;  %v4028_v46 = vmul.f32 %v7886_v32, %v11115_v61  ;;  %7907 = vpow2.f32 %v5958_v43  ;;  %v11834_v33 = vld [vmem:[#allocation19_spill] sm:$0xff] }
 0x2b1   :  { %v7890_v40 = vpop.eup %7889  ;;  %5434 = vst.msk [vmem:[%s11613_s3 + $0x3ac] sm:$0xf] %vm5198_vm3, %v6465_v44  ;;  %v6463_v42 = vpack.c.bf16 %v4151_v34, %v4151_v34  ;;  %v4156_v18 = vmul.f32 %v7888_v17, %v11120_v30  ;;  %7909 = vpow2.f32 %v5833_v54  ;;  %v11333_v56 = vadd.f32 %v10939_v4, %v11834_v33  ;;  %v11835_v34 = vld [vmem:[#allocation20_spill] sm:$0xff]  ;;  %v11836_v17 = vld [vmem:[#allocation21_spill] sm:$0xff] }
 0x2b2   :  { %v7892_v38 = vpop.eup %7891  ;;  %5304 = vst.msk [vmem:[%s11613_s3 + $0x1a4] sm:$0xf] %vm5198_vm3, %v6335_v28  ;;  %v6340_v61 = vpack.c.bf16 %v4028_v46, %v4028_v46  ;;  %v4026_v43 = vmul.f32 %v7890_v40, %v11125_v0  ;;  %7911 = vpow2.f32 %v5961_v48  ;;  %v11341_v28 = vadd.f32 %v10939_v4, %v11836_v17  ;;  %v11837_v40 = vld [vmem:[#allocation22_spill] sm:$0xff] }
 0x2b3   :  { %v7894_v21 = vpop.eup %7893  ;;  %5432 = vst.msk [vmem:[%s11613_s3 + $0x3a4] sm:$0xf] %vm5198_vm3, %v6463_v42  ;;  %v6468_v30 = vpack.c.bf16 %v4156_v18, %v4156_v18  ;;  %v4154_v7 = vmul.f32 %v7892_v38, %v11134_v41  ;;  %7913 = vpow2.f32 %v5831_v13  ;;  %v11337_v13 = vadd.f32 %v10939_v4, %v11835_v34 }
 0x2b4   :  { %v7896_v11 = vpop.eup %7895  ;;  %5309 = vst.msk [vmem:[%s11613_s3 + $0x1b8] sm:$0xf] %vm5198_vm3, %v6340_v61  ;;  %v6338_v0 = vpack.c.bf16 %v4026_v43, %v4026_v43  ;;  %v4029_v16 = vmul.f32 %v7894_v21, %v11149_v35  ;;  %7915 = vpow2.f32 %v5959_v59  ;;  %v11345_v42 = vadd.f32 %v10939_v4, %v11837_v40 }
 0x2b5   :  { %v7898_v39 = vpop.eup %7897  ;;  %5437 = vst.msk [vmem:[%s11613_s3 + $0x3b8] sm:$0xf] %vm5198_vm3, %v6468_v30  ;;  %v6466_v2 = vpack.c.bf16 %v4154_v7, %v4154_v7  ;;  %v3389_v62 = vadd.f32 1.0, %v7896_v11  ;;  %7917 = vpow2.f32 %v5836_v58  ;;  %v11349_v18 = vadd.f32 %v10939_v4, %v10696_v26  ;;  %v11838_v7 = vld [vmem:[#allocation23_spill] sm:$0xff] }
 0x2b6   :  { %v7900_v41 = vpop.eup %7899  ;;  %5307 = vst.msk [vmem:[%s11613_s3 + $0x1b0] sm:$0xf] %vm5198_vm3, %v6338_v0  ;;  %v6341_v54 = vpack.c.bf16 %v4029_v16, %v4029_v16  ;;  %v3259_v20 = vadd.f32 1.0, %v7898_v39  ;;  %7919 = vpow2.f32 %v5964_v19  ;;  %v11353_v61 = vadd.f32 %v10939_v4, %v10698_v51 }
 0x2b7   :  { %v7902_v35 = vpop.eup %7901  ;;  %5435 = vst.msk [vmem:[%s11613_s3 + $0x3b0] sm:$0xf] %vm5198_vm3, %v6466_v2  ;;  %7921 = vrcp.f32 %v3389_v62  ;;  %v3387_v57 = vadd.f32 1.0, %v7900_v41  ;;  %v11357_v43 = vadd.f32 %v10939_v4, %v10742_v10  ;;  %v5834_v30 = vmul.f32 -1.442695, %v11333_v56 }
 0x2b8   :  { %v7904_v1 = vpop.eup %7903  ;;  %5310 = vst.msk [vmem:[%s11613_s3 + $0x1bc] sm:$0xf] %vm5198_vm3, %v6341_v54  ;;  %7923 = vrcp.f32 %v3259_v20  ;;  %v3264_v48 = vadd.f32 1.0, %v7902_v35  ;;  %v11362_v26 = vadd.f32 %v10939_v4, %v11838_v7  ;;  %v5962_v16 = vmul.f32 -1.442695, %v11337_v13  ;;  %v11843_v7 = vld [vmem:[#allocation25_spill] sm:$0xff] }
 0x2b9   :  { %v7906_v24 = vpop.eup %7905  ;;  %7925 = vrcp.f32 %v3387_v57  ;;  %v3392_v52 = vadd.f32 1.0, %v7904_v1  ;;  %v5837_v51 = vmul.f32 -1.442695, %v11341_v28  ;;  %v5965_v2 = vmul.f32 -1.442695, %v11345_v42 }
 0x2ba   :  { %v7908_v14 = vpop.eup %7907  ;;  %7927 = vrcp.f32 %v3264_v48  ;;  %v3262_v25 = vadd.f32 1.0, %v7906_v24  ;;  %v5835_v62 = vmul.f32 -1.442695, %v11349_v18  ;;  %v5963_v20 = vmul.f32 -1.442695, %v11353_v61  ;;  %v11839_v24 = vld [vmem:[#allocation24_spill] sm:$0xff] }
 0x2bb   :  { %v7910_v49 = vpop.eup %7909  ;;  %7929 = vrcp.f32 %v3392_v52  ;;  %v3390_v22 = vadd.f32 1.0, %v7908_v14  ;;  %v5840_v35 = vmul.f32 -1.442695, %v11357_v43  ;;  %v5968_v48 = vmul.f32 -1.442695, %v11362_v26 }
 0x2bc   :  { %v7912_v32 = vpop.eup %7911  ;;  %7931 = vrcp.f32 %v3262_v25  ;;  %v3265_v44 = vadd.f32 1.0, %v7910_v49  ;;  %v11375_v52 = vadd.f32 %v10939_v4, %v11839_v24 }
 0x2bd   :  { %v7914_v46 = vpop.eup %7913  ;;  %7933 = vrcp.f32 %v3390_v22  ;;  %v3393_v59 = vadd.f32 1.0, %v7912_v32 }
 0x2be   :  { %v7916_v58 = vpop.eup %7915  ;;  %7935 = vrcp.f32 %v3265_v44  ;;  %v3263_v38 = vadd.f32 1.0, %v7914_v46  ;;  %v11841_v44 = vld [vmem:[#allocation2_spill] sm:$0xff] }
 0x2bf   :  { %v7918_v19 = vpop.eup %7917  ;;  %7937 = vrcp.f32 %v3393_v59  ;;  %v3391_v21 = vadd.f32 1.0, %v7916_v58  ;;  %v11385_v34 = vadd.f32 %v10939_v4, %v11841_v44  ;;  %v11842_v59 = vld [vmem:[#allocation3_spill] sm:$0xff] }
 0x2c0   :  { %v7920_v11 = vpop.eup %7919  ;;  %7939 = vrcp.f32 %v3263_v38  ;;  %v3268_v0 = vadd.f32 1.0, %v7918_v19  ;;  %v11394_v40 = vadd.f32 %v10939_v4, %v11842_v59  ;;  %v5838_v19 = vmul.f32 -1.442695, %v11375_v52 }
 0x2c1   :  { %v7922_v39 = vpop.eup %7921  ;;  %7941 = vrcp.f32 %v3391_v21  ;;  %v3396_v10 = vadd.f32 1.0, %v7920_v11  ;;  %v11409_v11 = vadd.f32 %v10939_v4, %v11843_v7 }
 0x2c2   :  { %v7924_v41 = vpop.eup %7923  ;;  %v4157_v54 = vmul.f32 %v7922_v39, %v11203_v63  ;;  %7943 = vrcp.f32 %v3268_v0  ;;  %v11840_v63 = vld [vmem:[#allocation45_spill] sm:$0xff] }
 0x2c3   :  { %v7926_v57 = vpop.eup %7925  ;;  %v4027_v1 = vmul.f32 %v7924_v41, %v11207_v53  ;;  %7945 = vrcp.f32 %v3396_v10  ;;  %v11380_v22 = vadd.f32 %v10939_v4, %v11840_v63  ;;  %v5841_v10 = vmul.f32 -1.442695, %v11385_v34 }
 0x2c4   :  { %v7928_v14 = vpop.eup %7927  ;;  %v6469_v25 = vpack.c.bf16 %v4157_v54, %v4157_v54  ;;  %v4155_v49 = vmul.f32 %v7926_v57, %v11211_v60  ;;  %7947 = vpow2.f32 %v5834_v30  ;;  %v5969_v41 = vmul.f32 -1.442695, %v11394_v40 }
 0x2c5   :  { %v7930_v33 = vpop.eup %7929  ;;  %v6339_v32 = vpack.c.bf16 %v4027_v1, %v4027_v1  ;;  %v4032_v53 = vmul.f32 %v7928_v14, %v11215_v3  ;;  %7949 = vpow2.f32 %v5962_v16 }
 0x2c6   :  { %v7932_v17 = vpop.eup %7931  ;;  %5438 = vst.msk [vmem:[%s11613_s3 + $0x3bc] sm:$0xf] %vm5198_vm3, %v6469_v25  ;;  %v6467_v60 = vpack.c.bf16 %v4155_v49, %v4155_v49  ;;  %v4160_v46 = vmul.f32 %v7930_v33, %v11219_v47  ;;  %7951 = vpow2.f32 %v5837_v51  ;;  %v5966_v51 = vmul.f32 -1.442695, %v11380_v22 }
 0x2c7   :  { %v7934_v3 = vpop.eup %7933  ;;  %5308 = vst.msk [vmem:[%s11613_s3 + $0x1b4] sm:$0xf] %vm5198_vm3, %v6339_v32  ;;  %v6344_v58 = vpack.c.bf16 %v4032_v53, %v4032_v53  ;;  %v4030_v38 = vmul.f32 %v7932_v17, %v11224_v31  ;;  %7953 = vpow2.f32 %v5965_v2 }
 0x2c8   :  { %v7936_v21 = vpop.eup %7935  ;;  %5436 = vst.msk [vmem:[%s11613_s3 + $0x3b4] sm:$0xf] %vm5198_vm3, %v6467_v60  ;;  %v6472_v47 = vpack.c.bf16 %v4160_v46, %v4160_v46  ;;  %v4158_v30 = vmul.f32 %v7934_v3, %v11229_v5  ;;  %7955 = vpow2.f32 %v5835_v62 }
 0x2c9   :  { %v7938_v0 = vpop.eup %7937  ;;  %5313 = vst.msk [vmem:[%s11613_s3 + $0x1c8] sm:$0xf] %vm5198_vm3, %v6344_v58  ;;  %v6342_v31 = vpack.c.bf16 %v4030_v38, %v4030_v38  ;;  %v4033_v16 = vmul.f32 %v7936_v21, %v11236_v36  ;;  %7957 = vpow2.f32 %v5963_v20  ;;  %v8039_v21 = vld [vmem:[%s11612_s2] ss:$0 sm:$0xff] }
 0x2ca   :  { %v7940_v39 = vpop.eup %7939  ;;  %5441 = vst.msk [vmem:[%s11613_s3 + $0x3c8] sm:$0xf] %vm5198_vm3, %v6472_v47  ;;  %v6470_v4 = vpack.c.bf16 %v4158_v30, %v4158_v30  ;;  %v4161_v5 = vmul.f32 %v7938_v0, %v11242_v23  ;;  %7959 = vpow2.f32 %v5840_v35  ;;  %v5839_v35 = vmul.f32 -1.442695, %v11409_v11  ;;  %v11844_v47 = vld [vmem:[#allocation26_spill] sm:$0xff] }
 0x2cb   :  { %v7942_v2 = vpop.eup %7941  ;;  %5311 = vst.msk [vmem:[%s11613_s3 + $0x1c0] sm:$0xf] %vm5198_vm3, %v6342_v31  ;;  %v6345_v36 = vpack.c.bf16 %v4033_v16, %v4033_v16  ;;  %v4031_v62 = vmul.f32 %v7940_v39, %v11248_v9  ;;  %7961 = vpow2.f32 %v5968_v48  ;;  %v11465_v30 = vadd.f32 %v8039_v21, %v11844_v47 }
 0x2cc   :  { %v7944_v54 = vpop.eup %7943  ;;  %5439 = vst.msk [vmem:[%s11613_s3 + $0x3c0] sm:$0xf] %vm5198_vm3, %v6470_v4  ;;  %v6473_v23 = vpack.c.bf16 %v4161_v5, %v4161_v5  ;;  %v4159_v20 = vmul.f32 %v7942_v2, %v11253_v45  ;;  %7963 = vpow2.f32 %v5838_v19  ;;  %v11468_v7 = vadd.f32 %v8039_v21, %v10852_v55 }
 0x2cd   :  { %v7946_v57 = vpop.eup %7945  ;;  %5314 = vst.msk [vmem:[%s11613_s3 + $0x1cc] sm:$0xf] %vm5198_vm3, %v6345_v36  ;;  %v6343_v9 = vpack.c.bf16 %v4031_v62, %v4031_v62  ;;  %v4036_v1 = vmul.f32 %v7944_v54, %v11270_v29  ;;  %7965 = vpow2.f32 %v5966_v51  ;;  %v11471_v16 = vadd.f32 %v8039_v21, %v10854_v8 }
 0x2ce   :  { %v7948_v48 = vpop.eup %7947  ;;  %5442 = vst.msk [vmem:[%s11613_s3 + $0x3cc] sm:$0xf] %vm5198_vm3, %v6473_v23  ;;  %v6471_v45 = vpack.c.bf16 %v4159_v20, %v4159_v20  ;;  %v4164_v24 = vmul.f32 %v7946_v57, %v11279_v6  ;;  %7967 = vpow2.f32 %v5841_v10  ;;  %v11474_v4 = vadd.f32 %v8039_v21, %v10865_v50 }
 0x2cf   :  { %v7950_v14 = vpop.eup %7949  ;;  %5312 = vst.msk [vmem:[%s11613_s3 + $0x1c4] sm:$0xf] %vm5198_vm3, %v6343_v9  ;;  %v6348_v25 = vpack.c.bf16 %v4036_v1, %v4036_v1  ;;  %v3266_v49 = vadd.f32 1.0, %v7948_v48  ;;  %7969 = vpow2.f32 %v5969_v41  ;;  %v11477_v2 = vadd.f32 %v8039_v21, %v10867_v37 }
 0x2d0   :  { %v7952_v29 = vpop.eup %7951  ;;  %5440 = vst.msk [vmem:[%s11613_s3 + $0x3c4] sm:$0xf] %vm5198_vm3, %v6471_v45  ;;  %v6476_v63 = vpack.c.bf16 %v4164_v24, %v4164_v24  ;;  %v3394_v33 = vadd.f32 1.0, %v7950_v14  ;;  %7971 = vpow2.f32 %v5839_v35  ;;  %v5967_v62 = vmul.f32 -1.442695, %v11465_v30 }
 0x2d1   :  { %v7954_v6 = vpop.eup %7953  ;;  %5317 = vst.msk [vmem:[%s11613_s3 + $0x1d8] sm:$0xf] %vm5198_vm3, %v6348_v25  ;;  %7973 = vrcp.f32 %v3266_v49  ;;  %v3269_v32 = vadd.f32 1.0, %v7952_v29  ;;  %v5844_v8 = vmul.f32 -1.442695, %v11468_v7  ;;  %v11483_v50 = vadd.f32 %v8039_v21, %v10878_v27 }
 0x2d2   :  { %v7956_v53 = vpop.eup %7955  ;;  %5445 = vst.msk [vmem:[%s11613_s3 + $0x3d8] sm:$0xf] %vm5198_vm3, %v6476_v63  ;;  %7975 = vrcp.f32 %v3394_v33  ;;  %v3397_v44 = vadd.f32 1.0, %v7954_v6  ;;  %v5972_v23 = vmul.f32 -1.442695, %v11471_v16  ;;  %v11488_v57 = vadd.f32 %v8039_v21, %v10880_v15 }
 0x2d3   :  { %v7958_v17 = vpop.eup %7957  ;;  %7977 = vrcp.f32 %v3269_v32  ;;  %v3267_v60 = vadd.f32 1.0, %v7956_v53  ;;  %v5842_v37 = vmul.f32 -1.442695, %v11474_v4  ;;  %v5970_v48 = vmul.f32 -1.442695, %v11477_v2 }
 0x2d4   :  { %v7960_v46 = vpop.eup %7959  ;;  %7979 = vrcp.f32 %v3397_v44  ;;  %v3395_v59 = vadd.f32 1.0, %v7958_v17  ;;  %v11493_v45 = vadd.f32 %v8039_v21, %v10888_v12  ;;  %v5973_v33 = vmul.f32 -1.442695, %v11488_v57 }
 0x2d5   :  { %v7962_v3 = vpop.eup %7961  ;;  %7981 = vrcp.f32 %v3267_v60  ;;  %v3272_v58 = vadd.f32 1.0, %v7960_v46 }
 0x2d6   :  { %v7964_v38 = vpop.eup %7963  ;;  %7983 = vrcp.f32 %v3395_v59  ;;  %v3400_v19 = vadd.f32 1.0, %v7962_v3  ;;  %v5843_v53 = vmul.f32 -1.442695, %v11493_v45 }
 0x2d7   :  { %v7966_v0 = vpop.eup %7965  ;;  %7985 = vrcp.f32 %v3272_v58  ;;  %v3270_v31 = vadd.f32 1.0, %v7964_v38 }
 0x2d8   :  { %v7968_v51 = vpop.eup %7967  ;;  %7987 = vrcp.f32 %v3400_v19  ;;  %v3398_v39 = vadd.f32 1.0, %v7966_v0 }
 0x2d9   :  { %v7970_v5 = vpop.eup %7969  ;;  %7989 = vrcp.f32 %v3270_v31  ;;  %v3273_v10 = vadd.f32 1.0, %v7968_v51 }
 0x2da   :  { %v7972_v55 = vpop.eup %7971  ;;  %7991 = vrcp.f32 %v3398_v39  ;;  %v3401_v36 = vadd.f32 1.0, %v7970_v5 }
 0x2db   :  { %v7974_v41 = vpop.eup %7973  ;;  %7993 = vrcp.f32 %v3273_v10  ;;  %v3271_v54 = vadd.f32 1.0, %v7972_v55 }
 0x2dc   :  { %v7976_v20 = vpop.eup %7975  ;;  %v4034_v35 = vmul.f32 %v7974_v41, %v11333_v56  ;;  %7995 = vrcp.f32 %v3401_v36  ;;  %v11845_v56 = vld [vmem:[#allocation27_spill] sm:$0xff] }
 0x2dd   :  { %v7978_v9 = vpop.eup %7977  ;;  %v4162_v1 = vmul.f32 %v7976_v20, %v11337_v13  ;;  %7997 = vrcp.f32 %v3271_v54  ;;  %v11497_v25 = vadd.f32 %v8039_v21, %v11845_v56  ;;  %v5845_v13 = vmul.f32 -1.442695, %v11483_v50 }
 0x2de   :  { %v7980_v27 = vpop.eup %7979  ;;  %v6346_v24 = vpack.c.bf16 %v4034_v35, %v4034_v35  ;;  %v4037_v14 = vmul.f32 %v7978_v9, %v11341_v28  ;;  %7999 = vpow2.f32 %v5967_v62 }
 0x2df   :  { %v7982_v49 = vpop.eup %7981  ;;  %v6474_v15 = vpack.c.bf16 %v4162_v1, %v4162_v1  ;;  %v4165_v29 = vmul.f32 %v7980_v27, %v11345_v42  ;;  %8001 = vpow2.f32 %v5844_v8  ;;  %v5971_v60 = vmul.f32 -1.442695, %v11497_v25 }
 0x2e0   :  { %v7984_v63 = vpop.eup %7983  ;;  %5315 = vst.msk [vmem:[%s11613_s3 + $0x1d0] sm:$0xf] %vm5198_vm3, %v6346_v24  ;;  %v6349_v12 = vpack.c.bf16 %v4037_v14, %v4037_v14  ;;  %v4035_v28 = vmul.f32 %v7982_v49, %v11349_v18  ;;  %8003 = vpow2.f32 %v5972_v23 }
 0x2e1   :  { %v7986_v6 = vpop.eup %7985  ;;  %5443 = vst.msk [vmem:[%s11613_s3 + $0x3d0] sm:$0xf] %vm5198_vm3, %v6474_v15  ;;  %v6477_v42 = vpack.c.bf16 %v4165_v29, %v4165_v29  ;;  %v4163_v32 = vmul.f32 %v7984_v63, %v11353_v61  ;;  %8005 = vpow2.f32 %v5842_v37 }
 0x2e2   :  { %v7988_v44 = vpop.eup %7987  ;;  %5318 = vst.msk [vmem:[%s11613_s3 + $0x1dc] sm:$0xf] %vm5198_vm3, %v6349_v12  ;;  %v6347_v18 = vpack.c.bf16 %v4035_v28, %v4035_v28  ;;  %v4040_v17 = vmul.f32 %v7986_v6, %v11357_v43  ;;  %8007 = vpow2.f32 %v5970_v48 }
 0x2e3   :  { %v7990_v46 = vpop.eup %7989  ;;  %5446 = vst.msk [vmem:[%s11613_s3 + $0x3dc] sm:$0xf] %vm5198_vm3, %v6477_v42  ;;  %v6475_v61 = vpack.c.bf16 %v4163_v32, %v4163_v32  ;;  %v4168_v59 = vmul.f32 %v7988_v44, %v11362_v26  ;;  %8009 = vpow2.f32 %v5845_v13 }
 0x2e4   :  { %v7992_v3 = vpop.eup %7991  ;;  %5316 = vst.msk [vmem:[%s11613_s3 + $0x1d4] sm:$0xf] %vm5198_vm3, %v6347_v18  ;;  %v6352_v43 = vpack.c.bf16 %v4040_v17, %v4040_v17  ;;  %v4038_v58 = vmul.f32 %v7990_v46, %v11375_v52  ;;  %8011 = vpow2.f32 %v5973_v33 }
 0x2e5   :  { %v7994_v38 = vpop.eup %7993  ;;  %5444 = vst.msk [vmem:[%s11613_s3 + $0x3d4] sm:$0xf] %vm5198_vm3, %v6475_v61  ;;  %v6480_v19 = vpack.c.bf16 %v4168_v59, %v4168_v59  ;;  %v4166_v26 = vmul.f32 %v7992_v3, %v11380_v22  ;;  %8013 = vpow2.f32 %v5843_v53 }
 0x2e6   :  { %v7996_v21 = vpop.eup %7995  ;;  %5321 = vst.msk [vmem:[%s11613_s3 + $0x1e8] sm:$0xf] %vm5198_vm3, %v6352_v43  ;;  %v6350_v47 = vpack.c.bf16 %v4038_v58, %v4038_v58  ;;  %v4041_v52 = vmul.f32 %v7994_v38, %v11385_v34  ;;  %8015 = vpow2.f32 %v5971_v60 }
 0x2e7   :  { %v7998_v0 = vpop.eup %7997  ;;  %5449 = vst.msk [vmem:[%s11613_s3 + $0x3e8] sm:$0xf] %vm5198_vm3, %v6480_v19  ;;  %v6478_v31 = vpack.c.bf16 %v4166_v26, %v4166_v26  ;;  %v4169_v22 = vmul.f32 %v7996_v21, %v11394_v40 }
 0x2e8   :  { %v8000_v51 = vpop.eup %7999  ;;  %5319 = vst.msk [vmem:[%s11613_s3 + $0x1e0] sm:$0xf] %vm5198_vm3, %v6350_v47  ;;  %v6353_v39 = vpack.c.bf16 %v4041_v52, %v4041_v52  ;;  %v4039_v5 = vmul.f32 %v7998_v0, %v11409_v11 }
 0x2e9   :  { %v8002_v34 = vpop.eup %8001  ;;  %5447 = vst.msk [vmem:[%s11613_s3 + $0x3e0] sm:$0xf] %vm5198_vm3, %v6478_v31  ;;  %v6481_v10 = vpack.c.bf16 %v4169_v22, %v4169_v22  ;;  %v3399_v55 = vadd.f32 1.0, %v8000_v51 }
 0x2ea   :  { %v8004_v36 = vpop.eup %8003  ;;  %5322 = vst.msk [vmem:[%s11613_s3 + $0x1ec] sm:$0xf] %vm5198_vm3, %v6353_v39  ;;  %v6351_v40 = vpack.c.bf16 %v4039_v5, %v4039_v5  ;;  %v3276_v62 = vadd.f32 1.0, %v8002_v34 }
 0x2eb   :  { %v8006_v8 = vpop.eup %8005  ;;  %5450 = vst.msk [vmem:[%s11613_s3 + $0x3ec] sm:$0xf] %vm5198_vm3, %v6481_v10  ;;  %8017 = vrcp.f32 %v3399_v55  ;;  %v3404_v11 = vadd.f32 1.0, %v8004_v36 }
 0x2ec   :  { %v8008_v41 = vpop.eup %8007  ;;  %5320 = vst.msk [vmem:[%s11613_s3 + $0x1e4] sm:$0xf] %vm5198_vm3, %v6351_v40  ;;  %8019 = vrcp.f32 %v3276_v62  ;;  %v3274_v54 = vadd.f32 1.0, %v8006_v8 }
 0x2ed   :  { %v8010_v23 = vpop.eup %8009  ;;  %8021 = vrcp.f32 %v3404_v11  ;;  %v3402_v20 = vadd.f32 1.0, %v8008_v41 }
 0x2ee   :  { %v8012_v35 = vpop.eup %8011  ;;  %8023 = vrcp.f32 %v3274_v54  ;;  %v3277_v37 = vadd.f32 1.0, %v8010_v23 }
 0x2ef   :  { %v8014_v9 = vpop.eup %8013  ;;  %8025 = vrcp.f32 %v3402_v20  ;;  %v3405_v1 = vadd.f32 1.0, %v8012_v35 }
 0x2f0   :  { %v8016_v48 = vpop.eup %8015  ;;  %8027 = vrcp.f32 %v3277_v37  ;;  %v3275_v27 = vadd.f32 1.0, %v8014_v9 }
 0x2f1   :  { %8029 = vrcp.f32 %v3405_v1  ;;  %v3403_v24 = vadd.f32 1.0, %v8016_v48 }
 0x2f2   :  { %8031 = vrcp.f32 %v3275_v27 }
 0x2f3   :  { %8033 = vrcp.f32 %v3403_v24 }
 0x2f5   :  { %v8018_v14 = vpop.eup %8017 }
 0x2f6   :  { %v8020_v56 = vpop.eup %8019  ;;  %v4167_v49 = vmul.f32 %v8018_v14, %v11465_v30 }
 0x2f7   :  { %v8022_v15 = vpop.eup %8021  ;;  %v4044_v29 = vmul.f32 %v8020_v56, %v11468_v7 }
 0x2f8   :  { %v8024_v13 = vpop.eup %8023  ;;  %v6479_v63 = vpack.c.bf16 %v4167_v49, %v4167_v49  ;;  %v4172_v12 = vmul.f32 %v8022_v15, %v11471_v16 }
 0x2f9   :  { %v8026_v28 = vpop.eup %8025  ;;  %v6356_v33 = vpack.c.bf16 %v4044_v29, %v4044_v29  ;;  %v4042_v6 = vmul.f32 %v8024_v13, %v11474_v4 }
 0x2fa   :  { %v8028_v42 = vpop.eup %8027  ;;  %5448 = vst.msk [vmem:[%s11613_s3 + $0x3e4] sm:$0xf] %vm5198_vm3, %v6479_v63  ;;  %v6484_v32 = vpack.c.bf16 %v4172_v12, %v4172_v12  ;;  %v4170_v30 = vmul.f32 %v8026_v28, %v11477_v2 }
 0x2fb   :  { %v8030_v53 = vpop.eup %8029  ;;  %5325 = vst.msk [vmem:[%s11613_s3 + $0x1f8] sm:$0xf] %vm5198_vm3, %v6356_v33  ;;  %v6354_v7 = vpack.c.bf16 %v4042_v6, %v4042_v6  ;;  %v4045_v16 = vmul.f32 %v8028_v42, %v11483_v50 }
 0x2fc   :  { %v8032_v44 = vpop.eup %8031  ;;  %5453 = vst.msk [vmem:[%s11613_s3 + $0x3f8] sm:$0xf] %vm5198_vm3, %v6484_v32  ;;  %v6482_v4 = vpack.c.bf16 %v4170_v30, %v4170_v30  ;;  %v4173_v18 = vmul.f32 %v8030_v53, %v11488_v57 }
 0x2fd   :  { %v8034_v17 = vpop.eup %8033  ;;  %5323 = vst.msk [vmem:[%s11613_s3 + $0x1f0] sm:$0xf] %vm5198_vm3, %v6354_v7  ;;  %v6357_v2 = vpack.c.bf16 %v4045_v16, %v4045_v16  ;;  %v4043_v60 = vmul.f32 %v8032_v44, %v11493_v45 }
 0x2fe   :  { %5451 = vst.msk [vmem:[%s11613_s3 + $0x3f0] sm:$0xf] %vm5198_vm3, %v6482_v4  ;;  %v6485_v50 = vpack.c.bf16 %v4173_v18, %v4173_v18  ;;  %v4171_v46 = vmul.f32 %v8034_v17, %v11497_v25 }
 0x2ff   :  { %5326 = vst.msk [vmem:[%s11613_s3 + $0x1fc] sm:$0xf] %vm5198_vm3, %v6357_v2  ;;  %v6355_v57 = vpack.c.bf16 %v4043_v60, %v4043_v60 }
 0x300   :  { %5454 = vst.msk [vmem:[%s11613_s3 + $0x3fc] sm:$0xf] %vm5198_vm3, %v6485_v50  ;;  %v6483_v45 = vpack.c.bf16 %v4171_v46, %v4171_v46 }
 0x301   :  { %5324 = vst.msk [vmem:[%s11613_s3 + $0x1f4] sm:$0xf] %vm5198_vm3, %v6355_v57 }
 0x302   :  { %5452 = vst.msk [vmem:[%s11613_s3 + $0x3f4] sm:$0xf] %vm5198_vm3, %v6483_v45 }

// kernel: _forward_impl.6
= control target key start
LH: loop header
LB: loop body
LE: loop exit
PB: predicated region body
PF: predicated region fallthrough
CT: control target
= control target key end

     0   :  { %vm282_vm0 = vcmask 588800   ;;  %vm379_vm1 = vcmask 1043456   ;;  %vm1376_vm2 = vcmask 125952   ;;  %s2979_s1 = inlined_call_operand.vmem [shape: bf16[72,16], index: 1, kind: input, shape index: {}]   ;;  %s2980_s0 = inlined_call_operand.vmem [shape: bf16[512,72], index: 0, kind: input, shape index: {}]   ;;  %s2981_s2 = inlined_call_operand.vmem [shape: f32[1,16], index: 2, kind: input, shape index: {}]   ;;  %s2982_s3 = inlined_call_operand.vmem [shape: bf16[512,16], index: 3, kind: output, shape index: {}]  }
   0x1   :  { %v1830_v0 = vld [vmem:[%s2979_s1] sm:$0xff]   ;;  %v1831_v1 = vld [vmem:[%s2979_s1 + $0x8] sm:$0xff]   ;;  %v1832_v2 = vld [vmem:[%s2979_s1 + $0x10] sm:$0xff]  }
   0x2   :  { %1744 = vmatprep.subr.bf16.mxu0 %v1830_v0  ;;  %1818 = vmatprep.subr.bf16.mxu1 %v1830_v0  ;;  %v1835_v3 = vld [vmem:[%s2980_s0] sm:$0xff]   ;;  %v1833_v5 = vld [vmem:[%s2979_s1 + $0x18] sm:$0xff]   ;;  %v1837_v8 = vld [vmem:[%s2980_s0 + $0x8] sm:$0xff]  }
   0x3   :  { %1745 = vmatpush3.bf16.msra.mxu0 %v1830_v0  ;;  %1823 = vmatpush3.bf16.msra.mxu1 %v1830_v0  ;;  %v1836_v4 = vld [vmem:[%s2980_s0 + $0x80] sm:$0xff]   ;;  %v1838_v9 = vld [vmem:[%s2980_s0 + $0x88] sm:$0xff]   ;;  %v1839_v10 = vld [vmem:[%s2980_s0 + $0x10] sm:$0xff]  }
   0x4   :  { %1746 = vmatprep.subr.bf16.mxu0 %v1831_v1  ;;  %1819 = vmatprep.subr.bf16.mxu1 %v1831_v1  ;;  %v1834_v6 = vld [vmem:[%s2979_s1 + $0x20] ss:$0 sps:$4 sm:$0xff]   ;;  %v1840_v11 = vld [vmem:[%s2980_s0 + $0x90] sm:$0xff]   ;;  %v1841_v12 = vld [vmem:[%s2980_s0 + $0x18] sm:$0xff]  }
   0x5   :  { %1754 = vmatprep.mubr.msk.bf16.mxu0 %vm282_vm0, %v1835_v3  ;;  %1786 = vmatprep.mubr.msk.bf16.mxu1 %vm282_vm0, %v1836_v4  ;;  %v381_v7 = vsel %vm379_vm1, %v1834_v6, 0  ;;  %v1842_v13 = vld [vmem:[%s2980_s0 + $0x98] sm:$0xff]   ;;  %v1843_v14 = vld [vmem:[%s2980_s0 + $0x20] sm:$0xff]   ;;  %v1845_v16 = vld [vmem:[%s2980_s0 + $0x28] sm:$0xff]  }
   0x6   :  { %v1844_v15 = vld [vmem:[%s2980_s0 + $0xa0] sm:$0xff]   ;;  %v1846_v17 = vld [vmem:[%s2980_s0 + $0xa8] sm:$0xff]   ;;  %v1847_v18 = vld [vmem:[%s2980_s0 + $0x30] sm:$0xff]  }
   0x7   :  { %1747 = vmatpush3.bf16.msra.mxu0 %v1831_v1  ;;  %1824 = vmatpush3.bf16.msra.mxu1 %v1831_v1  ;;  %v1848_v19 = vld [vmem:[%s2980_s0 + $0xb0] sm:$0xff]   ;;  %v1849_v20 = vld [vmem:[%s2980_s0 + $0x38] sm:$0xff]   ;;  %v1851_v22 = vld [vmem:[%s2980_s0 + $0x40] sm:$0xff]  }
   0x8   :  { %1748 = vmatprep.subr.bf16.mxu0 %v1832_v2  ;;  %1820 = vmatprep.subr.bf16.mxu1 %v1832_v2  ;;  %v1850_v21 = vld [vmem:[%s2980_s0 + $0xb8] sm:$0xff]   ;;  %v1852_v23 = vld [vmem:[%s2980_s0 + $0xc0] sm:$0xff]   ;;  %v1853_v24 = vld [vmem:[%s2980_s0 + $0x48] sm:$0xff]  }
   0x9   :  { %v1854_v25 = vld [vmem:[%s2980_s0 + $0xc8] sm:$0xff]   ;;  %v1855_v26 = vld [vmem:[%s2980_s0 + $0x50] sm:$0xff]   ;;  %v1857_v28 = vld [vmem:[%s2980_s0 + $0x58] sm:$0xff]  }
   0xa   :  { %v1856_v27 = vld [vmem:[%s2980_s0 + $0xd0] sm:$0xff]   ;;  %v1858_v29 = vld [vmem:[%s2980_s0 + $0xd8] sm:$0xff]   ;;  %v1859_v30 = vld [vmem:[%s2980_s0 + $0x60] sm:$0xff]  }
   0xb   :  { %1749 = vmatpush3.bf16.msra.mxu0 %v1832_v2  ;;  %1825 = vmatpush3.bf16.msra.mxu1 %v1832_v2  ;;  %v1860_v31 = vld [vmem:[%s2980_s0 + $0xe0] sm:$0xff]   ;;  %v1861_v32 = vld [vmem:[%s2980_s0 + $0x68] sm:$0xff]   ;;  %v1863_v34 = vld [vmem:[%s2980_s0 + $0x70] sm:$0xff]  }
   0xc   :  { %1750 = vmatprep.subr.bf16.mxu0 %v1833_v5  ;;  %1821 = vmatprep.subr.bf16.mxu1 %v1833_v5  ;;  %v1862_v33 = vld [vmem:[%s2980_s0 + $0xe8] sm:$0xff]   ;;  %v1864_v35 = vld [vmem:[%s2980_s0 + $0xf0] sm:$0xff]   ;;  %v1865_v36 = vld [vmem:[%s2980_s0 + $0x78] sm:$0xff]  }
   0xd   :  { %v1866_v37 = vld [vmem:[%s2980_s0 + $0xf8] sm:$0xff]   ;;  %v2290_v38 = vld [vmem:[%s2981_s2] ss:$0 sm:$0xff] }
   0xf   :  { %1751 = vmatpush3.bf16.msra.mxu0 %v1833_v5  ;;  %1826 = vmatpush3.bf16.msra.mxu1 %v1833_v5 }
  0x10   :  { %1828 = vmatprep.subr.msk.bf16.mxu0 %vm379_vm1, %v1834_v6  ;;  %1829 = vmatprep.subr.msk.bf16.mxu1 %vm379_vm1, %v1834_v6 }
  0x13   :  { %1753 = vmatpush3.bf16.msra.mxu0 %v381_v7  ;;  %1827 = vmatpush3.bf16.msra.mxu1 %v381_v7 }
  0x16   :  { %1755 = vmatmul.mubr.msk.bf16.vlgmr.msra.gmra.mrb[0].mxu0 %vm282_vm0, %v1837_v8  ;;  %1787 = vmatmul.mubr.msk.bf16.vlgmr.msra.gmra.mrb[0].mxu1 %vm282_vm0, %v1838_v9 }
  0x17   :  { %1758 = vmatprep.mubr.msk.bf16.mxu0 %vm282_vm0, %v1839_v10  ;;  %1790 = vmatprep.mubr.msk.bf16.mxu1 %vm282_vm0, %v1840_v11 }
  0x1e   :  { %1759 = vmatmul.mubr.msk.bf16.gmra.mrb[4].mxu0 %vm282_vm0, %v1841_v12  ;;  %1791 = vmatmul.mubr.msk.bf16.gmra.mrb[4].mxu1 %vm282_vm0, %v1842_v13 }
  0x1f   :  { %1762 = vmatprep.mubr.msk.bf16.mxu0 %vm282_vm0, %v1843_v14  ;;  %1794 = vmatprep.mubr.msk.bf16.mxu1 %vm282_vm0, %v1844_v15 }
  0x26   :  { %1763 = vmatmul.mubr.msk.bf16.gmra.mrb[8].mxu0 %vm282_vm0, %v1845_v16  ;;  %1795 = vmatmul.mubr.msk.bf16.gmra.mrb[8].mxu1 %vm282_vm0, %v1846_v17 }
  0x27   :  { %1766 = vmatprep.mubr.msk.bf16.mxu0 %vm282_vm0, %v1847_v18  ;;  %1798 = vmatprep.mubr.msk.bf16.mxu1 %vm282_vm0, %v1848_v19 }
  0x2e   :  { %1767 = vmatmul.mubr.msk.bf16.gmra.mrb[12].mxu0 %vm282_vm0, %v1849_v20  ;;  %1799 = vmatmul.mubr.msk.bf16.gmra.mrb[12].mxu1 %vm282_vm0, %v1850_v21 }
  0x2f   :  { %1770 = vmatprep.mubr.msk.bf16.mxu0 %vm282_vm0, %v1851_v22  ;;  %1802 = vmatprep.mubr.msk.bf16.mxu1 %vm282_vm0, %v1852_v23 }
  0x36   :  { %1771 = vmatmul.mubr.msk.bf16.gmra.mrb[16].mxu0 %vm282_vm0, %v1853_v24  ;;  %1803 = vmatmul.mubr.msk.bf16.gmra.mrb[16].mxu1 %vm282_vm0, %v1854_v25 }
  0x37   :  { %1774 = vmatprep.mubr.msk.bf16.mxu0 %vm282_vm0, %v1855_v26  ;;  %1806 = vmatprep.mubr.msk.bf16.mxu1 %vm282_vm0, %v1856_v27 }
  0x3e   :  { %1775 = vmatmul.mubr.msk.bf16.gmra.mrb[20].mxu0 %vm282_vm0, %v1857_v28  ;;  %1807 = vmatmul.mubr.msk.bf16.gmra.mrb[20].mxu1 %vm282_vm0, %v1858_v29 }
  0x3f   :  { %1778 = vmatprep.mubr.msk.bf16.mxu0 %vm282_vm0, %v1859_v30  ;;  %1810 = vmatprep.mubr.msk.bf16.mxu1 %vm282_vm0, %v1860_v31 }
  0x46   :  { %1779 = vmatmul.mubr.msk.bf16.gmra.mrb[24].mxu0 %vm282_vm0, %v1861_v32  ;;  %1811 = vmatmul.mubr.msk.bf16.gmra.mrb[24].mxu1 %vm282_vm0, %v1862_v33 }
  0x47   :  { %1782 = vmatprep.mubr.msk.bf16.mxu0 %vm282_vm0, %v1863_v34  ;;  %1814 = vmatprep.mubr.msk.bf16.mxu1 %vm282_vm0, %v1864_v35 }
  0x4e   :  { %1783 = vmatmul.mubr.msk.bf16.gmra.mrb[28].mxu0 %vm282_vm0, %v1865_v36  ;;  %1815 = vmatmul.mubr.msk.bf16.gmra.mrb[28].mxu1 %vm282_vm0, %v1866_v37 }
  0xe9   :  { %v1756_v39 = vpop.f32.mrb[0].mxu0  ;;  %v1788_v40 = vpop.f32.mrb[0].mxu1 }
  0xea   :  { %v2293_v41 = vadd.f32 %v1756_v39, %v2290_v38  ;;  %v2296_v42 = vadd.f32 %v1788_v40, %v2290_v38  ;;  %v417_v43 = vpop.f32.mrb[1].mxu0  ;;  %v545_v44 = vpop.f32.mrb[1].mxu1 }
  0xeb   :  { %v2299_v45 = vadd.f32 %v2290_v38, %v417_v43  ;;  %v2302_v46 = vadd.f32 %v2290_v38, %v545_v44  ;;  %v1757_v47 = vpop.f32.mrb[2].mxu0  ;;  %v1789_v48 = vpop.f32.mrb[2].mxu1 }
  0xec   :  { %v1517_v49 = vmul.f32 -1.442695, %v2293_v41  ;;  %v1549_v50 = vmul.f32 -1.442695, %v2296_v42  ;;  %v2307_v51 = vadd.f32 %v1757_v47, %v2290_v38  ;;  %v2310_v52 = vadd.f32 %v1789_v48, %v2290_v38  ;;  %v420_v53 = vpop.f32.mrb[3].mxu0  ;;  %v548_v54 = vpop.f32.mrb[3].mxu1 }
  0xed   :  { %v1515_v55 = vmul.f32 -1.442695, %v2299_v45  ;;  %v1547_v56 = vmul.f32 -1.442695, %v2302_v46  ;;  %v2315_v57 = vadd.f32 %v2290_v38, %v420_v53  ;;  %v2318_v58 = vadd.f32 %v2290_v38, %v548_v54 }
  0xee   :  { %1867 = vpow2.f32 %v1517_v49  ;;  %v1518_v59 = vmul.f32 -1.442695, %v2307_v51  ;;  %v1550_v60 = vmul.f32 -1.442695, %v2310_v52 }
  0xef   :  { %1869 = vpow2.f32 %v1549_v50  ;;  %v1516_v61 = vmul.f32 -1.442695, %v2315_v57  ;;  %v1548_v62 = vmul.f32 -1.442695, %v2318_v58 }
  0xf0   :  { %1871 = vpow2.f32 %v1515_v55 }
  0xf1   :  { %1873 = vpow2.f32 %v1547_v56  ;;  %v1760_v63 = vpop.f32.mrb[4].mxu0  ;;  %v1792_v0 = vpop.f32.mrb[4].mxu1 }
  0xf2   :  { %1875 = vpow2.f32 %v1518_v59  ;;  %v2325_v1 = vadd.f32 %v1760_v63, %v2290_v38  ;;  %v2328_v2 = vadd.f32 %v1792_v0, %v2290_v38  ;;  %v433_v3 = vpop.f32.mrb[5].mxu0  ;;  %v561_v4 = vpop.f32.mrb[5].mxu1 }
  0xf3   :  { %1877 = vpow2.f32 %v1550_v60  ;;  %v2331_v5 = vadd.f32 %v2290_v38, %v433_v3  ;;  %v2334_v6 = vadd.f32 %v2290_v38, %v561_v4  ;;  %v1761_v7 = vpop.f32.mrb[6].mxu0  ;;  %v1793_v8 = vpop.f32.mrb[6].mxu1 }
  0xf4   :  { %1879 = vpow2.f32 %v1516_v61  ;;  %v1521_v9 = vmul.f32 -1.442695, %v2325_v1  ;;  %v1553_v10 = vmul.f32 -1.442695, %v2328_v2  ;;  %v2339_v11 = vadd.f32 %v1761_v7, %v2290_v38  ;;  %v436_v12 = vpop.f32.mrb[7].mxu0  ;;  %v564_v13 = vpop.f32.mrb[7].mxu1 }
  0xf5   :  { %1881 = vpow2.f32 %v1548_v62  ;;  %v1519_v14 = vmul.f32 -1.442695, %v2331_v5  ;;  %v1551_v15 = vmul.f32 -1.442695, %v2334_v6  ;;  %v2345_v35 = vadd.f32 %v1793_v8, %v2290_v38 }
  0xf6   :  { %1883 = vpow2.f32 %v1521_v9  ;;  %v1522_v16 = vmul.f32 -1.442695, %v2339_v11  ;;  %v2348_v40 = vadd.f32 %v2290_v38, %v436_v12  ;;  %v2351_v47 = vadd.f32 %v2290_v38, %v564_v13 }
  0xf7   :  { %1885 = vpow2.f32 %v1553_v10  ;;  %v1554_v55 = vmul.f32 -1.442695, %v2345_v35 }
  0xf8   :  { %v1868_v17 = vpop.eup %1867  ;;  %1887 = vpow2.f32 %v1519_v14  ;;  %v1520_v62 = vmul.f32 -1.442695, %v2348_v40  ;;  %v1552_v8 = vmul.f32 -1.442695, %v2351_v47 }
  0xf9   :  { %v1870_v18 = vpop.eup %1869  ;;  %v866_v19 = vadd.f32 1.0, %v1868_v17  ;;  %1889 = vpow2.f32 %v1551_v15  ;;  %v1764_v20 = vpop.f32.mrb[8].mxu0 }
  0xfa   :  { %v1796_v21 = vpop.f32.mrb[8].mxu1  ;;  %v1872_v22 = vpop.eup %1871  ;;  %v898_v23 = vadd.f32 1.0, %v1870_v18  ;;  %1891 = vpow2.f32 %v1522_v16  ;;  %v2354_v50 = vadd.f32 %v1764_v20, %v2290_v38 }
  0xfb   :  { %v449_v24 = vpop.f32.mrb[9].mxu0  ;;  %v577_v25 = vpop.f32.mrb[9].mxu1  ;;  %1893 = vrcp.f32 %v866_v19  ;;  %v864_v27 = vadd.f32 1.0, %v1872_v22  ;;  %v2358_v56 = vadd.f32 %v1796_v21, %v2290_v38 }
  0xfc   :  { %v1874_v26 = vpop.eup %1873  ;;  %v1765_v28 = vpop.f32.mrb[10].mxu0  ;;  %1895 = vrcp.f32 %v898_v23  ;;  %v2364_v63 = vadd.f32 %v2290_v38, %v449_v24  ;;  %v2372_v9 = vadd.f32 %v2290_v38, %v577_v25  ;;  %v1525_v15 = vmul.f32 -1.442695, %v2354_v50 }
  0xfd   :  { %v1797_v29 = vpop.f32.mrb[10].mxu1  ;;  %v1876_v30 = vpop.eup %1875  ;;  %v896_v31 = vadd.f32 1.0, %v1874_v26  ;;  %1897 = vrcp.f32 %v864_v27  ;;  %v1557_v20 = vmul.f32 -1.442695, %v2358_v56  ;;  %v2385_v21 = vadd.f32 %v1765_v28, %v2290_v38 }
  0xfe   :  { %v452_v32 = vpop.f32.mrb[11].mxu0  ;;  %v1878_v33 = vpop.eup %1877  ;;  %v867_v34 = vadd.f32 1.0, %v1876_v30  ;;  %v1523_v25 = vmul.f32 -1.442695, %v2364_v63  ;;  %v2392_v26 = vadd.f32 %v1797_v29, %v2290_v38 }
  0xff   :  { %v580_v36 = vpop.f32.mrb[11].mxu1  ;;  %v1880_v37 = vpop.eup %1879  ;;  %1899 = vrcp.f32 %v896_v31  ;;  %v899_v39 = vadd.f32 1.0, %v1878_v33  ;;  %v1555_v31 = vmul.f32 -1.442695, %v2372_v9  ;;  %v2397_v28 = vadd.f32 %v2290_v38, %v452_v32 }
 0x100   :  { %v1882_v43 = vpop.eup %1881  ;;  %1901 = vrcp.f32 %v867_v34  ;;  %v865_v44 = vadd.f32 1.0, %v1880_v37 }
 0x101   :  { %v1884_v48 = vpop.eup %1883  ;;  %1903 = vrcp.f32 %v899_v39  ;;  %v897_v49 = vadd.f32 1.0, %v1882_v43  ;;  %v2360_v59 = vpop.f32.mrb[12].mxu0 }
 0x102   :  { %v1886_v53 = vpop.eup %1885  ;;  %1905 = vrcp.f32 %v865_v44  ;;  %v870_v54 = vadd.f32 1.0, %v1884_v48  ;;  %v2366_v0 = vpop.f32.mrb[12].mxu1 }
 0x103   :  { %v1888_v60 = vpop.eup %1887  ;;  %1907 = vrcp.f32 %v897_v49  ;;  %v902_v61 = vadd.f32 1.0, %v1886_v53  ;;  %v2368_v3 = vpop.f32.mrb[13].mxu0  ;;  %v1558_v49 = vmul.f32 -1.442695, %v2392_v26 }
 0x104   :  { %v1890_v4 = vpop.eup %1889  ;;  %1909 = vrcp.f32 %v870_v54  ;;  %v868_v7 = vadd.f32 1.0, %v1888_v60  ;;  %v2374_v10 = vpop.f32.mrb[13].mxu1 }
 0x105   :  { %v2376_v12 = vpop.f32.mrb[14].mxu0  ;;  %v1892_v13 = vpop.eup %1891  ;;  %1911 = vrcp.f32 %v902_v61  ;;  %v900_v14 = vadd.f32 1.0, %v1890_v4 }
 0x106   :  { %v2379_v16 = vpop.f32.mrb[14].mxu1  ;;  %v2381_v17 = vpop.f32.mrb[15].mxu0  ;;  %1913 = vrcp.f32 %v868_v7  ;;  %v871_v19 = vadd.f32 1.0, %v1892_v13 }
 0x107   :  { %v1894_v18 = vpop.eup %1893  ;;  %v2387_v22 = vpop.f32.mrb[15].mxu1  ;;  %1915 = vrcp.f32 %v900_v14 }
 0x108   :  { %v1896_v23 = vpop.eup %1895  ;;  %v1058_v24 = vmul.f32 %v1894_v18, %v2293_v41  ;;  %1917 = vrcp.f32 %v871_v19  ;;  %v2401_v41 = vadd.f32 %v2290_v38, %v580_v36 }
 0x109   :  { %v1898_v27 = vpop.eup %1897  ;;  %v1090_v30 = vmul.f32 %v1896_v23, %v2296_v42  ;;  %1919 = vpow2.f32 %v1554_v55  ;;  %v1526_v42 = vmul.f32 -1.442695, %v2385_v21  ;;  %v2405_v44 = vpop.f32.mrb[16].mxu0 }
 0x10a   :  { %v1900_v33 = vpop.eup %1899  ;;  %v1645_v34 = vpack.c.bf16 %v1058_v24, %v1058_v24  ;;  %v1056_v37 = vmul.f32 %v1898_v27, %v2299_v45  ;;  %1921 = vpow2.f32 %v1520_v62  ;;  %v2407_v48 = vpop.f32.mrb[16].mxu1  ;;  %v1556_v23 = vmul.f32 -1.442695, %v2401_v41 }
 0x10b   :  { %v1902_v39 = vpop.eup %1901  ;;  %v1677_v29 = vpack.c.bf16 %v1090_v30, %v1090_v30  ;;  %v1088_v43 = vmul.f32 %v1900_v33, %v2302_v46  ;;  %1923 = vpow2.f32 %v1552_v8  ;;  %v2415_v46 = vpop.f32.mrb[17].mxu0 }
 0x10c   :  { %v1904_v32 = vpop.eup %1903  ;;  %1379 = vst.msk [vmem:[%s2982_s3 + $0x8] sm:$0xf] %vm1376_vm2, %v1645_v34  ;;  %v1643_v45 = vpack.c.bf16 %v1056_v37, %v1056_v37  ;;  %v1059_v36 = vmul.f32 %v1902_v39, %v2307_v51  ;;  %v2417_v53 = vpop.f32.mrb[17].mxu1  ;;  %1925 = vpow2.f32 %v1525_v15  ;;  %v2426_v51 = vadd.f32 %v2360_v59, %v2290_v38 }
 0x10d   :  { %v1906_v54 = vpop.eup %1905  ;;  %1411 = vst.msk [vmem:[%s2982_s3 + $0x88] sm:$0xf] %vm1376_vm2, %v1677_v29  ;;  %v1675_v55 = vpack.c.bf16 %v1088_v43, %v1088_v43  ;;  %v1091_v60 = vmul.f32 %v1904_v32, %v2310_v52  ;;  %v2428_v61 = vpop.f32.mrb[18].mxu0  ;;  %1927 = vpow2.f32 %v1557_v20  ;;  %v2439_v52 = vadd.f32 %v2366_v0, %v2290_v38 }
 0x10e   :  { %v2430_v62 = vpop.f32.mrb[18].mxu1  ;;  %v1908_v4 = vpop.eup %1907  ;;  %1377 = vst.msk [vmem:[%s2982_s3] sm:$0xf] %vm1376_vm2, %v1643_v45  ;;  %v1646_v7 = vpack.c.bf16 %v1059_v36, %v1059_v36  ;;  %v1057_v8 = vmul.f32 %v1906_v54, %v2315_v57  ;;  %1929 = vpow2.f32 %v1523_v25  ;;  %v1524_v57 = vmul.f32 -1.442695, %v2397_v28 }
 0x10f   :  { %v2441_v59 = vpop.f32.mrb[19].mxu0  ;;  %v2443_v13 = vpop.f32.mrb[19].mxu1  ;;  %1409 = vst.msk [vmem:[%s2982_s3 + $0x80] sm:$0xf] %vm1376_vm2, %v1675_v55  ;;  %v1678_v15 = vpack.c.bf16 %v1091_v60, %v1091_v60  ;;  %v1089_v18 = vmul.f32 %v1908_v4, %v2318_v58  ;;  %1931 = vpow2.f32 %v1555_v31  ;;  %v1529_v27 = vmul.f32 -1.442695, %v2426_v51 }
 0x110   :  { %v1910_v14 = vpop.eup %1909  ;;  %1380 = vst.msk [vmem:[%s2982_s3 + $0xc] sm:$0xf] %vm1376_vm2, %v1646_v7  ;;  %v1644_v0 = vpack.c.bf16 %v1057_v8, %v1057_v8  ;;  %1933 = vpow2.f32 %v1526_v42  ;;  %v1561_v33 = vmul.f32 -1.442695, %v2439_v52 }
 0x111   :  { %v1912_v19 = vpop.eup %1911  ;;  %v1062_v20 = vmul.f32 %v1910_v14, %v2325_v1  ;;  %1412 = vst.msk [vmem:[%s2982_s3 + $0x8c] sm:$0xf] %vm1376_vm2, %v1678_v15  ;;  %v1676_v58 = vpack.c.bf16 %v1089_v18, %v1089_v18  ;;  %1935 = vpow2.f32 %v1558_v49  ;;  %v2474_v39 = vpop.f32.mrb[20].mxu0 }
 0x112   :  { %v1914_v24 = vpop.eup %1913  ;;  %v1094_v25 = vmul.f32 %v1912_v19, %v2328_v2  ;;  %1378 = vst.msk [vmem:[%s2982_s3 + $0x4] sm:$0xf] %vm1376_vm2, %v1644_v0  ;;  %1937 = vpow2.f32 %v1524_v57  ;;  %v2476_v29 = vpop.f32.mrb[20].mxu1  ;;  %v2513_v19 = vadd.f32 %v2290_v38, %v2368_v3  ;;  %v2522_v3 = vadd.f32 %v2290_v38, %v2374_v10 }
 0x113   :  { %v1916_v30 = vpop.eup %1915  ;;  %v1649_v1 = vpack.c.bf16 %v1062_v20, %v1062_v20  ;;  %v1060_v31 = vmul.f32 %v1914_v24, %v2331_v5  ;;  %1410 = vst.msk [vmem:[%s2982_s3 + $0x84] sm:$0xf] %vm1376_vm2, %v1676_v58  ;;  %1939 = vpow2.f32 %v1556_v23  ;;  %v2483_v32 = vpop.f32.mrb[21].mxu0 }
 0x114   :  { %v1918_v34 = vpop.eup %1917  ;;  %v1681_v2 = vpack.c.bf16 %v1094_v25, %v1094_v25  ;;  %v1092_v37 = vmul.f32 %v1916_v30, %v2334_v6  ;;  %v2485_v45 = vpop.f32.mrb[21].mxu1  ;;  %1941 = vpow2.f32 %v1529_v27 }
 0x115   :  { %v1920_v43 = vpop.eup %1919  ;;  %1383 = vst.msk [vmem:[%s2982_s3 + $0x18] sm:$0xf] %vm1376_vm2, %v1649_v1  ;;  %v1647_v5 = vpack.c.bf16 %v1060_v31, %v1060_v31  ;;  %v1063_v42 = vmul.f32 %v1918_v34, %v2339_v11  ;;  %v2491_v54 = vpop.f32.mrb[22].mxu0  ;;  %1943 = vpow2.f32 %v1561_v33  ;;  %v1527_v33 = vmul.f32 -1.442695, %v2513_v19 }
 0x116   :  { %v1922_v6 = vpop.eup %1921  ;;  %1415 = vst.msk [vmem:[%s2982_s3 + $0x98] sm:$0xf] %vm1376_vm2, %v1681_v2  ;;  %v1679_v36 = vpack.c.bf16 %v1092_v37, %v1092_v37  ;;  %v903_v49 = vadd.f32 1.0, %v1920_v43  ;;  %v2493_v55 = vpop.f32.mrb[22].mxu1 }
 0x117   :  { %v1924_v60 = vpop.eup %1923  ;;  %1381 = vst.msk [vmem:[%s2982_s3 + $0x10] sm:$0xf] %vm1376_vm2, %v1647_v5  ;;  %v1650_v11 = vpack.c.bf16 %v1063_v42, %v1063_v42  ;;  %v869_v4 = vadd.f32 1.0, %v1922_v6  ;;  %v2499_v7 = vpop.f32.mrb[23].mxu0  ;;  %v2530_v5 = vadd.f32 %v2376_v12, %v2290_v38  ;;  %v2534_v42 = vadd.f32 %v2379_v16, %v2290_v38 }
 0x118   :  { %v2501_v8 = vpop.f32.mrb[23].mxu1  ;;  %v1926_v14 = vpop.eup %1925  ;;  %1413 = vst.msk [vmem:[%s2982_s3 + $0x90] sm:$0xf] %vm1376_vm2, %v1679_v36  ;;  %1945 = vrcp.f32 %v903_v49  ;;  %v901_v15 = vadd.f32 1.0, %v1924_v60  ;;  %v2542_v60 = vadd.f32 %v2290_v38, %v2381_v17 }
 0x119   :  { %v1928_v18 = vpop.eup %1927  ;;  %1384 = vst.msk [vmem:[%s2982_s3 + $0x1c] sm:$0xf] %vm1376_vm2, %v1650_v11  ;;  %1947 = vrcp.f32 %v869_v4  ;;  %v874_v57 = vadd.f32 1.0, %v1926_v14  ;;  %v2515_v27 = vpop.f32.mrb[24].mxu0  ;;  %v2546_v11 = vadd.f32 %v2290_v38, %v2387_v22  ;;  %v1559_v22 = vmul.f32 -1.442695, %v2522_v3 }
 0x11a   :  { %v1930_v0 = vpop.eup %1929  ;;  %1949 = vrcp.f32 %v901_v15  ;;  %v906_v20 = vadd.f32 1.0, %v1928_v18  ;;  %v2517_v30 = vpop.f32.mrb[24].mxu1  ;;  %v2554_v15 = vadd.f32 %v2405_v44, %v2290_v38  ;;  %v2558_v18 = vadd.f32 %v2407_v48, %v2290_v38 }
 0x11b   :  { %v1932_v23 = vpop.eup %1931  ;;  %1951 = vrcp.f32 %v874_v57  ;;  %v872_v24 = vadd.f32 1.0, %v1930_v0  ;;  %v2524_v34 = vpop.f32.mrb[25].mxu0  ;;  %v2563_v0 = vadd.f32 %v2290_v38, %v2415_v46  ;;  %v1562_v44 = vmul.f32 -1.442695, %v2534_v42 }
 0x11c   :  { %v1934_v58 = vpop.eup %1933  ;;  %1953 = vrcp.f32 %v906_v20  ;;  %v904_v25 = vadd.f32 1.0, %v1932_v23  ;;  %v2526_v2 = vpop.f32.mrb[25].mxu1  ;;  %v1533_v46 = vmul.f32 -1.442695, %v2554_v15 }
 0x11d   :  { %v1936_v1 = vpop.eup %1935  ;;  %1955 = vrcp.f32 %v872_v24  ;;  %v875_v31 = vadd.f32 1.0, %v1934_v58  ;;  %v2536_v6 = vpop.f32.mrb[26].mxu0  ;;  %v1530_v24 = vmul.f32 -1.442695, %v2530_v5 }
 0x11e   :  { %v1938_v37 = vpop.eup %1937  ;;  %1957 = vrcp.f32 %v904_v25  ;;  %v907_v43 = vadd.f32 1.0, %v1936_v1  ;;  %v2538_v36 = vpop.f32.mrb[26].mxu1  ;;  %v1528_v25 = vmul.f32 -1.442695, %v2542_v60  ;;  %v1560_v1 = vmul.f32 -1.442695, %v2546_v11 }
 0x11f   :  { %v1940_v10 = vpop.eup %1939  ;;  %1959 = vrcp.f32 %v875_v31  ;;  %v873_v49 = vadd.f32 1.0, %v1938_v37  ;;  %v2548_v12 = vpop.f32.mrb[27].mxu0 }
 0x120   :  { %v2550_v4 = vpop.f32.mrb[27].mxu1  ;;  %v1942_v16 = vpop.eup %1941  ;;  %1961 = vrcp.f32 %v907_v43  ;;  %v905_v14 = vadd.f32 1.0, %v1940_v10  ;;  %v1565_v43 = vmul.f32 -1.442695, %v2558_v18 }
 0x121   :  { %v1944_v17 = vpop.eup %1943  ;;  %1963 = vrcp.f32 %v873_v49  ;;  %v878_v57 = vadd.f32 1.0, %v1942_v16  ;;  %v2573_v10 = vpop.f32.mrb[28].mxu0 }
 0x122   :  { %v1946_v20 = vpop.eup %1945  ;;  %1965 = vrcp.f32 %v905_v14  ;;  %v910_v23 = vadd.f32 1.0, %v1944_v17  ;;  %2983 = vst [vmem:[#allocation2_spill] sm:$0xff] %v2573_v10  ;;  %v2575_v49 = vpop.f32.mrb[28].mxu1  ;;  %v1531_v17 = vmul.f32 -1.442695, %v2563_v0  ;;  %v2586_v10 = vadd.f32 %v2290_v38, %v2417_v53 }
 0x123   :  { %v1948_v58 = vpop.eup %1947  ;;  %v1095_v48 = vmul.f32 %v1946_v20, %v2345_v35  ;;  %1967 = vrcp.f32 %v878_v57  ;;  %2984 = vst [vmem:[#allocation3_spill] sm:$0xff] %v2575_v49  ;;  %v2579_v57 = vpop.f32.mrb[29].mxu0 }
 0x124   :  { %v1950_v31 = vpop.eup %1949  ;;  %v1061_v37 = vmul.f32 %v1948_v58, %v2348_v40  ;;  %1969 = vrcp.f32 %v910_v23  ;;  %v2581_v20 = vpop.f32.mrb[29].mxu1 }
 0x125   :  { %v1952_v16 = vpop.eup %1951  ;;  %v1682_v14 = vpack.c.bf16 %v1095_v48, %v1095_v48  ;;  %v1093_v35 = vmul.f32 %v1950_v31, %v2351_v47  ;;  %1971 = vpow2.f32 %v1527_v33  ;;  %v2588_v49 = vpop.f32.mrb[30].mxu0 }
 0x126   :  { %v1954_v40 = vpop.eup %1953  ;;  %v1648_v23 = vpack.c.bf16 %v1061_v37, %v1061_v37  ;;  %v1066_v58 = vmul.f32 %v1952_v16, %v2354_v50  ;;  %1973 = vpow2.f32 %v1559_v22  ;;  %v2590_v48 = vpop.f32.mrb[30].mxu1  ;;  %v2599_v50 = vadd.f32 %v2428_v61, %v2290_v38 }
 0x127   :  { %v1956_v47 = vpop.eup %1955  ;;  %1416 = vst.msk [vmem:[%s2982_s3 + $0x9c] sm:$0xf] %vm1376_vm2, %v1682_v14  ;;  %v1680_v33 = vpack.c.bf16 %v1093_v35, %v1093_v35  ;;  %v1098_v31 = vmul.f32 %v1954_v40, %v2358_v56  ;;  %1975 = vpow2.f32 %v1530_v24  ;;  %v2601_v53 = vpop.f32.mrb[31].mxu0  ;;  %v2612_v56 = vadd.f32 %v2430_v62, %v2290_v38 }
 0x128   :  { %v2603_v22 = vpop.f32.mrb[31].mxu1  ;;  %v1958_v37 = vpop.eup %1957  ;;  %1382 = vst.msk [vmem:[%s2982_s3 + $0x14] sm:$0xf] %vm1376_vm2, %v1648_v23  ;;  %v1653_v16 = vpack.c.bf16 %v1066_v58, %v1066_v58  ;;  %v1064_v14 = vmul.f32 %v1956_v47, %v2364_v63  ;;  %1977 = vpow2.f32 %v1562_v44  ;;  %v2621_v40 = vadd.f32 %v2290_v38, %v2441_v59 }
 0x129   :  { %v1960_v61 = vpop.eup %1959  ;;  %1414 = vst.msk [vmem:[%s2982_s3 + $0x94] sm:$0xf] %vm1376_vm2, %v1680_v33  ;;  %v1685_v24 = vpack.c.bf16 %v1098_v31, %v1098_v31  ;;  %v1096_v35 = vmul.f32 %v1958_v37, %v2372_v9  ;;  %1979 = vpow2.f32 %v1528_v25  ;;  %v1563_v23 = vmul.f32 -1.442695, %v2586_v10 }
 0x12a   :  { %v1962_v63 = vpop.eup %1961  ;;  %1387 = vst.msk [vmem:[%s2982_s3 + $0x28] sm:$0xf] %vm1376_vm2, %v1653_v16  ;;  %v1651_v62 = vpack.c.bf16 %v1064_v14, %v1064_v14  ;;  %v1067_v44 = vmul.f32 %v1960_v61, %v2385_v21  ;;  %1981 = vpow2.f32 %v1560_v1  ;;  %v1534_v25 = vmul.f32 -1.442695, %v2599_v50 }
 0x12b   :  { %v1964_v58 = vpop.eup %1963  ;;  %1419 = vst.msk [vmem:[%s2982_s3 + $0xa8] sm:$0xf] %vm1376_vm2, %v1685_v24  ;;  %v1683_v9 = vpack.c.bf16 %v1096_v35, %v1096_v35  ;;  %v1099_v59 = vmul.f32 %v1962_v63, %v2392_v26  ;;  %1983 = vpow2.f32 %v1533_v46  ;;  %v1566_v33 = vmul.f32 -1.442695, %v2612_v56 }
 0x12c   :  { %v1966_v47 = vpop.eup %1965  ;;  %1385 = vst.msk [vmem:[%s2982_s3 + $0x20] sm:$0xf] %vm1376_vm2, %v1651_v62  ;;  %v1654_v21 = vpack.c.bf16 %v1067_v44, %v1067_v44  ;;  %v1065_v1 = vmul.f32 %v1964_v58, %v2397_v28  ;;  %1985 = vpow2.f32 %v1565_v43  ;;  %v1532_v37 = vmul.f32 -1.442695, %v2621_v40 }
 0x12d   :  { %v1968_v31 = vpop.eup %1967  ;;  %1417 = vst.msk [vmem:[%s2982_s3 + $0xa0] sm:$0xf] %vm1376_vm2, %v1683_v9  ;;  %v1686_v26 = vpack.c.bf16 %v1099_v59, %v1099_v59  ;;  %v1097_v46 = vmul.f32 %v1966_v47, %v2401_v41  ;;  %1987 = vpow2.f32 %v1531_v17 }
 0x12e   :  { %v1970_v16 = vpop.eup %1969  ;;  %1388 = vst.msk [vmem:[%s2982_s3 + $0x2c] sm:$0xf] %vm1376_vm2, %v1654_v21  ;;  %v1652_v28 = vpack.c.bf16 %v1065_v1, %v1065_v1  ;;  %v1070_v43 = vmul.f32 %v1968_v31, %v2426_v51  ;;  %1989 = vpow2.f32 %v1563_v23 }
 0x12f   :  { %v1972_v14 = vpop.eup %1971  ;;  %1420 = vst.msk [vmem:[%s2982_s3 + $0xac] sm:$0xf] %vm1376_vm2, %v1686_v26  ;;  %v1684_v41 = vpack.c.bf16 %v1097_v46, %v1097_v46  ;;  %v1102_v17 = vmul.f32 %v1970_v16, %v2439_v52  ;;  %1991 = vpow2.f32 %v1534_v25  ;;  %v2675_v25 = vadd.f32 %v2290_v38, %v2443_v13 }
 0x130   :  { %v1974_v61 = vpop.eup %1973  ;;  %1386 = vst.msk [vmem:[%s2982_s3 + $0x24] sm:$0xf] %vm1376_vm2, %v1652_v28  ;;  %v1657_v24 = vpack.c.bf16 %v1070_v43, %v1070_v43  ;;  %v876_v35 = vadd.f32 1.0, %v1972_v14  ;;  %1993 = vpow2.f32 %v1566_v33  ;;  %v2679_v46 = vadd.f32 %v2474_v39, %v2290_v38 }
 0x131   :  { %v1976_v51 = vpop.eup %1975  ;;  %1418 = vst.msk [vmem:[%s2982_s3 + $0xa4] sm:$0xf] %vm1376_vm2, %v1684_v41  ;;  %v1689_v63 = vpack.c.bf16 %v1102_v17, %v1102_v17  ;;  %v908_v62 = vadd.f32 1.0, %v1974_v61  ;;  %1995 = vpow2.f32 %v1532_v37  ;;  %v2683_v37 = vadd.f32 %v2476_v29, %v2290_v38 }
 0x132   :  { %v1978_v52 = vpop.eup %1977  ;;  %1391 = vst.msk [vmem:[%s2982_s3 + $0x38] sm:$0xf] %vm1376_vm2, %v1657_v24  ;;  %1997 = vrcp.f32 %v876_v35  ;;  %v879_v44 = vadd.f32 1.0, %v1976_v51  ;;  %v1564_v28 = vmul.f32 -1.442695, %v2675_v25  ;;  %v2688_v43 = vadd.f32 %v2290_v38, %v2483_v32 }
 0x133   :  { %v1980_v23 = vpop.eup %1979  ;;  %1423 = vst.msk [vmem:[%s2982_s3 + $0xb8] sm:$0xf] %vm1376_vm2, %v1689_v63  ;;  %1999 = vrcp.f32 %v908_v62  ;;  %v911_v58 = vadd.f32 1.0, %v1978_v52  ;;  %v2692_v39 = vadd.f32 %v2290_v38, %v2485_v45  ;;  %v2696_v29 = vadd.f32 %v2491_v54, %v2290_v38 }
 0x134   :  { %v1982_v9 = vpop.eup %1981  ;;  %2001 = vrcp.f32 %v879_v44  ;;  %v877_v59 = vadd.f32 1.0, %v1980_v23  ;;  %v2700_v24 = vadd.f32 %v2493_v55, %v2290_v38  ;;  %v2704_v32 = vadd.f32 %v2290_v38, %v2499_v7 }
 0x135   :  { %v1984_v47 = vpop.eup %1983  ;;  %2003 = vrcp.f32 %v911_v58  ;;  %v909_v21 = vadd.f32 1.0, %v1982_v9  ;;  %v1537_v45 = vmul.f32 -1.442695, %v2679_v46  ;;  %v1569_v63 = vmul.f32 -1.442695, %v2683_v37 }
 0x136   :  { %v1986_v1 = vpop.eup %1985  ;;  %2005 = vrcp.f32 %v877_v59  ;;  %v882_v33 = vadd.f32 1.0, %v1984_v47  ;;  %v1535_v52 = vmul.f32 -1.442695, %v2688_v43  ;;  %v2711_v55 = vadd.f32 %v2290_v38, %v2501_v8 }
 0x137   :  { %v1988_v31 = vpop.eup %1987  ;;  %2007 = vrcp.f32 %v909_v21  ;;  %v914_v26 = vadd.f32 1.0, %v1986_v1  ;;  %v1567_v23 = vmul.f32 -1.442695, %v2692_v39  ;;  %v1538_v58 = vmul.f32 -1.442695, %v2696_v29 }
 0x138   :  { %v1990_v16 = vpop.eup %1989  ;;  %2009 = vrcp.f32 %v882_v33  ;;  %v880_v13 = vadd.f32 1.0, %v1988_v31  ;;  %v1570_v47 = vmul.f32 -1.442695, %v2700_v24  ;;  %v1536_v21 = vmul.f32 -1.442695, %v2704_v32 }
 0x139   :  { %v1992_v14 = vpop.eup %1991  ;;  %2011 = vrcp.f32 %v914_v26  ;;  %v912_v41 = vadd.f32 1.0, %v1990_v16 }
 0x13a   :  { %v1994_v17 = vpop.eup %1993  ;;  %2013 = vrcp.f32 %v880_v13  ;;  %v883_v61 = vadd.f32 1.0, %v1992_v14 }
 0x13b   :  { %v1996_v35 = vpop.eup %1995  ;;  %2015 = vrcp.f32 %v912_v41  ;;  %v915_v51 = vadd.f32 1.0, %v1994_v17  ;;  %v2742_v17 = vadd.f32 %v2290_v38, %v2524_v34 }
 0x13c   :  { %v1998_v54 = vpop.eup %1997  ;;  %2017 = vrcp.f32 %v883_v61  ;;  %v881_v62 = vadd.f32 1.0, %v1996_v35  ;;  %v2751_v35 = vadd.f32 %v2290_v38, %v2526_v2 }
 0x13d   :  { %v2000_v44 = vpop.eup %1999  ;;  %v1068_v7 = vmul.f32 %v1998_v54, %v2513_v19  ;;  %2019 = vrcp.f32 %v915_v51  ;;  %v2722_v19 = vadd.f32 %v2515_v27, %v2290_v38  ;;  %v2733_v27 = vadd.f32 %v2517_v30, %v2290_v38 }
 0x13e   :  { %v2002_v9 = vpop.eup %2001  ;;  %v1100_v59 = vmul.f32 %v2000_v44, %v2522_v3  ;;  %2021 = vrcp.f32 %v881_v62  ;;  %v1568_v3 = vmul.f32 -1.442695, %v2711_v55 }
 0x13f   :  { %v2004_v1 = vpop.eup %2003  ;;  %v1655_v33 = vpack.c.bf16 %v1068_v7, %v1068_v7  ;;  %v1071_v8 = vmul.f32 %v2002_v9, %v2530_v5  ;;  %2023 = vpow2.f32 %v1564_v28 }
 0x140   :  { %v2006_v31 = vpop.eup %2005  ;;  %v1687_v26 = vpack.c.bf16 %v1100_v59, %v1100_v59  ;;  %v1103_v16 = vmul.f32 %v2004_v1, %v2534_v42  ;;  %2025 = vpow2.f32 %v1537_v45  ;;  %v1541_v45 = vmul.f32 -1.442695, %v2722_v19 }
 0x141   :  { %v2008_v13 = vpop.eup %2007  ;;  %1389 = vst.msk [vmem:[%s2982_s3 + $0x30] sm:$0xf] %vm1376_vm2, %v1655_v33  ;;  %v1658_v14 = vpack.c.bf16 %v1071_v8, %v1071_v8  ;;  %v1069_v5 = vmul.f32 %v2006_v31, %v2542_v60  ;;  %2027 = vpow2.f32 %v1569_v63 }
 0x142   :  { %v2010_v28 = vpop.eup %2009  ;;  %1421 = vst.msk [vmem:[%s2982_s3 + $0xb0] sm:$0xf] %vm1376_vm2, %v1687_v26  ;;  %v1690_v42 = vpack.c.bf16 %v1103_v16, %v1103_v16  ;;  %v1101_v41 = vmul.f32 %v2008_v13, %v2546_v11  ;;  %2029 = vpow2.f32 %v1535_v52  ;;  %v1539_v52 = vmul.f32 -1.442695, %v2742_v17 }
 0x143   :  { %v2012_v60 = vpop.eup %2011  ;;  %1392 = vst.msk [vmem:[%s2982_s3 + $0x3c] sm:$0xf] %vm1376_vm2, %v1658_v14  ;;  %v1656_v30 = vpack.c.bf16 %v1069_v5, %v1069_v5  ;;  %v1074_v61 = vmul.f32 %v2010_v28, %v2554_v15  ;;  %2031 = vpow2.f32 %v1567_v23  ;;  %v1573_v15 = vmul.f32 -1.442695, %v2733_v27 }
 0x144   :  { %v2014_v11 = vpop.eup %2013  ;;  %1424 = vst.msk [vmem:[%s2982_s3 + $0xbc] sm:$0xf] %vm1376_vm2, %v1690_v42  ;;  %v1688_v34 = vpack.c.bf16 %v1101_v41, %v1101_v41  ;;  %v1106_v51 = vmul.f32 %v2012_v60, %v2558_v18  ;;  %2033 = vpow2.f32 %v1538_v58  ;;  %v1571_v23 = vmul.f32 -1.442695, %v2751_v35 }
 0x145   :  { %v2016_v63 = vpop.eup %2015  ;;  %1390 = vst.msk [vmem:[%s2982_s3 + $0x34] sm:$0xf] %vm1376_vm2, %v1656_v30  ;;  %v1661_v38 = vpack.c.bf16 %v1074_v61, %v1074_v61  ;;  %v1072_v2 = vmul.f32 %v2014_v11, %v2563_v0  ;;  %2035 = vpow2.f32 %v1570_v47  ;;  %v2123_v61 = vld [vmem:[%s2981_s2] ss:$0 sm:$0xff] }
 0x146   :  { %v2018_v54 = vpop.eup %2017  ;;  %1422 = vst.msk [vmem:[%s2982_s3 + $0xb4] sm:$0xf] %vm1376_vm2, %v1688_v34  ;;  %v1693_v18 = vpack.c.bf16 %v1106_v51, %v1106_v51  ;;  %v1104_v62 = vmul.f32 %v2016_v63, %v2586_v10  ;;  %2037 = vpow2.f32 %v1536_v21  ;;  %v2807_v11 = vadd.f32 %v2123_v61, %v2536_v6  ;;  %v2986_v6 = vld [vmem:[#allocation3_spill] sm:$0xff] }
 0x147   :  { %v2020_v44 = vpop.eup %2019  ;;  %1395 = vst.msk [vmem:[%s2982_s3 + $0x48] sm:$0xf] %vm1376_vm2, %v1661_v38  ;;  %v1659_v0 = vpack.c.bf16 %v1072_v2, %v1072_v2  ;;  %v1075_v7 = vmul.f32 %v2018_v54, %v2599_v50  ;;  %2039 = vpow2.f32 %v1568_v3  ;;  %v2810_v34 = vadd.f32 %v2123_v61, %v2538_v36  ;;  %v2985_v54 = vld [vmem:[#allocation2_spill] sm:$0xff] }
 0x148   :  { %v2022_v58 = vpop.eup %2021  ;;  %1427 = vst.msk [vmem:[%s2982_s3 + $0xc8] sm:$0xf] %vm1376_vm2, %v1693_v18  ;;  %v1691_v10 = vpack.c.bf16 %v1104_v62, %v1104_v62  ;;  %v1107_v9 = vmul.f32 %v2020_v44, %v2612_v56  ;;  %2041 = vpow2.f32 %v1541_v45  ;;  %v2813_v63 = vadd.f32 %v2123_v61, %v2548_v12 }
 0x149   :  { %v2024_v59 = vpop.eup %2023  ;;  %1393 = vst.msk [vmem:[%s2982_s3 + $0x40] sm:$0xf] %vm1376_vm2, %v1659_v0  ;;  %v1662_v50 = vpack.c.bf16 %v1075_v7, %v1075_v7  ;;  %v1073_v47 = vmul.f32 %v2022_v58, %v2621_v40  ;;  %2043 = vpow2.f32 %v1573_v15  ;;  %v2816_v38 = vadd.f32 %v2123_v61, %v2550_v4 }
 0x14a   :  { %v2026_v21 = vpop.eup %2025  ;;  %1425 = vst.msk [vmem:[%s2982_s3 + $0xc0] sm:$0xf] %vm1376_vm2, %v1691_v10  ;;  %v1694_v1 = vpack.c.bf16 %v1107_v9, %v1107_v9  ;;  %v913_v33 = vadd.f32 1.0, %v2024_v59  ;;  %2045 = vpow2.f32 %v1539_v52  ;;  %v2819_v18 = vadd.f32 %v2123_v61, %v2985_v54 }
 0x14b   :  { %v2028_v56 = vpop.eup %2027  ;;  %1396 = vst.msk [vmem:[%s2982_s3 + $0x4c] sm:$0xf] %vm1376_vm2, %v1662_v50  ;;  %v1660_v8 = vpack.c.bf16 %v1073_v47, %v1073_v47  ;;  %v886_v31 = vadd.f32 1.0, %v2026_v21  ;;  %2047 = vpow2.f32 %v1571_v23  ;;  %v2822_v62 = vadd.f32 %v2123_v61, %v2986_v6 }
 0x14c   :  { %v2030_v40 = vpop.eup %2029  ;;  %1428 = vst.msk [vmem:[%s2982_s3 + $0xcc] sm:$0xf] %vm1376_vm2, %v1694_v1  ;;  %2049 = vrcp.f32 %v913_v33  ;;  %v918_v26 = vadd.f32 1.0, %v2028_v56  ;;  %v2825_v44 = vadd.f32 %v2123_v61, %v2579_v57  ;;  %v2828_v12 = vadd.f32 %v2123_v61, %v2581_v20 }
 0x14d   :  { %v2032_v16 = vpop.eup %2031  ;;  %1394 = vst.msk [vmem:[%s2982_s3 + $0x44] sm:$0xf] %vm1376_vm2, %v1660_v8  ;;  %2051 = vrcp.f32 %v886_v31  ;;  %v884_v3 = vadd.f32 1.0, %v2030_v40  ;;  %v1542_v7 = vmul.f32 -1.442695, %v2807_v11 }
 0x14e   :  { %v2034_v13 = vpop.eup %2033  ;;  %2053 = vrcp.f32 %v918_v26  ;;  %v916_v14 = vadd.f32 1.0, %v2032_v16  ;;  %v1574_v23 = vmul.f32 -1.442695, %v2810_v34  ;;  %v1540_v9 = vmul.f32 -1.442695, %v2813_v63 }
 0x14f   :  { %v2036_v5 = vpop.eup %2035  ;;  %2055 = vrcp.f32 %v884_v3  ;;  %v887_v28 = vadd.f32 1.0, %v2034_v13  ;;  %v1572_v59 = vmul.f32 -1.442695, %v2816_v38  ;;  %v1545_v20 = vmul.f32 -1.442695, %v2819_v18 }
 0x150   :  { %v2038_v42 = vpop.eup %2037  ;;  %2057 = vrcp.f32 %v916_v14  ;;  %v919_v41 = vadd.f32 1.0, %v2036_v5  ;;  %v1577_v47 = vmul.f32 -1.442695, %v2822_v62  ;;  %v1543_v33 = vmul.f32 -1.442695, %v2825_v44 }
 0x151   :  { %v2040_v60 = vpop.eup %2039  ;;  %2059 = vrcp.f32 %v887_v28  ;;  %v885_v30 = vadd.f32 1.0, %v2038_v42  ;;  %v1575_v56 = vmul.f32 -1.442695, %v2828_v12  ;;  %v2862_v28 = vadd.f32 %v2123_v61, %v2603_v22 }
 0x152   :  { %v2042_v51 = vpop.eup %2041  ;;  %2061 = vrcp.f32 %v919_v41  ;;  %v917_v45 = vadd.f32 1.0, %v2040_v60 }
 0x153   :  { %v2044_v2 = vpop.eup %2043  ;;  %2063 = vrcp.f32 %v885_v30  ;;  %v890_v15 = vadd.f32 1.0, %v2042_v51  ;;  %v1576_v54 = vmul.f32 -1.442695, %v2862_v28 }
 0x154   :  { %v2046_v36 = vpop.eup %2045  ;;  %2065 = vrcp.f32 %v917_v45  ;;  %v922_v52 = vadd.f32 1.0, %v2044_v2 }
 0x155   :  { %v2048_v4 = vpop.eup %2047  ;;  %2067 = vrcp.f32 %v890_v15  ;;  %v888_v0 = vadd.f32 1.0, %v2046_v36 }
 0x156   :  { %v2050_v58 = vpop.eup %2049  ;;  %2069 = vrcp.f32 %v922_v52  ;;  %v920_v10 = vadd.f32 1.0, %v2048_v4 }
 0x157   :  { %v2052_v50 = vpop.eup %2051  ;;  %v1105_v57 = vmul.f32 %v2050_v58, %v2675_v25  ;;  %2071 = vrcp.f32 %v888_v0  ;;  %v2842_v25 = vadd.f32 %v2123_v61, %v2588_v49  ;;  %v2854_v49 = vadd.f32 %v2123_v61, %v2601_v53 }
 0x158   :  { %v2054_v21 = vpop.eup %2053  ;;  %v1078_v1 = vmul.f32 %v2052_v50, %v2679_v46  ;;  %2073 = vrcp.f32 %v920_v10  ;;  %v2846_v46 = vadd.f32 %v2123_v61, %v2590_v48 }
 0x159   :  { %v2056_v8 = vpop.eup %2055  ;;  %v1692_v31 = vpack.c.bf16 %v1105_v57, %v1105_v57  ;;  %v1110_v40 = vmul.f32 %v2054_v21, %v2683_v37  ;;  %2075 = vpow2.f32 %v1542_v7  ;;  %v1546_v41 = vmul.f32 -1.442695, %v2842_v25 }
 0x15a   :  { %v2058_v26 = vpop.eup %2057  ;;  %v1665_v16 = vpack.c.bf16 %v1078_v1, %v1078_v1  ;;  %v1076_v3 = vmul.f32 %v2056_v8, %v2688_v43  ;;  %2077 = vpow2.f32 %v1574_v23  ;;  %v1578_v30 = vmul.f32 -1.442695, %v2846_v46 }
 0x15b   :  { %v2060_v13 = vpop.eup %2059  ;;  %1426 = vst.msk [vmem:[%s2982_s3 + $0xc4] sm:$0xf] %vm1376_vm2, %v1692_v31  ;;  %v1697_v14 = vpack.c.bf16 %v1110_v40, %v1110_v40  ;;  %v1108_v37 = vmul.f32 %v2058_v26, %v2692_v39  ;;  %2079 = vpow2.f32 %v1540_v9  ;;  %v1544_v45 = vmul.f32 -1.442695, %v2854_v49 }
 0x15c   :  { %v2062_v5 = vpop.eup %2061  ;;  %1399 = vst.msk [vmem:[%s2982_s3 + $0x58] sm:$0xf] %vm1376_vm2, %v1665_v16  ;;  %v1663_v48 = vpack.c.bf16 %v1076_v3, %v1076_v3  ;;  %v1079_v43 = vmul.f32 %v2060_v13, %v2696_v29  ;;  %2081 = vpow2.f32 %v1572_v59 }
 0x15d   :  { %v2064_v42 = vpop.eup %2063  ;;  %1431 = vst.msk [vmem:[%s2982_s3 + $0xd8] sm:$0xf] %vm1376_vm2, %v1697_v14  ;;  %v1695_v53 = vpack.c.bf16 %v1108_v37, %v1108_v37  ;;  %v1111_v39 = vmul.f32 %v2062_v5, %v2700_v24  ;;  %2083 = vpow2.f32 %v1545_v20 }
 0x15e   :  { %v2066_v60 = vpop.eup %2065  ;;  %1397 = vst.msk [vmem:[%s2982_s3 + $0x50] sm:$0xf] %vm1376_vm2, %v1663_v48  ;;  %v1666_v22 = vpack.c.bf16 %v1079_v43, %v1079_v43  ;;  %v1077_v29 = vmul.f32 %v2064_v42, %v2704_v32  ;;  %2085 = vpow2.f32 %v1577_v47 }
 0x15f   :  { %v2068_v61 = vpop.eup %2067  ;;  %1429 = vst.msk [vmem:[%s2982_s3 + $0xd0] sm:$0xf] %vm1376_vm2, %v1695_v53  ;;  %v1698_v24 = vpack.c.bf16 %v1111_v39, %v1111_v39  ;;  %v1109_v51 = vmul.f32 %v2066_v60, %v2711_v55  ;;  %2087 = vpow2.f32 %v1543_v33 }
 0x160   :  { %v2070_v2 = vpop.eup %2069  ;;  %1400 = vst.msk [vmem:[%s2982_s3 + $0x5c] sm:$0xf] %vm1376_vm2, %v1666_v22  ;;  %v1664_v32 = vpack.c.bf16 %v1077_v29, %v1077_v29  ;;  %v1082_v15 = vmul.f32 %v2068_v61, %v2722_v19  ;;  %2089 = vpow2.f32 %v1575_v56 }
 0x161   :  { %v2072_v6 = vpop.eup %2071  ;;  %1432 = vst.msk [vmem:[%s2982_s3 + $0xdc] sm:$0xf] %vm1376_vm2, %v1698_v24  ;;  %v1696_v55 = vpack.c.bf16 %v1109_v51, %v1109_v51  ;;  %v1114_v36 = vmul.f32 %v2070_v2, %v2733_v27  ;;  %2091 = vpow2.f32 %v1546_v41 }
 0x162   :  { %v2074_v52 = vpop.eup %2073  ;;  %1398 = vst.msk [vmem:[%s2982_s3 + $0x54] sm:$0xf] %vm1376_vm2, %v1664_v32  ;;  %v1669_v19 = vpack.c.bf16 %v1082_v15, %v1082_v15  ;;  %v1080_v4 = vmul.f32 %v2072_v6, %v2742_v17  ;;  %2093 = vpow2.f32 %v1578_v30 }
 0x163   :  { %v2076_v0 = vpop.eup %2075  ;;  %1430 = vst.msk [vmem:[%s2982_s3 + $0xd4] sm:$0xf] %vm1376_vm2, %v1696_v55  ;;  %v1701_v7 = vpack.c.bf16 %v1114_v36, %v1114_v36  ;;  %v1112_v27 = vmul.f32 %v2074_v52, %v2751_v35  ;;  %2095 = vpow2.f32 %v1544_v45 }
 0x164   :  { %v2078_v23 = vpop.eup %2077  ;;  %1403 = vst.msk [vmem:[%s2982_s3 + $0x68] sm:$0xf] %vm1376_vm2, %v1669_v19  ;;  %v1667_v58 = vpack.c.bf16 %v1080_v4, %v1080_v4  ;;  %v891_v10 = vadd.f32 1.0, %v2076_v0  ;;  %2097 = vpow2.f32 %v1576_v54 }
 0x165   :  { %v2080_v17 = vpop.eup %2079  ;;  %1435 = vst.msk [vmem:[%s2982_s3 + $0xe8] sm:$0xf] %vm1376_vm2, %v1701_v7  ;;  %v1699_v9 = vpack.c.bf16 %v1112_v27, %v1112_v27  ;;  %v923_v59 = vadd.f32 1.0, %v2078_v23 }
 0x166   :  { %v2082_v50 = vpop.eup %2081  ;;  %1401 = vst.msk [vmem:[%s2982_s3 + $0x60] sm:$0xf] %vm1376_vm2, %v1667_v58  ;;  %2099 = vrcp.f32 %v891_v10  ;;  %v889_v35 = vadd.f32 1.0, %v2080_v17 }
 0x167   :  { %v2084_v57 = vpop.eup %2083  ;;  %1433 = vst.msk [vmem:[%s2982_s3 + $0xe0] sm:$0xf] %vm1376_vm2, %v1699_v9  ;;  %2101 = vrcp.f32 %v923_v59  ;;  %v921_v20 = vadd.f32 1.0, %v2082_v50 }
 0x168   :  { %v2086_v47 = vpop.eup %2085  ;;  %2103 = vrcp.f32 %v889_v35  ;;  %v894_v21 = vadd.f32 1.0, %v2084_v57 }
 0x169   :  { %v2088_v1 = vpop.eup %2087  ;;  %2105 = vrcp.f32 %v921_v20  ;;  %v926_v33 = vadd.f32 1.0, %v2086_v47 }
 0x16a   :  { %v2090_v56 = vpop.eup %2089  ;;  %2107 = vrcp.f32 %v894_v21  ;;  %v892_v8 = vadd.f32 1.0, %v2088_v1 }
 0x16b   :  { %v2092_v31 = vpop.eup %2091  ;;  %2109 = vrcp.f32 %v926_v33  ;;  %v924_v40 = vadd.f32 1.0, %v2090_v56 }
 0x16c   :  { %v2094_v26 = vpop.eup %2093  ;;  %2111 = vrcp.f32 %v892_v8  ;;  %v895_v16 = vadd.f32 1.0, %v2092_v31 }
 0x16d   :  { %v2096_v3 = vpop.eup %2095  ;;  %2113 = vrcp.f32 %v924_v40  ;;  %v927_v13 = vadd.f32 1.0, %v2094_v26 }
 0x16e   :  { %v2098_v14 = vpop.eup %2097  ;;  %2115 = vrcp.f32 %v895_v16  ;;  %v893_v37 = vadd.f32 1.0, %v2096_v3 }
 0x16f   :  { %2117 = vrcp.f32 %v927_v13  ;;  %v925_v5 = vadd.f32 1.0, %v2098_v14 }
 0x170   :  { %v2100_v48 = vpop.eup %2099  ;;  %2119 = vrcp.f32 %v893_v37 }
 0x171   :  { %v2102_v43 = vpop.eup %2101  ;;  %v1083_v42 = vmul.f32 %v2100_v48, %v2807_v11  ;;  %2121 = vrcp.f32 %v925_v5 }
 0x172   :  { %v2104_v53 = vpop.eup %2103  ;;  %v1115_v39 = vmul.f32 %v2102_v43, %v2810_v34 }
 0x173   :  { %v2106_v41 = vpop.eup %2105  ;;  %v1670_v60 = vpack.c.bf16 %v1083_v42, %v1083_v42  ;;  %v1081_v22 = vmul.f32 %v2104_v53, %v2813_v63 }
 0x174   :  { %v2108_v29 = vpop.eup %2107  ;;  %v1702_v30 = vpack.c.bf16 %v1115_v39, %v1115_v39  ;;  %v1113_v61 = vmul.f32 %v2106_v41, %v2816_v38 }
 0x175   :  { %v2110_v24 = vpop.eup %2109  ;;  %1404 = vst.msk [vmem:[%s2982_s3 + $0x6c] sm:$0xf] %vm1376_vm2, %v1670_v60  ;;  %v1668_v51 = vpack.c.bf16 %v1081_v22, %v1081_v22  ;;  %v1086_v11 = vmul.f32 %v2108_v29, %v2819_v18 }
 0x176   :  { %v2112_v45 = vpop.eup %2111  ;;  %1436 = vst.msk [vmem:[%s2982_s3 + $0xec] sm:$0xf] %vm1376_vm2, %v1702_v30  ;;  %v1700_v34 = vpack.c.bf16 %v1113_v61, %v1113_v61  ;;  %v1118_v63 = vmul.f32 %v2110_v24, %v2822_v62 }
 0x177   :  { %v2114_v2 = vpop.eup %2113  ;;  %1402 = vst.msk [vmem:[%s2982_s3 + $0x64] sm:$0xf] %vm1376_vm2, %v1668_v51  ;;  %v1673_v38 = vpack.c.bf16 %v1086_v11, %v1086_v11  ;;  %v1084_v32 = vmul.f32 %v2112_v45, %v2825_v44 }
 0x178   :  { %v2116_v15 = vpop.eup %2115  ;;  %1434 = vst.msk [vmem:[%s2982_s3 + $0xe4] sm:$0xf] %vm1376_vm2, %v1700_v34  ;;  %v1705_v18 = vpack.c.bf16 %v1118_v63, %v1118_v63  ;;  %v1116_v54 = vmul.f32 %v2114_v2, %v2828_v12 }
 0x179   :  { %v2118_v6 = vpop.eup %2117  ;;  %1407 = vst.msk [vmem:[%s2982_s3 + $0x78] sm:$0xf] %vm1376_vm2, %v1673_v38  ;;  %v1671_v62 = vpack.c.bf16 %v1084_v32, %v1084_v32  ;;  %v1087_v55 = vmul.f32 %v2116_v15, %v2842_v25 }
 0x17a   :  { %v2120_v36 = vpop.eup %2119  ;;  %1439 = vst.msk [vmem:[%s2982_s3 + $0xf8] sm:$0xf] %vm1376_vm2, %v1705_v18  ;;  %v1703_v44 = vpack.c.bf16 %v1116_v54, %v1116_v54  ;;  %v1119_v52 = vmul.f32 %v2118_v6, %v2846_v46 }
 0x17b   :  { %v2122_v19 = vpop.eup %2121  ;;  %1405 = vst.msk [vmem:[%s2982_s3 + $0x70] sm:$0xf] %vm1376_vm2, %v1671_v62  ;;  %v1674_v12 = vpack.c.bf16 %v1087_v55, %v1087_v55  ;;  %v1085_v4 = vmul.f32 %v2120_v36, %v2854_v49 }
 0x17c   :  { %1437 = vst.msk [vmem:[%s2982_s3 + $0xf0] sm:$0xf] %vm1376_vm2, %v1703_v44  ;;  %v1706_v25 = vpack.c.bf16 %v1119_v52, %v1119_v52  ;;  %v1117_v0 = vmul.f32 %v2122_v19, %v2862_v28 }
 0x17d   :  { %1408 = vst.msk [vmem:[%s2982_s3 + $0x7c] sm:$0xf] %vm1376_vm2, %v1674_v12  ;;  %v1672_v46 = vpack.c.bf16 %v1085_v4, %v1085_v4 }
 0x17e   :  { %1440 = vst.msk [vmem:[%s2982_s3 + $0xfc] sm:$0xf] %vm1376_vm2, %v1706_v25  ;;  %v1704_v49 = vpack.c.bf16 %v1117_v0, %v1117_v0 }
 0x17f   :  { %1406 = vst.msk [vmem:[%s2982_s3 + $0x74] sm:$0xf] %vm1376_vm2, %v1672_v46 }
 0x180   :  { %1438 = vst.msk [vmem:[%s2982_s3 + $0xf4] sm:$0xf] %vm1376_vm2, %v1704_v49 }

// kernel: _forward_impl.7
= control target key start
LH: loop header
LB: loop body
LE: loop exit
PB: predicated region body
PF: predicated region fallthrough
CT: control target
= control target key end

     0   :  { %v699_v0 = vmov 0   ;;  %vm182_vm0 = vcmask 130048   ;;  %vm480_vm1 = vcmask 257024   ;;  %s952_s1 = inlined_call_operand.vmem [shape: bf16[144,32], index: 1, kind: input, shape index: {}]   ;;  %s953_s0 = inlined_call_operand.vmem [shape: bf16[128,144], index: 0, kind: input, shape index: {}]   ;;  %s954_s2 = inlined_call_operand.vmem [shape: f32[1,32], index: 2, kind: input, shape index: {}]   ;;  %s955_s3 = inlined_call_operand.vmem [shape: bf16[128,32], index: 3, kind: output, shape index: {}]  }
   0x1   :  { %207 = vmatprep.subr.bf16.mxu0 %v699_v0  ;;  %583 = vmatprep.subr.bf16.mxu1 %v699_v0  ;;  %v602_v1 = vld [vmem:[%s952_s1] sm:$0xff]   ;;  %v603_v2 = vld [vmem:[%s952_s1 + $0x8] sm:$0xff]   ;;  %v604_v3 = vld [vmem:[%s952_s1 + $0x10] sm:$0xff]  }
   0x2   :  { %208 = vmatpush1.bf16.msra.mxu0 %v602_v1  ;;  %592 = vmatpush1.bf16.msra.mxu1 %v602_v1  ;;  %v605_v4 = vld [vmem:[%s952_s1 + $0x18] sm:$0xff]   ;;  %v613_v5 = vld [vmem:[%s953_s0 + $0x4] ss:$8 sps:$4 sm:$0xff]   ;;  %v608_v9 = vld [vmem:[%s952_s1 + $0x30] sm:$0xff]  }
   0x3   :  { %209 = vmatprep.subr.bf16.mxu0 %v699_v0  ;;  %584 = vmatprep.subr.bf16.mxu1 %v699_v0  ;;  %v616_v6 = vld [vmem:[%s953_s0 + $0x44] ss:$8 sps:$4 sm:$0xff]   ;;  %v609_v10 = vld [vmem:[%s952_s1 + $0x38] sm:$0xff]   ;;  %v611_v12 = vld [vmem:[%s953_s0] ss:$8 sps:$4 sm:$0xff]  }
   0x4   :  { %527 = vmatprep.mubr.msk.bf16.mxu0 %vm182_vm0, %v613_v5  ;;  %531 = vmatprep.mubr.msk.bf16.mxu1 %vm182_vm0, %v616_v6  ;;  %v606_v7 = vld [vmem:[%s952_s1 + $0x20] sm:$0xff]   ;;  %v607_v8 = vld [vmem:[%s952_s1 + $0x28] sm:$0xff]   ;;  %v617_v14 = vld [vmem:[%s953_s0 + $0x14] ss:$8 sps:$4 sm:$0xff]  }
   0x5   :  { %v610_v11 = vld [vmem:[%s952_s1 + $0x40] sm:$0xff]   ;;  %v619_v15 = vld [vmem:[%s953_s0 + $0x54] ss:$8 sps:$4 sm:$0xff]   ;;  %v621_v16 = vld [vmem:[%s953_s0 + $0x10] ss:$8 sps:$4 sm:$0xff]  }
   0x6   :  { %210 = vmatpush1.bf16.msra.mxu0 %v603_v2  ;;  %593 = vmatpush1.bf16.msra.mxu1 %v603_v2  ;;  %v614_v13 = vld [vmem:[%s953_s0 + $0x40] ss:$8 sps:$4 sm:$0xff]   ;;  %v622_v17 = vld [vmem:[%s953_s0 + $0x50] ss:$8 sps:$4 sm:$0xff]   ;;  %v623_v18 = vld [vmem:[%s953_s0 + $0x24] ss:$8 sps:$4 sm:$0xff]  }
   0x7   :  { %211 = vmatprep.subr.bf16.mxu0 %v699_v0  ;;  %585 = vmatprep.subr.bf16.mxu1 %v699_v0  ;;  %v625_v19 = vld [vmem:[%s953_s0 + $0x64] ss:$8 sps:$4 sm:$0xff]   ;;  %v627_v20 = vld [vmem:[%s953_s0 + $0x20] ss:$8 sps:$4 sm:$0xff]   ;;  %v629_v22 = vld [vmem:[%s953_s0 + $0x34] ss:$8 sps:$4 sm:$0xff]  }
   0x8   :  { %v628_v21 = vld [vmem:[%s953_s0 + $0x60] ss:$8 sps:$4 sm:$0xff]   ;;  %v631_v23 = vld [vmem:[%s953_s0 + $0x74] ss:$8 sps:$4 sm:$0xff]   ;;  %v633_v24 = vld [vmem:[%s953_s0 + $0x30] ss:$8 sps:$4 sm:$0xff]  }
   0x9   :  { %v634_v25 = vld [vmem:[%s953_s0 + $0x70] ss:$8 sps:$4 sm:$0xff]   ;;  %v806_v26 = vld [vmem:[%s954_s2] ss:$0 sm:$0xff] }
   0xa   :  { %212 = vmatpush1.bf16.msra.mxu0 %v604_v3  ;;  %594 = vmatpush1.bf16.msra.mxu1 %v604_v3 }
   0xb   :  { %213 = vmatprep.subr.bf16.mxu0 %v699_v0  ;;  %586 = vmatprep.subr.bf16.mxu1 %v699_v0 }
   0xe   :  { %214 = vmatpush1.bf16.msra.mxu0 %v605_v4  ;;  %595 = vmatpush1.bf16.msra.mxu1 %v605_v4 }
   0xf   :  { %215 = vmatprep.subr.bf16.mxu0 %v699_v0  ;;  %587 = vmatprep.subr.bf16.mxu1 %v699_v0 }
  0x12   :  { %216 = vmatpush1.bf16.msra.mxu0 %v606_v7  ;;  %596 = vmatpush1.bf16.msra.mxu1 %v606_v7 }
  0x13   :  { %217 = vmatprep.subr.bf16.mxu0 %v699_v0  ;;  %588 = vmatprep.subr.bf16.mxu1 %v699_v0 }
  0x16   :  { %218 = vmatpush1.bf16.msra.mxu0 %v607_v8  ;;  %597 = vmatpush1.bf16.msra.mxu1 %v607_v8 }
  0x17   :  { %219 = vmatprep.subr.bf16.mxu0 %v699_v0  ;;  %589 = vmatprep.subr.bf16.mxu1 %v699_v0 }
  0x1a   :  { %220 = vmatpush1.bf16.msra.mxu0 %v608_v9  ;;  %598 = vmatpush1.bf16.msra.mxu1 %v608_v9 }
  0x1b   :  { %221 = vmatprep.subr.bf16.mxu0 %v699_v0  ;;  %590 = vmatprep.subr.bf16.mxu1 %v699_v0 }
  0x1e   :  { %222 = vmatpush1.bf16.msra.mxu0 %v609_v10  ;;  %599 = vmatpush1.bf16.msra.mxu1 %v609_v10 }
  0x1f   :  { %223 = vmatprep.subr.bf16.mxu0 %v699_v0  ;;  %591 = vmatprep.subr.bf16.mxu1 %v699_v0 }
  0x22   :  { %224 = vmatpush1.bf16.msra.mxu0 %v610_v11  ;;  %600 = vmatpush1.bf16.msra.mxu1 %v610_v11 }
  0x25   :  { %240 = vmatmul.mubr.bf16.vlgmr.msra.gmra.mrb[0].mxu0 %v611_v12  ;;  %272 = vmatmul.mubr.bf16.vlgmr.msra.gmra.mrb[0].mxu1 %v614_v13 }
  0x26   :  { %528 = vmatprep.mubr.msk.bf16.mxu0 %vm182_vm0, %v617_v14  ;;  %532 = vmatprep.mubr.msk.bf16.mxu1 %vm182_vm0, %v619_v15 }
  0x2d   :  { %248 = vmatmul.mubr.bf16.gmra.mrb[4].mxu0 %v621_v16  ;;  %280 = vmatmul.mubr.bf16.gmra.mrb[4].mxu1 %v622_v17 }
  0x2e   :  { %529 = vmatprep.mubr.msk.bf16.mxu0 %vm182_vm0, %v623_v18  ;;  %533 = vmatprep.mubr.msk.bf16.mxu1 %vm182_vm0, %v625_v19 }
  0x35   :  { %256 = vmatmul.mubr.bf16.gmra.mrb[8].mxu0 %v627_v20  ;;  %288 = vmatmul.mubr.bf16.gmra.mrb[8].mxu1 %v628_v21 }
  0x36   :  { %530 = vmatprep.mubr.msk.bf16.mxu0 %vm182_vm0, %v629_v22  ;;  %534 = vmatprep.mubr.msk.bf16.mxu1 %vm182_vm0, %v631_v23 }
  0x3d   :  { %264 = vmatmul.mubr.bf16.gmra.mrb[12].mxu0 %v633_v24  ;;  %296 = vmatmul.mubr.bf16.gmra.mrb[12].mxu1 %v634_v25 }
  0xf8   :  { %v241_v27 = vpop.f32.mrb[0].mxu0  ;;  %v273_v28 = vpop.f32.mrb[0].mxu1 }
  0xf9   :  { %v809_v29 = vadd.f32 %v806_v26, %v241_v27  ;;  %v812_v30 = vadd.f32 %v806_v26, %v273_v28  ;;  %v243_v31 = vpop.f32.mrb[1].mxu0  ;;  %v275_v32 = vpop.f32.mrb[1].mxu1 }
  0xfa   :  { %v244_v33 = vpop.f32.mrb[2].mxu0  ;;  %v276_v34 = vpop.f32.mrb[2].mxu1 }
  0xfb   :  { %v535_v35 = vmul.f32 -1.442695, %v809_v29  ;;  %v543_v36 = vmul.f32 -1.442695, %v812_v30  ;;  %v817_v37 = vadd.f32 %v806_v26, %v244_v33  ;;  %v820_v38 = vadd.f32 %v806_v26, %v276_v34  ;;  %v246_v39 = vpop.f32.mrb[3].mxu0  ;;  %v278_v40 = vpop.f32.mrb[3].mxu1 }
  0xfd   :  { %635 = vpow2.f32 %v535_v35  ;;  %v536_v41 = vmul.f32 -1.442695, %v817_v37  ;;  %v544_v42 = vmul.f32 -1.442695, %v820_v38 }
  0xfe   :  { %637 = vpow2.f32 %v543_v36 }
  0xff   :  { %639 = vpow2.f32 %v536_v41 }
 0x100   :  { %641 = vpow2.f32 %v544_v42  ;;  %v249_v43 = vpop.f32.mrb[4].mxu0  ;;  %v281_v44 = vpop.f32.mrb[4].mxu1 }
 0x101   :  { %v825_v45 = vadd.f32 %v806_v26, %v249_v43  ;;  %v828_v46 = vadd.f32 %v806_v26, %v281_v44  ;;  %v251_v47 = vpop.f32.mrb[5].mxu0  ;;  %v283_v48 = vpop.f32.mrb[5].mxu1 }
 0x102   :  { %v252_v49 = vpop.f32.mrb[6].mxu0  ;;  %v284_v50 = vpop.f32.mrb[6].mxu1 }
 0x103   :  { %v537_v51 = vmul.f32 -1.442695, %v825_v45  ;;  %v545_v52 = vmul.f32 -1.442695, %v828_v46  ;;  %v833_v53 = vadd.f32 %v806_v26, %v252_v49  ;;  %v836_v54 = vadd.f32 %v806_v26, %v284_v50  ;;  %v254_v55 = vpop.f32.mrb[7].mxu0  ;;  %v286_v56 = vpop.f32.mrb[7].mxu1 }
 0x105   :  { %643 = vpow2.f32 %v537_v51  ;;  %v538_v57 = vmul.f32 -1.442695, %v833_v53  ;;  %v546_v58 = vmul.f32 -1.442695, %v836_v54 }
 0x106   :  { %645 = vpow2.f32 %v545_v52 }
 0x107   :  { %v636_v59 = vpop.eup %635  ;;  %647 = vpow2.f32 %v538_v57 }
 0x108   :  { %v638_v60 = vpop.eup %637  ;;  %v352_v61 = vadd.f32 1.0, %v636_v59  ;;  %649 = vpow2.f32 %v546_v58  ;;  %v257_v62 = vpop.f32.mrb[8].mxu0 }
 0x109   :  { %v289_v63 = vpop.f32.mrb[8].mxu1  ;;  %v640_v0 = vpop.eup %639  ;;  %v360_v1 = vadd.f32 1.0, %v638_v60  ;;  %v841_v2 = vadd.f32 %v806_v26, %v257_v62 }
 0x10a   :  { %v844_v3 = vadd.f32 %v806_v26, %v289_v63  ;;  %v259_v4 = vpop.f32.mrb[9].mxu0  ;;  %v291_v5 = vpop.f32.mrb[9].mxu1  ;;  %651 = vrcp.f32 %v352_v61  ;;  %v353_v7 = vadd.f32 1.0, %v640_v0 }
 0x10b   :  { %v642_v6 = vpop.eup %641  ;;  %v260_v8 = vpop.f32.mrb[10].mxu0  ;;  %653 = vrcp.f32 %v360_v1  ;;  %v539_v11 = vmul.f32 -1.442695, %v841_v2 }
 0x10c   :  { %v292_v9 = vpop.f32.mrb[10].mxu1  ;;  %v361_v10 = vadd.f32 1.0, %v642_v6  ;;  %v547_v12 = vmul.f32 -1.442695, %v844_v3  ;;  %v262_v13 = vpop.f32.mrb[11].mxu0  ;;  %655 = vrcp.f32 %v353_v7  ;;  %v849_v14 = vadd.f32 %v806_v26, %v260_v8 }
 0x10d   :  { %v852_v15 = vadd.f32 %v806_v26, %v292_v9  ;;  %v294_v16 = vpop.f32.mrb[11].mxu1 }
 0x10e   :  { %657 = vrcp.f32 %v361_v10  ;;  %v540_v17 = vmul.f32 -1.442695, %v849_v14 }
 0x10f   :  { %659 = vpow2.f32 %v539_v11  ;;  %v548_v18 = vmul.f32 -1.442695, %v852_v15  ;;  %v644_v19 = vpop.eup %643 }
 0x110   :  { %661 = vpow2.f32 %v547_v12  ;;  %v646_v20 = vpop.eup %645  ;;  %v354_v21 = vadd.f32 1.0, %v644_v19  ;;  %v265_v22 = vpop.f32.mrb[12].mxu0 }
 0x111   :  { %663 = vpow2.f32 %v540_v17  ;;  %v297_v23 = vpop.f32.mrb[12].mxu1  ;;  %v648_v24 = vpop.eup %647  ;;  %v362_v25 = vadd.f32 1.0, %v646_v20  ;;  %v857_v27 = vadd.f32 %v806_v26, %v265_v22 }
 0x112   :  { %665 = vpow2.f32 %v548_v18  ;;  %v860_v28 = vadd.f32 %v806_v26, %v297_v23  ;;  %v267_v31 = vpop.f32.mrb[13].mxu0  ;;  %v299_v32 = vpop.f32.mrb[13].mxu1  ;;  %v355_v34 = vadd.f32 1.0, %v648_v24 }
 0x113   :  { %v650_v33 = vpop.eup %649  ;;  %667 = vrcp.f32 %v354_v21  ;;  %v268_v35 = vpop.f32.mrb[14].mxu0  ;;  %v541_v40 = vmul.f32 -1.442695, %v857_v27 }
 0x114   :  { %v300_v36 = vpop.f32.mrb[14].mxu1  ;;  %669 = vrcp.f32 %v362_v25  ;;  %v363_v39 = vadd.f32 1.0, %v650_v33  ;;  %v549_v41 = vmul.f32 -1.442695, %v860_v28  ;;  %v270_v42 = vpop.f32.mrb[15].mxu0  ;;  %v865_v44 = vadd.f32 %v806_v26, %v268_v35 }
 0x115   :  { %v652_v43 = vpop.eup %651  ;;  %671 = vrcp.f32 %v355_v34  ;;  %v868_v47 = vadd.f32 %v806_v26, %v300_v36  ;;  %v302_v48 = vpop.f32.mrb[15].mxu1 }
 0x116   :  { %v654_v49 = vpop.eup %653  ;;  %v400_v50 = vmul.f32 %v652_v43, %v809_v29  ;;  %673 = vrcp.f32 %v363_v39  ;;  %v542_v55 = vmul.f32 -1.442695, %v865_v44 }
 0x117   :  { %v656_v51 = vpop.eup %655  ;;  %v408_v52 = vmul.f32 %v654_v49, %v812_v30  ;;  %675 = vpow2.f32 %v541_v40  ;;  %v550_v56 = vmul.f32 -1.442695, %v868_v47 }
 0x118   :  { %v658_v57 = vpop.eup %657  ;;  %v567_v58 = vpack.c.bf16 %v400_v50, %v400_v50  ;;  %v401_v59 = vmul.f32 %v656_v51, %v817_v37  ;;  %677 = vpow2.f32 %v549_v41 }
 0x119   :  { %v660_v26 = vpop.eup %659  ;;  %v575_v60 = vpack.c.bf16 %v408_v52, %v408_v52  ;;  %v409_v61 = vmul.f32 %v658_v57, %v820_v38  ;;  %679 = vpow2.f32 %v542_v55 }
 0x11a   :  { %v662_v29 = vpop.eup %661  ;;  %481 = vst.msk [vmem:[%s955_s3] sm:$0xf] %vm480_vm1, %v567_v58  ;;  %v568_v30 = vpack.c.bf16 %v401_v59, %v401_v59  ;;  %v356_v62 = vadd.f32 1.0, %v660_v26  ;;  %681 = vpow2.f32 %v550_v56 }
 0x11b   :  { %v664_v63 = vpop.eup %663  ;;  %489 = vst.msk [vmem:[%s955_s3 + $0x20] sm:$0xf] %vm480_vm1, %v575_v60  ;;  %v576_v37 = vpack.c.bf16 %v409_v61, %v409_v61  ;;  %v364_v0 = vadd.f32 1.0, %v662_v29 }
 0x11c   :  { %v666_v1 = vpop.eup %665  ;;  %482 = vst.msk [vmem:[%s955_s3 + $0x4] sm:$0xf] %vm480_vm1, %v568_v30  ;;  %683 = vrcp.f32 %v356_v62  ;;  %v357_v38 = vadd.f32 1.0, %v664_v63 }
 0x11d   :  { %v668_v4 = vpop.eup %667  ;;  %490 = vst.msk [vmem:[%s955_s3 + $0x24] sm:$0xf] %vm480_vm1, %v576_v37  ;;  %685 = vrcp.f32 %v364_v0  ;;  %v365_v5 = vadd.f32 1.0, %v666_v1 }
 0x11e   :  { %v670_v6 = vpop.eup %669  ;;  %v402_v7 = vmul.f32 %v668_v4, %v825_v45  ;;  %687 = vrcp.f32 %v357_v38 }
 0x11f   :  { %v672_v8 = vpop.eup %671  ;;  %v410_v9 = vmul.f32 %v670_v6, %v828_v46  ;;  %689 = vrcp.f32 %v365_v5 }
 0x120   :  { %v674_v10 = vpop.eup %673  ;;  %v569_v11 = vpack.c.bf16 %v402_v7, %v402_v7  ;;  %v403_v12 = vmul.f32 %v672_v8, %v833_v53 }
 0x121   :  { %v676_v13 = vpop.eup %675  ;;  %v577_v16 = vpack.c.bf16 %v410_v9, %v410_v9  ;;  %v411_v17 = vmul.f32 %v674_v10, %v836_v54 }
 0x122   :  { %v678_v18 = vpop.eup %677  ;;  %483 = vst.msk [vmem:[%s955_s3 + $0x8] sm:$0xf] %vm480_vm1, %v569_v11  ;;  %v570_v45 = vpack.c.bf16 %v403_v12, %v403_v12  ;;  %v358_v19 = vadd.f32 1.0, %v676_v13 }
 0x123   :  { %v680_v20 = vpop.eup %679  ;;  %491 = vst.msk [vmem:[%s955_s3 + $0x28] sm:$0xf] %vm480_vm1, %v577_v16  ;;  %v578_v46 = vpack.c.bf16 %v411_v17, %v411_v17  ;;  %v366_v53 = vadd.f32 1.0, %v678_v18 }
 0x124   :  { %v682_v21 = vpop.eup %681  ;;  %484 = vst.msk [vmem:[%s955_s3 + $0xc] sm:$0xf] %vm480_vm1, %v570_v45  ;;  %691 = vrcp.f32 %v358_v19  ;;  %v359_v54 = vadd.f32 1.0, %v680_v20 }
 0x125   :  { %492 = vst.msk [vmem:[%s955_s3 + $0x2c] sm:$0xf] %vm480_vm1, %v578_v46  ;;  %693 = vrcp.f32 %v366_v53  ;;  %v367_v22 = vadd.f32 1.0, %v682_v21 }
 0x126   :  { %v684_v23 = vpop.eup %683  ;;  %695 = vrcp.f32 %v359_v54 }
 0x127   :  { %v686_v24 = vpop.eup %685  ;;  %v404_v25 = vmul.f32 %v684_v23, %v841_v2  ;;  %697 = vrcp.f32 %v367_v22 }
 0x128   :  { %v688_v31 = vpop.eup %687  ;;  %v412_v32 = vmul.f32 %v686_v24, %v844_v3 }
 0x129   :  { %v690_v33 = vpop.eup %689  ;;  %v571_v34 = vpack.c.bf16 %v404_v25, %v404_v25  ;;  %v405_v35 = vmul.f32 %v688_v31, %v849_v14 }
 0x12a   :  { %v579_v36 = vpack.c.bf16 %v412_v32, %v412_v32  ;;  %v413_v39 = vmul.f32 %v690_v33, %v852_v15 }
 0x12b   :  { %485 = vst.msk [vmem:[%s955_s3 + $0x10] sm:$0xf] %vm480_vm1, %v571_v34  ;;  %v572_v40 = vpack.c.bf16 %v405_v35, %v405_v35 }
 0x12c   :  { %493 = vst.msk [vmem:[%s955_s3 + $0x30] sm:$0xf] %vm480_vm1, %v579_v36  ;;  %v580_v2 = vpack.c.bf16 %v413_v39, %v413_v39 }
 0x12d   :  { %486 = vst.msk [vmem:[%s955_s3 + $0x14] sm:$0xf] %vm480_vm1, %v572_v40 }
 0x12e   :  { %v692_v3 = vpop.eup %691  ;;  %494 = vst.msk [vmem:[%s955_s3 + $0x34] sm:$0xf] %vm480_vm1, %v580_v2 }
 0x12f   :  { %v694_v14 = vpop.eup %693  ;;  %v406_v15 = vmul.f32 %v692_v3, %v857_v27 }
 0x130   :  { %v696_v41 = vpop.eup %695  ;;  %v414_v42 = vmul.f32 %v694_v14, %v860_v28 }
 0x131   :  { %v698_v43 = vpop.eup %697  ;;  %v573_v48 = vpack.c.bf16 %v406_v15, %v406_v15  ;;  %v407_v49 = vmul.f32 %v696_v41, %v865_v44 }
 0x132   :  { %v581_v50 = vpack.c.bf16 %v414_v42, %v414_v42  ;;  %v415_v51 = vmul.f32 %v698_v43, %v868_v47 }
 0x133   :  { %487 = vst.msk [vmem:[%s955_s3 + $0x18] sm:$0xf] %vm480_vm1, %v573_v48  ;;  %v574_v52 = vpack.c.bf16 %v407_v49, %v407_v49 }
 0x134   :  { %495 = vst.msk [vmem:[%s955_s3 + $0x38] sm:$0xf] %vm480_vm1, %v581_v50  ;;  %v582_v27 = vpack.c.bf16 %v415_v51, %v415_v51 }
 0x135   :  { %488 = vst.msk [vmem:[%s955_s3 + $0x1c] sm:$0xf] %vm480_vm1, %v574_v52 }
 0x136   :  { %496 = vst.msk [vmem:[%s955_s3 + $0x3c] sm:$0xf] %vm480_vm1, %v582_v27 }

// kernel: _forward_impl.8
= control target key start
LH: loop header
LB: loop body
LE: loop exit
PB: predicated region body
PF: predicated region fallthrough
CT: control target
= control target key end

     0   :  { %vm204_vm0 = vcmask 261120   ;;  %vm353_vm1 = vcmask 519168   ;;  %s590_s1 = inlined_call_operand.vmem [shape: bf16[288,64], index: 1, kind: input, shape index: {}]   ;;  %s591_s0 = inlined_call_operand.vmem [shape: bf16[32,288], index: 0, kind: input, shape index: {}]   ;;  %s592_s2 = inlined_call_operand.vmem [shape: f32[1,64], index: 2, kind: input, shape index: {}]   ;;  %s593_s3 = inlined_call_operand.vmem [shape: bf16[32,64], index: 3, kind: output, shape index: {}]  }
   0x1   :  { %v441_v0 = vld [vmem:[%s590_s1 + $0x40] sm:$0xff]   ;;  %v443_v2 = vld [vmem:[%s590_s1 + $0x48] sm:$0xff]   ;;  %v445_v4 = vld [vmem:[%s590_s1 + $0x50] sm:$0xff]  }
   0x2   :  { %v442_v1 = vld [vmem:[%s590_s1] sm:$0xff]   ;;  %401 = vmatprep.subr.bf16.mxu0 %v441_v0  ;;  %v444_v3 = vld [vmem:[%s590_s1 + $0x8] sm:$0xff]   ;;  %v446_v5 = vld [vmem:[%s590_s1 + $0x10] sm:$0xff]  }
   0x3   :  { %402 = vmatpush3.bf16.msra.mxu0 %v442_v1  ;;  %v447_v6 = vld [vmem:[%s590_s1 + $0x58] sm:$0xff]   ;;  %v449_v8 = vld [vmem:[%s590_s1 + $0x60] sm:$0xff]   ;;  %v451_v11 = vld [vmem:[%s590_s1 + $0x68] sm:$0xff]  }
   0x4   :  { %403 = vmatprep.subr.bf16.mxu0 %v443_v2  ;;  %v448_v7 = vld [vmem:[%s590_s1 + $0x18] sm:$0xff]   ;;  %v450_v9 = vld [vmem:[%s590_s1 + $0x20] sm:$0xff]   ;;  %v452_v12 = vld [vmem:[%s590_s1 + $0x28] sm:$0xff]  }
   0x5   :  { %v456_v10 = vld [vmem:[%s590_s1 + $0x80] sm:$0xff]   ;;  %v453_v13 = vld [vmem:[%s590_s1 + $0x70] sm:$0xff]   ;;  %v461_v15 = vld [vmem:[%s590_s1 + $0x88] sm:$0xff]  }
   0x6   :  { %433 = vmatprep.subr.bf16.mxu1 %v456_v10  ;;  %v460_v14 = vld [vmem:[%s591_s0 + $0x4] ss:$12 sps:$4 sm:$0xff]   ;;  %v462_v16 = vld [vmem:[%s591_s0 + $0x8] ss:$12 sps:$4 sm:$0xff]   ;;  %v463_v17 = vld [vmem:[%s591_s0 + $0x20] ss:$12 sps:$4 sm:$0xff]  }
   0x7   :  { %404 = vmatpush3.bf16.msra.mxu0 %v444_v3  ;;  %434 = vmatpush3.bf16.msra.mxu1 %v456_v10  ;;  %v454_v18 = vld [vmem:[%s590_s1 + $0x30] sm:$0xff]   ;;  %v455_v19 = vld [vmem:[%s590_s1 + $0x78] sm:$0xff]   ;;  %v458_v21 = vld [vmem:[%s591_s0] ss:$12 sps:$4 sm:$0xff]  }
   0x8   :  { %405 = vmatprep.subr.bf16.mxu0 %v445_v4  ;;  %243 = vmatprep.mubr.bf16.mxu0 %v460_v14  ;;  %v457_v20 = vld [vmem:[%s590_s1 + $0x38] sm:$0xff]   ;;  %v362_v30 = vld [vmem:[%s592_s2] ss:$0 sm:$0xff] }
   0x9   :  { %435 = vmatprep.subr.bf16.mxu1 %v461_v15  ;;  %437 = vmatprep.mubr.msk.bf16.mxu1 %vm204_vm0, %v462_v16  ;;  %v464_v22 = vld [vmem:[%s591_s0 + $0x1c] ss:$12 sps:$4 sm:$0xff]   ;;  %v466_v23 = vld [vmem:[%s591_s0 + $0x18] ss:$12 sps:$4 sm:$0xff]  }
   0xb   :  { %406 = vmatpush3.bf16.msra.mxu0 %v446_v5  ;;  %436 = vmatpush3.bf16.msra.mxu1 %v461_v15 }
   0xc   :  { %407 = vmatprep.subr.bf16.mxu0 %v447_v6 }
   0xe   :  { %438 = vmatmul.mubr.msk.bf16.vlgmr.msra.gmra.mrb[0].mxu1 %vm204_vm0, %v463_v17 }
   0xf   :  { %408 = vmatpush3.bf16.msra.mxu0 %v448_v7 }
  0x10   :  { %409 = vmatprep.subr.bf16.mxu0 %v449_v8 }
  0x13   :  { %410 = vmatpush3.bf16.msra.mxu0 %v450_v9 }
  0x14   :  { %411 = vmatprep.subr.bf16.mxu0 %v451_v11 }
  0x17   :  { %412 = vmatpush3.bf16.msra.mxu0 %v452_v12 }
  0x18   :  { %413 = vmatprep.subr.bf16.mxu0 %v453_v13 }
  0x1b   :  { %414 = vmatpush3.bf16.msra.mxu0 %v454_v18 }
  0x1c   :  { %415 = vmatprep.subr.bf16.mxu0 %v455_v19 }
  0x1f   :  { %416 = vmatpush3.bf16.msra.mxu0 %v457_v20 }
  0x22   :  { %244 = vmatmul.mubr.bf16.vlgmr.msra.gmra.mrb[0].mxu0 %v458_v21 }
  0x23   :  { %251 = vmatprep.mubr.bf16.mxu0 %v464_v22 }
  0x2a   :  { %252 = vmatmul.mubr.bf16.gmra.mrb[4].mxu0 %v466_v23 }
  0xe1   :  { %v439_v24 = vpop.f32.mrb[0].mxu1 }
  0xe2   :  { %v294_v25 = vpop.f32.mrb[1].mxu1 }
  0xe3   :  { %v440_v26 = vpop.f32.mrb[2].mxu1 }
  0xe4   :  { %v297_v27 = vpop.f32.mrb[3].mxu1 }
  0xf5   :  { %v417_v28 = vpop.f32.mrb[0].mxu0 }
  0xf6   :  { %v418_v29 = vpop.f32.mrb[1].mxu0 }
  0xf7   :  { %v419_v31 = vadd.f32 %v418_v29, %v417_v28  ;;  %v420_v32 = vpop.f32.mrb[2].mxu0 }
  0xf8   :  { %v421_v33 = vpop.f32.mrb[3].mxu0 }
  0xf9   :  { %v422_v34 = vadd.f32 %v421_v33, %v420_v32  ;;  %v246_v35 = vadd.f32 %v419_v31, %v362_v30 }
  0xfb   :  { %v295_v36 = vadd.f32 %v294_v25, %v246_v35  ;;  %v249_v37 = vadd.f32 %v422_v34, %v362_v30 }
  0xfd   :  { %v389_v38 = vmul.f32 -1.442695, %v295_v36  ;;  %v298_v39 = vadd.f32 %v297_v27, %v249_v37  ;;  %v423_v40 = vpop.f32.mrb[4].mxu0 }
  0xfe   :  { %v424_v41 = vpop.f32.mrb[5].mxu0 }
  0xff   :  { %467 = vpow2.f32 %v389_v38  ;;  %v390_v42 = vmul.f32 -1.442695, %v298_v39  ;;  %v425_v43 = vadd.f32 %v424_v41, %v423_v40  ;;  %v426_v44 = vpop.f32.mrb[6].mxu0 }
 0x100   :  { %v427_v45 = vpop.f32.mrb[7].mxu0 }
 0x101   :  { %469 = vpow2.f32 %v390_v42  ;;  %v254_v46 = vadd.f32 %v425_v43, %v362_v30  ;;  %v428_v47 = vadd.f32 %v427_v45, %v426_v44 }
 0x103   :  { %v303_v48 = vadd.f32 %v439_v24, %v254_v46  ;;  %v257_v49 = vadd.f32 %v428_v47, %v362_v30 }
 0x105   :  { %v391_v50 = vmul.f32 -1.442695, %v303_v48  ;;  %v306_v51 = vadd.f32 %v440_v26, %v257_v49 }
 0x107   :  { %471 = vpow2.f32 %v391_v50  ;;  %v392_v52 = vmul.f32 -1.442695, %v306_v51 }
 0x109   :  { %v468_v53 = vpop.eup %467  ;;  %473 = vpow2.f32 %v392_v52 }
 0x10a   :  { %v321_v54 = vadd.f32 1.0, %v468_v53 }
 0x10b   :  { %v470_v55 = vpop.eup %469 }
 0x10c   :  { %475 = vrcp.f32 %v321_v54  ;;  %v322_v56 = vadd.f32 1.0, %v470_v55 }
 0x10e   :  { %477 = vrcp.f32 %v322_v56 }
 0x111   :  { %v472_v57 = vpop.eup %471 }
 0x112   :  { %v323_v58 = vadd.f32 1.0, %v472_v57 }
 0x113   :  { %v474_v59 = vpop.eup %473 }
 0x114   :  { %479 = vrcp.f32 %v323_v58  ;;  %v324_v60 = vadd.f32 1.0, %v474_v59 }
 0x116   :  { %v476_v61 = vpop.eup %475  ;;  %481 = vrcp.f32 %v324_v60 }
 0x117   :  { %v333_v62 = vmul.f32 %v476_v61, %v295_v36 }
 0x118   :  { %v478_v63 = vpop.eup %477 }
 0x119   :  { %v397_v0 = vpack.c.bf16 %v333_v62, %v333_v62  ;;  %v334_v1 = vmul.f32 %v478_v63, %v298_v39 }
 0x11b   :  { %354 = vst.msk [vmem:[%s593_s3] sm:$0xf] %vm353_vm1, %v397_v0  ;;  %v398_v2 = vpack.c.bf16 %v334_v1, %v334_v1 }
 0x11d   :  { %355 = vst.msk [vmem:[%s593_s3 + $0x4] sm:$0xf] %vm353_vm1, %v398_v2 }
 0x11e   :  { %v480_v3 = vpop.eup %479 }
 0x11f   :  { %v335_v4 = vmul.f32 %v480_v3, %v303_v48 }
 0x120   :  { %v482_v5 = vpop.eup %481 }
 0x121   :  { %v399_v6 = vpack.c.bf16 %v335_v4, %v335_v4  ;;  %v336_v7 = vmul.f32 %v482_v5, %v306_v51 }
 0x123   :  { %356 = vst.msk [vmem:[%s593_s3 + $0x8] sm:$0xf] %vm353_vm1, %v399_v6  ;;  %v400_v8 = vpack.c.bf16 %v336_v7, %v336_v7 }
 0x125   :  { %357 = vst.msk [vmem:[%s593_s3 + $0xc] sm:$0xf] %vm353_vm1, %v400_v8 }

// kernel: _forward_impl.9
= control target key start
LH: loop header
LB: loop body
LE: loop exit
PB: predicated region body
PF: predicated region fallthrough
CT: control target
= control target key end

     0   :  { %s3126_s0 = inlined_call_operand.vmem [shape: s32[4], index: 0, kind: input, shape index: {}]   ;;  %s3127_s1 = inlined_call_operand.vmem [shape: bf16[1024,64], index: 1, kind: input, shape index: {}]   ;;  %s3128_s2 = inlined_call_operand.vmem [shape: bf16[3,64,128], index: 2, kind: input, shape index: {}]   ;;  %s3129_s3 = inlined_call_operand.vmem [shape: f32[3,8,128], index: 3, kind: input, shape index: {}]   ;;  %s3130_s4 = inlined_call_operand.vmem [shape: f32[1024,1], index: 4, kind: input, shape index: {}]   ;;  %s3131_s5 = inlined_call_operand.vmem [shape: f32[1024,1], index: 5, kind: input, shape index: {}]   ;;  %s3132_s6 = inlined_call_operand.vmem [shape: bf16[1024,128], index: 6, kind: output, shape index: {0}]   ;;  %s3133_s7 = inlined_call_operand.vmem [shape: f32[1024,128], index: 7, kind: output, shape index: {1}]  }
   0x1   :  { %s13_s26 = sshll.u32 %s3126_s0, 4  ;;  %s14_s26 = int_to_ptr.vmem [resolvable:$true] %s13_s26 }
   0x2   :  { %s2353_s27 = scalar_lea.vmem %s14_s26, 16  ;;  %p2358_p1 = scmp.lt.s32.totalorder %s14_s26, %s14_s26 }
   0x3   :  { %p2354_p0 = scmp.ne.s32.totalorder %s14_s26, %s2353_s27  ;;  %p2359_p2 = scmp.lt.s32.totalorder %s2353_s27, %s2353_s27 }
   0x5   :  { %p2360_p3 = por %p2359_p2, %p2358_p1 }
   0x7   :  { %p2361_p4 = pnand %p2360_p3, %p2354_p0 }
   0x9   :  { %2364 = shalt.err (!%p2361_p4)  }
   0xa   :  { %s2375_s28 = smov [#allocation3]  }
   0xb   :  { %16 = dma.vmem_to_smem %s14_s26, 16, %s2375_s28, [#allocation2] }
   0xc   :  { %2369 = dma.done.wait [#allocation2], 16 }
   0xd   :  { %2370 = vsyncadd [#allocation2], 4294967280 }
   0xe   :  { %18 = sfence }
   0xf   :  { %s2420_s29 = smov 0  }
  0x10 LB: > { %s2426_s0 = sadd.s32 4294967295, %s2373_s29   ;;  %p1881_p5 = scmp.ge.s32.totalorder %s2373_s29, 1  ;;  %s2373_s29 = sphi %s2420_s29, %s24_s29  }
  0x11   : > { %p272_p6 = scmp.lt.s32.totalorder %s2373_s29, 5 }
  0x13   : > { %p273_p7 = pnand %p1881_p5, %p272_p6 }
  0x15   : > { %276 = sbr.rel (%p273_p7) target bundleno = 375 (0x177), region = 40 }
  0x1c   : > { %s1882_s30 = sshll.u32 %s2426_s0, 5  ;;  %s334_s8 = sld [smem:[#allocation3 + %s2426_s0]]  ;;  %v2376_v0 = vmov 0   ;;  %vm521_vm0 = vcmask 523264  }
  0x1d   : > { %2204 = vset.pattern.permute.xlu1 %v2376_v0  ;;  %2203 = vset.pattern.permute.xlu0 %v2376_v0  ;;  %p329_p8 = scmp.lt.s32.totalorder %s1882_s30, 127  ;;  %s341_s24 = sld [smem:[#allocation3 + %s2426_s0]] }
  0x1f   : > { %s3177_s30 = smov (!%p329_p8, %s1882_s30), 127 }
  0x20   : > { %s2435_s9 = sshll.u32 %s3177_s30, 3  ;;  %s1883_s10 = sshll.u32 %s3177_s30, 2 }
  0x21   : > { %s2442_s13 = scalar_lea.vmem %s3130_s4, %s2435_s9  ;;  %s2451_s16 = scalar_lea.vmem %s3127_s1, %s1883_s10 }
  0x22   : > { %v1085_v1 = vld [vmem:[%s2442_s13 + $0x10] sm:$0xff]  ;;  %v1083_v2 = vld [vmem:[%s2442_s13] sm:$0xff]  ;;  %p335_p9 = scmp.lt.s32.totalorder %s334_s8, 2  ;;  %v1086_v3 = vld [vmem:[%s2442_s13 + $0x18] sm:$0xff]  ;;  %s2522_s23 = scalar_lea.vmem %s3131_s5, %s2435_s9 }
  0x23   : > { %1127 = vperm.xlu1 %2204, %v1085_v1   ;;  %1117 = vperm.xlu0 %2203, %v1083_v2   ;;  %v1084_v4 = vld [vmem:[%s2442_s13 + $0x8] sm:$0xff]  ;;  %v2209_v5 = vld [vmem:[%s2451_s16] sm:$0xff]   ;;  %v1090_v11 = vld [vmem:[%s2442_s13 + $0x38] sm:$0xff]  ;;  %p342_p10 = scmp.lt.s32.totalorder %s341_s24, 2  ;;  %s2764_s11 = scalar_lea.vmem %s3132_s6, %s1883_s10 }
  0x24   : > { %s3179_s8 = smov (!%p335_p9, %s334_s8), 2  ;;  %v1088_v6 = vld [vmem:[%s2442_s13 + $0x28] sm:$0xff]  ;;  %v1087_v7 = vld [vmem:[%s2442_s13 + $0x20] sm:$0xff]  ;;  %2153 = vmatprep.mubr.msk.bf16.mxu0 %vm521_vm0, %v2209_v5  ;;  %v1089_v12 = vld [vmem:[%s2442_s13 + $0x30] sm:$0xff]  ;;  %s2904_s12 = scalar_lea.vmem %s3133_s7, %s2435_s9 }
  0x25   : > { %s1997_s17 = sshll.u32 %s3179_s8, 5  ;;  %v2210_v8 = vld [vmem:[%s2451_s16 + $0x40] sm:$0xff]   ;;  %v1092_v14 = vld [vmem:[%s2442_s13 + $0x48] sm:$0xff]  ;;  %v1094_v17 = vld [vmem:[%s2442_s13 + $0x58] sm:$0xff]  ;;  %s3181_s24 = smov (!%p342_p10, %s341_s24), 2 }
  0x26   : > { %s339_s20 = scalar_lea.vmem %s3128_s2, %s1997_s17  ;;  %2169 = vmatprep.mubr.msk.bf16.mxu1 %vm521_vm0, %v2210_v8  ;;  %v1091_v15 = vld [vmem:[%s2442_s13 + $0x40] sm:$0xff]  ;;  %v1093_v18 = vld [vmem:[%s2442_s13 + $0x50] sm:$0xff]  ;;  %v2211_v19 = vld [vmem:[%s2451_s16 + $0x8] sm:$0xff]   ;;  %s1886_s25 = sshll.u32 %s3181_s24, 3 }
  0x27   : > { %1132 = vperm.xlu1 %2204, %v1086_v3   ;;  %1122 = vperm.xlu0 %2203, %v1084_v4   ;;  %v2205_v9 = vld [vmem:[%s339_s20] sm:$0xff]   ;;  %v2206_v10 = vld [vmem:[%s339_s20 + $0x8] sm:$0xff]   ;;  %v2207_v13 = vld [vmem:[%s339_s20 + $0x10] sm:$0xff]   ;;  %s345_s28 = scalar_lea.vmem %s3129_s3, %s1886_s25 }
  0x28   : > { %2145 = vmatprep.subr.bf16.mxu0 %v2205_v9  ;;  %2185 = vmatprep.subr.bf16.mxu1 %v2205_v9  ;;  %v2208_v16 = vld [vmem:[%s339_s20 + $0x18] sm:$0xff]   ;;  %v2212_v20 = vld [vmem:[%s2451_s16 + $0x48] sm:$0xff]   ;;  %v2213_v21 = vld [vmem:[%s2451_s16 + $0x10] sm:$0xff]  }
  0x29   : > { %2146 = vmatpush3.bf16.msra.mxu0 %v2205_v9  ;;  %2189 = vmatpush3.bf16.msra.mxu1 %v2205_v9  ;;  %v2214_v22 = vld [vmem:[%s2451_s16 + $0x50] sm:$0xff]   ;;  %v1096_v23 = vld [vmem:[%s2442_s13 + $0x68] sm:$0xff]  ;;  %v1095_v24 = vld [vmem:[%s2442_s13 + $0x60] sm:$0xff] }
  0x2a   : > { %2147 = vmatprep.subr.bf16.mxu0 %v2206_v10  ;;  %2186 = vmatprep.subr.bf16.mxu1 %v2206_v10  ;;  %v1098_v25 = vld [vmem:[%s2442_s13 + $0x78] sm:$0xff]  ;;  %v1097_v26 = vld [vmem:[%s2442_s13 + $0x70] sm:$0xff]  ;;  %v2217_v29 = vld [vmem:[%s2451_s16 + $0x20] sm:$0xff]  }
  0x2b   : > { %1142 = vperm.xlu1 %2204, %v1088_v6   ;;  %1137 = vperm.xlu0 %2203, %v1087_v7   ;;  %v2215_v27 = vld [vmem:[%s2451_s16 + $0x18] sm:$0xff]   ;;  %v2218_v30 = vld [vmem:[%s2451_s16 + $0x60] sm:$0xff]   ;;  %v1100_v31 = vld [vmem:[%s2442_s13 + $0x88] sm:$0xff] }
  0x2c   : > { %v2216_v28 = vld [vmem:[%s2451_s16 + $0x58] sm:$0xff]   ;;  %v1099_v32 = vld [vmem:[%s2442_s13 + $0x80] sm:$0xff]  ;;  %v1101_v34 = vld [vmem:[%s2442_s13 + $0x90] sm:$0xff] }
  0x2d   : > { %2148 = vmatpush3.bf16.msra.mxu0 %v2206_v10  ;;  %2190 = vmatpush3.bf16.msra.mxu1 %v2206_v10  ;;  %v1102_v33 = vld [vmem:[%s2442_s13 + $0x98] sm:$0xff]  ;;  %v2219_v35 = vld [vmem:[%s2451_s16 + $0x28] sm:$0xff]   ;;  %v2221_v37 = vld [vmem:[%s2451_s16 + $0x30] sm:$0xff]  }
  0x2e   : > { %2149 = vmatprep.subr.bf16.mxu0 %v2207_v13  ;;  %2187 = vmatprep.subr.bf16.mxu1 %v2207_v13  ;;  %v2220_v36 = vld [vmem:[%s2451_s16 + $0x68] sm:$0xff]   ;;  %v2222_v38 = vld [vmem:[%s2451_s16 + $0x70] sm:$0xff]   ;;  %v1103_v40 = vld [vmem:[%s2442_s13 + $0xa0] sm:$0xff] }
  0x2f   : > { %1152 = vperm.xlu1 %2204, %v1090_v11   ;;  %1147 = vperm.xlu0 %2203, %v1089_v12   ;;  %v1104_v39 = vld [vmem:[%s2442_s13 + $0xa8] sm:$0xff]  ;;  %v1106_v41 = vld [vmem:[%s2442_s13 + $0xb8] sm:$0xff]  ;;  %v1105_v42 = vld [vmem:[%s2442_s13 + $0xb0] sm:$0xff] }
  0x30   : > { %v2223_v43 = vld [vmem:[%s2451_s16 + $0x38] sm:$0xff]   ;;  %v1108_v45 = vld [vmem:[%s2442_s13 + $0xc8] sm:$0xff]  ;;  %v1107_v46 = vld [vmem:[%s2442_s13 + $0xc0] sm:$0xff] }
  0x31   : > { %2150 = vmatpush3.bf16.msra.mxu0 %v2207_v13  ;;  %2191 = vmatpush3.bf16.msra.mxu1 %v2207_v13  ;;  %v2224_v44 = vld [vmem:[%s2451_s16 + $0x78] sm:$0xff]   ;;  %v1109_v48 = vld [vmem:[%s2442_s13 + $0xd0] sm:$0xff]  ;;  %v1112_v49 = vld [vmem:[%s2442_s13 + $0xe8] sm:$0xff] }
  0x32   : > { %2151 = vmatprep.subr.bf16.mxu0 %v2208_v16  ;;  %2188 = vmatprep.subr.bf16.mxu1 %v2208_v16  ;;  %v1110_v47 = vld [vmem:[%s2442_s13 + $0xd8] sm:$0xff]  ;;  %v1111_v50 = vld [vmem:[%s2442_s13 + $0xe0] sm:$0xff]  ;;  %v1113_v52 = vld [vmem:[%s2442_s13 + $0xf0] sm:$0xff] }
  0x33   : > { %1162 = vperm.xlu1 %2204, %v1092_v14   ;;  %1157 = vperm.xlu0 %2203, %v1091_v15   ;;  %v1114_v51 = vld [vmem:[%s2442_s13 + $0xf8] sm:$0xff]  ;;  %v1312_v53 = vld [vmem:[%s2522_s23 + $0x8] sm:$0xff]  ;;  %v1311_v54 = vld [vmem:[%s2522_s23] sm:$0xff] }
  0x34   : > { %v1314_v55 = vld [vmem:[%s2522_s23 + $0x18] sm:$0xff]  ;;  %v1313_v56 = vld [vmem:[%s2522_s23 + $0x10] sm:$0xff]  ;;  %v1316_v57 = vld [vmem:[%s2522_s23 + $0x28] sm:$0xff] }
  0x35   : > { %2152 = vmatpush3.bf16.msra.mxu0 %v2208_v16  ;;  %2192 = vmatpush3.bf16.msra.mxu1 %v2208_v16  ;;  %v1315_v58 = vld [vmem:[%s2522_s23 + $0x20] sm:$0xff]  ;;  %v1318_v59 = vld [vmem:[%s2522_s23 + $0x38] sm:$0xff]  ;;  %v1317_v60 = vld [vmem:[%s2522_s23 + $0x30] sm:$0xff] }
  0x36   : > { %v1320_v61 = vld [vmem:[%s2522_s23 + $0x48] sm:$0xff]  ;;  %v1319_v62 = vld [vmem:[%s2522_s23 + $0x40] sm:$0xff]  ;;  %v1322_v63 = vld [vmem:[%s2522_s23 + $0x58] sm:$0xff] }
  0x37   : > { %1172 = vperm.xlu1 %2204, %v1094_v17   ;;  %1167 = vperm.xlu0 %2203, %v1093_v18   ;;  %v1321_v0 = vld [vmem:[%s2522_s23 + $0x50] sm:$0xff]  ;;  %v1324_v1 = vld [vmem:[%s2522_s23 + $0x68] sm:$0xff]  ;;  %v1323_v2 = vld [vmem:[%s2522_s23 + $0x60] sm:$0xff] }
  0x38   : > { %2154 = vmatmul.mubr.msk.bf16.vlgmr.msra.gmra.mrb[0].mxu0 %vm521_vm0, %v2211_v19  ;;  %2170 = vmatmul.mubr.msk.bf16.vlgmr.msra.gmra.mrb[0].mxu1 %vm521_vm0, %v2212_v20  ;;  %v1326_v3 = vld [vmem:[%s2522_s23 + $0x78] sm:$0xff]  ;;  %v1325_v4 = vld [vmem:[%s2522_s23 + $0x70] sm:$0xff]  ;;  %v1328_v5 = vld [vmem:[%s2522_s23 + $0x88] sm:$0xff] }
  0x39   : > { %2157 = vmatprep.mubr.msk.bf16.mxu0 %vm521_vm0, %v2213_v21  ;;  %2173 = vmatprep.mubr.msk.bf16.mxu1 %vm521_vm0, %v2214_v22  ;;  %v1327_v6 = vld [vmem:[%s2522_s23 + $0x80] sm:$0xff]  ;;  %v1330_v7 = vld [vmem:[%s2522_s23 + $0x98] sm:$0xff]  ;;  %v1329_v8 = vld [vmem:[%s2522_s23 + $0x90] sm:$0xff] }
  0x3a   : > { %v1332_v9 = vld [vmem:[%s2522_s23 + $0xa8] sm:$0xff]  ;;  %v1331_v10 = vld [vmem:[%s2522_s23 + $0xa0] sm:$0xff]  ;;  %v1334_v11 = vld [vmem:[%s2522_s23 + $0xb8] sm:$0xff] }
  0x3b   : > { %1182 = vperm.xlu1 %2204, %v1096_v23   ;;  %1177 = vperm.xlu0 %2203, %v1095_v24   ;;  %v1333_v12 = vld [vmem:[%s2522_s23 + $0xb0] sm:$0xff]  ;;  %v1336_v13 = vld [vmem:[%s2522_s23 + $0xc8] sm:$0xff]  ;;  %v1335_v14 = vld [vmem:[%s2522_s23 + $0xc0] sm:$0xff] }
  0x3c   : > { %v1338_v15 = vld [vmem:[%s2522_s23 + $0xd8] sm:$0xff]  ;;  %v1337_v16 = vld [vmem:[%s2522_s23 + $0xd0] sm:$0xff]  ;;  %v1340_v17 = vld [vmem:[%s2522_s23 + $0xe8] sm:$0xff] }
  0x3d   : > { %v1339_v18 = vld [vmem:[%s2522_s23 + $0xe0] sm:$0xff]  ;;  %v1342_v19 = vld [vmem:[%s2522_s23 + $0xf8] sm:$0xff]  ;;  %v1341_v20 = vld [vmem:[%s2522_s23 + $0xf0] sm:$0xff] }
  0x3f   : > { %1192 = vperm.xlu1 %2204, %v1098_v25   ;;  %1187 = vperm.xlu0 %2203, %v1097_v26  }
  0x40   : > { %2158 = vmatmul.mubr.msk.bf16.gmra.mrb[4].mxu0 %vm521_vm0, %v2215_v27  ;;  %2174 = vmatmul.mubr.msk.bf16.gmra.mrb[4].mxu1 %vm521_vm0, %v2216_v28  ;;  %v413_v27 = vlaneseq }
  0x41   : > { %2161 = vmatprep.mubr.msk.bf16.mxu0 %vm521_vm0, %v2217_v29  ;;  %2177 = vmatprep.mubr.msk.bf16.mxu1 %vm521_vm0, %v2218_v30 }
  0x42   : > { %v414_v30 = vshrl.u32 %v413_v27, 7 }
  0x43   : > { %1202 = vperm.xlu1 %2204, %v1100_v31   ;;  %1197 = vperm.xlu0 %2203, %v1099_v32  }
  0x47   : > { %1212 = vperm.xlu1 %2204, %v1102_v33   ;;  %1207 = vperm.xlu0 %2203, %v1101_v34   ;;  %v1277_v33 = vsub.s32 3, %v414_v30  ;;  %v372_v34 = vld [vmem:[%s345_s28] sm:$0xff] }
  0x48   : > { %2162 = vmatmul.mubr.msk.bf16.gmra.mrb[8].mxu0 %vm521_vm0, %v2219_v35  ;;  %2178 = vmatmul.mubr.msk.bf16.gmra.mrb[8].mxu1 %vm521_vm0, %v2220_v36 }
  0x49   : > { %2165 = vmatprep.mubr.msk.bf16.mxu0 %vm521_vm0, %v2221_v37  ;;  %2181 = vmatprep.mubr.msk.bf16.mxu1 %vm521_vm0, %v2222_v38  ;;  %v2580_v37 = vrot.slane %v372_v34, %v1277_v33 }
  0x4b   : > { %1222 = vperm.xlu1 %2204, %v1104_v39   ;;  %1217 = vperm.xlu0 %2203, %v1103_v40   ;;  %3136 = vst [vmem:[#allocation5_spill] sm:$0xff] %v2580_v37 }
  0x4f   : > { %1232 = vperm.xlu1 %2204, %v1106_v41   ;;  %1227 = vperm.xlu0 %2203, %v1105_v42  }
  0x50   : > { %2166 = vmatmul.mubr.msk.bf16.gmra.mrb[12].mxu0 %vm521_vm0, %v2223_v43  ;;  %2182 = vmatmul.mubr.msk.bf16.gmra.mrb[12].mxu1 %vm521_vm0, %v2224_v44 }
  0x53   : > { %1242 = vperm.xlu1 %2204, %v1108_v45   ;;  %1237 = vperm.xlu0 %2203, %v1107_v46  }
  0x57   : > { %1252 = vperm.xlu1 %2204, %v1110_v47   ;;  %1247 = vperm.xlu0 %2203, %v1109_v48  }
  0x5b   : > { %1262 = vperm.xlu1 %2204, %v1112_v49   ;;  %1257 = vperm.xlu0 %2203, %v1111_v50  }
  0x5f   : > { %1272 = vperm.xlu1 %2204, %v1114_v51   ;;  %1267 = vperm.xlu0 %2203, %v1113_v52  }
  0x63   : > { %1350 = vperm.xlu1 %2204, %v1312_v53   ;;  %1345 = vperm.xlu0 %2203, %v1311_v54  }
  0x67   : > { %1360 = vperm.xlu1 %2204, %v1314_v55   ;;  %1355 = vperm.xlu0 %2203, %v1313_v56  }
  0x6b   : > { %1370 = vperm.xlu1 %2204, %v1316_v57   ;;  %1365 = vperm.xlu0 %2203, %v1315_v58  }
  0x6f   : > { %1380 = vperm.xlu1 %2204, %v1318_v59   ;;  %1375 = vperm.xlu0 %2203, %v1317_v60  }
  0x73   : > { %1390 = vperm.xlu1 %2204, %v1320_v61   ;;  %1385 = vperm.xlu0 %2203, %v1319_v62  }
  0x77   : > { %1400 = vperm.xlu1 %2204, %v1322_v63   ;;  %1395 = vperm.xlu0 %2203, %v1321_v0  }
  0x7b   : > { %1410 = vperm.xlu1 %2204, %v1324_v1   ;;  %1405 = vperm.xlu0 %2203, %v1323_v2  }
  0x7f   : > { %1420 = vperm.xlu1 %2204, %v1326_v3   ;;  %1415 = vperm.xlu0 %2203, %v1325_v4  }
  0x83   : > { %1430 = vperm.xlu1 %2204, %v1328_v5   ;;  %1425 = vperm.xlu0 %2203, %v1327_v6   ;;  %v1505_v6 = vsub.s32 4, %v414_v30 }
  0x87   : > { %1440 = vperm.xlu1 %2204, %v1330_v7   ;;  %1435 = vperm.xlu0 %2203, %v1329_v8  }
  0x8b   : > { %1450 = vperm.xlu1 %2204, %v1332_v9   ;;  %1445 = vperm.xlu0 %2203, %v1331_v10   ;;  %v2618_v9 = vrot.slane %v372_v34, %v1505_v6 }
  0x8f   : > { %1460 = vperm.xlu1 %2204, %v1334_v11   ;;  %1455 = vperm.xlu0 %2203, %v1333_v12  }
  0x93   : > { %1470 = vperm.xlu1 %2204, %v1336_v13   ;;  %1465 = vperm.xlu0 %2203, %v1335_v14  }
  0x97   : > { %1480 = vperm.xlu1 %2204, %v1338_v15   ;;  %1475 = vperm.xlu0 %2203, %v1337_v16   ;;  %v415_v15 = vsub.s32 0, %v414_v30  ;;  %v1573_v16 = vsub.s32 2, %v414_v30 }
  0x99   : > { %v2633_v27 = vrot.slane %v372_v34, %v1573_v16 }
  0x9b   : > { %1490 = vperm.xlu1 %2204, %v1340_v17   ;;  %1485 = vperm.xlu0 %2203, %v1339_v18   ;;  %v1609_v17 = vsub.s32 1, %v414_v30 }
  0x9f   : > { %1500 = vperm.xlu1 %2204, %v1342_v19   ;;  %1495 = vperm.xlu0 %2203, %v1341_v20   ;;  %v2631_v20 = vrot.slane %v372_v34, %v415_v15 }
  0xa2   : > { %v2557_v21 = vpop.permute.xlu1 %1127  ;;  %v2559_v22 = vpop.permute.xlu0 %1117 }
  0xa3   : > { %v1281_v18 = vmul.f32 %v2580_v37, %v2557_v21  ;;  %v1279_v19 = vmul.f32 %v2580_v37, %v2559_v22 }
  0xa6   : > { %v2561_v23 = vpop.permute.xlu1 %1132  ;;  %v2563_v24 = vpop.permute.xlu0 %1122 }
  0xa7   : > { %v1282_v33 = vmul.f32 %v2580_v37, %v2561_v23 }
  0xaa   : > { %v2565_v25 = vpop.permute.xlu1 %1142  ;;  %v2567_v26 = vpop.permute.xlu0 %1137 }
  0xab   : > { %v2647_v21 = vmul.f32 %v2580_v37, %v2567_v26 }
  0xae   : > { %v2569_v28 = vpop.permute.xlu1 %1152  ;;  %v2571_v29 = vpop.permute.xlu0 %1147 }
  0xaf   : > { %v2651_v22 = vmul.f32 %v2580_v37, %v2569_v28  ;;  %v2655_v23 = vmul.f32 %v2580_v37, %v2571_v29 }
  0xb2   : > { %v2576_v31 = vpop.permute.xlu1 %1162  ;;  %v2578_v32 = vpop.permute.xlu0 %1157 }
  0xb6   : > { %v1173_v35 = vpop.permute.xlu1 %1172  ;;  %v1168_v36 = vpop.permute.xlu0 %1167 }
  0xb7   : > { %v2669_v26 = vmul.f32 %v2580_v37, %v1168_v36 }
  0xba   : > { %v1183_v38 = vpop.permute.xlu1 %1182  ;;  %v1178_v39 = vpop.permute.xlu0 %1177 }
  0xbb   : > { %v1292_v40 = vmul.f32 %v2580_v37, %v1183_v38  ;;  %v1280_v38 = vmul.f32 %v2580_v37, %v2563_v24  ;;  %v2659_v24 = vmul.f32 %v2580_v37, %v2576_v31  ;;  %v2672_v28 = vmul.f32 %v2580_v37, %v1178_v39 }
  0xbd   : > { %3141 = vst [vmem:[#allocation10_spill] sm:$0xff] %v2659_v24  ;;  %3144 = vst [vmem:[#allocation13_spill] sm:$0xff] %v2672_v28 }
  0xbe   : > { %v1193_v41 = vpop.permute.xlu1 %1192  ;;  %v1188_v42 = vpop.permute.xlu0 %1187 }
  0xbf   : > { %v2675_v29 = vmul.f32 %v2580_v37, %v1193_v41  ;;  %v2678_v6 = vmul.f32 %v2580_v37, %v1188_v42 }
  0xc1   : > { %3145 = vst [vmem:[#allocation14_spill] sm:$0xff] %v2675_v29  ;;  %3146 = vst [vmem:[#allocation15_spill] sm:$0xff] %v2678_v6 }
  0xc2   : > { %v1203_v43 = vpop.permute.xlu1 %1202  ;;  %v1198_v44 = vpop.permute.xlu0 %1197 }
  0xc3   : > { %v2681_v31 = vmul.f32 %v2580_v37, %v1203_v43 }
  0xc6   : > { %v1213_v45 = vpop.permute.xlu1 %1212  ;;  %v1208_v46 = vpop.permute.xlu0 %1207 }
  0xc7   : > { %v2690_v36 = vmul.f32 %v2580_v37, %v1213_v45  ;;  %v2693_v39 = vmul.f32 %v2580_v37, %v1208_v46 }
  0xca   : > { %v1223_v47 = vpop.permute.xlu1 %1222  ;;  %v1218_v48 = vpop.permute.xlu0 %1217 }
  0xcb   : > { %v2697_v42 = vmul.f32 %v2580_v37, %v1223_v47  ;;  %v2700_v43 = vmul.f32 %v2580_v37, %v1218_v48 }
  0xce   : > { %v2583_v49 = vpop.permute.xlu1 %1232  ;;  %v2585_v50 = vpop.permute.xlu0 %1227 }
  0xcf   : > { %v2710_v45 = vmul.f32 %v2580_v37, %v2585_v50 }
  0xd2   : > { %v2587_v51 = vpop.permute.xlu1 %1242  ;;  %v2589_v52 = vpop.permute.xlu0 %1237 }
  0xd3   : > { %v2714_v46 = vmul.f32 %v2580_v37, %v2587_v51  ;;  %v2718_v47 = vmul.f32 %v2580_v37, %v2589_v52 }
  0xd5   : > { %3148 = vst [vmem:[#allocation17_spill] sm:$0xff] %v2714_v46  ;;  %3149 = vst [vmem:[#allocation18_spill] sm:$0xff] %v2718_v47 }
  0xd6   : > { %v2591_v53 = vpop.permute.xlu1 %1252  ;;  %v2593_v54 = vpop.permute.xlu0 %1247 }
  0xda   : > { %v1263_v55 = vpop.permute.xlu1 %1262  ;;  %v2595_v56 = vpop.permute.xlu0 %1257 }
  0xdb   : > { %v2598_v57 = vmul.f32 %v2580_v37, %v1263_v55  ;;  %v2643_v55 = vrot.slane %v372_v34, %v1609_v17  ;;  %v2666_v34 = vmul.f32 %v2580_v37, %v1173_v35  ;;  %v2687_v35 = vmul.f32 %v2580_v37, %v1198_v44 }
  0xdc   : > { %v2706_v44 = vmul.f32 %v2580_v37, %v2583_v49  ;;  %v2728_v49 = vmul.f32 %v2580_v37, %v2593_v54  ;;  %v2732_v50 = vmul.f32 %v2580_v37, %v2595_v56 }
  0xdd   : > { %3137 = vst [vmem:[#allocation6_spill] sm:$0xff] %v2598_v57  ;;  %3143 = vst [vmem:[#allocation12_spill] sm:$0xff] %v2666_v34 }
  0xde   : > { %v2600_v58 = vpop.permute.xlu1 %1272  ;;  %v2602_v59 = vpop.permute.xlu0 %1267  ;;  %3151 = vst [vmem:[#allocation20_spill] sm:$0xff] %v2728_v49  ;;  %3152 = vst [vmem:[#allocation21_spill] sm:$0xff] %v2732_v50 }
  0xdf   : > { %3138 = vst [vmem:[#allocation7_spill] sm:$0xff] %v2600_v58 }
  0xe2   : > { %v1351_v60 = vpop.permute.xlu1 %1350  ;;  %v1346_v61 = vpop.permute.xlu0 %1345 }
  0xe3   : > { %v1507_v41 = vmul.f32 %v2618_v9, %v1346_v61  ;;  %v2724_v61 = vmul.f32 %v2580_v37, %v2591_v53 }
  0xe5   : > { %3150 = vst [vmem:[#allocation19_spill] sm:$0xff] %v2724_v61  ;;  %v2736_v52 = vadd.f32 %v1507_v41, %v1279_v19 }
  0xe6   : > { %v1361_v62 = vpop.permute.xlu1 %1360  ;;  %v1356_v63 = vpop.permute.xlu0 %1355 }
  0xea   : > { %v1371_v0 = vpop.permute.xlu1 %1370  ;;  %v2604_v1 = vpop.permute.xlu0 %1365 }
  0xeb   : > { %v1512_v15 = vmul.f32 %v2618_v9, %v1371_v0  ;;  %v1511_v0 = vmul.f32 %v2618_v9, %v2604_v1 }
  0xed   : > { %v2768_v61 = vadd.f32 %v1511_v0, %v2647_v21 }
  0xee   : > { %v2606_v2 = vpop.permute.xlu1 %1380  ;;  %v2608_v3 = vpop.permute.xlu0 %1375 }
  0xef   : > { %v1514_v19 = vmul.f32 %v2618_v9, %v2606_v2  ;;  %v1513_v1 = vmul.f32 %v2618_v9, %v2608_v3 }
  0xf1   : > { %v2771_v47 = vadd.f32 %v1514_v19, %v2651_v22 }
  0xf2   : > { %v2610_v4 = vpop.permute.xlu1 %1390  ;;  %v2612_v5 = vpop.permute.xlu0 %1385 }
  0xf3   : > { %v2784_v0 = vmul.f32 %v2618_v9, %v2610_v4 }
  0xf5   : > { %3153 = vst [vmem:[#allocation22_spill] sm:$0xff] %v2784_v0 }
  0xf6   : > { %v2614_v7 = vpop.permute.xlu1 %1400  ;;  %v2616_v8 = vpop.permute.xlu0 %1395 }
  0xf7   : > { %v2796_v4 = vmul.f32 %v2618_v9, %v2616_v8 }
  0xfa   : > { %v1411_v10 = vpop.permute.xlu1 %1410  ;;  %v2620_v11 = vpop.permute.xlu0 %1405 }
  0xfb   : > { %v1520_v12 = vmul.f32 %v2618_v9, %v1411_v10 }
  0xfd   : > { %v2623_v13 = vadd.f32 %v1520_v12, %v1292_v40  ;;  %v1284_v40 = vmul.f32 %v2580_v37, %v2565_v25  ;;  %v2663_v25 = vmul.f32 %v2580_v37, %v2578_v32  ;;  %v1508_v32 = vmul.f32 %v2618_v9, %v1351_v60 }
  0xfe   : > { %v2625_v14 = vpop.permute.xlu0 %1415  ;;  %v2684_v10 = vpop.permute.xlu1 %1420  ;;  %v1510_v60 = vmul.f32 %v2618_v9, %v1361_v62  ;;  %v1509_v12 = vmul.f32 %v2618_v9, %v1356_v63 }
  0xff   : > { %3139 = vst [vmem:[#allocation8_spill] sm:$0xff] %v2623_v13  ;;  %3140 = vst [vmem:[#allocation9_spill] sm:$0xff] %v2625_v14  ;;  %v2734_v51 = vadd.f32 %v1508_v32, %v1280_v38 }
 0x100   : > { %3142 = vst [vmem:[#allocation11_spill] sm:$0xff] %v2663_v25  ;;  %3147 = vst [vmem:[#allocation16_spill] sm:$0xff] %v2684_v10  ;;  %v2741_v54 = vadd.f32 %v1510_v60, %v1282_v33  ;;  %v2743_v13 = vadd.f32 %v1509_v12, %v1281_v18 }
 0x102   : > { %v2641_v30 = vpop.permute.xlu0 %1425  ;;  %v2745_v56 = vpop.permute.xlu1 %1430 }
 0x103   : > { %v1523_v8 = vmul.f32 %v2618_v9, %v2641_v30 }
 0x106   : > { %v2720_v48 = vpop.permute.xlu0 %1435 }
 0x10b   : > { %v2155_v62 = vpop.f32.mrb[0].mxu0  ;;  %v2171_v63 = vpop.f32.mrb[0].mxu1 }
 0x10c   : > { %v613_v16 = vadd.f32 %v2155_v62, %v2631_v20  ;;  %v677_v53 = vadd.f32 %v2171_v63, %v2631_v20  ;;  %v604_v17 = vpop.f32.mrb[1].mxu0  ;;  %v668_v57 = vpop.f32.mrb[1].mxu1 }
 0x10d   : > { %v605_v38 = vadd.f32 %v604_v17, %v2631_v20  ;;  %v669_v32 = vadd.f32 %v668_v57, %v2631_v20  ;;  %v2156_v63 = vpop.f32.mrb[2].mxu0  ;;  %v2172_v33 = vpop.f32.mrb[2].mxu1  ;;  %v2755_v57 = vadd.f32 %v1512_v15, %v1284_v40 }
 0x10e   : > { %v1965_v41 = vmul.f32 -1.442695, %v613_v16  ;;  %v1981_v62 = vmul.f32 -1.442695, %v677_v53  ;;  %v616_v12 = vadd.f32 %v2156_v63, %v2631_v20  ;;  %v680_v29 = vadd.f32 %v2172_v33, %v2631_v20  ;;  %v607_v17 = vpop.f32.mrb[3].mxu0  ;;  %v671_v50 = vpop.f32.mrb[3].mxu1 }
 0x10f   : > { %v1963_v60 = vmul.f32 -1.442695, %v605_v38  ;;  %v1979_v18 = vmul.f32 -1.442695, %v669_v32  ;;  %v608_v2 = vadd.f32 %v607_v17, %v2631_v20  ;;  %v1446_v40 = vpop.permute.xlu0 %1445 }
 0x110   : > { %2225 = vpow2.f32 %v1965_v41  ;;  %v2038_v63 = vpack.c.bf16 %v616_v12, %v613_v16  ;;  %v1966_v33 = vmul.f32 -1.442695, %v616_v12  ;;  %v2078_v58 = vpack.c.bf16 %v680_v29, %v677_v53 }
 0x111   : > { %2227 = vpow2.f32 %v1981_v62  ;;  %v1982_v15 = vmul.f32 -1.442695, %v680_v29  ;;  %v2033_v3 = vpack.c.bf16 %v608_v2, %v605_v38  ;;  %v1964_v41 = vmul.f32 -1.442695, %v608_v2 }
 0x112   : > { %2229 = vpow2.f32 %v1963_v60  ;;  %2110 = vst [vmem:[%s2764_s11 + $0x8] sm:$0xff] %v2038_v63   ;;  %2118 = vst [vmem:[%s2764_s11 + $0x48] sm:$0xff] %v2078_v58   ;;  %v672_v62 = vadd.f32 %v671_v50, %v2631_v20  ;;  %v2777_v53 = vadd.f32 %v1513_v1, %v2655_v23  ;;  %v1441_v58 = vpop.permute.xlu1 %1440  ;;  %v2788_v23 = vmul.f32 %v2618_v9, %v2612_v5 }
 0x113   : > { %2231 = vpow2.f32 %v1979_v18  ;;  %v2159_v16 = vpop.f32.mrb[4].mxu0  ;;  %v2175_v12 = vpop.f32.mrb[4].mxu1  ;;  %2034 = vst [vmem:[%s2764_s11] sm:$0xff] %v2033_v3   ;;  %v2792_v2 = vmul.f32 %v2618_v9, %v2614_v7  ;;  %v1524_v7 = vmul.f32 %v2618_v9, %v2745_v56 }
 0x114   : > { %2233 = vpow2.f32 %v1966_v33  ;;  %v629_v29 = vadd.f32 %v2159_v16, %v2631_v20  ;;  %v693_v21 = vadd.f32 %v2175_v12, %v2631_v20  ;;  %v620_v38 = vpop.f32.mrb[5].mxu0  ;;  %v684_v22 = vpop.f32.mrb[5].mxu1  ;;  %v2073_v50 = vpack.c.bf16 %v672_v62, %v669_v32  ;;  %3154 = vst [vmem:[#allocation23_spill] sm:$0xff] %v2788_v23 }
 0x115   : > { %2235 = vpow2.f32 %v1982_v15  ;;  %v1980_v19 = vmul.f32 -1.442695, %v672_v62  ;;  %v2160_v17 = vpop.f32.mrb[6].mxu0  ;;  %v2176_v1 = vpop.f32.mrb[6].mxu1  ;;  %3155 = vst [vmem:[#allocation24_spill] sm:$0xff] %v2792_v2  ;;  %v621_v32 = vadd.f32 %v620_v38, %v2631_v20  ;;  %v685_v33 = vadd.f32 %v684_v22, %v2631_v20 }
 0x116   : > { %2237 = vpow2.f32 %v1964_v41  ;;  %v1969_v60 = vmul.f32 -1.442695, %v629_v29  ;;  %v1985_v18 = vmul.f32 -1.442695, %v693_v21  ;;  %2117 = vst [vmem:[%s2764_s11 + $0x40] sm:$0xff] %v2073_v50   ;;  %v623_v63 = vpop.f32.mrb[7].mxu0  ;;  %v632_v15 = vadd.f32 %v2160_v17, %v2631_v20  ;;  %v1456_v12 = vpop.permute.xlu0 %1455 }
 0x117   : > { %2239 = vpow2.f32 %v1980_v19  ;;  %v687_v5 = vpop.f32.mrb[7].mxu1  ;;  %v2803_v3 = vadd.f32 %v2176_v1, %v2631_v20  ;;  %v1967_v41 = vmul.f32 -1.442695, %v621_v32  ;;  %v1526_v16 = vmul.f32 %v2618_v9, %v1441_v58  ;;  %v1451_v49 = vpop.permute.xlu1 %1450 }
 0x118   : > { %2241 = vpow2.f32 %v1969_v60  ;;  %v1983_v38 = vmul.f32 -1.442695, %v685_v33  ;;  %v2048_v22 = vpack.c.bf16 %v632_v15, %v629_v29  ;;  %v1525_v60 = vmul.f32 %v2618_v9, %v2720_v48 }
 0x119   : > { %2243 = vpow2.f32 %v1985_v18  ;;  %v2088_v50 = vpack.c.bf16 %v2803_v3, %v693_v21  ;;  %v624_v30 = vadd.f32 %v623_v63, %v2631_v20  ;;  %v1527_v58 = vmul.f32 %v2618_v9, %v1446_v40 }
 0x11a   : > { %v2226_v62 = vpop.eup %2225  ;;  %2245 = vpow2.f32 %v1967_v41  ;;  %2112 = vst [vmem:[%s2764_s11 + $0x18] sm:$0xff] %v2048_v22   ;;  %v688_v29 = vadd.f32 %v687_v5, %v2631_v20  ;;  %v1529_v48 = vmul.f32 %v2618_v9, %v1456_v12  ;;  %v2820_v14 = vadd.f32 %v1524_v7, %v2681_v31 }
 0x11b   : > { %v2228_v19 = vpop.eup %2227  ;;  %v989_v56 = vadd.f32 1.0, %v2226_v62  ;;  %v2163_v18 = vpop.f32.mrb[8].mxu0  ;;  %2247 = vpow2.f32 %v1983_v38  ;;  %2120 = vst [vmem:[%s2764_s11 + $0x58] sm:$0xff] %v2088_v50   ;;  %v2043_v41 = vpack.c.bf16 %v624_v30, %v621_v32 }
 0x11c   : > { %v2179_v17 = vpop.f32.mrb[8].mxu1  ;;  %v2230_v1 = vpop.eup %2229  ;;  %v1005_v46 = vadd.f32 1.0, %v2228_v19  ;;  %v2083_v38 = vpack.c.bf16 %v688_v29, %v685_v33  ;;  %v2823_v19 = vadd.f32 %v1523_v8, %v2687_v35  ;;  %v2842_v7 = vadd.f32 %v1529_v48, %v2710_v45 }
 0x11d   : > { %v636_v21 = vpop.f32.mrb[9].mxu0  ;;  %v700_v6 = vpop.f32.mrb[9].mxu1  ;;  %2249 = vrcp.f32 %v989_v56  ;;  %v987_v63 = vadd.f32 1.0, %v2230_v1  ;;  %v2826_v56 = vadd.f32 %v1526_v16, %v2690_v36  ;;  %2111 = vst [vmem:[%s2764_s11 + $0x10] sm:$0xff] %v2043_v41   ;;  %v2839_v36 = vadd.f32 %v1527_v58, %v2700_v43 }
 0x11e   : > { %v2232_v10 = vpop.eup %2231  ;;  %2251 = vrcp.f32 %v1005_v46  ;;  %v2164_v22 = vpop.f32.mrb[10].mxu0  ;;  %v2835_v46 = vmul.f32 %v2618_v9, %v1451_v49  ;;  %2119 = vst [vmem:[%s2764_s11 + $0x50] sm:$0xff] %v2083_v38   ;;  %v1968_v48 = vmul.f32 -1.442695, %v624_v30  ;;  %v637_v38 = vadd.f32 %v636_v21, %v2631_v20 }
 0x11f   : > { %v2234_v62 = vpop.eup %2233  ;;  %v1003_v40 = vadd.f32 1.0, %v2232_v10  ;;  %v2180_v5 = vpop.f32.mrb[10].mxu1  ;;  %2253 = vrcp.f32 %v987_v63  ;;  %v2832_v10 = vadd.f32 %v1525_v60, %v2693_v39  ;;  %v1970_v39 = vmul.f32 -1.442695, %v632_v15 }
 0x120   : > { %v2236_v50 = vpop.eup %2235  ;;  %v990_v12 = vadd.f32 1.0, %v2234_v62  ;;  %v639_v32 = vpop.f32.mrb[11].mxu0  ;;  %v645_v60 = vadd.f32 %v2163_v18, %v2631_v20  ;;  %v1986_v62 = vmul.f32 -1.442695, %v2803_v3  ;;  %v2860_v3 = vadd.f32 %v2164_v22, %v2631_v20 }
 0x121   : > { %v2829_v1 = vpop.f32.mrb[11].mxu1  ;;  %v2238_v31 = vpop.eup %2237  ;;  %2255 = vrcp.f32 %v1003_v40  ;;  %v1006_v33 = vadd.f32 1.0, %v2236_v50  ;;  %v709_v40 = vadd.f32 %v2179_v17, %v2631_v20  ;;  %v2863_v17 = vadd.f32 %v2180_v5, %v2631_v20 }
 0x122   : > { %v2240_v35 = vpop.eup %2239  ;;  %2257 = vrcp.f32 %v990_v12  ;;  %v988_v8 = vadd.f32 1.0, %v2238_v31  ;;  %v2857_v12 = vadd.f32 %v700_v6, %v2631_v20  ;;  %v2058_v5 = vpack.c.bf16 %v2860_v3, %v645_v60 }
 0x123   : > { %v2242_v16 = vpop.eup %2241  ;;  %2259 = vrcp.f32 %v1006_v33  ;;  %v1004_v63 = vadd.f32 1.0, %v2240_v35  ;;  %v2847_v43 = vpop.f32.mrb[12].mxu0  ;;  %v1984_v35 = vmul.f32 -1.442695, %v688_v29  ;;  %v2871_v22 = vmul.f32 -1.442695, %v709_v40 }
 0x124   : > { %v2244_v49 = vpop.eup %2243  ;;  %2261 = vrcp.f32 %v988_v8  ;;  %v993_v41 = vadd.f32 1.0, %v2242_v16  ;;  %v2849_v58 = vpop.f32.mrb[12].mxu1  ;;  %v1973_v8 = vmul.f32 -1.442695, %v645_v60  ;;  %v2098_v29 = vpack.c.bf16 %v2863_v17, %v709_v40  ;;  %2114 = vst [vmem:[%s2764_s11 + $0x28] sm:$0xff] %v2058_v5  }
 0x125   : > { %2263 = vrcp.f32 %v1004_v63  ;;  %v1009_v45 = vadd.f32 1.0, %v2244_v49  ;;  %v2852_v50 = vpop.f32.mrb[13].mxu0  ;;  %v2854_v15 = vpop.f32.mrb[13].mxu1  ;;  %v2886_v60 = vadd.f32 %v639_v32, %v2631_v20  ;;  %v2893_v40 = vadd.f32 %v2829_v1, %v2631_v20 }
 0x126   : > { %v2246_v18 = vpop.eup %2245  ;;  %2265 = vrcp.f32 %v993_v41  ;;  %v2865_v31 = vpop.f32.mrb[14].mxu0  ;;  %2122 = vst [vmem:[%s2764_s11 + $0x68] sm:$0xff] %v2098_v29  }
 0x127   : > { %v2867_v30 = vpop.f32.mrb[14].mxu1  ;;  %v2248_v21 = vpop.eup %2247  ;;  %2267 = vrcp.f32 %v1009_v45  ;;  %v991_v33 = vadd.f32 1.0, %v2246_v18  ;;  %v2877_v45 = vmul.f32 -1.442695, %v637_v38  ;;  %v2053_v32 = vpack.c.bf16 %v2886_v60, %v637_v38 }
 0x128   : > { %v2869_v16 = vpop.f32.mrb[15].mxu0  ;;  %v2250_v6 = vpop.eup %2249  ;;  %v1007_v63 = vadd.f32 1.0, %v2248_v21  ;;  %2269 = vpow2.f32 %v1970_v39  ;;  %v2882_v39 = vmul.f32 -1.442695, %v2857_v12 }
 0x129   : > { %v2874_v49 = vpop.f32.mrb[15].mxu1  ;;  %v2252_v41 = vpop.eup %2251  ;;  %v1577_v28 = vmul.f32 %v2250_v6, %v2633_v27  ;;  %2271 = vrcp.f32 %v991_v33  ;;  %2113 = vst [vmem:[%s2764_s11 + $0x20] sm:$0xff] %v2053_v32  }
 0x12a   : > { %v2254_v18 = vpop.eup %2253  ;;  %v1593_v2 = vmul.f32 %v2252_v41, %v2633_v27  ;;  %2273 = vrcp.f32 %v1007_v63 }
 0x12b   : > { %v2256_v21 = vpop.eup %2255  ;;  %v1613_v34 = vadd.f32 %v2643_v55, %v1577_v28  ;;  %v1575_v33 = vmul.f32 %v2254_v18, %v2633_v27  ;;  %2275 = vpow2.f32 %v1986_v62 }
 0x12c   : > { %v2258_v63 = vpop.eup %2257  ;;  %v1629_v23 = vadd.f32 %v2643_v55, %v1593_v2  ;;  %v1591_v5 = vmul.f32 %v2256_v21, %v2633_v27  ;;  %2277 = vpow2.f32 %v1968_v48 }
 0x12d   : > { %v2260_v25 = vpop.eup %2259  ;;  %v1645_v28 = vmul.f32 %v2250_v6, %v1613_v34  ;;  %v1611_v0 = vadd.f32 %v2643_v55, %v1575_v33  ;;  %v1578_v62 = vmul.f32 %v2258_v63, %v2633_v27  ;;  %2279 = vpow2.f32 %v1984_v35 }
 0x12e   : > { %v2262_v29 = vpop.eup %2261  ;;  %v1661_v1 = vmul.f32 %v2252_v41, %v1629_v23  ;;  %v1627_v2 = vadd.f32 %v2643_v55, %v1591_v5  ;;  %v1594_v48 = vmul.f32 %v2260_v25, %v2633_v27  ;;  %2281 = vpow2.f32 %v1973_v8 }
 0x12f   : > { %v2264_v34 = vpop.eup %2263  ;;  %v1677_v38 = vadd.f32 %v1645_v28, %v2743_v13  ;;  %v1643_v6 = vmul.f32 %v2254_v18, %v1611_v0  ;;  %v1614_v35 = vadd.f32 %v2643_v55, %v1578_v62  ;;  %v1576_v33 = vmul.f32 %v2262_v29, %v2633_v27 }
 0x130   : > { %v2266_v24 = vpop.eup %2265  ;;  %v1693_v37 = vadd.f32 %v1661_v1, %v2832_v10  ;;  %v1659_v23 = vmul.f32 %v2256_v21, %v1627_v2  ;;  %v1630_v41 = vadd.f32 %v2643_v55, %v1594_v48  ;;  %v1592_v5 = vmul.f32 %v2264_v34, %v2633_v27 }
 0x131   : > { %v2268_v8 = vpop.eup %2267  ;;  %1709 = vst [vmem:[%s2904_s12 + $0x10] sm:$0xff] %v1677_v38  ;;  %v1675_v32 = vadd.f32 %v1643_v6, %v2736_v52  ;;  %v1646_v13 = vmul.f32 %v2258_v63, %v1614_v35  ;;  %v1612_v0 = vadd.f32 %v2643_v55, %v1576_v33  ;;  %v1581_v18 = vmul.f32 %v2266_v24, %v2633_v27 }
 0x132   : > { %v2270_v28 = vpop.eup %2269  ;;  %1725 = vst [vmem:[%s2904_s12 + $0x90] sm:$0xff] %v1693_v37  ;;  %v1691_v10 = vadd.f32 %v1659_v23, %v2823_v19  ;;  %v1662_v21 = vmul.f32 %v2260_v25, %v1630_v41  ;;  %v1628_v62 = vadd.f32 %v2643_v55, %v1592_v5  ;;  %v1597_v1 = vmul.f32 %v2268_v8, %v2633_v27 }
 0x133   : > { %v2272_v2 = vpop.eup %2271  ;;  %1707 = vst [vmem:[%s2904_s12] sm:$0xff] %v1675_v32  ;;  %v1678_v52 = vadd.f32 %v1646_v13, %v2741_v54  ;;  %v1644_v63 = vmul.f32 %v2262_v29, %v1612_v0  ;;  %v1617_v48 = vadd.f32 %v2643_v55, %v1581_v18  ;;  %v994_v38 = vadd.f32 1.0, %v2270_v28 }
 0x134   : > { %v2274_v6 = vpop.eup %2273  ;;  %1723 = vst [vmem:[%s2904_s12 + $0x80] sm:$0xff] %v1691_v10  ;;  %v1694_v37 = vadd.f32 %v1662_v21, %v2826_v56  ;;  %v1660_v19 = vmul.f32 %v2264_v34, %v1628_v62  ;;  %v1633_v25 = vadd.f32 %v2643_v55, %v1597_v1  ;;  %v1579_v35 = vmul.f32 %v2272_v2, %v2633_v27 }
 0x135   : > { %v2276_v33 = vpop.eup %2275  ;;  %1710 = vst [vmem:[%s2904_s12 + $0x18] sm:$0xff] %v1678_v52  ;;  %v1676_v23 = vadd.f32 %v1644_v63, %v2734_v51  ;;  %v1649_v54 = vmul.f32 %v2266_v24, %v1617_v48  ;;  %v1595_v29 = vmul.f32 %v2274_v6, %v2633_v27  ;;  %2283 = vrcp.f32 %v994_v38  ;;  %v2981_v63 = vpop.permute.xlu0 %1465 }
 0x136   : > { %v2278_v41 = vpop.eup %2277  ;;  %1726 = vst [vmem:[%s2904_s12 + $0x98] sm:$0xff] %v1694_v37  ;;  %v1692_v5 = vadd.f32 %v1660_v19, %v2820_v14  ;;  %v1665_v56 = vmul.f32 %v2268_v8, %v1633_v25  ;;  %v1615_v34 = vadd.f32 %v2643_v55, %v1579_v35  ;;  %v1010_v32 = vadd.f32 1.0, %v2276_v33 }
 0x137   : > { %v2280_v13 = vpop.eup %2279  ;;  %1708 = vst [vmem:[%s2904_s12 + $0x8] sm:$0xff] %v1676_v23  ;;  %v1681_v0 = vadd.f32 %v1649_v54, %v2777_v53  ;;  %v1631_v24 = vadd.f32 %v2643_v55, %v1595_v29  ;;  %v992_v51 = vadd.f32 1.0, %v2278_v41  ;;  %2285 = vpow2.f32 %v2871_v22 }
 0x138   : > { %v2282_v18 = vpop.eup %2281  ;;  %1724 = vst [vmem:[%s2904_s12 + $0x88] sm:$0xff] %v1692_v5  ;;  %v1697_v28 = vadd.f32 %v1665_v56, %v2842_v7  ;;  %v1647_v14 = vmul.f32 %v2272_v2, %v1615_v34  ;;  %2287 = vrcp.f32 %v1010_v32  ;;  %v1008_v8 = vadd.f32 1.0, %v2280_v13 }
 0x139   : > { %1713 = vst [vmem:[%s2904_s12 + $0x30] sm:$0xff] %v1681_v0  ;;  %v1663_v10 = vmul.f32 %v2274_v6, %v1631_v24  ;;  %2289 = vrcp.f32 %v992_v51  ;;  %v997_v21 = vadd.f32 1.0, %v2282_v18  ;;  %v1974_v53 = vmul.f32 -1.442695, %v2860_v3  ;;  %v1476_v13 = vpop.permute.xlu0 %1475 }
 0x13a   : > { %1729 = vst [vmem:[%s2904_s12 + $0xb0] sm:$0xff] %v1697_v28  ;;  %v1679_v62 = vadd.f32 %v1647_v14, %v2768_v61  ;;  %2291 = vrcp.f32 %v1008_v8  ;;  %v2093_v22 = vpack.c.bf16 %v2893_v40, %v2857_v12  ;;  %v661_v7 = vadd.f32 %v2847_v43, %v2631_v20 }
 0x13b   : > { %v1695_v1 = vadd.f32 %v1663_v10, %v2839_v36  ;;  %2293 = vrcp.f32 %v997_v21  ;;  %v1990_v2 = vmul.f32 -1.442695, %v2863_v17  ;;  %v725_v52 = vadd.f32 %v2849_v58, %v2631_v20  ;;  %v1461_v17 = vpop.permute.xlu1 %1460 }
 0x13c   : > { %1711 = vst [vmem:[%s2904_s12 + $0x20] sm:$0xff] %v1679_v62  ;;  %2295 = vpow2.f32 %v2877_v45  ;;  %v1972_v61 = vmul.f32 -1.442695, %v2886_v60  ;;  %2121 = vst [vmem:[%s2764_s11 + $0x60] sm:$0xff] %v2093_v22   ;;  %v1988_v3 = vmul.f32 -1.442695, %v2893_v40  ;;  %v664_v12 = vadd.f32 %v2865_v31, %v2631_v20 }
 0x13d   : > { %1727 = vst [vmem:[%s2904_s12 + $0xa0] sm:$0xff] %v1695_v1  ;;  %2297 = vpow2.f32 %v2882_v39  ;;  %v653_v36 = vadd.f32 %v2852_v50, %v2631_v20  ;;  %v728_v43 = vadd.f32 %v2867_v30, %v2631_v20  ;;  %v2969_v58 = vadd.f32 %v2869_v16, %v2631_v20 }
 0x13e   : > { %2299 = vpow2.f32 %v1974_v53  ;;  %v1977_v45 = vmul.f32 -1.442695, %v661_v7  ;;  %v717_v31 = vadd.f32 %v2854_v15, %v2631_v20  ;;  %v2068_v60 = vpack.c.bf16 %v664_v12, %v661_v7 }
 0x13f   : > { %v2284_v39 = vpop.eup %2283  ;;  %v2975_v50 = vadd.f32 %v2796_v4, %v2669_v26  ;;  %2301 = vpow2.f32 %v1990_v2  ;;  %v1993_v30 = vmul.f32 -1.442695, %v725_v52  ;;  %v2108_v40 = vpack.c.bf16 %v728_v43, %v725_v52  ;;  %v1471_v62 = vpop.permute.xlu1 %1470 }
 0x140   : > { %v2979_v16 = vadd.f32 %v2835_v46, %v2697_v42  ;;  %v1582_v48 = vmul.f32 %v2284_v39, %v2633_v27  ;;  %2303 = vpow2.f32 %v1972_v61  ;;  %2116 = vst [vmem:[%s2764_s11 + $0x38] sm:$0xff] %v2068_v60   ;;  %v2063_v15 = vpack.c.bf16 %v2969_v58, %v653_v36 }
 0x141   : > { %v2286_v38 = vpop.eup %2285  ;;  %v1530_v26 = vmul.f32 %v2618_v9, %v1461_v17  ;;  %2305 = vpow2.f32 %v1988_v3  ;;  %v1975_v4 = vmul.f32 -1.442695, %v653_v36  ;;  %2124 = vst [vmem:[%s2764_s11 + $0x78] sm:$0xff] %v2108_v40   ;;  %v2990_v6 = vadd.f32 %v2874_v49, %v2631_v20 }
 0x142   : > { %v2288_v42 = vpop.eup %2287  ;;  %v1618_v46 = vadd.f32 %v2643_v55, %v1582_v48  ;;  %v1013_v37 = vadd.f32 1.0, %v2286_v38  ;;  %2307 = vpow2.f32 %v1977_v45  ;;  %v1991_v19 = vmul.f32 -1.442695, %v717_v31  ;;  %2115 = vst [vmem:[%s2764_s11 + $0x30] sm:$0xff] %v2063_v15   ;;  %v3158_v48 = vld [vmem:[#allocation22_spill] sm:$0xff] }
 0x143   : > { %v2290_v25 = vpop.eup %2289  ;;  %v1598_v35 = vmul.f32 %v2288_v42, %v2633_v27  ;;  %2309 = vpow2.f32 %v1993_v30  ;;  %v1978_v33 = vmul.f32 -1.442695, %v664_v12  ;;  %v2103_v23 = vpack.c.bf16 %v2990_v6, %v717_v31  ;;  %v3156_v31 = vld [vmem:[#allocation5_spill] sm:$0xff] }
 0x144   : > { %v2292_v54 = vpop.eup %2291  ;;  %v1650_v29 = vmul.f32 %v2284_v39, %v1618_v46  ;;  %v1580_v20 = vmul.f32 %v2290_v25, %v2633_v27  ;;  %2311 = vrcp.f32 %v1013_v37  ;;  %v1994_v49 = vmul.f32 -1.442695, %v728_v43  ;;  %v3161_v46 = vld [vmem:[#allocation12_spill] sm:$0xff] }
 0x145   : > { %v2294_v41 = vpop.eup %2293  ;;  %v1562_v5 = vadd.f32 %v1530_v26, %v2706_v44  ;;  %v1634_v56 = vadd.f32 %v2643_v55, %v1598_v35  ;;  %v1596_v34 = vmul.f32 %v2292_v54, %v2633_v27  ;;  %2313 = vpow2.f32 %v1975_v4  ;;  %2123 = vst [vmem:[%s2764_s11 + $0x70] sm:$0xff] %v2103_v23   ;;  %v3160_v4 = vld [vmem:[#allocation23_spill] sm:$0xff]  ;;  %v3162_v37 = vld [vmem:[#allocation24_spill] sm:$0xff]  ;;  %v3163_v35 = vld [vmem:[#allocation13_spill] sm:$0xff]  ;;  %v1481_v23 = vpop.permute.xlu1 %1480 }
 0x146   : > { %v2296_v32 = vpop.eup %2295  ;;  %v1682_v0 = vadd.f32 %v1650_v29, %v2771_v47  ;;  %v1616_v24 = vadd.f32 %v2643_v55, %v1580_v20  ;;  %v1585_v51 = vmul.f32 %v2294_v41, %v2633_v27  ;;  %2315 = vpow2.f32 %v1991_v19  ;;  %v3164_v20 = vld [vmem:[#allocation9_spill] sm:$0xff] }
 0x147   : > { %v2298_v18 = vpop.eup %2297  ;;  %v1666_v28 = vmul.f32 %v2288_v42, %v1634_v56  ;;  %v1632_v44 = vadd.f32 %v2643_v55, %v1596_v34  ;;  %v995_v14 = vadd.f32 1.0, %v2296_v32  ;;  %2317 = vpow2.f32 %v1978_v33 }
 0x148   : > { %v2300_v8 = vpop.eup %2299  ;;  %1714 = vst [vmem:[%s2904_s12 + $0x38] sm:$0xff] %v1682_v0  ;;  %v1648_v10 = vmul.f32 %v2290_v25, %v1616_v24  ;;  %v1621_v21 = vadd.f32 %v2643_v55, %v1585_v51  ;;  %v1011_v53 = vadd.f32 1.0, %v2298_v18  ;;  %2319 = vpow2.f32 %v1994_v49 }
 0x149   : > { %v2302_v47 = vpop.eup %2301  ;;  %v1698_v22 = vadd.f32 %v1666_v28, %v1562_v5  ;;  %v1664_v7 = vmul.f32 %v2292_v54, %v1632_v44  ;;  %2321 = vrcp.f32 %v995_v14  ;;  %v998_v1 = vadd.f32 1.0, %v2300_v8  ;;  %v3165_v14 = vld [vmem:[#allocation20_spill] sm:$0xff] }
 0x14a   : > { %v2304_v2 = vpop.eup %2303  ;;  %v1680_v52 = vadd.f32 %v1648_v10, %v2755_v57  ;;  %v1653_v61 = vmul.f32 %v2294_v41, %v1621_v21  ;;  %2323 = vrcp.f32 %v1011_v53  ;;  %v1014_v3 = vadd.f32 1.0, %v2302_v47  ;;  %v3017_v57 = vpop.permute.xlu0 %1485 }
 0x14b   : > { %v2306_v12 = vpop.eup %2305  ;;  %v1519_v36 = vmul.f32 %v2618_v9, %v2620_v11  ;;  %1730 = vst [vmem:[%s2904_s12 + $0xb8] sm:$0xff] %v1698_v22  ;;  %v1696_v43 = vadd.f32 %v1664_v7, %v2979_v16  ;;  %2325 = vrcp.f32 %v998_v1  ;;  %v996_v17 = vadd.f32 1.0, %v2304_v2  ;;  %v3157_v11 = vld [vmem:[#allocation10_spill] sm:$0xff] }
 0x14c   : > { %v2308_v45 = vpop.eup %2307  ;;  %v3014_v60 = vmul.f32 %v3156_v31, %v2602_v59  ;;  %1712 = vst [vmem:[%s2904_s12 + $0x28] sm:$0xff] %v1680_v52  ;;  %v1685_v39 = vadd.f32 %v1653_v61, %v2975_v50  ;;  %2327 = vrcp.f32 %v1014_v3  ;;  %v1012_v30 = vadd.f32 1.0, %v2306_v12  ;;  %v3159_v59 = vld [vmem:[#allocation11_spill] sm:$0xff]  ;;  %v3168_v3 = vld [vmem:[#allocation17_spill] sm:$0xff] }
 0x14d   : > { %v2310_v40 = vpop.eup %2309  ;;  %v3022_v15 = vadd.f32 %v3158_v48, %v3157_v11  ;;  %1728 = vst [vmem:[%s2904_s12 + $0xa8] sm:$0xff] %v1696_v43  ;;  %2329 = vrcp.f32 %v996_v17  ;;  %v1001_v16 = vadd.f32 1.0, %v2308_v45  ;;  %v1976_v38 = vmul.f32 -1.442695, %v2969_v58  ;;  %v3169_v45 = vld [vmem:[#allocation18_spill] sm:$0xff]  ;;  %v3064_v11 = vpop.permute.xlu1 %1490 }
 0x14e   : > { %v2312_v26 = vpop.eup %2311  ;;  %v3028_v42 = vadd.f32 %v3160_v4, %v3159_v59  ;;  %v3032_v50 = vadd.f32 %v3162_v37, %v3161_v46  ;;  %1717 = vst [vmem:[%s2904_s12 + $0x50] sm:$0xff] %v1685_v39  ;;  %2331 = vrcp.f32 %v1012_v30  ;;  %v1017_v19 = vadd.f32 1.0, %v2310_v40  ;;  %v1496_v51 = vpop.permute.xlu0 %1495  ;;  %v3170_v30 = vld [vmem:[#allocation19_spill] sm:$0xff] }
 0x14f   : > { %v2314_v25 = vpop.eup %2313  ;;  %v3036_v33 = vadd.f32 %v1519_v36, %v3163_v35  ;;  %v1533_v54 = vmul.f32 %v2618_v9, %v1476_v13  ;;  %v1601_v58 = vmul.f32 %v2312_v26, %v2633_v27  ;;  %2333 = vrcp.f32 %v1001_v16 }
 0x150   : > { %v2316_v29 = vpop.eup %2315  ;;  %v1521_v49 = vmul.f32 %v2618_v9, %v3164_v20  ;;  %v1532_v41 = vmul.f32 %v2618_v9, %v1471_v62  ;;  %2335 = vrcp.f32 %v1017_v19  ;;  %v999_v5 = vadd.f32 1.0, %v2314_v25  ;;  %v3167_v62 = vld [vmem:[#allocation15_spill] sm:$0xff] }
 0x151   : > { %v2318_v56 = vpop.eup %2317  ;;  %v1531_v34 = vmul.f32 %v2618_v9, %v2981_v63  ;;  %v1637_v32 = vadd.f32 %v2643_v55, %v1601_v58  ;;  %v1015_v0 = vadd.f32 1.0, %v2316_v29  ;;  %2337 = vpow2.f32 %v1976_v38  ;;  %v3166_v63 = vld [vmem:[#allocation16_spill] sm:$0xff] }
 0x152   : > { %v2320_v13 = vpop.eup %2319  ;;  %v1534_v24 = vmul.f32 %v2618_v9, %v1481_v23  ;;  %2339 = vrcp.f32 %v999_v5  ;;  %v1002_v18 = vadd.f32 1.0, %v2318_v56  ;;  %v1992_v28 = vmul.f32 -1.442695, %v2990_v6 }
 0x153   : > { %v2322_v44 = vpop.eup %2321  ;;  %v1565_v8 = vadd.f32 %v1533_v54, %v3165_v14  ;;  %v1669_v10 = vmul.f32 %v2312_v26, %v1637_v32  ;;  %2341 = vrcp.f32 %v1015_v0  ;;  %v1018_v21 = vadd.f32 1.0, %v2320_v13 }
 0x154   : > { %v2324_v53 = vpop.eup %2323  ;;  %v3051_v47 = vmul.f32 %v2618_v9, %v3166_v63  ;;  %v3054_v22 = vadd.f32 %v1521_v49, %v3167_v62  ;;  %v1583_v7 = vmul.f32 %v2322_v44, %v2633_v27  ;;  %2343 = vrcp.f32 %v1002_v18 }
 0x155   : > { %v2326_v1 = vpop.eup %2325  ;;  %v1701_v6 = vadd.f32 %v1669_v10, %v1565_v8  ;;  %v1537_v2 = vmul.f32 %v2618_v9, %v1496_v51  ;;  %v1599_v52 = vmul.f32 %v2324_v53, %v2633_v27  ;;  %2345 = vrcp.f32 %v1018_v21  ;;  %v1501_v51 = vpop.permute.xlu1 %1500 }
 0x156   : > { %v2328_v61 = vpop.eup %2327  ;;  %v1564_v12 = vadd.f32 %v1532_v41, %v3168_v3  ;;  %v1619_v36 = vadd.f32 %v2643_v55, %v1583_v7  ;;  %v1586_v43 = vmul.f32 %v2326_v1, %v2633_v27  ;;  %2347 = vpow2.f32 %v1992_v28 }
 0x157   : > { %v2330_v17 = vpop.eup %2329  ;;  %v1563_v39 = vadd.f32 %v1531_v34, %v3169_v45  ;;  %v1566_v40 = vadd.f32 %v1534_v24, %v3170_v30  ;;  %1733 = vst [vmem:[%s2904_s12 + $0xd0] sm:$0xff] %v1701_v6  ;;  %v1635_v48 = vadd.f32 %v2643_v55, %v1599_v52  ;;  %v1602_v16 = vmul.f32 %v2328_v61, %v2633_v27 }
 0x158   : > { %v2332_v38 = vpop.eup %2331  ;;  %v1535_v26 = vmul.f32 %v2618_v9, %v3017_v57  ;;  %v1651_v59 = vmul.f32 %v2322_v44, %v1619_v36  ;;  %v1622_v4 = vadd.f32 %v2643_v55, %v1586_v43  ;;  %v1584_v46 = vmul.f32 %v2330_v17, %v2633_v27 }
 0x159   : > { %v2334_v37 = vpop.eup %2333  ;;  %v1569_v19 = vadd.f32 %v1537_v2, %v3014_v60  ;;  %v1667_v25 = vmul.f32 %v2324_v53, %v1635_v48  ;;  %v1638_v35 = vadd.f32 %v2643_v55, %v1602_v16  ;;  %v1600_v23 = vmul.f32 %v2332_v38, %v2633_v27  ;;  %v3173_v48 = vld [vmem:[#allocation14_spill] sm:$0xff] }
 0x15a   : > { %v2336_v54 = vpop.eup %2335  ;;  %v1683_v58 = vadd.f32 %v1651_v59, %v3028_v42  ;;  %v1654_v29 = vmul.f32 %v2326_v1, %v1622_v4  ;;  %v1620_v57 = vadd.f32 %v2643_v55, %v1584_v46  ;;  %v1589_v20 = vmul.f32 %v2334_v37, %v2633_v27 }
 0x15b   : > { %v2338_v49 = vpop.eup %2337  ;;  %v1699_v41 = vadd.f32 %v1667_v25, %v1563_v39  ;;  %v1670_v5 = vmul.f32 %v2328_v61, %v1638_v35  ;;  %v1636_v56 = vadd.f32 %v2643_v55, %v1600_v23  ;;  %v1605_v60 = vmul.f32 %v2336_v54, %v2633_v27  ;;  %v3172_v39 = vld [vmem:[#allocation21_spill] sm:$0xff] }
 0x15c   : > { %v2340_v34 = vpop.eup %2339  ;;  %1715 = vst [vmem:[%s2904_s12 + $0x40] sm:$0xff] %v1683_v58  ;;  %v1686_v32 = vadd.f32 %v1654_v29, %v3032_v50  ;;  %v1652_v0 = vmul.f32 %v2330_v17, %v1620_v57  ;;  %v1625_v42 = vadd.f32 %v2643_v55, %v1589_v20  ;;  %v1000_v13 = vadd.f32 1.0, %v2338_v49  ;;  %v3171_v17 = vld [vmem:[#allocation7_spill] sm:$0xff]  ;;  %v3174_v58 = vld [vmem:[#allocation8_spill] sm:$0xff]  ;;  %v3175_v20 = vld [vmem:[#allocation6_spill] sm:$0xff] }
 0x15d   : > { %v2342_v24 = vpop.eup %2341  ;;  %1731 = vst [vmem:[%s2904_s12 + $0xc0] sm:$0xff] %v1699_v41  ;;  %v1702_v18 = vadd.f32 %v1670_v5, %v1566_v40  ;;  %v1668_v28 = vmul.f32 %v2332_v38, %v1636_v56  ;;  %v1641_v44 = vadd.f32 %v2643_v55, %v1605_v60  ;;  %v1587_v14 = vmul.f32 %v2340_v34, %v2633_v27 }
 0x15e   : > { %v2344_v8 = vpop.eup %2343  ;;  %1718 = vst [vmem:[%s2904_s12 + $0x58] sm:$0xff] %v1686_v32  ;;  %v1684_v10 = vadd.f32 %v1652_v0, %v3022_v15  ;;  %v1657_v50 = vmul.f32 %v2334_v37, %v1625_v42  ;;  %v1603_v21 = vmul.f32 %v2342_v24, %v2633_v27  ;;  %2349 = vrcp.f32 %v1000_v13 }
 0x15f   : > { %v2346_v53 = vpop.eup %2345  ;;  %1734 = vst [vmem:[%s2904_s12 + $0xd8] sm:$0xff] %v1702_v18  ;;  %v1700_v63 = vadd.f32 %v1668_v28, %v1564_v12  ;;  %v1673_v62 = vmul.f32 %v2336_v54, %v1641_v44  ;;  %v1623_v7 = vadd.f32 %v2643_v55, %v1587_v14  ;;  %v1590_v1 = vmul.f32 %v2344_v8, %v2633_v27 }
 0x160   : > { %v2348_v6 = vpop.eup %2347  ;;  %v1538_v2 = vmul.f32 %v2618_v9, %v1501_v51  ;;  %1716 = vst [vmem:[%s2904_s12 + $0x48] sm:$0xff] %v1684_v10  ;;  %v1689_v15 = vadd.f32 %v1657_v50, %v3054_v22  ;;  %v1639_v52 = vadd.f32 %v2643_v55, %v1603_v21  ;;  %v1606_v61 = vmul.f32 %v2346_v53, %v2633_v27 }
 0x161   : > { %1732 = vst [vmem:[%s2904_s12 + $0xc8] sm:$0xff] %v1700_v63  ;;  %v1705_v3 = vadd.f32 %v1673_v62, %v1569_v19  ;;  %v1655_v12 = vmul.f32 %v2340_v34, %v1623_v7  ;;  %v1626_v36 = vadd.f32 %v2643_v55, %v1590_v1  ;;  %v1016_v43 = vadd.f32 1.0, %v2348_v6 }
 0x162   : > { %v1310_v45 = vmul.f32 %v3156_v31, %v3171_v17  ;;  %v1567_v30 = vadd.f32 %v1535_v26, %v3172_v39  ;;  %1721 = vst [vmem:[%s2904_s12 + $0x70] sm:$0xff] %v1689_v15  ;;  %v1671_v22 = vmul.f32 %v2342_v24, %v1639_v52  ;;  %v1642_v40 = vadd.f32 %v2643_v55, %v1606_v61 }
 0x163   : > { %v1554_v16 = vadd.f32 %v3051_v47, %v3173_v48  ;;  %1737 = vst [vmem:[%s2904_s12 + $0xf0] sm:$0xff] %v1705_v3  ;;  %v1687_v38 = vadd.f32 %v1655_v12, %v3036_v33  ;;  %v1658_v59 = vmul.f32 %v2344_v8, %v1626_v36  ;;  %2351 = vrcp.f32 %v1016_v43 }
 0x164   : > { %v1570_v4 = vadd.f32 %v1538_v2, %v1310_v45  ;;  %v1703_v46 = vadd.f32 %v1671_v22, %v1567_v30  ;;  %v1674_v37 = vmul.f32 %v2346_v53, %v1642_v40  ;;  %v1536_v23 = vmul.f32 %v2618_v9, %v3064_v11 }
 0x165   : > { %1719 = vst [vmem:[%s2904_s12 + $0x60] sm:$0xff] %v1687_v38  ;;  %v1690_v31 = vadd.f32 %v1658_v59, %v1554_v16 }
 0x166   : > { %1735 = vst [vmem:[%s2904_s12 + $0xe0] sm:$0xff] %v1703_v46  ;;  %v1706_v26 = vadd.f32 %v1674_v37, %v1570_v4  ;;  %v1568_v49 = vadd.f32 %v1536_v23, %v3175_v20 }
 0x167   : > { %1722 = vst [vmem:[%s2904_s12 + $0x78] sm:$0xff] %v1690_v31 }
 0x168   : > { %v2350_v19 = vpop.eup %2349  ;;  %1738 = vst [vmem:[%s2904_s12 + $0xf8] sm:$0xff] %v1706_v26 }
 0x169   : > { %v1588_v25 = vmul.f32 %v2350_v19, %v2633_v27 }
 0x16b   : > { %v1624_v47 = vadd.f32 %v2643_v55, %v1588_v25 }
 0x16d   : > { %v2352_v35 = vpop.eup %2351  ;;  %v1656_v33 = vmul.f32 %v2350_v19, %v1624_v47 }
 0x16e   : > { %v1604_v54 = vmul.f32 %v2352_v35, %v2633_v27 }
 0x16f   : > { %v1688_v29 = vadd.f32 %v1656_v33, %v3174_v58 }
 0x170   : > { %v1640_v57 = vadd.f32 %v2643_v55, %v1604_v54 }
 0x171   : > { %1720 = vst [vmem:[%s2904_s12 + $0x68] sm:$0xff] %v1688_v29 }
 0x172   : > { %v1672_v41 = vmul.f32 %v2352_v35, %v1640_v57 }
 0x174   : > { %v1704_v5 = vadd.f32 %v1672_v41, %v1568_v49 }
 0x176   : > { %1736 = vst [vmem:[%s2904_s12 + $0xe8] sm:$0xff] %v1704_v5 }
 0x177 PF: > { %s24_s29 = sadd.s32 1, %s2373_s29  }
 0x178   : > { %p21_p11 = scmp.ge.s32.totalorder %s24_s29, 6  }
 0x17a   :  { %23 = sbr.rel (!%p21_p11) target bundleno = 16 (0x10), region = 94 }

</bundles_post_ra>
